<compile_context>
chip_gen: v5e
topology: v5e:2x2
jax: 0.10.0
libtpu: 0.0.40
codegen_flags: <defaults>
</compile_context>

<pallas_src>
import functools

import jax
import jax.numpy as jnp
from jax import lax
from jax.experimental import pallas as pl
from jax.experimental.pallas import tpu as pltpu

BN_EPS = 1e-5
VMEM_LIMIT = 32 * 1024 * 1024   # comfortably inside scoped VMEM on v5e/v6e/v7x
LPAD = 8                        # sublane-aligned column where the image starts in the padded scratch


def _gelu_tanh(x):
    # tanh-approx GELU: routes through the otherwise-idle EUP.
    # TODO(synk): torch nn.GELU() default is erf-exact; swap in lax.erf here if bit-faithful
    #             activation is required (difference is ~1e-3 pre-fc2, well inside tolerance).
    c = 0.7978845608028654  # sqrt(2/pi)
    return 0.5 * x * (1.0 + jnp.tanh(c * (x + 0.044715 * (x * x * x))))


def _gelu_erf(x):
    # exact GELU, used only by the pure-JAX reference
    return 0.5 * x * (1.0 + lax.erf(x * 0.7071067811865476))


# ---------------------------------------------------------------------------
# Kernel 1: depthwise 7x7 conv (halo built in VMEM) + per-batch BN partials.
# ---------------------------------------------------------------------------
def dwconv7x7_stats_kernel(x_ref, w_ref, cv_ref, stats_ref, xp_ref, *, slab):
    _, H, W, C = x_ref.shape
    Wp = LPAD + W + 3

    # Padded image in VMEM.  Interior store is sublane-aligned (column LPAD);
    # only the 3-wide zero borders are rewritten each step (the interior is
    # fully overwritten, and a "first step" guard is not megacore-safe).
    xp_ref[0:3, :, :] = jnp.zeros((3, Wp, C), jnp.float32)
    xp_ref[H + 3:H + 6, :, :] = jnp.zeros((3, Wp, C), jnp.float32)
    xp_ref[3:H + 3, LPAD - 3:LPAD, :] = jnp.zeros((H, 3, C), jnp.float32)
    xp_ref[3:H + 3, LPAD + W:LPAD + W + 3, :] = jnp.zeros((H, 3, C), jnp.float32)
    xp_ref[3:H + 3, LPAD:LPAD + W, :] = x_ref[0]

    n_slabs = H // slab

    def slab_body(r, carry):
        s, sq = carry
        base = pl.multiple_of(r * slab, slab)
        acc = jnp.zeros((slab, W, C), jnp.float32)
        # Column shift hoisted out of the row-tap loop: one realigned load per
        # kj, re-used by all 7 ki taps (leading-dim views of `col` are free).
        for kj in range(7):
            col = xp_ref[pl.ds(base, slab + 6),
                         LPAD - 3 + kj:LPAD - 3 + kj + W, :]        # (slab+6, W, C)
            for ki in range(7):
                acc = acc + col[ki:ki + slab] * w_ref[ki, kj, :]
        cv_ref[0, pl.ds(base, slab), :, :] = acc.astype(cv_ref.dtype)
        a2 = acc.reshape(slab * W, C)
        s = s + jnp.sum(a2, axis=0, keepdims=True)
        sq = sq + jnp.sum(a2 * a2, axis=0, keepdims=True)
        return s, sq

    zero = jnp.zeros((1, C), jnp.float32)
    s, sq = lax.fori_loop(0, n_slabs, slab_body, (zero, zero))
    stats_ref[0, :, :] = jnp.concatenate([s, sq], axis=0)          # single (2, C) store


def dwconv7x7_stats(x_img, w_dw):
    B, H, W, C = x_img.shape
    cg = 128 if C % 128 == 0 else C                                # channel-group grid axis when C > 128
    slab = 4 if H % 4 == 0 else (2 if H % 2 == 0 else 1)           # small accumulator slab
    kernel = functools.partial(dwconv7x7_stats_kernel, slab=slab)
    return pl.pallas_call(
        kernel,
        out_shape=(
            jax.ShapeDtypeStruct((B, H, W, C), jnp.bfloat16),      # conv output in bf16
            jax.ShapeDtypeStruct((B, 2, C), jnp.float32),          # per-batch BN partials (sum, sumsq)
        ),
        grid=(B, C // cg),
        in_specs=[
            pl.BlockSpec((1, H, W, cg), lambda b, c: (b, 0, 0, c)),
            pl.BlockSpec((7, 7, cg), lambda b, c: (0, 0, c)),
        ],
        out_specs=(
            pl.BlockSpec((1, H, W, cg), lambda b, c: (b, 0, 0, c)),
            pl.BlockSpec((1, 2, cg), lambda b, c: (b, 0, c)),
        ),
        scratch_shapes=[pltpu.VMEM((H + 6, LPAD + W + 3, cg), jnp.float32)],
        compiler_params=pltpu.CompilerParams(
            dimension_semantics=("parallel", "parallel"),
            vmem_limit_bytes=VMEM_LIMIT,
        ),
    )(x_img, w_dw)


# ---------------------------------------------------------------------------
# Kernel 2: (BN folded into fc1) -> fc1 -> GELU -> fc2, bf16 MXU, (B, C, N) out.
# ---------------------------------------------------------------------------
def ffn_kernel(cv_ref, w1_ref, b1_ref, w2ct_ref, b2c_ref, out_ref, h1_ref,
               *, rchunk, hchunk):
    _, tile_n, _ = cv_ref.shape
    Hd = w1_ref.shape[1]
    for r0 in range(0, tile_n, rchunk):
        rc = min(rchunk, tile_n - r0)
        cvr = cv_ref[0, r0:r0 + rc, :]                             # (rc, C) bf16
        # fc1 + GELU, chunked over hidden columns -> bf16 scratch
        for h0 in range(0, Hd, hchunk):
            hc = min(hchunk, Hd - h0)
            t = jnp.dot(cvr, w1_ref[:, h0:h0 + hc],
                        preferred_element_type=jnp.float32)
            t = t + b1_ref[0, h0:h0 + hc]
            h1_ref[0:rc, h0:h0 + hc] = _gelu_tanh(t).astype(jnp.bfloat16)
        # fc2 emitted directly transposed: (C, Hd) x (rc, Hd) -> (C, rc)
        o = lax.dot_general(
            w2ct_ref[...], h1_ref[0:rc, :],
            dimension_numbers=(((1,), (1,)), ((), ())),
            preferred_element_type=jnp.float32)
        out_ref[0, :, r0:r0 + rc] = o + b2c_ref[...]


def _pick_tile(n, target):
    divisors = [t for t in range(1, n + 1) if n % t == 0 and t <= target]
    for mult in (128, 8, 1):
        cands = [t for t in divisors if t % mult == 0]
        if cands:
            return max(cands)
    return n


def ffn_block(cv_seq, w1, b1, w2ct, b2c, tile_target=512):
    B, N, C = cv_seq.shape
    Hd = w1.shape[1]
    tile_n = _pick_tile(N, tile_target)
    rchunk = min(256, tile_n)
    hchunk = min(128, Hd)
    kernel = functools.partial(ffn_kernel, rchunk=rchunk, hchunk=hchunk)
    return pl.pallas_call(
        kernel,
        out_shape=jax.ShapeDtypeStruct((B, C, N), jnp.float32),
        grid=(B, N // tile_n),
        in_specs=[
            pl.BlockSpec((1, tile_n, C), lambda b, n: (b, n, 0)),
            pl.BlockSpec((C, Hd), lambda b, n: (0, 0)),
            pl.BlockSpec((1, Hd), lambda b, n: (0, 0)),
            pl.BlockSpec((C, Hd), lambda b, n: (0, 0)),
            pl.BlockSpec((C, 1), lambda b, n: (0, 0)),
        ],
        out_specs=pl.BlockSpec((1, C, tile_n), lambda b, n: (b, 0, n)),
        scratch_shapes=[pltpu.VMEM((rchunk, Hd), jnp.bfloat16)],
        compiler_params=pltpu.CompilerParams(
            dimension_semantics=("parallel", "parallel"),
            vmem_limit_bytes=VMEM_LIMIT,
        ),
    )(cv_seq, w1, b1, w2ct, b2c)


# ---------------------------------------------------------------------------
# Full ConvFFN forward (NCHW in / NCHW out)
# ---------------------------------------------------------------------------
def conv_ffn(x_nchw, p):
    B, C, H, W = x_nchw.shape
    N = H * W
    x_img = jnp.transpose(x_nchw, (0, 2, 3, 1))                    # NCHW -> NHWC (one XLA pass)

    cv, stats = dwconv7x7_stats(x_img, p["w_dw"])                  # bf16 conv out + BN partials

    cnt = float(B * H * W)
    total = jnp.sum(stats, axis=0)                                 # (2, C)
    mean = total[0] / cnt
    # NOTE: E[x^2] - E[x]^2 in f32; fine for centered data (use Welford for
    # real data with large channel means).
    var = jnp.maximum(total[1] / cnt - mean * mean, 0.0)
    scale = p["bn_g"] * lax.rsqrt(var + BN_EPS)
    shift = p["bn_b"] - mean * scale

    # Fold the BN affine into fc1: touches only the small (C, Hd) weight, so
    # the FFN kernel feeds bf16 cv straight into the MXU.
    w1f = (scale[:, None] * p["w1"]).astype(jnp.bfloat16)          # (C, Hd)
    b1f = (p["b1"] + shift @ p["w1"]).reshape(1, -1)               # (1, Hd) f32
    w2ct = p["w2_ct"].astype(jnp.bfloat16)                         # (C, Hd)  (torch fc2.weight layout)
    b2c = p["b2"].reshape(-1, 1)                                   # (C, 1) f32

    out_cn = ffn_block(cv.reshape(B, N, C), w1f, b1f, w2ct, b2c)   # (B, C, N)
    return out_cn.reshape(B, C, H, W)                              # free metadata reshape


conv_ffn_jit = jax.jit(conv_ffn)


# ---------------------------------------------------------------------------
# Deterministic synthetic parameters (shapes per the torch __init__)
# ---------------------------------------------------------------------------
def init_params(key, dim, hidden):
    ks = jax.random.split(key, 7)
    std = 0.02
    return {
        # conv.conv: depthwise 7x7, no bias, stored as (7, 7, C)
        "w_dw": std * jax.random.normal(ks[0], (7, 7, dim), jnp.float32),
        # conv.bn: BatchNorm2d affine
        "bn_g": 1.0 + 0.1 * jax.random.normal(ks[1], (dim,), jnp.float32),
        "bn_b": 0.1 * jax.random.normal(ks[2], (dim,), jnp.float32),
        # fc1: 1x1 conv, stored as (C, Hd) = fc1.weight.T
        "w1": std * jax.random.normal(ks[3], (dim, hidden), jnp.float32),
        "b1": 0.02 * jax.random.normal(ks[4], (hidden,), jnp.float32),
        # fc2: 1x1 conv, stored as (C, Hd) = fc2.weight (already "output-major")
        "w2_ct": std * jax.random.normal(ks[5], (dim, hidden), jnp.float32),
        "b2": 0.02 * jax.random.normal(ks[6], (dim,), jnp.float32),
    }


# ---------------------------------------------------------------------------
# Pure-JAX f32 reference (same math, exact erf GELU) for correctness check
# ---------------------------------------------------------------------------
def ref_conv_ffn(x_nchw, p):
    B, C, H, W = x_nchw.shape
    w = jnp.transpose(p["w_dw"], (2, 0, 1))[:, None, :, :]         # (C, 1, 7, 7)
    cv = lax.conv_general_dilated(x_nchw, w, (1, 1), ((3, 3), (3, 3)),
                                  feature_group_count=C)
    m = cv.mean(axis=(0, 2, 3))
    v = ((cv - m[None, :, None, None]) ** 2).mean(axis=(0, 2, 3))
    h = (cv - m[None, :, None, None]) * lax.rsqrt(v + BN_EPS)[None, :, None, None]
    h = h * p["bn_g"][None, :, None, None] + p["bn_b"][None, :, None, None]
    hs = jnp.transpose(h, (0, 2, 3, 1)).reshape(B * H * W, C)
    h1 = _gelu_erf(hs @ p["w1"] + p["b1"])
    h2 = h1 @ p["w2_ct"].T + p["b2"]
    return jnp.transpose(h2.reshape(B, H, W, C), (0, 3, 1, 2))


if __name__ == "__main__":
    # C = 128 keeps every block lane-dense (last dim a multiple of 128).
    B, C, H, W = 2, 128, 16, 16
    hidden = 4 * C

    key = jax.random.PRNGKey(0)
    kx, kp = jax.random.split(key)
    x = jax.random.normal(kx, (B, C, H, W), jnp.float32)
    params = init_params(kp, C, hidden)

    out = jax.block_until_ready(conv_ffn_jit(x, params))
    ref = ref_conv_ffn(x, params)

    assert out.shape == (B, C, H, W), out.shape
    max_err = float(jnp.max(jnp.abs(out - ref)))
    rel = float(jnp.linalg.norm(out - ref) / jnp.linalg.norm(ref))
    # bf16 MXU operands / bf16 cv storage / tanh-GELU vs f32 erf reference.
    assert max_err < 1e-2 and rel < 2e-2, f"max_err={max_err} rel={rel}"
    print("KERNEL_OK")
</pallas_src>

<mosaic_0001>
module attributes {stable_mosaic.version = 11 : i64} {
  func.func @dwconv7x7_stats_kernel(%arg0: i32, %arg1: i32, %arg2: memref<1x16x16x128xf32, #tpu.memory_space<vmem>>, %arg3: memref<7x7x128xf32, #tpu.memory_space<vmem>>, %arg4: memref<1x16x16x128xbf16, #tpu.memory_space<vmem>>, %arg5: memref<1x2x128xf32, #tpu.memory_space<vmem>>, %arg6: memref<22x27x128xf32, #tpu.memory_space<vmem>>) attributes {dimension_semantics = [#tpu.dimension_semantics<parallel>, #tpu.dimension_semantics<parallel>], iteration_bounds = array<i64: 2, 1>, scalar_prefetch = 0 : i64, scratch_operands = 1 : i64, tpu.core_type = #tpu.core_type<tc>, window_params = [{transform_indices = @transform_0, window_bounds = array<i64: 1, 16, 16, 128>}, {transform_indices = @transform_1, window_bounds = array<i64: 7, 7, 128>}, {transform_indices = @transform_2, window_bounds = array<i64: 1, 16, 16, 128>}, {transform_indices = @transform_3, window_bounds = array<i64: 1, 2, 128>}]} {
    %cst = arith.constant 0.000000e+00 : f32
    %0 = vector.broadcast %cst : f32 to vector<3x27x128xf32>
    %c0 = arith.constant 0 : index
    %c0_0 = arith.constant 0 : index
    %c0_1 = arith.constant 0 : index
    %1 = vector.load %arg6[%c0, %c0_0, %c0_1] : memref<22x27x128xf32, #tpu.memory_space<vmem>>, vector<3x27x128xf32>
    tpu.vector_store %arg6[%c0, %c0_0, %c0_1], %0 {strides = array<i32>} : memref<22x27x128xf32, #tpu.memory_space<vmem>>, vector<3x27x128xf32>,
    %cst_2 = arith.constant 0.000000e+00 : f32
    %2 = vector.broadcast %cst_2 : f32 to vector<3x27x128xf32>
    %c19 = arith.constant 19 : index
    %c0_3 = arith.constant 0 : index
    %c0_4 = arith.constant 0 : index
    %3 = vector.load %arg6[%c19, %c0_3, %c0_4] : memref<22x27x128xf32, #tpu.memory_space<vmem>>, vector<3x27x128xf32>
    tpu.vector_store %arg6[%c19, %c0_3, %c0_4], %2 {strides = array<i32>} : memref<22x27x128xf32, #tpu.memory_space<vmem>>, vector<3x27x128xf32>,
    %cst_5 = arith.constant 0.000000e+00 : f32
    %4 = vector.broadcast %cst_5 : f32 to vector<16x3x128xf32>
    %c3 = arith.constant 3 : index
    %c5 = arith.constant 5 : index
    %c0_6 = arith.constant 0 : index
    %5 = vector.load %arg6[%c3, %c5, %c0_6] : memref<22x27x128xf32, #tpu.memory_space<vmem>>, vector<16x3x128xf32>
    tpu.vector_store %arg6[%c3, %c5, %c0_6], %4 {strides = array<i32>} : memref<22x27x128xf32, #tpu.memory_space<vmem>>, vector<16x3x128xf32>,
    %cst_7 = arith.constant 0.000000e+00 : f32
    %6 = vector.broadcast %cst_7 : f32 to vector<16x3x128xf32>
    %c3_8 = arith.constant 3 : index
    %c24 = arith.constant 24 : index
    %c0_9 = arith.constant 0 : index
    %7 = vector.load %arg6[%c3_8, %c24, %c0_9] : memref<22x27x128xf32, #tpu.memory_space<vmem>>, vector<16x3x128xf32>
    tpu.vector_store %arg6[%c3_8, %c24, %c0_9], %6 {strides = array<i32>} : memref<22x27x128xf32, #tpu.memory_space<vmem>>, vector<16x3x128xf32>,
    %c0_10 = arith.constant 0 : index
    %c0_11 = arith.constant 0 : index
    %c0_12 = arith.constant 0 : index
    %c0_13 = arith.constant 0 : index
    %8 = vector.load %arg2[%c0_10, %c0_11, %c0_12, %c0_13] : memref<1x16x16x128xf32, #tpu.memory_space<vmem>>, vector<1x16x16x128xf32>
    %9 = vector.shape_cast %8 : vector<1x16x16x128xf32> to vector<16x16x128xf32>
    %c3_14 = arith.constant 3 : index
    %c8 = arith.constant 8 : index
    %c0_15 = arith.constant 0 : index
    %10 = vector.load %arg6[%c3_14, %c8, %c0_15] : memref<22x27x128xf32, #tpu.memory_space<vmem>>, vector<16x16x128xf32>
    tpu.vector_store %arg6[%c3_14, %c8, %c0_15], %9 {strides = array<i32>} : memref<22x27x128xf32, #tpu.memory_space<vmem>>, vector<16x16x128xf32>,
    %cst_16 = arith.constant 0.000000e+00 : f32
    %11 = vector.broadcast %cst_16 : f32 to vector<1x128xf32>
    %c0_i32 = arith.constant 0 : i32
    %c4_i32 = arith.constant 4 : i32
    %12 = arith.addi %c0_i32, %c4_i32 : i32
    %c1_i32 = arith.constant 1 : i32
    %13:2 = scf.for %arg7 = %c0_i32 to %12 step %c1_i32 iter_args(%arg8 = %11, %arg9 = %11) -> (vector<1x128xf32>, vector<1x128xf32>)  : i32 {
      %c4_i32_21 = arith.constant 4 : i32
      %18 = arith.muli %arg7, %c4_i32_21 : i32
      %19 = tpu.assume_multiple %18, 4 : i32
      %cst_22 = arith.constant 0.000000e+00 : f32
      %20 = vector.broadcast %cst_22 : f32 to vector<4x16x128xf32>
      %21 = arith.index_cast %19 : i32 to index
      %c5_23 = arith.constant 5 : index
      %c0_24 = arith.constant 0 : index
      %22 = vector.load %arg6[%21, %c5_23, %c0_24] : memref<22x27x128xf32, #tpu.memory_space<vmem>>, vector<10x16x128xf32>
      %23 = vector.extract_strided_slice %22 {offsets = [0, 0, 0], sizes = [4, 16, 128], strides = [1, 1, 1]} : vector<10x16x128xf32> to vector<4x16x128xf32>
      %c0_25 = arith.constant 0 : index
      %c0_26 = arith.constant 0 : index
      %c0_27 = arith.constant 0 : index
      %24 = vector.load %arg3[%c0_25, %c0_26, %c0_27] : memref<7x7x128xf32, #tpu.memory_space<vmem>>, vector<1x1x128xf32>
      %25 = vector.shape_cast %24 : vector<1x1x128xf32> to vector<128xf32>
      %26 = vector.shape_cast %25 : vector<128xf32> to vector<1x1x128xf32>
      %27 = vector.broadcast %26 : vector<1x1x128xf32> to vector<4x16x128xf32>
      %28 = arith.mulf %23, %27 : vector<4x16x128xf32>
      %29 = arith.addf %20, %28 : vector<4x16x128xf32>
      %30 = vector.extract_strided_slice %22 {offsets = [1, 0, 0], sizes = [4, 16, 128], strides = [1, 1, 1]} : vector<10x16x128xf32> to vector<4x16x128xf32>
      %c1 = arith.constant 1 : index
      %c0_28 = arith.constant 0 : index
      %c0_29 = arith.constant 0 : index
      %31 = vector.load %arg3[%c1, %c0_28, %c0_29] : memref<7x7x128xf32, #tpu.memory_space<vmem>>, vector<1x1x128xf32>
      %32 = vector.shape_cast %31 : vector<1x1x128xf32> to vector<128xf32>
      %33 = vector.shape_cast %32 : vector<128xf32> to vector<1x1x128xf32>
      %34 = vector.broadcast %33 : vector<1x1x128xf32> to vector<4x16x128xf32>
      %35 = arith.mulf %30, %34 : vector<4x16x128xf32>
      %36 = arith.addf %29, %35 : vector<4x16x128xf32>
      %37 = vector.extract_strided_slice %22 {offsets = [2, 0, 0], sizes = [4, 16, 128], strides = [1, 1, 1]} : vector<10x16x128xf32> to vector<4x16x128xf32>
      %c2 = arith.constant 2 : index
      %c0_30 = arith.constant 0 : index
      %c0_31 = arith.constant 0 : index
      %38 = vector.load %arg3[%c2, %c0_30, %c0_31] : memref<7x7x128xf32, #tpu.memory_space<vmem>>, vector<1x1x128xf32>
      %39 = vector.shape_cast %38 : vector<1x1x128xf32> to vector<128xf32>
      %40 = vector.shape_cast %39 : vector<128xf32> to vector<1x1x128xf32>
      %41 = vector.broadcast %40 : vector<1x1x128xf32> to vector<4x16x128xf32>
      %42 = arith.mulf %37, %41 : vector<4x16x128xf32>
      %43 = arith.addf %36, %42 : vector<4x16x128xf32>
      %44 = vector.extract_strided_slice %22 {offsets = [3, 0, 0], sizes = [4, 16, 128], strides = [1, 1, 1]} : vector<10x16x128xf32> to vector<4x16x128xf32>
      %c3_32 = arith.constant 3 : index
      %c0_33 = arith.constant 0 : index
      %c0_34 = arith.constant 0 : index
      %45 = vector.load %arg3[%c3_32, %c0_33, %c0_34] : memref<7x7x128xf32, #tpu.memory_space<vmem>>, vector<1x1x128xf32>
      %46 = vector.shape_cast %45 : vector<1x1x128xf32> to vector<128xf32>
      %47 = vector.shape_cast %46 : vector<128xf32> to vector<1x1x128xf32>
      %48 = vector.broadcast %47 : vector<1x1x128xf32> to vector<4x16x128xf32>
      %49 = arith.mulf %44, %48 : vector<4x16x128xf32>
      %50 = arith.addf %43, %49 : vector<4x16x128xf32>
      %51 = vector.extract_strided_slice %22 {offsets = [4, 0, 0], sizes = [4, 16, 128], strides = [1, 1, 1]} : vector<10x16x128xf32> to vector<4x16x128xf32>
      %c4 = arith.constant 4 : index
      %c0_35 = arith.constant 0 : index
      %c0_36 = arith.constant 0 : index
      %52 = vector.load %arg3[%c4, %c0_35, %c0_36] : memref<7x7x128xf32, #tpu.memory_space<vmem>>, vector<1x1x128xf32>
      %53 = vector.shape_cast %52 : vector<1x1x128xf32> to vector<128xf32>
      %54 = vector.shape_cast %53 : vector<128xf32> to vector<1x1x128xf32>
      %55 = vector.broadcast %54 : vector<1x1x128xf32> to vector<4x16x128xf32>
      %56 = arith.mulf %51, %55 : vector<4x16x128xf32>
      %57 = arith.addf %50, %56 : vector<4x16x128xf32>
      %58 = vector.extract_strided_slice %22 {offsets = [5, 0, 0], sizes = [4, 16, 128], strides = [1, 1, 1]} : vector<10x16x128xf32> to vector<4x16x128xf32>
      %c5_37 = arith.constant 5 : index
      %c0_38 = arith.constant 0 : index
      %c0_39 = arith.constant 0 : index
      %59 = vector.load %arg3[%c5_37, %c0_38, %c0_39] : memref<7x7x128xf32, #tpu.memory_space<vmem>>, vector<1x1x128xf32>
      %60 = vector.shape_cast %59 : vector<1x1x128xf32> to vector<128xf32>
      %61 = vector.shape_cast %60 : vector<128xf32> to vector<1x1x128xf32>
      %62 = vector.broadcast %61 : vector<1x1x128xf32> to vector<4x16x128xf32>
      %63 = arith.mulf %58, %62 : vector<4x16x128xf32>
      %64 = arith.addf %57, %63 : vector<4x16x128xf32>
      %65 = vector.extract_strided_slice %22 {offsets = [6, 0, 0], sizes = [4, 16, 128], strides = [1, 1, 1]} : vector<10x16x128xf32> to vector<4x16x128xf32>
      %c6 = arith.constant 6 : index
      %c0_40 = arith.constant 0 : index
      %c0_41 = arith.constant 0 : index
      %66 = vector.load %arg3[%c6, %c0_40, %c0_41] : memref<7x7x128xf32, #tpu.memory_space<vmem>>, vector<1x1x128xf32>
      %67 = vector.shape_cast %66 : vector<1x1x128xf32> to vector<128xf32>
      %68 = vector.shape_cast %67 : vector<128xf32> to vector<1x1x128xf32>
      %69 = vector.broadcast %68 : vector<1x1x128xf32> to vector<4x16x128xf32>
      %70 = arith.mulf %65, %69 : vector<4x16x128xf32>
      %71 = arith.addf %64, %70 : vector<4x16x128xf32>
      %72 = arith.index_cast %19 : i32 to index
      %c6_42 = arith.constant 6 : index
      %c0_43 = arith.constant 0 : index
      %73 = vector.load %arg6[%72, %c6_42, %c0_43] : memref<22x27x128xf32, #tpu.memory_space<vmem>>, vector<10x16x128xf32>
      %74 = vector.extract_strided_slice %73 {offsets = [0, 0, 0], sizes = [4, 16, 128], strides = [1, 1, 1]} : vector<10x16x128xf32> to vector<4x16x128xf32>
      %c0_44 = arith.constant 0 : index
      %c1_45 = arith.constant 1 : index
      %c0_46 = arith.constant 0 : index
      %75 = vector.load %arg3[%c0_44, %c1_45, %c0_46] : memref<7x7x128xf32, #tpu.memory_space<vmem>>, vector<1x1x128xf32>
      %76 = vector.shape_cast %75 : vector<1x1x128xf32> to vector<128xf32>
      %77 = vector.shape_cast %76 : vector<128xf32> to vector<1x1x128xf32>
      %78 = vector.broadcast %77 : vector<1x1x128xf32> to vector<4x16x128xf32>
      %79 = arith.mulf %74, %78 : vector<4x16x128xf32>
      %80 = arith.addf %71, %79 : vector<4x16x128xf32>
      %81 = vector.extract_strided_slice %73 {offsets = [1, 0, 0], sizes = [4, 16, 128], strides = [1, 1, 1]} : vector<10x16x128xf32> to vector<4x16x128xf32>
      %c1_47 = arith.constant 1 : index
      %c1_48 = arith.constant 1 : index
      %c0_49 = arith.constant 0 : index
      %82 = vector.load %arg3[%c1_47, %c1_48, %c0_49] : memref<7x7x128xf32, #tpu.memory_space<vmem>>, vector<1x1x128xf32>
      %83 = vector.shape_cast %82 : vector<1x1x128xf32> to vector<128xf32>
      %84 = vector.shape_cast %83 : vector<128xf32> to vector<1x1x128xf32>
      %85 = vector.broadcast %84 : vector<1x1x128xf32> to vector<4x16x128xf32>
      %86 = arith.mulf %81, %85 : vector<4x16x128xf32>
      %87 = arith.addf %80, %86 : vector<4x16x128xf32>
      %88 = vector.extract_strided_slice %73 {offsets = [2, 0, 0], sizes = [4, 16, 128], strides = [1, 1, 1]} : vector<10x16x128xf32> to vector<4x16x128xf32>
      %c2_50 = arith.constant 2 : index
      %c1_51 = arith.constant 1 : index
      %c0_52 = arith.constant 0 : index
      %89 = vector.load %arg3[%c2_50, %c1_51, %c0_52] : memref<7x7x128xf32, #tpu.memory_space<vmem>>, vector<1x1x128xf32>
      %90 = vector.shape_cast %89 : vector<1x1x128xf32> to vector<128xf32>
      %91 = vector.shape_cast %90 : vector<128xf32> to vector<1x1x128xf32>
      %92 = vector.broadcast %91 : vector<1x1x128xf32> to vector<4x16x128xf32>
      %93 = arith.mulf %88, %92 : vector<4x16x128xf32>
      %94 = arith.addf %87, %93 : vector<4x16x128xf32>
      %95 = vector.extract_strided_slice %73 {offsets = [3, 0, 0], sizes = [4, 16, 128], strides = [1, 1, 1]} : vector<10x16x128xf32> to vector<4x16x128xf32>
      %c3_53 = arith.constant 3 : index
      %c1_54 = arith.constant 1 : index
      %c0_55 = arith.constant 0 : index
      %96 = vector.load %arg3[%c3_53, %c1_54, %c0_55] : memref<7x7x128xf32, #tpu.memory_space<vmem>>, vector<1x1x128xf32>
      %97 = vector.shape_cast %96 : vector<1x1x128xf32> to vector<128xf32>
      %98 = vector.shape_cast %97 : vector<128xf32> to vector<1x1x128xf32>
      %99 = vector.broadcast %98 : vector<1x1x128xf32> to vector<4x16x128xf32>
      %100 = arith.mulf %95, %99 : vector<4x16x128xf32>
      %101 = arith.addf %94, %100 : vector<4x16x128xf32>
      %102 = vector.extract_strided_slice %73 {offsets = [4, 0, 0], sizes = [4, 16, 128], strides = [1, 1, 1]} : vector<10x16x128xf32> to vector<4x16x128xf32>
      %c4_56 = arith.constant 4 : index
      %c1_57 = arith.constant 1 : index
      %c0_58 = arith.constant 0 : index
      %103 = vector.load %arg3[%c4_56, %c1_57, %c0_58] : memref<7x7x128xf32, #tpu.memory_space<vmem>>, vector<1x1x128xf32>
      %104 = vector.shape_cast %103 : vector<1x1x128xf32> to vector<128xf32>
      %105 = vector.shape_cast %104 : vector<128xf32> to vector<1x1x128xf32>
      %106 = vector.broadcast %105 : vector<1x1x128xf32> to vector<4x16x128xf32>
      %107 = arith.mulf %102, %106 : vector<4x16x128xf32>
      %108 = arith.addf %101, %107 : vector<4x16x128xf32>
      %109 = vector.extract_strided_slice %73 {offsets = [5, 0, 0], sizes = [4, 16, 128], strides = [1, 1, 1]} : vector<10x16x128xf32> to vector<4x16x128xf32>
      %c5_59 = arith.constant 5 : index
      %c1_60 = arith.constant 1 : index
      %c0_61 = arith.constant 0 : index
      %110 = vector.load %arg3[%c5_59, %c1_60, %c0_61] : memref<7x7x128xf32, #tpu.memory_space<vmem>>, vector<1x1x128xf32>
      %111 = vector.shape_cast %110 : vector<1x1x128xf32> to vector<128xf32>
      %112 = vector.shape_cast %111 : vector<128xf32> to vector<1x1x128xf32>
      %113 = vector.broadcast %112 : vector<1x1x128xf32> to vector<4x16x128xf32>
      %114 = arith.mulf %109, %113 : vector<4x16x128xf32>
      %115 = arith.addf %108, %114 : vector<4x16x128xf32>
      %116 = vector.extract_strided_slice %73 {offsets = [6, 0, 0], sizes = [4, 16, 128], strides = [1, 1, 1]} : vector<10x16x128xf32> to vector<4x16x128xf32>
      %c6_62 = arith.constant 6 : index
      %c1_63 = arith.constant 1 : index
      %c0_64 = arith.constant 0 : index
      %117 = vector.load %arg3[%c6_62, %c1_63, %c0_64] : memref<7x7x128xf32, #tpu.memory_space<vmem>>, vector<1x1x128xf32>
      %118 = vector.shape_cast %117 : vector<1x1x128xf32> to vector<128xf32>
      %119 = vector.shape_cast %118 : vector<128xf32> to vector<1x1x128xf32>
      %120 = vector.broadcast %119 : vector<1x1x128xf32> to vector<4x16x128xf32>
      %121 = arith.mulf %116, %120 : vector<4x16x128xf32>
      %122 = arith.addf %115, %121 : vector<4x16x128xf32>
      %123 = arith.index_cast %19 : i32 to index
      %c7 = arith.constant 7 : index
      %c0_65 = arith.constant 0 : index
      %124 = vector.load %arg6[%123, %c7, %c0_65] : memref<22x27x128xf32, #tpu.memory_space<vmem>>, vector<10x16x128xf32>
      %125 = vector.extract_strided_slice %124 {offsets = [0, 0, 0], sizes = [4, 16, 128], strides = [1, 1, 1]} : vector<10x16x128xf32> to vector<4x16x128xf32>
      %c0_66 = arith.constant 0 : index
      %c2_67 = arith.constant 2 : index
      %c0_68 = arith.constant 0 : index
      %126 = vector.load %arg3[%c0_66, %c2_67, %c0_68] : memref<7x7x128xf32, #tpu.memory_space<vmem>>, vector<1x1x128xf32>
      %127 = vector.shape_cast %126 : vector<1x1x128xf32> to vector<128xf32>
      %128 = vector.shape_cast %127 : vector<128xf32> to vector<1x1x128xf32>
      %129 = vector.broadcast %128 : vector<1x1x128xf32> to vector<4x16x128xf32>
      %130 = arith.mulf %125, %129 : vector<4x16x128xf32>
      %131 = arith.addf %122, %130 : vector<4x16x128xf32>
      %132 = vector.extract_strided_slice %124 {offsets = [1, 0, 0], sizes = [4, 16, 128], strides = [1, 1, 1]} : vector<10x16x128xf32> to vector<4x16x128xf32>
      %c1_69 = arith.constant 1 : index
      %c2_70 = arith.constant 2 : index
      %c0_71 = arith.constant 0 : index
      %133 = vector.load %arg3[%c1_69, %c2_70, %c0_71] : memref<7x7x128xf32, #tpu.memory_space<vmem>>, vector<1x1x128xf32>
      %134 = vector.shape_cast %133 : vector<1x1x128xf32> to vector<128xf32>
      %135 = vector.shape_cast %134 : vector<128xf32> to vector<1x1x128xf32>
      %136 = vector.broadcast %135 : vector<1x1x128xf32> to vector<4x16x128xf32>
      %137 = arith.mulf %132, %136 : vector<4x16x128xf32>
      %138 = arith.addf %131, %137 : vector<4x16x128xf32>
      %139 = vector.extract_strided_slice %124 {offsets = [2, 0, 0], sizes = [4, 16, 128], strides = [1, 1, 1]} : vector<10x16x128xf32> to vector<4x16x128xf32>
      %c2_72 = arith.constant 2 : index
      %c2_73 = arith.constant 2 : index
      %c0_74 = arith.constant 0 : index
      %140 = vector.load %arg3[%c2_72, %c2_73, %c0_74] : memref<7x7x128xf32, #tpu.memory_space<vmem>>, vector<1x1x128xf32>
      %141 = vector.shape_cast %140 : vector<1x1x128xf32> to vector<128xf32>
      %142 = vector.shape_cast %141 : vector<128xf32> to vector<1x1x128xf32>
      %143 = vector.broadcast %142 : vector<1x1x128xf32> to vector<4x16x128xf32>
      %144 = arith.mulf %139, %143 : vector<4x16x128xf32>
      %145 = arith.addf %138, %144 : vector<4x16x128xf32>
      %146 = vector.extract_strided_slice %124 {offsets = [3, 0, 0], sizes = [4, 16, 128], strides = [1, 1, 1]} : vector<10x16x128xf32> to vector<4x16x128xf32>
      %c3_75 = arith.constant 3 : index
      %c2_76 = arith.constant 2 : index
      %c0_77 = arith.constant 0 : index
      %147 = vector.load %arg3[%c3_75, %c2_76, %c0_77] : memref<7x7x128xf32, #tpu.memory_space<vmem>>, vector<1x1x128xf32>
      %148 = vector.shape_cast %147 : vector<1x1x128xf32> to vector<128xf32>
      %149 = vector.shape_cast %148 : vector<128xf32> to vector<1x1x128xf32>
      %150 = vector.broadcast %149 : vector<1x1x128xf32> to vector<4x16x128xf32>
      %151 = arith.mulf %146, %150 : vector<4x16x128xf32>
      %152 = arith.addf %145, %151 : vector<4x16x128xf32>
      %153 = vector.extract_strided_slice %124 {offsets = [4, 0, 0], sizes = [4, 16, 128], strides = [1, 1, 1]} : vector<10x16x128xf32> to vector<4x16x128xf32>
      %c4_78 = arith.constant 4 : index
      %c2_79 = arith.constant 2 : index
      %c0_80 = arith.constant 0 : index
      %154 = vector.load %arg3[%c4_78, %c2_79, %c0_80] : memref<7x7x128xf32, #tpu.memory_space<vmem>>, vector<1x1x128xf32>
      %155 = vector.shape_cast %154 : vector<1x1x128xf32> to vector<128xf32>
      %156 = vector.shape_cast %155 : vector<128xf32> to vector<1x1x128xf32>
      %157 = vector.broadcast %156 : vector<1x1x128xf32> to vector<4x16x128xf32>
      %158 = arith.mulf %153, %157 : vector<4x16x128xf32>
      %159 = arith.addf %152, %158 : vector<4x16x128xf32>
      %160 = vector.extract_strided_slice %124 {offsets = [5, 0, 0], sizes = [4, 16, 128], strides = [1, 1, 1]} : vector<10x16x128xf32> to vector<4x16x128xf32>
      %c5_81 = arith.constant 5 : index
      %c2_82 = arith.constant 2 : index
      %c0_83 = arith.constant 0 : index
      %161 = vector.load %arg3[%c5_81, %c2_82, %c0_83] : memref<7x7x128xf32, #tpu.memory_space<vmem>>, vector<1x1x128xf32>
      %162 = vector.shape_cast %161 : vector<1x1x128xf32> to vector<128xf32>
      %163 = vector.shape_cast %162 : vector<128xf32> to vector<1x1x128xf32>
      %164 = vector.broadcast %163 : vector<1x1x128xf32> to vector<4x16x128xf32>
      %165 = arith.mulf %160, %164 : vector<4x16x128xf32>
      %166 = arith.addf %159, %165 : vector<4x16x128xf32>
      %167 = vector.extract_strided_slice %124 {offsets = [6, 0, 0], sizes = [4, 16, 128], strides = [1, 1, 1]} : vector<10x16x128xf32> to vector<4x16x128xf32>
      %c6_84 = arith.constant 6 : index
      %c2_85 = arith.constant 2 : index
      %c0_86 = arith.constant 0 : index
      %168 = vector.load %arg3[%c6_84, %c2_85, %c0_86] : memref<7x7x128xf32, #tpu.memory_space<vmem>>, vector<1x1x128xf32>
      %169 = vector.shape_cast %168 : vector<1x1x128xf32> to vector<128xf32>
      %170 = vector.shape_cast %169 : vector<128xf32> to vector<1x1x128xf32>
      %171 = vector.broadcast %170 : vector<1x1x128xf32> to vector<4x16x128xf32>
      %172 = arith.mulf %167, %171 : vector<4x16x128xf32>
      %173 = arith.addf %166, %172 : vector<4x16x128xf32>
      %174 = arith.index_cast %19 : i32 to index
      %c8_87 = arith.constant 8 : index
      %c0_88 = arith.constant 0 : index
      %175 = vector.load %arg6[%174, %c8_87, %c0_88] : memref<22x27x128xf32, #tpu.memory_space<vmem>>, vector<10x16x128xf32>
      %176 = vector.extract_strided_slice %175 {offsets = [0, 0, 0], sizes = [4, 16, 128], strides = [1, 1, 1]} : vector<10x16x128xf32> to vector<4x16x128xf32>
      %c0_89 = arith.constant 0 : index
      %c3_90 = arith.constant 3 : index
      %c0_91 = arith.constant 0 : index
      %177 = vector.load %arg3[%c0_89, %c3_90, %c0_91] : memref<7x7x128xf32, #tpu.memory_space<vmem>>, vector<1x1x128xf32>
      %178 = vector.shape_cast %177 : vector<1x1x128xf32> to vector<128xf32>
      %179 = vector.shape_cast %178 : vector<128xf32> to vector<1x1x128xf32>
      %180 = vector.broadcast %179 : vector<1x1x128xf32> to vector<4x16x128xf32>
      %181 = arith.mulf %176, %180 : vector<4x16x128xf32>
      %182 = arith.addf %173, %181 : vector<4x16x128xf32>
      %183 = vector.extract_strided_slice %175 {offsets = [1, 0, 0], sizes = [4, 16, 128], strides = [1, 1, 1]} : vector<10x16x128xf32> to vector<4x16x128xf32>
      %c1_92 = arith.constant 1 : index
      %c3_93 = arith.constant 3 : index
      %c0_94 = arith.constant 0 : index
      %184 = vector.load %arg3[%c1_92, %c3_93, %c0_94] : memref<7x7x128xf32, #tpu.memory_space<vmem>>, vector<1x1x128xf32>
      %185 = vector.shape_cast %184 : vector<1x1x128xf32> to vector<128xf32>
      %186 = vector.shape_cast %185 : vector<128xf32> to vector<1x1x128xf32>
      %187 = vector.broadcast %186 : vector<1x1x128xf32> to vector<4x16x128xf32>
      %188 = arith.mulf %183, %187 : vector<4x16x128xf32>
      %189 = arith.addf %182, %188 : vector<4x16x128xf32>
      %190 = vector.extract_strided_slice %175 {offsets = [2, 0, 0], sizes = [4, 16, 128], strides = [1, 1, 1]} : vector<10x16x128xf32> to vector<4x16x128xf32>
      %c2_95 = arith.constant 2 : index
      %c3_96 = arith.constant 3 : index
      %c0_97 = arith.constant 0 : index
      %191 = vector.load %arg3[%c2_95, %c3_96, %c0_97] : memref<7x7x128xf32, #tpu.memory_space<vmem>>, vector<1x1x128xf32>
      %192 = vector.shape_cast %191 : vector<1x1x128xf32> to vector<128xf32>
      %193 = vector.shape_cast %192 : vector<128xf32> to vector<1x1x128xf32>
      %194 = vector.broadcast %193 : vector<1x1x128xf32> to vector<4x16x128xf32>
      %195 = arith.mulf %190, %194 : vector<4x16x128xf32>
      %196 = arith.addf %189, %195 : vector<4x16x128xf32>
      %197 = vector.extract_strided_slice %175 {offsets = [3, 0, 0], sizes = [4, 16, 128], strides = [1, 1, 1]} : vector<10x16x128xf32> to vector<4x16x128xf32>
      %c3_98 = arith.constant 3 : index
      %c3_99 = arith.constant 3 : index
      %c0_100 = arith.constant 0 : index
      %198 = vector.load %arg3[%c3_98, %c3_99, %c0_100] : memref<7x7x128xf32, #tpu.memory_space<vmem>>, vector<1x1x128xf32>
      %199 = vector.shape_cast %198 : vector<1x1x128xf32> to vector<128xf32>
      %200 = vector.shape_cast %199 : vector<128xf32> to vector<1x1x128xf32>
      %201 = vector.broadcast %200 : vector<1x1x128xf32> to vector<4x16x128xf32>
      %202 = arith.mulf %197, %201 : vector<4x16x128xf32>
      %203 = arith.addf %196, %202 : vector<4x16x128xf32>
      %204 = vector.extract_strided_slice %175 {offsets = [4, 0, 0], sizes = [4, 16, 128], strides = [1, 1, 1]} : vector<10x16x128xf32> to vector<4x16x128xf32>
      %c4_101 = arith.constant 4 : index
      %c3_102 = arith.constant 3 : index
      %c0_103 = arith.constant 0 : index
      %205 = vector.load %arg3[%c4_101, %c3_102, %c0_103] : memref<7x7x128xf32, #tpu.memory_space<vmem>>, vector<1x1x128xf32>
      %206 = vector.shape_cast %205 : vector<1x1x128xf32> to vector<128xf32>
      %207 = vector.shape_cast %206 : vector<128xf32> to vector<1x1x128xf32>
      %208 = vector.broadcast %207 : vector<1x1x128xf32> to vector<4x16x128xf32>
      %209 = arith.mulf %204, %208 : vector<4x16x128xf32>
      %210 = arith.addf %203, %209 : vector<4x16x128xf32>
      %211 = vector.extract_strided_slice %175 {offsets = [5, 0, 0], sizes = [4, 16, 128], strides = [1, 1, 1]} : vector<10x16x128xf32> to vector<4x16x128xf32>
      %c5_104 = arith.constant 5 : index
      %c3_105 = arith.constant 3 : index
      %c0_106 = arith.constant 0 : index
      %212 = vector.load %arg3[%c5_104, %c3_105, %c0_106] : memref<7x7x128xf32, #tpu.memory_space<vmem>>, vector<1x1x128xf32>
      %213 = vector.shape_cast %212 : vector<1x1x128xf32> to vector<128xf32>
      %214 = vector.shape_cast %213 : vector<128xf32> to vector<1x1x128xf32>
      %215 = vector.broadcast %214 : vector<1x1x128xf32> to vector<4x16x128xf32>
      %216 = arith.mulf %211, %215 : vector<4x16x128xf32>
      %217 = arith.addf %210, %216 : vector<4x16x128xf32>
      %218 = vector.extract_strided_slice %175 {offsets = [6, 0, 0], sizes = [4, 16, 128], strides = [1, 1, 1]} : vector<10x16x128xf32> to vector<4x16x128xf32>
      %c6_107 = arith.constant 6 : index
      %c3_108 = arith.constant 3 : index
      %c0_109 = arith.constant 0 : index
      %219 = vector.load %arg3[%c6_107, %c3_108, %c0_109] : memref<7x7x128xf32, #tpu.memory_space<vmem>>, vector<1x1x128xf32>
      %220 = vector.shape_cast %219 : vector<1x1x128xf32> to vector<128xf32>
      %221 = vector.shape_cast %220 : vector<128xf32> to vector<1x1x128xf32>
      %222 = vector.broadcast %221 : vector<1x1x128xf32> to vector<4x16x128xf32>
      %223 = arith.mulf %218, %222 : vector<4x16x128xf32>
      %224 = arith.addf %217, %223 : vector<4x16x128xf32>
      %225 = arith.index_cast %19 : i32 to index
      %c9 = arith.constant 9 : index
      %c0_110 = arith.constant 0 : index
      %226 = vector.load %arg6[%225, %c9, %c0_110] : memref<22x27x128xf32, #tpu.memory_space<vmem>>, vector<10x16x128xf32>
      %227 = vector.extract_strided_slice %226 {offsets = [0, 0, 0], sizes = [4, 16, 128], strides = [1, 1, 1]} : vector<10x16x128xf32> to vector<4x16x128xf32>
      %c0_111 = arith.constant 0 : index
      %c4_112 = arith.constant 4 : index
      %c0_113 = arith.constant 0 : index
      %228 = vector.load %arg3[%c0_111, %c4_112, %c0_113] : memref<7x7x128xf32, #tpu.memory_space<vmem>>, vector<1x1x128xf32>
      %229 = vector.shape_cast %228 : vector<1x1x128xf32> to vector<128xf32>
      %230 = vector.shape_cast %229 : vector<128xf32> to vector<1x1x128xf32>
      %231 = vector.broadcast %230 : vector<1x1x128xf32> to vector<4x16x128xf32>
      %232 = arith.mulf %227, %231 : vector<4x16x128xf32>
      %233 = arith.addf %224, %232 : vector<4x16x128xf32>
      %234 = vector.extract_strided_slice %226 {offsets = [1, 0, 0], sizes = [4, 16, 128], strides = [1, 1, 1]} : vector<10x16x128xf32> to vector<4x16x128xf32>
      %c1_114 = arith.constant 1 : index
      %c4_115 = arith.constant 4 : index
      %c0_116 = arith.constant 0 : index
      %235 = vector.load %arg3[%c1_114, %c4_115, %c0_116] : memref<7x7x128xf32, #tpu.memory_space<vmem>>, vector<1x1x128xf32>
      %236 = vector.shape_cast %235 : vector<1x1x128xf32> to vector<128xf32>
      %237 = vector.shape_cast %236 : vector<128xf32> to vector<1x1x128xf32>
      %238 = vector.broadcast %237 : vector<1x1x128xf32> to vector<4x16x128xf32>
      %239 = arith.mulf %234, %238 : vector<4x16x128xf32>
      %240 = arith.addf %233, %239 : vector<4x16x128xf32>
      %241 = vector.extract_strided_slice %226 {offsets = [2, 0, 0], sizes = [4, 16, 128], strides = [1, 1, 1]} : vector<10x16x128xf32> to vector<4x16x128xf32>
      %c2_117 = arith.constant 2 : index
      %c4_118 = arith.constant 4 : index
      %c0_119 = arith.constant 0 : index
      %242 = vector.load %arg3[%c2_117, %c4_118, %c0_119] : memref<7x7x128xf32, #tpu.memory_space<vmem>>, vector<1x1x128xf32>
      %243 = vector.shape_cast %242 : vector<1x1x128xf32> to vector<128xf32>
      %244 = vector.shape_cast %243 : vector<128xf32> to vector<1x1x128xf32>
      %245 = vector.broadcast %244 : vector<1x1x128xf32> to vector<4x16x128xf32>
      %246 = arith.mulf %241, %245 : vector<4x16x128xf32>
      %247 = arith.addf %240, %246 : vector<4x16x128xf32>
      %248 = vector.extract_strided_slice %226 {offsets = [3, 0, 0], sizes = [4, 16, 128], strides = [1, 1, 1]} : vector<10x16x128xf32> to vector<4x16x128xf32>
      %c3_120 = arith.constant 3 : index
      %c4_121 = arith.constant 4 : index
      %c0_122 = arith.constant 0 : index
      %249 = vector.load %arg3[%c3_120, %c4_121, %c0_122] : memref<7x7x128xf32, #tpu.memory_space<vmem>>, vector<1x1x128xf32>
      %250 = vector.shape_cast %249 : vector<1x1x128xf32> to vector<128xf32>
      %251 = vector.shape_cast %250 : vector<128xf32> to vector<1x1x128xf32>
      %252 = vector.broadcast %251 : vector<1x1x128xf32> to vector<4x16x128xf32>
      %253 = arith.mulf %248, %252 : vector<4x16x128xf32>
      %254 = arith.addf %247, %253 : vector<4x16x128xf32>
      %255 = vector.extract_strided_slice %226 {offsets = [4, 0, 0], sizes = [4, 16, 128], strides = [1, 1, 1]} : vector<10x16x128xf32> to vector<4x16x128xf32>
      %c4_123 = arith.constant 4 : index
      %c4_124 = arith.constant 4 : index
      %c0_125 = arith.constant 0 : index
      %256 = vector.load %arg3[%c4_123, %c4_124, %c0_125] : memref<7x7x128xf32, #tpu.memory_space<vmem>>, vector<1x1x128xf32>
      %257 = vector.shape_cast %256 : vector<1x1x128xf32> to vector<128xf32>
      %258 = vector.shape_cast %257 : vector<128xf32> to vector<1x1x128xf32>
      %259 = vector.broadcast %258 : vector<1x1x128xf32> to vector<4x16x128xf32>
      %260 = arith.mulf %255, %259 : vector<4x16x128xf32>
      %261 = arith.addf %254, %260 : vector<4x16x128xf32>
      %262 = vector.extract_strided_slice %226 {offsets = [5, 0, 0], sizes = [4, 16, 128], strides = [1, 1, 1]} : vector<10x16x128xf32> to vector<4x16x128xf32>
      %c5_126 = arith.constant 5 : index
      %c4_127 = arith.constant 4 : index
      %c0_128 = arith.constant 0 : index
      %263 = vector.load %arg3[%c5_126, %c4_127, %c0_128] : memref<7x7x128xf32, #tpu.memory_space<vmem>>, vector<1x1x128xf32>
      %264 = vector.shape_cast %263 : vector<1x1x128xf32> to vector<128xf32>
      %265 = vector.shape_cast %264 : vector<128xf32> to vector<1x1x128xf32>
      %266 = vector.broadcast %265 : vector<1x1x128xf32> to vector<4x16x128xf32>
      %267 = arith.mulf %262, %266 : vector<4x16x128xf32>
      %268 = arith.addf %261, %267 : vector<4x16x128xf32>
      %269 = vector.extract_strided_slice %226 {offsets = [6, 0, 0], sizes = [4, 16, 128], strides = [1, 1, 1]} : vector<10x16x128xf32> to vector<4x16x128xf32>
      %c6_129 = arith.constant 6 : index
      %c4_130 = arith.constant 4 : index
      %c0_131 = arith.constant 0 : index
      %270 = vector.load %arg3[%c6_129, %c4_130, %c0_131] : memref<7x7x128xf32, #tpu.memory_space<vmem>>, vector<1x1x128xf32>
      %271 = vector.shape_cast %270 : vector<1x1x128xf32> to vector<128xf32>
      %272 = vector.shape_cast %271 : vector<128xf32> to vector<1x1x128xf32>
      %273 = vector.broadcast %272 : vector<1x1x128xf32> to vector<4x16x128xf32>
      %274 = arith.mulf %269, %273 : vector<4x16x128xf32>
      %275 = arith.addf %268, %274 : vector<4x16x128xf32>
      %276 = arith.index_cast %19 : i32 to index
      %c10 = arith.constant 10 : index
      %c0_132 = arith.constant 0 : index
      %277 = vector.load %arg6[%276, %c10, %c0_132] : memref<22x27x128xf32, #tpu.memory_space<vmem>>, vector<10x16x128xf32>
      %278 = vector.extract_strided_slice %277 {offsets = [0, 0, 0], sizes = [4, 16, 128], strides = [1, 1, 1]} : vector<10x16x128xf32> to vector<4x16x128xf32>
      %c0_133 = arith.constant 0 : index
      %c5_134 = arith.constant 5 : index
      %c0_135 = arith.constant 0 : index
      %279 = vector.load %arg3[%c0_133, %c5_134, %c0_135] : memref<7x7x128xf32, #tpu.memory_space<vmem>>, vector<1x1x128xf32>
      %280 = vector.shape_cast %279 : vector<1x1x128xf32> to vector<128xf32>
      %281 = vector.shape_cast %280 : vector<128xf32> to vector<1x1x128xf32>
      %282 = vector.broadcast %281 : vector<1x1x128xf32> to vector<4x16x128xf32>
      %283 = arith.mulf %278, %282 : vector<4x16x128xf32>
      %284 = arith.addf %275, %283 : vector<4x16x128xf32>
      %285 = vector.extract_strided_slice %277 {offsets = [1, 0, 0], sizes = [4, 16, 128], strides = [1, 1, 1]} : vector<10x16x128xf32> to vector<4x16x128xf32>
      %c1_136 = arith.constant 1 : index
      %c5_137 = arith.constant 5 : index
      %c0_138 = arith.constant 0 : index
      %286 = vector.load %arg3[%c1_136, %c5_137, %c0_138] : memref<7x7x128xf32, #tpu.memory_space<vmem>>, vector<1x1x128xf32>
      %287 = vector.shape_cast %286 : vector<1x1x128xf32> to vector<128xf32>
      %288 = vector.shape_cast %287 : vector<128xf32> to vector<1x1x128xf32>
      %289 = vector.broadcast %288 : vector<1x1x128xf32> to vector<4x16x128xf32>
      %290 = arith.mulf %285, %289 : vector<4x16x128xf32>
      %291 = arith.addf %284, %290 : vector<4x16x128xf32>
      %292 = vector.extract_strided_slice %277 {offsets = [2, 0, 0], sizes = [4, 16, 128], strides = [1, 1, 1]} : vector<10x16x128xf32> to vector<4x16x128xf32>
      %c2_139 = arith.constant 2 : index
      %c5_140 = arith.constant 5 : index
      %c0_141 = arith.constant 0 : index
      %293 = vector.load %arg3[%c2_139, %c5_140, %c0_141] : memref<7x7x128xf32, #tpu.memory_space<vmem>>, vector<1x1x128xf32>
      %294 = vector.shape_cast %293 : vector<1x1x128xf32> to vector<128xf32>
      %295 = vector.shape_cast %294 : vector<128xf32> to vector<1x1x128xf32>
      %296 = vector.broadcast %295 : vector<1x1x128xf32> to vector<4x16x128xf32>
      %297 = arith.mulf %292, %296 : vector<4x16x128xf32>
      %298 = arith.addf %291, %297 : vector<4x16x128xf32>
      %299 = vector.extract_strided_slice %277 {offsets = [3, 0, 0], sizes = [4, 16, 128], strides = [1, 1, 1]} : vector<10x16x128xf32> to vector<4x16x128xf32>
      %c3_142 = arith.constant 3 : index
      %c5_143 = arith.constant 5 : index
      %c0_144 = arith.constant 0 : index
      %300 = vector.load %arg3[%c3_142, %c5_143, %c0_144] : memref<7x7x128xf32, #tpu.memory_space<vmem>>, vector<1x1x128xf32>
      %301 = vector.shape_cast %300 : vector<1x1x128xf32> to vector<128xf32>
      %302 = vector.shape_cast %301 : vector<128xf32> to vector<1x1x128xf32>
      %303 = vector.broadcast %302 : vector<1x1x128xf32> to vector<4x16x128xf32>
      %304 = arith.mulf %299, %303 : vector<4x16x128xf32>
      %305 = arith.addf %298, %304 : vector<4x16x128xf32>
      %306 = vector.extract_strided_slice %277 {offsets = [4, 0, 0], sizes = [4, 16, 128], strides = [1, 1, 1]} : vector<10x16x128xf32> to vector<4x16x128xf32>
      %c4_145 = arith.constant 4 : index
      %c5_146 = arith.constant 5 : index
      %c0_147 = arith.constant 0 : index
      %307 = vector.load %arg3[%c4_145, %c5_146, %c0_147] : memref<7x7x128xf32, #tpu.memory_space<vmem>>, vector<1x1x128xf32>
      %308 = vector.shape_cast %307 : vector<1x1x128xf32> to vector<128xf32>
      %309 = vector.shape_cast %308 : vector<128xf32> to vector<1x1x128xf32>
      %310 = vector.broadcast %309 : vector<1x1x128xf32> to vector<4x16x128xf32>
      %311 = arith.mulf %306, %310 : vector<4x16x128xf32>
      %312 = arith.addf %305, %311 : vector<4x16x128xf32>
      %313 = vector.extract_strided_slice %277 {offsets = [5, 0, 0], sizes = [4, 16, 128], strides = [1, 1, 1]} : vector<10x16x128xf32> to vector<4x16x128xf32>
      %c5_148 = arith.constant 5 : index
      %c5_149 = arith.constant 5 : index
      %c0_150 = arith.constant 0 : index
      %314 = vector.load %arg3[%c5_148, %c5_149, %c0_150] : memref<7x7x128xf32, #tpu.memory_space<vmem>>, vector<1x1x128xf32>
      %315 = vector.shape_cast %314 : vector<1x1x128xf32> to vector<128xf32>
      %316 = vector.shape_cast %315 : vector<128xf32> to vector<1x1x128xf32>
      %317 = vector.broadcast %316 : vector<1x1x128xf32> to vector<4x16x128xf32>
      %318 = arith.mulf %313, %317 : vector<4x16x128xf32>
      %319 = arith.addf %312, %318 : vector<4x16x128xf32>
      %320 = vector.extract_strided_slice %277 {offsets = [6, 0, 0], sizes = [4, 16, 128], strides = [1, 1, 1]} : vector<10x16x128xf32> to vector<4x16x128xf32>
      %c6_151 = arith.constant 6 : index
      %c5_152 = arith.constant 5 : index
      %c0_153 = arith.constant 0 : index
      %321 = vector.load %arg3[%c6_151, %c5_152, %c0_153] : memref<7x7x128xf32, #tpu.memory_space<vmem>>, vector<1x1x128xf32>
      %322 = vector.shape_cast %321 : vector<1x1x128xf32> to vector<128xf32>
      %323 = vector.shape_cast %322 : vector<128xf32> to vector<1x1x128xf32>
      %324 = vector.broadcast %323 : vector<1x1x128xf32> to vector<4x16x128xf32>
      %325 = arith.mulf %320, %324 : vector<4x16x128xf32>
      %326 = arith.addf %319, %325 : vector<4x16x128xf32>
      %327 = arith.index_cast %19 : i32 to index
      %c11 = arith.constant 11 : index
      %c0_154 = arith.constant 0 : index
      %328 = vector.load %arg6[%327, %c11, %c0_154] : memref<22x27x128xf32, #tpu.memory_space<vmem>>, vector<10x16x128xf32>
      %329 = vector.extract_strided_slice %328 {offsets = [0, 0, 0], sizes = [4, 16, 128], strides = [1, 1, 1]} : vector<10x16x128xf32> to vector<4x16x128xf32>
      %c0_155 = arith.constant 0 : index
      %c6_156 = arith.constant 6 : index
      %c0_157 = arith.constant 0 : index
      %330 = vector.load %arg3[%c0_155, %c6_156, %c0_157] : memref<7x7x128xf32, #tpu.memory_space<vmem>>, vector<1x1x128xf32>
      %331 = vector.shape_cast %330 : vector<1x1x128xf32> to vector<128xf32>
      %332 = vector.shape_cast %331 : vector<128xf32> to vector<1x1x128xf32>
      %333 = vector.broadcast %332 : vector<1x1x128xf32> to vector<4x16x128xf32>
      %334 = arith.mulf %329, %333 : vector<4x16x128xf32>
      %335 = arith.addf %326, %334 : vector<4x16x128xf32>
      %336 = vector.extract_strided_slice %328 {offsets = [1, 0, 0], sizes = [4, 16, 128], strides = [1, 1, 1]} : vector<10x16x128xf32> to vector<4x16x128xf32>
      %c1_158 = arith.constant 1 : index
      %c6_159 = arith.constant 6 : index
      %c0_160 = arith.constant 0 : index
      %337 = vector.load %arg3[%c1_158, %c6_159, %c0_160] : memref<7x7x128xf32, #tpu.memory_space<vmem>>, vector<1x1x128xf32>
      %338 = vector.shape_cast %337 : vector<1x1x128xf32> to vector<128xf32>
      %339 = vector.shape_cast %338 : vector<128xf32> to vector<1x1x128xf32>
      %340 = vector.broadcast %339 : vector<1x1x128xf32> to vector<4x16x128xf32>
      %341 = arith.mulf %336, %340 : vector<4x16x128xf32>
      %342 = arith.addf %335, %341 : vector<4x16x128xf32>
      %343 = vector.extract_strided_slice %328 {offsets = [2, 0, 0], sizes = [4, 16, 128], strides = [1, 1, 1]} : vector<10x16x128xf32> to vector<4x16x128xf32>
      %c2_161 = arith.constant 2 : index
      %c6_162 = arith.constant 6 : index
      %c0_163 = arith.constant 0 : index
      %344 = vector.load %arg3[%c2_161, %c6_162, %c0_163] : memref<7x7x128xf32, #tpu.memory_space<vmem>>, vector<1x1x128xf32>
      %345 = vector.shape_cast %344 : vector<1x1x128xf32> to vector<128xf32>
      %346 = vector.shape_cast %345 : vector<128xf32> to vector<1x1x128xf32>
      %347 = vector.broadcast %346 : vector<1x1x128xf32> to vector<4x16x128xf32>
      %348 = arith.mulf %343, %347 : vector<4x16x128xf32>
      %349 = arith.addf %342, %348 : vector<4x16x128xf32>
      %350 = vector.extract_strided_slice %328 {offsets = [3, 0, 0], sizes = [4, 16, 128], strides = [1, 1, 1]} : vector<10x16x128xf32> to vector<4x16x128xf32>
      %c3_164 = arith.constant 3 : index
      %c6_165 = arith.constant 6 : index
      %c0_166 = arith.constant 0 : index
      %351 = vector.load %arg3[%c3_164, %c6_165, %c0_166] : memref<7x7x128xf32, #tpu.memory_space<vmem>>, vector<1x1x128xf32>
      %352 = vector.shape_cast %351 : vector<1x1x128xf32> to vector<128xf32>
      %353 = vector.shape_cast %352 : vector<128xf32> to vector<1x1x128xf32>
      %354 = vector.broadcast %353 : vector<1x1x128xf32> to vector<4x16x128xf32>
      %355 = arith.mulf %350, %354 : vector<4x16x128xf32>
      %356 = arith.addf %349, %355 : vector<4x16x128xf32>
      %357 = vector.extract_strided_slice %328 {offsets = [4, 0, 0], sizes = [4, 16, 128], strides = [1, 1, 1]} : vector<10x16x128xf32> to vector<4x16x128xf32>
      %c4_167 = arith.constant 4 : index
      %c6_168 = arith.constant 6 : index
      %c0_169 = arith.constant 0 : index
      %358 = vector.load %arg3[%c4_167, %c6_168, %c0_169] : memref<7x7x128xf32, #tpu.memory_space<vmem>>, vector<1x1x128xf32>
      %359 = vector.shape_cast %358 : vector<1x1x128xf32> to vector<128xf32>
      %360 = vector.shape_cast %359 : vector<128xf32> to vector<1x1x128xf32>
      %361 = vector.broadcast %360 : vector<1x1x128xf32> to vector<4x16x128xf32>
      %362 = arith.mulf %357, %361 : vector<4x16x128xf32>
      %363 = arith.addf %356, %362 : vector<4x16x128xf32>
      %364 = vector.extract_strided_slice %328 {offsets = [5, 0, 0], sizes = [4, 16, 128], strides = [1, 1, 1]} : vector<10x16x128xf32> to vector<4x16x128xf32>
      %c5_170 = arith.constant 5 : index
      %c6_171 = arith.constant 6 : index
      %c0_172 = arith.constant 0 : index
      %365 = vector.load %arg3[%c5_170, %c6_171, %c0_172] : memref<7x7x128xf32, #tpu.memory_space<vmem>>, vector<1x1x128xf32>
      %366 = vector.shape_cast %365 : vector<1x1x128xf32> to vector<128xf32>
      %367 = vector.shape_cast %366 : vector<128xf32> to vector<1x1x128xf32>
      %368 = vector.broadcast %367 : vector<1x1x128xf32> to vector<4x16x128xf32>
      %369 = arith.mulf %364, %368 : vector<4x16x128xf32>
      %370 = arith.addf %363, %369 : vector<4x16x128xf32>
      %371 = vector.extract_strided_slice %328 {offsets = [6, 0, 0], sizes = [4, 16, 128], strides = [1, 1, 1]} : vector<10x16x128xf32> to vector<4x16x128xf32>
      %c6_173 = arith.constant 6 : index
      %c6_174 = arith.constant 6 : index
      %c0_175 = arith.constant 0 : index
      %372 = vector.load %arg3[%c6_173, %c6_174, %c0_175] : memref<7x7x128xf32, #tpu.memory_space<vmem>>, vector<1x1x128xf32>
      %373 = vector.shape_cast %372 : vector<1x1x128xf32> to vector<128xf32>
      %374 = vector.shape_cast %373 : vector<128xf32> to vector<1x1x128xf32>
      %375 = vector.broadcast %374 : vector<1x1x128xf32> to vector<4x16x128xf32>
      %376 = arith.mulf %371, %375 : vector<4x16x128xf32>
      %377 = arith.addf %370, %376 : vector<4x16x128xf32>
      %378 = arith.truncf %377 : vector<4x16x128xf32> to vector<4x16x128xbf16>
      %c0_176 = arith.constant 0 : index
      %379 = arith.index_cast %19 : i32 to index
      %c0_177 = arith.constant 0 : index
      %c0_178 = arith.constant 0 : index
      %380 = vector.load %arg4[%c0_176, %379, %c0_177, %c0_178] : memref<1x16x16x128xbf16, #tpu.memory_space<vmem>>, vector<1x4x16x128xbf16>
      %381 = vector.shape_cast %380 : vector<1x4x16x128xbf16> to vector<4x16x128xbf16>
      %382 = vector.shape_cast %378 : vector<4x16x128xbf16> to vector<1x4x16x128xbf16>
      tpu.vector_store %arg4[%c0_176, %379, %c0_177, %c0_178], %382 {strides = array<i32>} : memref<1x16x16x128xbf16, #tpu.memory_space<vmem>>, vector<1x4x16x128xbf16>,
      %383 = vector.shape_cast %377 : vector<4x16x128xf32> to vector<64x128xf32>
      %cst_179 = arith.constant dense<0.000000e+00> : vector<128xf32>
      %384 = vector.multi_reduction <add>, %383, %cst_179 [0] : vector<64x128xf32> to vector<128xf32>
      %385 = vector.shape_cast %384 : vector<128xf32> to vector<1x128xf32>
      %386 = arith.addf %arg8, %385 : vector<1x128xf32>
      %387 = arith.mulf %383, %383 : vector<64x128xf32>
      %cst_180 = arith.constant dense<0.000000e+00> : vector<128xf32>
      %388 = vector.multi_reduction <add>, %387, %cst_180 [0] : vector<64x128xf32> to vector<128xf32>
      %389 = vector.shape_cast %388 : vector<128xf32> to vector<1x128xf32>
      %390 = arith.addf %arg9, %389 : vector<1x128xf32>
      scf.yield %386, %390 : vector<1x128xf32>, vector<1x128xf32>
    }
    %c4_i32_17 = arith.constant 4 : i32
    %14 = tpu.concatenate %13#0, %13#1 in 0 : vector<1x128xf32>, vector<1x128xf32> -> vector<2x128xf32>
    %c0_18 = arith.constant 0 : index
    %c0_19 = arith.constant 0 : index
    %c0_20 = arith.constant 0 : index
    %15 = vector.load %arg5[%c0_18, %c0_19, %c0_20] : memref<1x2x128xf32, #tpu.memory_space<vmem>>, vector<1x2x128xf32>
    %16 = vector.shape_cast %15 : vector<1x2x128xf32> to vector<2x128xf32>
    %17 = vector.shape_cast %14 : vector<2x128xf32> to vector<1x2x128xf32>
    tpu.vector_store %arg5[%c0_18, %c0_19, %c0_20], %17 {strides = array<i32>} : memref<1x2x128xf32, #tpu.memory_space<vmem>>, vector<1x2x128xf32>,
    return
  }
  func.func @transform_0(%arg0: i32, %arg1: i32) -> (i32, i32, i32, i32) {
    %c0_i32 = arith.constant 0 : i32
    %c0_i32_0 = arith.constant 0 : i32
    %c0_i32_1 = arith.constant 0 : i32
    return %arg0, %c0_i32, %c0_i32_0, %arg1 : i32, i32, i32, i32
  }
  func.func @transform_1(%arg0: i32, %arg1: i32) -> (i32, i32, i32) {
    %c0_i32 = arith.constant 0 : i32
    %c0_i32_0 = arith.constant 0 : i32
    %c0_i32_1 = arith.constant 0 : i32
    return %c0_i32, %c0_i32_0, %arg1 : i32, i32, i32
  }
  func.func @transform_2(%arg0: i32, %arg1: i32) -> (i32, i32, i32, i32) {
    %c0_i32 = arith.constant 0 : i32
    %c0_i32_0 = arith.constant 0 : i32
    %c0_i32_1 = arith.constant 0 : i32
    return %arg0, %c0_i32, %c0_i32_0, %arg1 : i32, i32, i32, i32
  }
  func.func @transform_3(%arg0: i32, %arg1: i32) -> (i32, i32, i32) {
    %c0_i32 = arith.constant 0 : i32
    %c0_i32_0 = arith.constant 0 : i32
    return %arg0, %c0_i32, %arg1 : i32, i32, i32
  }
}

module attributes {stable_mosaic.version = 11 : i64} {
  func.func @ffn_kernel(%arg0: i32, %arg1: i32, %arg2: memref<1x256x128xbf16, #tpu.memory_space<vmem>>, %arg3: memref<128x512xbf16, #tpu.memory_space<vmem>>, %arg4: memref<1x512xf32, #tpu.memory_space<vmem>>, %arg5: memref<128x512xbf16, #tpu.memory_space<vmem>>, %arg6: memref<128x1xf32, #tpu.memory_space<vmem>>, %arg7: memref<1x128x256xf32, #tpu.memory_space<vmem>>, %arg8: memref<256x512xbf16, #tpu.memory_space<vmem>>) attributes {dimension_semantics = [#tpu.dimension_semantics<parallel>, #tpu.dimension_semantics<parallel>], iteration_bounds = array<i64: 2, 1>, scalar_prefetch = 0 : i64, scratch_operands = 1 : i64, tpu.core_type = #tpu.core_type<tc>, window_params = [{transform_indices = @transform_0, window_bounds = array<i64: 1, 256, 128>}, {pipeline_mode = #tpu.pipeline_mode<synchronous>, transform_indices = @transform_1, window_bounds = array<i64: 128, 512>}, {pipeline_mode = #tpu.pipeline_mode<synchronous>, transform_indices = @transform_2, window_bounds = array<i64: 1, 512>}, {pipeline_mode = #tpu.pipeline_mode<synchronous>, transform_indices = @transform_3, window_bounds = array<i64: 128, 512>}, {pipeline_mode = #tpu.pipeline_mode<synchronous>, transform_indices = @transform_4, window_bounds = array<i64: 128, 1>}, {transform_indices = @transform_5, window_bounds = array<i64: 1, 128, 256>}]} {
    %c0 = arith.constant 0 : index
    %c0_0 = arith.constant 0 : index
    %c0_1 = arith.constant 0 : index
    %0 = vector.load %arg2[%c0, %c0_0, %c0_1] : memref<1x256x128xbf16, #tpu.memory_space<vmem>>, vector<1x256x128xbf16>
    %1 = vector.shape_cast %0 : vector<1x256x128xbf16> to vector<256x128xbf16>
    %c0_2 = arith.constant 0 : index
    %c0_3 = arith.constant 0 : index
    %2 = vector.load %arg3[%c0_2, %c0_3] : memref<128x512xbf16, #tpu.memory_space<vmem>>, vector<128x128xbf16>
    %cst = arith.constant dense<0.000000e+00> : vector<256x128xf32>
    %3 = tpu.matmul %1, %2, %cst {dimension_numbers = #tpu.dot_dimension_numbers<[1], [0], [0], [1], [0, 0, 1, 1], [], []>} : vector<256x128xbf16>, vector<128x128xbf16>, vector<256x128xf32> -> vector<256x128xf32>
    %c0_4 = arith.constant 0 : index
    %c0_5 = arith.constant 0 : index
    %4 = vector.load %arg4[%c0_4, %c0_5] : memref<1x512xf32, #tpu.memory_space<vmem>>, vector<1x128xf32>
    %5 = vector.shape_cast %4 : vector<1x128xf32> to vector<128xf32>
    %6 = vector.shape_cast %5 : vector<128xf32> to vector<1x128xf32>
    %7 = vector.broadcast %6 : vector<1x128xf32> to vector<256x128xf32>
    %8 = arith.addf %3, %7 : vector<256x128xf32>
    %cst_6 = arith.constant 5.000000e-01 : f32
    %9 = vector.broadcast %cst_6 : f32 to vector<256x128xf32>
    %10 = arith.mulf %9, %8 : vector<256x128xf32>
    %11 = arith.mulf %8, %8 : vector<256x128xf32>
    %12 = arith.mulf %11, %8 : vector<256x128xf32>
    %cst_7 = arith.constant 4.471500e-02 : f32
    %13 = vector.broadcast %cst_7 : f32 to vector<256x128xf32>
    %14 = arith.mulf %13, %12 : vector<256x128xf32>
    %15 = arith.addf %8, %14 : vector<256x128xf32>
    %cst_8 = arith.constant 0.797884583 : f32
    %16 = vector.broadcast %cst_8 : f32 to vector<256x128xf32>
    %17 = arith.mulf %16, %15 : vector<256x128xf32>
    %18 = math.tanh %17 : vector<256x128xf32>
    %cst_9 = arith.constant 1.000000e+00 : f32
    %19 = vector.broadcast %cst_9 : f32 to vector<256x128xf32>
    %20 = arith.addf %19, %18 : vector<256x128xf32>
    %21 = arith.mulf %10, %20 : vector<256x128xf32>
    %22 = arith.truncf %21 : vector<256x128xf32> to vector<256x128xbf16>
    %c0_10 = arith.constant 0 : index
    %c0_11 = arith.constant 0 : index
    %23 = vector.load %arg8[%c0_10, %c0_11] : memref<256x512xbf16, #tpu.memory_space<vmem>>, vector<256x128xbf16>
    tpu.vector_store %arg8[%c0_10, %c0_11], %22 {strides = array<i32>} : memref<256x512xbf16, #tpu.memory_space<vmem>>, vector<256x128xbf16>,
    %c0_12 = arith.constant 0 : index
    %c128 = arith.constant 128 : index
    %24 = vector.load %arg3[%c0_12, %c128] : memref<128x512xbf16, #tpu.memory_space<vmem>>, vector<128x128xbf16>
    %cst_13 = arith.constant dense<0.000000e+00> : vector<256x128xf32>
    %25 = tpu.matmul %1, %24, %cst_13 {dimension_numbers = #tpu.dot_dimension_numbers<[1], [0], [0], [1], [0, 0, 1, 1], [], []>} : vector<256x128xbf16>, vector<128x128xbf16>, vector<256x128xf32> -> vector<256x128xf32>
    %c0_14 = arith.constant 0 : index
    %c128_15 = arith.constant 128 : index
    %26 = vector.load %arg4[%c0_14, %c128_15] : memref<1x512xf32, #tpu.memory_space<vmem>>, vector<1x128xf32>
    %27 = vector.shape_cast %26 : vector<1x128xf32> to vector<128xf32>
    %28 = vector.shape_cast %27 : vector<128xf32> to vector<1x128xf32>
    %29 = vector.broadcast %28 : vector<1x128xf32> to vector<256x128xf32>
    %30 = arith.addf %25, %29 : vector<256x128xf32>
    %cst_16 = arith.constant 5.000000e-01 : f32
    %31 = vector.broadcast %cst_16 : f32 to vector<256x128xf32>
    %32 = arith.mulf %31, %30 : vector<256x128xf32>
    %33 = arith.mulf %30, %30 : vector<256x128xf32>
    %34 = arith.mulf %33, %30 : vector<256x128xf32>
    %cst_17 = arith.constant 4.471500e-02 : f32
    %35 = vector.broadcast %cst_17 : f32 to vector<256x128xf32>
    %36 = arith.mulf %35, %34 : vector<256x128xf32>
    %37 = arith.addf %30, %36 : vector<256x128xf32>
    %cst_18 = arith.constant 0.797884583 : f32
    %38 = vector.broadcast %cst_18 : f32 to vector<256x128xf32>
    %39 = arith.mulf %38, %37 : vector<256x128xf32>
    %40 = math.tanh %39 : vector<256x128xf32>
    %cst_19 = arith.constant 1.000000e+00 : f32
    %41 = vector.broadcast %cst_19 : f32 to vector<256x128xf32>
    %42 = arith.addf %41, %40 : vector<256x128xf32>
    %43 = arith.mulf %32, %42 : vector<256x128xf32>
    %44 = arith.truncf %43 : vector<256x128xf32> to vector<256x128xbf16>
    %c0_20 = arith.constant 0 : index
    %c128_21 = arith.constant 128 : index
    %45 = vector.load %arg8[%c0_20, %c128_21] : memref<256x512xbf16, #tpu.memory_space<vmem>>, vector<256x128xbf16>
    tpu.vector_store %arg8[%c0_20, %c128_21], %44 {strides = array<i32>} : memref<256x512xbf16, #tpu.memory_space<vmem>>, vector<256x128xbf16>,
    %c0_22 = arith.constant 0 : index
    %c256 = arith.constant 256 : index
    %46 = vector.load %arg3[%c0_22, %c256] : memref<128x512xbf16, #tpu.memory_space<vmem>>, vector<128x128xbf16>
    %cst_23 = arith.constant dense<0.000000e+00> : vector<256x128xf32>
    %47 = tpu.matmul %1, %46, %cst_23 {dimension_numbers = #tpu.dot_dimension_numbers<[1], [0], [0], [1], [0, 0, 1, 1], [], []>} : vector<256x128xbf16>, vector<128x128xbf16>, vector<256x128xf32> -> vector<256x128xf32>
    %c0_24 = arith.constant 0 : index
    %c256_25 = arith.constant 256 : index
    %48 = vector.load %arg4[%c0_24, %c256_25] : memref<1x512xf32, #tpu.memory_space<vmem>>, vector<1x128xf32>
    %49 = vector.shape_cast %48 : vector<1x128xf32> to vector<128xf32>
    %50 = vector.shape_cast %49 : vector<128xf32> to vector<1x128xf32>
    %51 = vector.broadcast %50 : vector<1x128xf32> to vector<256x128xf32>
    %52 = arith.addf %47, %51 : vector<256x128xf32>
    %cst_26 = arith.constant 5.000000e-01 : f32
    %53 = vector.broadcast %cst_26 : f32 to vector<256x128xf32>
    %54 = arith.mulf %53, %52 : vector<256x128xf32>
    %55 = arith.mulf %52, %52 : vector<256x128xf32>
    %56 = arith.mulf %55, %52 : vector<256x128xf32>
    %cst_27 = arith.constant 4.471500e-02 : f32
    %57 = vector.broadcast %cst_27 : f32 to vector<256x128xf32>
    %58 = arith.mulf %57, %56 : vector<256x128xf32>
    %59 = arith.addf %52, %58 : vector<256x128xf32>
    %cst_28 = arith.constant 0.797884583 : f32
    %60 = vector.broadcast %cst_28 : f32 to vector<256x128xf32>
    %61 = arith.mulf %60, %59 : vector<256x128xf32>
    %62 = math.tanh %61 : vector<256x128xf32>
    %cst_29 = arith.constant 1.000000e+00 : f32
    %63 = vector.broadcast %cst_29 : f32 to vector<256x128xf32>
    %64 = arith.addf %63, %62 : vector<256x128xf32>
    %65 = arith.mulf %54, %64 : vector<256x128xf32>
    %66 = arith.truncf %65 : vector<256x128xf32> to vector<256x128xbf16>
    %c0_30 = arith.constant 0 : index
    %c256_31 = arith.constant 256 : index
    %67 = vector.load %arg8[%c0_30, %c256_31] : memref<256x512xbf16, #tpu.memory_space<vmem>>, vector<256x128xbf16>
    tpu.vector_store %arg8[%c0_30, %c256_31], %66 {strides = array<i32>} : memref<256x512xbf16, #tpu.memory_space<vmem>>, vector<256x128xbf16>,
    %c0_32 = arith.constant 0 : index
    %c384 = arith.constant 384 : index
    %68 = vector.load %arg3[%c0_32, %c384] : memref<128x512xbf16, #tpu.memory_space<vmem>>, vector<128x128xbf16>
    %cst_33 = arith.constant dense<0.000000e+00> : vector<256x128xf32>
    %69 = tpu.matmul %1, %68, %cst_33 {dimension_numbers = #tpu.dot_dimension_numbers<[1], [0], [0], [1], [0, 0, 1, 1], [], []>} : vector<256x128xbf16>, vector<128x128xbf16>, vector<256x128xf32> -> vector<256x128xf32>
    %c0_34 = arith.constant 0 : index
    %c384_35 = arith.constant 384 : index
    %70 = vector.load %arg4[%c0_34, %c384_35] : memref<1x512xf32, #tpu.memory_space<vmem>>, vector<1x128xf32>
    %71 = vector.shape_cast %70 : vector<1x128xf32> to vector<128xf32>
    %72 = vector.shape_cast %71 : vector<128xf32> to vector<1x128xf32>
    %73 = vector.broadcast %72 : vector<1x128xf32> to vector<256x128xf32>
    %74 = arith.addf %69, %73 : vector<256x128xf32>
    %cst_36 = arith.constant 5.000000e-01 : f32
    %75 = vector.broadcast %cst_36 : f32 to vector<256x128xf32>
    %76 = arith.mulf %75, %74 : vector<256x128xf32>
    %77 = arith.mulf %74, %74 : vector<256x128xf32>
    %78 = arith.mulf %77, %74 : vector<256x128xf32>
    %cst_37 = arith.constant 4.471500e-02 : f32
    %79 = vector.broadcast %cst_37 : f32 to vector<256x128xf32>
    %80 = arith.mulf %79, %78 : vector<256x128xf32>
    %81 = arith.addf %74, %80 : vector<256x128xf32>
    %cst_38 = arith.constant 0.797884583 : f32
    %82 = vector.broadcast %cst_38 : f32 to vector<256x128xf32>
    %83 = arith.mulf %82, %81 : vector<256x128xf32>
    %84 = math.tanh %83 : vector<256x128xf32>
    %cst_39 = arith.constant 1.000000e+00 : f32
    %85 = vector.broadcast %cst_39 : f32 to vector<256x128xf32>
    %86 = arith.addf %85, %84 : vector<256x128xf32>
    %87 = arith.mulf %76, %86 : vector<256x128xf32>
    %88 = arith.truncf %87 : vector<256x128xf32> to vector<256x128xbf16>
    %c0_40 = arith.constant 0 : index
    %c384_41 = arith.constant 384 : index
    %89 = vector.load %arg8[%c0_40, %c384_41] : memref<256x512xbf16, #tpu.memory_space<vmem>>, vector<256x128xbf16>
    tpu.vector_store %arg8[%c0_40, %c384_41], %88 {strides = array<i32>} : memref<256x512xbf16, #tpu.memory_space<vmem>>, vector<256x128xbf16>,
    %c0_42 = arith.constant 0 : index
    %c0_43 = arith.constant 0 : index
    %90 = vector.load %arg5[%c0_42, %c0_43] : memref<128x512xbf16, #tpu.memory_space<vmem>>, vector<128x512xbf16>
    %c0_44 = arith.constant 0 : index
    %c0_45 = arith.constant 0 : index
    %91 = vector.load %arg8[%c0_44, %c0_45] : memref<256x512xbf16, #tpu.memory_space<vmem>>, vector<256x512xbf16>
    %cst_46 = arith.constant dense<0.000000e+00> : vector<128x256xf32>
    %92 = tpu.matmul %90, %91, %cst_46 {dimension_numbers = #tpu.dot_dimension_numbers<[1], [1], [0], [0], [0, 0, 1, 0], [], []>} : vector<128x512xbf16>, vector<256x512xbf16>, vector<128x256xf32> -> vector<128x256xf32>
    %c0_47 = arith.constant 0 : index
    %c0_48 = arith.constant 0 : index
    %93 = vector.load %arg6[%c0_47, %c0_48] : memref<128x1xf32, #tpu.memory_space<vmem>>, vector<128x1xf32>
    %94 = vector.broadcast %93 : vector<128x1xf32> to vector<128x256xf32>
    %95 = arith.addf %92, %94 : vector<128x256xf32>
    %c0_49 = arith.constant 0 : index
    %c0_50 = arith.constant 0 : index
    %c0_51 = arith.constant 0 : index
    %96 = vector.load %arg7[%c0_49, %c0_50, %c0_51] : memref<1x128x256xf32, #tpu.memory_space<vmem>>, vector<1x128x256xf32>
    %97 = vector.shape_cast %96 : vector<1x128x256xf32> to vector<128x256xf32>
    %98 = vector.shape_cast %95 : vector<128x256xf32> to vector<1x128x256xf32>
    tpu.vector_store %arg7[%c0_49, %c0_50, %c0_51], %98 {strides = array<i32>} : memref<1x128x256xf32, #tpu.memory_space<vmem>>, vector<1x128x256xf32>,
    return
  }
  func.func @transform_0(%arg0: i32, %arg1: i32) -> (i32, i32, i32) {
    %c0_i32 = arith.constant 0 : i32
    %c0_i32_0 = arith.constant 0 : i32
    return %arg0, %arg1, %c0_i32 : i32, i32, i32
  }
  func.func @transform_1(%arg0: i32, %arg1: i32) -> (i32, i32) {
    %c0_i32 = arith.constant 0 : i32
    %c0_i32_0 = arith.constant 0 : i32
    %c0_i32_1 = arith.constant 0 : i32
    return %c0_i32, %c0_i32_0 : i32, i32
  }
  func.func @transform_2(%arg0: i32, %arg1: i32) -> (i32, i32) {
    %c0_i32 = arith.constant 0 : i32
    %c0_i32_0 = arith.constant 0 : i32
    %c0_i32_1 = arith.constant 0 : i32
    return %c0_i32, %c0_i32_0 : i32, i32
  }
  func.func @transform_3(%arg0: i32, %arg1: i32) -> (i32, i32) {
    %c0_i32 = arith.constant 0 : i32
    %c0_i32_0 = arith.constant 0 : i32
    %c0_i32_1 = arith.constant 0 : i32
    return %c0_i32, %c0_i32_0 : i32, i32
  }
  func.func @transform_4(%arg0: i32, %arg1: i32) -> (i32, i32) {
    %c0_i32 = arith.constant 0 : i32
    %c0_i32_0 = arith.constant 0 : i32
    %c0_i32_1 = arith.constant 0 : i32
    return %c0_i32, %c0_i32_0 : i32, i32
  }
  func.func @transform_5(%arg0: i32, %arg1: i32) -> (i32, i32, i32) {
    %c0_i32 = arith.constant 0 : i32
    %c0_i32_0 = arith.constant 0 : i32
    return %arg0, %c0_i32, %arg1 : i32, i32, i32
  }
}

</mosaic_0001>

<bundles_post_ra>
// kernel: conv_ffn.2
= control target key start
LH: loop header
LB: loop body
LE: loop exit
PB: predicated region body
PF: predicated region fallthrough
CT: control target
= control target key end

     0   :  { %9 = vsyncpa [#allocation4], 0  ;;  %s2458_s0 = inlined_call_operand.hbm [shape: f32[2,16,16,128], index: 0, kind: input, shape index: {}]   ;;  %s2459_s1 = inlined_call_operand.vmem [shape: f32[7,7,128], index: 1, kind: input, shape index: {}]   ;;  %s2460_s2 = inlined_call_operand.vmem [shape: bf16[2,16,16,128], index: 2, kind: output, shape index: {0}]   ;;  %s2461_s3 = inlined_call_operand.vmem [shape: f32[2,2,128], index: 3, kind: output, shape index: {1}]  }
   0x1   :  { %11 = vsyncpa [#allocation4 + $0x1], 0  ;;  %s1982_s12 = smov 0   ;;  %s1984_s13 = smov 0  }
   0x2   :  { %s1986_s14 = smov 0   ;;  %s1988_s15 = smov 0  }
   0x3   :  { %s1990_s16 = smov 0   ;;  %s1992_s17 = smov 0  }
   0x4 LB: > { %s1633_s18 = sadd.s32 4294967295, %s1945_s17   ;;  %s29_s19 = sadd.s32 1, %s1941_s16  ;;  %s1945_s17 = sphi %s1992_s17, %s17_s17   ;;  %s1941_s16 = sphi %s1990_s16, %s2470_s16   ;;  %s1937_s15 = sphi %s1988_s15, %s2469_s15   ;;  %s1933_s14 = sphi %s1986_s14, %s2468_s14   ;;  %s1929_s13 = sphi %s1984_s13, %s2467_s13   ;;  %s1925_s12 = sphi %s1982_s12, %s2466_s12  }
   0x5   : > { %p31_p0 = scmp.ge.s32.totalorder %s29_s19, 2  ;;  %s38_s20 = sadd.s32 1, %s1933_s14 }
   0x6   : > { %p45_p1 = scmp.ne.s32.totalorder %s1933_s14, %s1929_s13  ;;  %p46_p2 = scmp.eq.s32.totalorder %s1945_s17, 0 }
   0x7   : > { %s2472_s19 = smov (%p31_p0, %s29_s19), 0  ;;  %p51_p4 = scmp.ne.s32.totalorder %s1929_s13, %s1925_s12 }
   0x8   : > { %p2018_p3 = por %p46_p2, %p45_p1  ;;  %s33_s22 = ssub.s32 %s1941_s16, %s2472_s19 }
   0x9   : > { %p52_p5 = scmp.eq.s32.totalorder %s1633_s18, 0  ;;  %p36_p6 = scmp.eq.s32.totalorder %s33_s22, 0 }
   0xa   : > { %p1728_p8 = scmp.lt.s32.totalorder %s1945_s17, 2  ;;  %s164_s25 = sand.u32 1, %s1933_s14  }
   0xb   : > { %p2025_p7 = por %p52_p5, %p51_p4  ;;  %s1694_s26 = sshll.u32 %s1941_s16, 8 }
   0xc   : > { %s2031_s24 = scalar_select %p36_p6, %s1933_s14, %s38_s20  }
   0xd   : > { %s1638_s27 = sshll.u32 %s164_s25, 8  ;;  %s174_s30 = scalar_lea.hbm %s2458_s0, %s1694_s26 }
   0xe   : > { %s175_s4 = sshll.u32 %s174_s30, 4  ;;  %s168_s5 = scalar_lea.vmem [#allocation3], %s1638_s27  ;;  %s176_s4 = int_to_ptr.hbm [resolvable:$true] %s175_s4 }
   0xf   : > { %s177_s6 = sshll.u32 %s168_s5, 4  ;;  %p1725_p9 = pnand %p1728_p8, %p2018_p3  ;;  %s178_s6 = int_to_ptr.vmem [resolvable:$true] %s177_s6 }
  0x10   : > { %p1641_p10 = scmp.ge.s32.totalorder %s1945_s17, 1  ;;  %p185_p11 = scmp.lt.s32.totalorder %s1945_s17, 3 }
  0x11   : > { %s165_s7 = scalar_lea.sflag [#allocation4], %s164_s25  ;;  %s1959_s8 = smov 128  }
  0x12   : > { %s1960_s9 = smov 8   ;;  %p186_p12 = pnand %p1641_p10, %p185_p11 }
  0x13   : > { %1727 = dma.hbm_to_vmem [thread:$0]  (!%p1725_p9), %s176_s4, 4096, %s178_s6, %s165_s7, %s1959_s8, %s1959_s8, %s1960_s9  }
  0x14   : > { %189 = sbr.rel (%p186_p12) target bundleno = 349 (0x15d), region = 28  ;;  %s191_s10 = sand.u32 (!%p186_p12), 1, %s1929_s13  }
  0x15   : > { %s1642_s11 = sshll.u32 (!%p186_p12), %s191_s10, 8  ;;  %s192_s12 = scalar_lea.sflag (!%p186_p12), [#allocation4], %s191_s10 }
  0x16   : > { %s2043_s18 = scalar_lea.vmem (!%p186_p12), [#allocation3], %s1642_s11 }
  0x19   : > { %1920 = dma.done.wait (%p2025_p7), %s192_s12, 4096  }
  0x1a   : > { %1922 = vsyncadd (%p2025_p7), %s192_s12, 4294963200  ;;  %p237_p13 = scmp.lt.s32.totalorder %s1937_s15, 1  ;;  %v1961_v0 = vmov 0.0   ;;  %v310_v1 = vld [vmem:[%s2043_s18] sm:$0xff]  ;;  %v311_v2 = vld [vmem:[%s2043_s18 + $0x8] sm:$0xff]  ;;  %v2093_v33 = vmov 0.0  }
  0x1b   : > { %252 = vst [vmem:[#allocation2] sm:$0xff] %v1961_v0  ;;  %v312_v3 = vld [vmem:[%s2043_s18 + $0x10] sm:$0xff]  ;;  %v313_v4 = vld [vmem:[%s2043_s18 + $0x18] sm:$0xff]  ;;  %v314_v5 = vld [vmem:[%s2043_s18 + $0x20] sm:$0xff]  ;;  %v2095_v34 = vmov 0.0  }
  0x1c   : > { %s2474_s15 = smov (!%p237_p13, %s1937_s15), 1  ;;  %253 = vst [vmem:[#allocation2 + $0x8] sm:$0xff] %v1961_v0  ;;  %v315_v6 = vld [vmem:[%s2043_s18 + $0x28] sm:$0xff]  ;;  %v316_v7 = vld [vmem:[%s2043_s18 + $0x30] sm:$0xff]  ;;  %v317_v8 = vld [vmem:[%s2043_s18 + $0x38] sm:$0xff] }
  0x1d   : > { %254 = vst [vmem:[#allocation2 + $0x10] sm:$0xff] %v1961_v0  ;;  %s1695_s20 = sshll.u32 %s2474_s15, 7  ;;  %s1645_s21 = sshll.u32 %s2474_s15, 1  ;;  %v318_v9 = vld [vmem:[%s2043_s18 + $0x40] sm:$0xff]  ;;  %v319_v10 = vld [vmem:[%s2043_s18 + $0x48] sm:$0xff]  ;;  %v320_v11 = vld [vmem:[%s2043_s18 + $0x50] sm:$0xff] }
  0x1e   : > { %255 = vst [vmem:[#allocation2 + $0x18] sm:$0x7] %v1961_v0  ;;  %s2054_s26 = scalar_lea.vmem %s2460_s2, %s1695_s20  ;;  %s2059_s23 = scalar_lea.vmem %s2461_s3, %s1645_s21  ;;  %v321_v12 = vld [vmem:[%s2043_s18 + $0x58] sm:$0xff]  ;;  %v322_v13 = vld [vmem:[%s2043_s18 + $0x60] sm:$0xff]  ;;  %v323_v14 = vld [vmem:[%s2043_s18 + $0x68] sm:$0xff] }
  0x1f   : > { %256 = vst [vmem:[#allocation2 + $0x20] sm:$0xff] %v1961_v0  ;;  %v324_v15 = vld [vmem:[%s2043_s18 + $0x70] sm:$0xff]  ;;  %v325_v16 = vld [vmem:[%s2043_s18 + $0x78] sm:$0xff]  ;;  %v326_v17 = vld [vmem:[%s2043_s18 + $0x80] sm:$0xff]  ;;  %s2097_s15 = smov 0  }
  0x20   : > { %257 = vst [vmem:[#allocation2 + $0x28] sm:$0xff] %v1961_v0  ;;  %v327_v18 = vld [vmem:[%s2043_s18 + $0x88] sm:$0xff]  ;;  %v328_v19 = vld [vmem:[%s2043_s18 + $0x90] sm:$0xff]  ;;  %v329_v20 = vld [vmem:[%s2043_s18 + $0x98] sm:$0xff] }
  0x21   : > { %258 = vst [vmem:[#allocation2 + $0x30] sm:$0xff] %v1961_v0  ;;  %v330_v21 = vld [vmem:[%s2043_s18 + $0xa0] sm:$0xff]  ;;  %v331_v22 = vld [vmem:[%s2043_s18 + $0xa8] sm:$0xff]  ;;  %v332_v23 = vld [vmem:[%s2043_s18 + $0xb0] sm:$0xff] }
  0x22   : > { %259 = vst [vmem:[#allocation2 + $0x38] sm:$0x7] %v1961_v0  ;;  %v333_v24 = vld [vmem:[%s2043_s18 + $0xb8] sm:$0xff]  ;;  %v334_v25 = vld [vmem:[%s2043_s18 + $0xc0] sm:$0xff]  ;;  %v335_v26 = vld [vmem:[%s2043_s18 + $0xc8] sm:$0xff] }
  0x23   : > { %260 = vst [vmem:[#allocation2 + $0x40] sm:$0xff] %v1961_v0  ;;  %v336_v27 = vld [vmem:[%s2043_s18 + $0xd0] sm:$0xff]  ;;  %v337_v28 = vld [vmem:[%s2043_s18 + $0xd8] sm:$0xff]  ;;  %v338_v29 = vld [vmem:[%s2043_s18 + $0xe0] sm:$0xff] }
  0x24   : > { %261 = vst [vmem:[#allocation2 + $0x48] sm:$0xff] %v1961_v0  ;;  %v339_v30 = vld [vmem:[%s2043_s18 + $0xe8] sm:$0xff]  ;;  %v340_v31 = vld [vmem:[%s2043_s18 + $0xf0] sm:$0xff]  ;;  %v341_v32 = vld [vmem:[%s2043_s18 + $0xf8] sm:$0xff] }
  0x25   : > { %262 = vst [vmem:[#allocation2 + $0x50] sm:$0xff] %v1961_v0 }
  0x26   : > { %263 = vst [vmem:[#allocation2 + $0x58] sm:$0x7] %v1961_v0 }
  0x27   : > { %265 = vst [vmem:[#allocation2 + $0x260] sm:$0xff] %v1961_v0 }
  0x28   : > { %266 = vst [vmem:[#allocation2 + $0x268] sm:$0xff] %v1961_v0 }
  0x29   : > { %267 = vst [vmem:[#allocation2 + $0x270] sm:$0xff] %v1961_v0 }
  0x2a   : > { %268 = vst [vmem:[#allocation2 + $0x278] sm:$0x7] %v1961_v0 }
  0x2b   : > { %269 = vst [vmem:[#allocation2 + $0x280] sm:$0xff] %v1961_v0 }
  0x2c   : > { %270 = vst [vmem:[#allocation2 + $0x288] sm:$0xff] %v1961_v0 }
  0x2d   : > { %271 = vst [vmem:[#allocation2 + $0x290] sm:$0xff] %v1961_v0 }
  0x2e   : > { %272 = vst [vmem:[#allocation2 + $0x298] sm:$0x7] %v1961_v0 }
  0x2f   : > { %273 = vst [vmem:[#allocation2 + $0x2a0] sm:$0xff] %v1961_v0 }
  0x30   : > { %274 = vst [vmem:[#allocation2 + $0x2a8] sm:$0xff] %v1961_v0 }
  0x31   : > { %275 = vst [vmem:[#allocation2 + $0x2b0] sm:$0xff] %v1961_v0 }
  0x32   : > { %276 = vst [vmem:[#allocation2 + $0x2b8] sm:$0x7] %v1961_v0 }
  0x33   : > { %278 = vst [vmem:[#allocation2 + $0x65] sm:$0x7] %v1961_v0 }
  0x34   : > { %279 = vst [vmem:[#allocation2 + $0x85] sm:$0x7] %v1961_v0 }
  0x35   : > { %280 = vst [vmem:[#allocation2 + $0xa5] sm:$0x7] %v1961_v0 }
  0x36   : > { %281 = vst [vmem:[#allocation2 + $0xc5] sm:$0x7] %v1961_v0 }
  0x37   : > { %282 = vst [vmem:[#allocation2 + $0xe5] sm:$0x7] %v1961_v0 }
  0x38   : > { %283 = vst [vmem:[#allocation2 + $0x105] sm:$0x7] %v1961_v0 }
  0x39   : > { %284 = vst [vmem:[#allocation2 + $0x125] sm:$0x7] %v1961_v0 }
  0x3a   : > { %285 = vst [vmem:[#allocation2 + $0x145] sm:$0x7] %v1961_v0 }
  0x3b   : > { %286 = vst [vmem:[#allocation2 + $0x165] sm:$0x7] %v1961_v0 }
  0x3c   : > { %287 = vst [vmem:[#allocation2 + $0x185] sm:$0x7] %v1961_v0 }
  0x3d   : > { %288 = vst [vmem:[#allocation2 + $0x1a5] sm:$0x7] %v1961_v0 }
  0x3e   : > { %289 = vst [vmem:[#allocation2 + $0x1c5] sm:$0x7] %v1961_v0 }
  0x3f   : > { %290 = vst [vmem:[#allocation2 + $0x1e5] sm:$0x7] %v1961_v0 }
  0x40   : > { %291 = vst [vmem:[#allocation2 + $0x205] sm:$0x7] %v1961_v0 }
  0x41   : > { %292 = vst [vmem:[#allocation2 + $0x225] sm:$0x7] %v1961_v0 }
  0x42   : > { %293 = vst [vmem:[#allocation2 + $0x245] sm:$0x7] %v1961_v0 }
  0x43   : > { %294 = vst [vmem:[#allocation2 + $0x78] sm:$0x7] %v1961_v0 }
  0x44   : > { %295 = vst [vmem:[#allocation2 + $0x98] sm:$0x7] %v1961_v0 }
  0x45   : > { %296 = vst [vmem:[#allocation2 + $0xb8] sm:$0x7] %v1961_v0 }
  0x46   : > { %297 = vst [vmem:[#allocation2 + $0xd8] sm:$0x7] %v1961_v0 }
  0x47   : > { %298 = vst [vmem:[#allocation2 + $0xf8] sm:$0x7] %v1961_v0 }
  0x48   : > { %299 = vst [vmem:[#allocation2 + $0x118] sm:$0x7] %v1961_v0 }
  0x49   : > { %300 = vst [vmem:[#allocation2 + $0x138] sm:$0x7] %v1961_v0 }
  0x4a   : > { %301 = vst [vmem:[#allocation2 + $0x158] sm:$0x7] %v1961_v0 }
  0x4b   : > { %302 = vst [vmem:[#allocation2 + $0x178] sm:$0x7] %v1961_v0 }
  0x4c   : > { %303 = vst [vmem:[#allocation2 + $0x198] sm:$0x7] %v1961_v0 }
  0x4d   : > { %304 = vst [vmem:[#allocation2 + $0x1b8] sm:$0x7] %v1961_v0 }
  0x4e   : > { %305 = vst [vmem:[#allocation2 + $0x1d8] sm:$0x7] %v1961_v0 }
  0x4f   : > { %306 = vst [vmem:[#allocation2 + $0x1f8] sm:$0x7] %v1961_v0 }
  0x50   : > { %307 = vst [vmem:[#allocation2 + $0x218] sm:$0x7] %v1961_v0 }
  0x51   : > { %308 = vst [vmem:[#allocation2 + $0x238] sm:$0x7] %v1961_v0 }
  0x52   : > { %309 = vst [vmem:[#allocation2 + $0x258] sm:$0x7] %v1961_v0 }
  0x53   : > { %342 = vst [vmem:[#allocation2 + $0x68] sm:$0xff] %v310_v1 }
  0x54   : > { %343 = vst [vmem:[#allocation2 + $0x70] sm:$0xff] %v311_v2 }
  0x55   : > { %344 = vst [vmem:[#allocation2 + $0x88] sm:$0xff] %v312_v3 }
  0x56   : > { %345 = vst [vmem:[#allocation2 + $0x90] sm:$0xff] %v313_v4 }
  0x57   : > { %346 = vst [vmem:[#allocation2 + $0xa8] sm:$0xff] %v314_v5 }
  0x58   : > { %347 = vst [vmem:[#allocation2 + $0xb0] sm:$0xff] %v315_v6 }
  0x59   : > { %348 = vst [vmem:[#allocation2 + $0xc8] sm:$0xff] %v316_v7 }
  0x5a   : > { %349 = vst [vmem:[#allocation2 + $0xd0] sm:$0xff] %v317_v8 }
  0x5b   : > { %350 = vst [vmem:[#allocation2 + $0xe8] sm:$0xff] %v318_v9 }
  0x5c   : > { %351 = vst [vmem:[#allocation2 + $0xf0] sm:$0xff] %v319_v10 }
  0x5d   : > { %352 = vst [vmem:[#allocation2 + $0x108] sm:$0xff] %v320_v11 }
  0x5e   : > { %353 = vst [vmem:[#allocation2 + $0x110] sm:$0xff] %v321_v12 }
  0x5f   : > { %354 = vst [vmem:[#allocation2 + $0x128] sm:$0xff] %v322_v13 }
  0x60   : > { %355 = vst [vmem:[#allocation2 + $0x130] sm:$0xff] %v323_v14 }
  0x61   : > { %356 = vst [vmem:[#allocation2 + $0x148] sm:$0xff] %v324_v15 }
  0x62   : > { %357 = vst [vmem:[#allocation2 + $0x150] sm:$0xff] %v325_v16 }
  0x63   : > { %358 = vst [vmem:[#allocation2 + $0x168] sm:$0xff] %v326_v17 }
  0x64   : > { %359 = vst [vmem:[#allocation2 + $0x170] sm:$0xff] %v327_v18 }
  0x65   : > { %360 = vst [vmem:[#allocation2 + $0x188] sm:$0xff] %v328_v19 }
  0x66   : > { %361 = vst [vmem:[#allocation2 + $0x190] sm:$0xff] %v329_v20 }
  0x67   : > { %362 = vst [vmem:[#allocation2 + $0x1a8] sm:$0xff] %v330_v21 }
  0x68   : > { %363 = vst [vmem:[#allocation2 + $0x1b0] sm:$0xff] %v331_v22 }
  0x69   : > { %364 = vst [vmem:[#allocation2 + $0x1c8] sm:$0xff] %v332_v23 }
  0x6a   : > { %365 = vst [vmem:[#allocation2 + $0x1d0] sm:$0xff] %v333_v24 }
  0x6b   : > { %366 = vst [vmem:[#allocation2 + $0x1e8] sm:$0xff] %v334_v25 }
  0x6c   : > { %367 = vst [vmem:[#allocation2 + $0x1f0] sm:$0xff] %v335_v26 }
  0x6d   : > { %368 = vst [vmem:[#allocation2 + $0x208] sm:$0xff] %v336_v27 }
  0x6e   : > { %369 = vst [vmem:[#allocation2 + $0x210] sm:$0xff] %v337_v28 }
  0x6f   : > { %370 = vst [vmem:[#allocation2 + $0x228] sm:$0xff] %v338_v29 }
  0x70   : > { %371 = vst [vmem:[#allocation2 + $0x230] sm:$0xff] %v339_v30 }
  0x71   : > { %372 = vst [vmem:[#allocation2 + $0x248] sm:$0xff] %v340_v31 }
  0x72   : > { %373 = vst [vmem:[#allocation2 + $0x250] sm:$0xff] %v341_v32 }
  0x73 LB: >> { %v1804_v35 = vld [vmem:[%s2459_s1] ss:$0 sm:$0xff]  ;;  %v1805_v36 = vld [vmem:[%s2459_s1 + $0x8] ss:$0 sm:$0xff]  ;;  %s1696_s6 = sshll.u32 %s1957_s15, 7  ;;  %s1698_s25 = sshll.u32 %s1957_s15, 5  ;;  %s1957_s15 = sphi %s2097_s15, %s379_s15   ;;  %v1953_v34 = vphi %v2095_v34, %v2465_v34   ;;  %v1949_v33 = vphi %v2093_v33, %v2464_v33  }
  0x74   : >> { %s2115_s7 = scalar_lea.vmem [#allocation2], %s1696_s6  ;;  %v1806_v59 = vld [vmem:[%s2459_s1 + $0x10] ss:$0 sm:$0xff]  ;;  %v1807_v8 = vld [vmem:[%s2459_s1 + $0x18] ss:$0 sm:$0xff]  ;;  %s379_s15 = sadd.s32 1, %s1957_s15  }
  0x75   : >> { %p376_p0 = scmp.ge.s32.totalorder %s379_s15, 4  }
  0x76   : > { %vm1468_vm0 = vcmask (%p376_p0), 1040384  }
  0x79   : >> { %v385_v37 = vld [vmem:[%s2115_s7 + $0x5] sm:$0xff]  ;;  %v386_v38 = vld [vmem:[%s2115_s7 + $0xd] sm:$0xff] }
  0x7a   : >> { %v387_v39 = vld [vmem:[%s2115_s7 + $0x25] sm:$0xff]  ;;  %v388_v40 = vld [vmem:[%s2115_s7 + $0x2d] sm:$0xff]  ;;  %v407_v43 = vmul.f32 %v1804_v35, %v385_v37  ;;  %v408_v44 = vmul.f32 %v1804_v35, %v386_v38 }
  0x7b   : >> { %v389_v41 = vld [vmem:[%s2115_s7 + $0x45] sm:$0xff]  ;;  %v390_v42 = vld [vmem:[%s2115_s7 + $0x4d] sm:$0xff]  ;;  %v409_v45 = vmul.f32 %v1804_v35, %v387_v39  ;;  %v426_v46 = vmul.f32 %v1805_v36, %v387_v39  ;;  %v410_v49 = vmul.f32 %v1804_v35, %v388_v40  ;;  %v427_v52 = vmul.f32 %v1805_v36, %v388_v40 }
  0x7c   : >> { %v391_v47 = vld [vmem:[%s2115_s7 + $0x65] sm:$0xff]  ;;  %v392_v48 = vld [vmem:[%s2115_s7 + $0x6d] sm:$0xff]  ;;  %v411_v50 = vmul.f32 %v1804_v35, %v389_v41  ;;  %v412_v51 = vmul.f32 %v1804_v35, %v390_v42  ;;  %v428_v57 = vmul.f32 %v1805_v36, %v389_v41  ;;  %v429_v58 = vmul.f32 %v1805_v36, %v390_v42 }
  0x7d   : >> { %v393_v53 = vld [vmem:[%s2115_s7 + $0x85] sm:$0xff]  ;;  %v394_v54 = vld [vmem:[%s2115_s7 + $0x8d] sm:$0xff]  ;;  %v413_v55 = vmul.f32 %v1804_v35, %v391_v47  ;;  %v414_v56 = vmul.f32 %v1804_v35, %v392_v48  ;;  %v430_v60 = vmul.f32 %v1805_v36, %v391_v47  ;;  %v431_v61 = vmul.f32 %v1805_v36, %v392_v48  ;;  %v1808_v35 = vld [vmem:[%s2459_s1 + $0x20] ss:$0 sm:$0xff] }
  0x7e   : >> { %v432_v62 = vmul.f32 %v1805_v36, %v393_v53  ;;  %v433_v63 = vmul.f32 %v1805_v36, %v394_v54  ;;  %v434_v0 = vadd.f32 %v426_v46, %v407_v43  ;;  %v435_v1 = vadd.f32 %v427_v52, %v408_v44  ;;  %v395_v9 = vld [vmem:[%s2115_s7 + $0xa5] sm:$0xff]  ;;  %v396_v10 = vld [vmem:[%s2115_s7 + $0xad] sm:$0xff] }
  0x7f   : >> { %v436_v2 = vadd.f32 %v428_v57, %v409_v45  ;;  %v437_v3 = vadd.f32 %v429_v58, %v410_v49  ;;  %v438_v4 = vadd.f32 %v430_v60, %v411_v50  ;;  %v439_v5 = vadd.f32 %v431_v61, %v412_v51  ;;  %v397_v27 = vld [vmem:[%s2115_s7 + $0xc5] sm:$0xff]  ;;  %v398_v28 = vld [vmem:[%s2115_s7 + $0xcd] sm:$0xff] }
  0x80   : >> { %v440_v6 = vadd.f32 %v432_v62, %v413_v55  ;;  %v441_v7 = vadd.f32 %v433_v63, %v414_v56  ;;  %v445_v11 = vmul.f32 %v1806_v59, %v389_v41  ;;  %v446_v12 = vmul.f32 %v1806_v59, %v390_v42  ;;  %v399_v44 = vld [vmem:[%s2115_s7 + $0xe5] sm:$0xff]  ;;  %v400_v49 = vld [vmem:[%s2115_s7 + $0xed] sm:$0xff] }
  0x81   : >> { %v447_v13 = vmul.f32 %v1806_v59, %v391_v47  ;;  %v448_v14 = vmul.f32 %v1806_v59, %v392_v48  ;;  %v449_v15 = vmul.f32 %v1806_v59, %v393_v53  ;;  %v450_v16 = vmul.f32 %v1806_v59, %v394_v54  ;;  %v1809_v56 = vld [vmem:[%s2459_s1 + $0x28] ss:$0 sm:$0xff] }
  0x82   : >> { %v451_v17 = vmul.f32 %v1806_v59, %v395_v9  ;;  %v452_v18 = vmul.f32 %v1806_v59, %v396_v10  ;;  %v453_v19 = vadd.f32 %v445_v11, %v434_v0  ;;  %v454_v20 = vadd.f32 %v446_v12, %v435_v1  ;;  %v401_v1 = vld [vmem:[%s2115_s7 + $0x105] sm:$0xff]  ;;  %v1810_v11 = vld [vmem:[%s2459_s1 + $0x30] ss:$0 sm:$0xff] }
  0x83   : >> { %v455_v21 = vadd.f32 %v447_v13, %v436_v2  ;;  %v456_v22 = vadd.f32 %v448_v14, %v437_v3  ;;  %v457_v23 = vadd.f32 %v449_v15, %v438_v4  ;;  %v458_v24 = vadd.f32 %v450_v16, %v439_v5  ;;  %v402_v4 = vld [vmem:[%s2115_s7 + $0x10d] sm:$0xff]  ;;  %v403_v12 = vld [vmem:[%s2115_s7 + $0x125] sm:$0xff] }
  0x84   : >> { %v459_v25 = vadd.f32 %v451_v17, %v440_v6  ;;  %v460_v26 = vadd.f32 %v452_v18, %v441_v7  ;;  %v464_v29 = vmul.f32 %v1807_v8, %v391_v47  ;;  %v465_v30 = vmul.f32 %v1807_v8, %v392_v48  ;;  %v404_v13 = vld [vmem:[%s2115_s7 + $0x12d] sm:$0xff] }
  0x85   : >> { %v466_v31 = vmul.f32 %v1807_v8, %v393_v53  ;;  %v467_v32 = vmul.f32 %v1807_v8, %v394_v54  ;;  %v468_v36 = vmul.f32 %v1807_v8, %v395_v9  ;;  %v469_v37 = vmul.f32 %v1807_v8, %v396_v10 }
  0x86   : >> { %v470_v38 = vmul.f32 %v1807_v8, %v397_v27  ;;  %v471_v39 = vmul.f32 %v1807_v8, %v398_v28  ;;  %v472_v40 = vadd.f32 %v464_v29, %v453_v19  ;;  %v473_v41 = vadd.f32 %v465_v30, %v454_v20  ;;  %v1811_v30 = vld [vmem:[%s2459_s1 + $0x1] ss:$0 sm:$0xff] }
  0x87   : >> { %v474_v42 = vadd.f32 %v466_v31, %v455_v21  ;;  %v475_v43 = vadd.f32 %v467_v32, %v456_v22  ;;  %v476_v45 = vadd.f32 %v468_v36, %v457_v23  ;;  %v477_v46 = vadd.f32 %v469_v37, %v458_v24  ;;  %v537_v37 = vld [vmem:[%s2115_s7 + $0x6] sm:$0xff] }
  0x88   : >> { %v478_v47 = vadd.f32 %v470_v38, %v459_v25  ;;  %v479_v48 = vadd.f32 %v471_v39, %v460_v26  ;;  %v483_v50 = vmul.f32 %v1808_v35, %v393_v53  ;;  %v484_v51 = vmul.f32 %v1808_v35, %v394_v54  ;;  %v538_v38 = vld [vmem:[%s2115_s7 + $0xe] sm:$0xff]  ;;  %v539_v39 = vld [vmem:[%s2115_s7 + $0x26] sm:$0xff] }
  0x89   : >> { %v485_v52 = vmul.f32 %v1808_v35, %v395_v9  ;;  %v486_v55 = vmul.f32 %v1808_v35, %v396_v10  ;;  %v487_v57 = vmul.f32 %v1808_v35, %v397_v27  ;;  %v488_v58 = vmul.f32 %v1808_v35, %v398_v28 }
  0x8a   : >> { %v489_v59 = vmul.f32 %v1808_v35, %v399_v44  ;;  %v490_v60 = vmul.f32 %v1808_v35, %v400_v49  ;;  %v491_v61 = vadd.f32 %v483_v50, %v472_v40  ;;  %v492_v62 = vadd.f32 %v484_v51, %v473_v41  ;;  %v544_v50 = vld [vmem:[%s2115_s7 + $0x6e] sm:$0xff] }
  0x8b   : >> { %v493_v63 = vadd.f32 %v485_v52, %v474_v42  ;;  %v494_v0 = vadd.f32 %v486_v55, %v475_v43  ;;  %v495_v53 = vadd.f32 %v487_v57, %v476_v45  ;;  %v496_v54 = vadd.f32 %v488_v58, %v477_v46  ;;  %v540_v46 = vld [vmem:[%s2115_s7 + $0x2e] sm:$0xff]  ;;  %v1812_v57 = vld [vmem:[%s2459_s1 + $0x9] ss:$0 sm:$0xff] }
  0x8c   : >> { %v497_v2 = vadd.f32 %v489_v59, %v478_v47  ;;  %v498_v3 = vadd.f32 %v490_v60, %v479_v48  ;;  %v502_v5 = vmul.f32 %v1809_v56, %v395_v9  ;;  %v503_v6 = vmul.f32 %v1809_v56, %v396_v10  ;;  %v541_v47 = vld [vmem:[%s2115_s7 + $0x46] sm:$0xff]  ;;  %v542_v48 = vld [vmem:[%s2115_s7 + $0x4e] sm:$0xff] }
  0x8d   : >> { %v504_v7 = vmul.f32 %v1809_v56, %v397_v27  ;;  %v505_v8 = vmul.f32 %v1809_v56, %v398_v28  ;;  %v506_v14 = vmul.f32 %v1809_v56, %v399_v44  ;;  %v507_v15 = vmul.f32 %v1809_v56, %v400_v49 }
  0x8e   : >> { %v508_v16 = vmul.f32 %v1809_v56, %v401_v1  ;;  %v509_v17 = vmul.f32 %v1809_v56, %v402_v4  ;;  %v510_v18 = vadd.f32 %v502_v5, %v491_v61  ;;  %v511_v19 = vadd.f32 %v503_v6, %v492_v62  ;;  %v2167_v62 = vld [vmem:[%s2115_s7 + $0x86] sm:$0xff] }
  0x8f   : >> { %v512_v20 = vadd.f32 %v504_v7, %v493_v63  ;;  %v513_v21 = vadd.f32 %v505_v8, %v494_v0  ;;  %v514_v9 = vadd.f32 %v506_v14, %v495_v53  ;;  %v515_v10 = vadd.f32 %v507_v15, %v496_v54  ;;  %v2170_v63 = vld [vmem:[%s2115_s7 + $0x8e] sm:$0xff] }
  0x90   : >> { %v516_v22 = vadd.f32 %v508_v16, %v497_v2  ;;  %v517_v23 = vadd.f32 %v509_v17, %v498_v3  ;;  %v521_v24 = vmul.f32 %v1810_v11, %v397_v27  ;;  %v522_v25 = vmul.f32 %v1810_v11, %v398_v28  ;;  %v2178_v17 = vld [vmem:[%s2115_s7 + $0xa6] sm:$0xff] }
  0x91   : >> { %v523_v26 = vmul.f32 %v1810_v11, %v399_v44  ;;  %v524_v29 = vmul.f32 %v1810_v11, %v400_v49  ;;  %v525_v31 = vmul.f32 %v1810_v11, %v401_v1  ;;  %v526_v32 = vmul.f32 %v1810_v11, %v402_v4  ;;  %v543_v49 = vld [vmem:[%s2115_s7 + $0x66] sm:$0xff] }
  0x92   : >> { %v527_v35 = vmul.f32 %v1810_v11, %v403_v12  ;;  %v528_v36 = vmul.f32 %v1810_v11, %v404_v13  ;;  %v529_v27 = vadd.f32 %v521_v24, %v510_v18  ;;  %v530_v28 = vadd.f32 %v522_v25, %v511_v19  ;;  %v1813_v12 = vld [vmem:[%s2459_s1 + $0x11] ss:$0 sm:$0xff] }
  0x93   : >> { %v531_v40 = vadd.f32 %v523_v26, %v512_v20  ;;  %v532_v41 = vadd.f32 %v524_v29, %v513_v21  ;;  %v533_v42 = vadd.f32 %v525_v31, %v514_v9  ;;  %v534_v43 = vadd.f32 %v526_v32, %v515_v10  ;;  %v2181_v18 = vld [vmem:[%s2115_s7 + $0xae] sm:$0xff]  ;;  %v1814_v31 = vld [vmem:[%s2459_s1 + $0x19] ss:$0 sm:$0xff] }
  0x94   : >> { %v535_v44 = vadd.f32 %v527_v35, %v516_v22  ;;  %v536_v45 = vadd.f32 %v528_v36, %v517_v23  ;;  %v559_v51 = vmul.f32 %v1811_v30, %v537_v37  ;;  %v560_v52 = vmul.f32 %v1811_v30, %v538_v38  ;;  %v2191_v38 = vld [vmem:[%s2115_s7 + $0xc6] sm:$0xff] }
  0x95   : >> { %v561_v55 = vmul.f32 %v1811_v30, %v539_v39  ;;  %v562_v56 = vmul.f32 %v1811_v30, %v540_v46  ;;  %v563_v58 = vmul.f32 %v1811_v30, %v541_v47  ;;  %v564_v59 = vmul.f32 %v1811_v30, %v542_v48 }
  0x96   : >> { %v565_v60 = vmul.f32 %v1811_v30, %v543_v49  ;;  %v566_v61 = vmul.f32 %v1811_v30, %v544_v50  ;;  %v567_v0 = vadd.f32 %v559_v51, %v529_v27  ;;  %v568_v1 = vadd.f32 %v560_v52, %v530_v28  ;;  %v1815_v52 = vld [vmem:[%s2459_s1 + $0x21] ss:$0 sm:$0xff] }
  0x97   : >> { %v569_v53 = vadd.f32 %v561_v55, %v531_v40  ;;  %v570_v54 = vadd.f32 %v562_v56, %v532_v41  ;;  %v571_v2 = vadd.f32 %v563_v58, %v533_v42  ;;  %v572_v3 = vadd.f32 %v564_v59, %v534_v43 }
  0x98   : >> { %v573_v4 = vadd.f32 %v565_v60, %v535_v44  ;;  %v574_v5 = vadd.f32 %v566_v61, %v536_v45  ;;  %v577_v6 = vmul.f32 %v1812_v57, %v539_v39  ;;  %v578_v7 = vmul.f32 %v1812_v57, %v540_v46  ;;  %v550_v45 = vld [vmem:[%s2115_s7 + $0xce] sm:$0xff] }
  0x99   : >> { %v579_v8 = vmul.f32 %v1812_v57, %v541_v47  ;;  %v580_v11 = vmul.f32 %v1812_v57, %v542_v48  ;;  %v581_v13 = vmul.f32 %v1812_v57, %v543_v49  ;;  %v582_v14 = vmul.f32 %v1812_v57, %v544_v50 }
  0x9a   : >> { %v583_v15 = vmul.f32 %v1812_v57, %v2167_v62  ;;  %v584_v16 = vmul.f32 %v1812_v57, %v2170_v63  ;;  %v585_v19 = vadd.f32 %v577_v6, %v567_v0  ;;  %v586_v20 = vadd.f32 %v578_v7, %v568_v1  ;;  %v1816_v7 = vld [vmem:[%s2459_s1 + $0x29] ss:$0 sm:$0xff] }
  0x9b   : >> { %v587_v21 = vadd.f32 %v579_v8, %v569_v53  ;;  %v588_v9 = vadd.f32 %v580_v11, %v570_v54  ;;  %v589_v10 = vadd.f32 %v581_v13, %v571_v2  ;;  %v590_v22 = vadd.f32 %v582_v14, %v572_v3  ;;  %v551_v54 = vld [vmem:[%s2115_s7 + $0xe6] sm:$0xff]  ;;  %v552_v2 = vld [vmem:[%s2115_s7 + $0xee] sm:$0xff] }
  0x9c   : >> { %v591_v23 = vadd.f32 %v583_v15, %v573_v4  ;;  %v592_v24 = vadd.f32 %v584_v16, %v574_v5  ;;  %v595_v25 = vmul.f32 %v1813_v12, %v541_v47  ;;  %v596_v26 = vmul.f32 %v1813_v12, %v542_v48 }
  0x9d   : >> { %v597_v29 = vmul.f32 %v1813_v12, %v543_v49  ;;  %v598_v30 = vmul.f32 %v1813_v12, %v544_v50  ;;  %v599_v32 = vmul.f32 %v1813_v12, %v2167_v62  ;;  %v600_v35 = vmul.f32 %v1813_v12, %v2170_v63 }
  0x9e   : >> { %v601_v36 = vmul.f32 %v1813_v12, %v2178_v17  ;;  %v602_v37 = vmul.f32 %v1813_v12, %v2181_v18  ;;  %v603_v39 = vadd.f32 %v595_v25, %v585_v19  ;;  %v604_v27 = vadd.f32 %v596_v26, %v586_v20  ;;  %v1817_v26 = vld [vmem:[%s2459_s1 + $0x31] ss:$0 sm:$0xff] }
  0x9f   : >> { %v605_v28 = vadd.f32 %v597_v29, %v587_v21  ;;  %v606_v40 = vadd.f32 %v598_v30, %v588_v9  ;;  %v607_v41 = vadd.f32 %v599_v32, %v589_v10  ;;  %v608_v42 = vadd.f32 %v600_v35, %v590_v22  ;;  %v553_v9 = vld [vmem:[%s2115_s7 + $0x106] sm:$0xff]  ;;  %v554_v10 = vld [vmem:[%s2115_s7 + $0x10e] sm:$0xff] }
  0xa0   : >> { %v609_v43 = vadd.f32 %v601_v36, %v591_v23  ;;  %v610_v44 = vadd.f32 %v602_v37, %v592_v24  ;;  %v613_v46 = vmul.f32 %v1814_v31, %v543_v49  ;;  %v614_v47 = vmul.f32 %v1814_v31, %v544_v50  ;;  %v555_v35 = vld [vmem:[%s2115_s7 + $0x126] sm:$0xff]  ;;  %v556_v36 = vld [vmem:[%s2115_s7 + $0x12e] sm:$0xff] }
  0xa1   : >> { %v615_v48 = vmul.f32 %v1814_v31, %v2167_v62  ;;  %v616_v51 = vmul.f32 %v1814_v31, %v2170_v63  ;;  %v617_v55 = vmul.f32 %v1814_v31, %v2178_v17  ;;  %v618_v56 = vmul.f32 %v1814_v31, %v2181_v18 }
  0xa2   : >> { %v619_v57 = vmul.f32 %v1814_v31, %v2191_v38  ;;  %v620_v58 = vmul.f32 %v1814_v31, %v550_v45  ;;  %v621_v59 = vadd.f32 %v613_v46, %v603_v39  ;;  %v622_v49 = vadd.f32 %v614_v47, %v604_v27  ;;  %v1818_v47 = vld [vmem:[%s2459_s1 + $0x2] ss:$0 sm:$0xff] }
  0xa3   : >> { %v623_v50 = vadd.f32 %v615_v48, %v605_v28  ;;  %v624_v60 = vadd.f32 %v616_v51, %v606_v40  ;;  %v625_v61 = vadd.f32 %v617_v55, %v607_v41  ;;  %v626_v0 = vadd.f32 %v618_v56, %v608_v42  ;;  %v683_v56 = vld [vmem:[%s2115_s7 + $0x7] sm:$0xff] }
  0xa4   : >> { %v627_v1 = vadd.f32 %v619_v57, %v609_v43  ;;  %v628_v53 = vadd.f32 %v620_v58, %v610_v44  ;;  %v631_v3 = vmul.f32 %v1815_v52, %v2167_v62  ;;  %v632_v4 = vmul.f32 %v1815_v52, %v2170_v63  ;;  %v684_v57 = vld [vmem:[%s2115_s7 + $0xf] sm:$0xff]  ;;  %v685_v58 = vld [vmem:[%s2115_s7 + $0x27] sm:$0xff] }
  0xa5   : >> { %v633_v5 = vmul.f32 %v1815_v52, %v2178_v17  ;;  %v634_v6 = vmul.f32 %v1815_v52, %v2181_v18  ;;  %v635_v8 = vmul.f32 %v1815_v52, %v2191_v38  ;;  %v636_v11 = vmul.f32 %v1815_v52, %v550_v45 }
  0xa6   : >> { %v637_v12 = vmul.f32 %v1815_v52, %v551_v54  ;;  %v638_v13 = vmul.f32 %v1815_v52, %v552_v2  ;;  %v639_v14 = vadd.f32 %v631_v3, %v621_v59  ;;  %v640_v15 = vadd.f32 %v632_v4, %v622_v49  ;;  %v690_v3 = vld [vmem:[%s2115_s7 + $0x6f] sm:$0xff] }
  0xa7   : >> { %v641_v62 = vadd.f32 %v633_v5, %v623_v50  ;;  %v642_v16 = vadd.f32 %v634_v6, %v624_v60  ;;  %v643_v63 = vadd.f32 %v635_v8, %v625_v61  ;;  %v644_v19 = vadd.f32 %v636_v11, %v626_v0  ;;  %v1819_v8 = vld [vmem:[%s2459_s1 + $0xa] ss:$0 sm:$0xff] }
  0xa8   : >> { %v645_v20 = vadd.f32 %v637_v12, %v627_v1  ;;  %v646_v21 = vadd.f32 %v638_v13, %v628_v53  ;;  %v649_v22 = vmul.f32 %v1816_v7, %v2178_v17  ;;  %v650_v23 = vmul.f32 %v1816_v7, %v2181_v18  ;;  %v686_v1 = vld [vmem:[%s2115_s7 + $0x2f] sm:$0xff]  ;;  %v687_v53 = vld [vmem:[%s2115_s7 + $0x47] sm:$0xff] }
  0xa9   : >> { %v651_v24 = vmul.f32 %v1816_v7, %v2191_v38  ;;  %v652_v25 = vmul.f32 %v1816_v7, %v550_v45  ;;  %v653_v29 = vmul.f32 %v1816_v7, %v551_v54  ;;  %v654_v30 = vmul.f32 %v1816_v7, %v552_v2 }
  0xaa   : >> { %v655_v31 = vmul.f32 %v1816_v7, %v553_v9  ;;  %v656_v32 = vmul.f32 %v1816_v7, %v554_v10  ;;  %v657_v37 = vadd.f32 %v649_v22, %v639_v14  ;;  %v658_v39 = vadd.f32 %v650_v23, %v640_v15  ;;  %v692_v22 = vld [vmem:[%s2115_s7 + $0x8f] sm:$0xff] }
  0xab   : >> { %v659_v27 = vadd.f32 %v651_v24, %v641_v62  ;;  %v660_v17 = vadd.f32 %v652_v25, %v642_v16  ;;  %v661_v18 = vadd.f32 %v653_v29, %v643_v63  ;;  %v662_v28 = vadd.f32 %v654_v30, %v644_v19  ;;  %v1820_v29 = vld [vmem:[%s2459_s1 + $0x12] ss:$0 sm:$0xff] }
  0xac   : >> { %v663_v40 = vadd.f32 %v655_v31, %v645_v20  ;;  %v664_v41 = vadd.f32 %v656_v32, %v646_v21  ;;  %v667_v42 = vmul.f32 %v1817_v26, %v2191_v38  ;;  %v668_v43 = vmul.f32 %v1817_v26, %v550_v45 }
  0xad   : >> { %v669_v44 = vmul.f32 %v1817_v26, %v551_v54  ;;  %v670_v46 = vmul.f32 %v1817_v26, %v552_v2  ;;  %v671_v48 = vmul.f32 %v1817_v26, %v553_v9  ;;  %v672_v51 = vmul.f32 %v1817_v26, %v554_v10  ;;  %v688_v54 = vld [vmem:[%s2115_s7 + $0x4f] sm:$0xff]  ;;  %v689_v2 = vld [vmem:[%s2115_s7 + $0x67] sm:$0xff] }
  0xae   : >> { %v673_v52 = vmul.f32 %v1817_v26, %v555_v35  ;;  %v674_v55 = vmul.f32 %v1817_v26, %v556_v36  ;;  %v675_v38 = vadd.f32 %v667_v42, %v657_v37  ;;  %v676_v45 = vadd.f32 %v668_v43, %v658_v39  ;;  %v691_v10 = vld [vmem:[%s2115_s7 + $0x87] sm:$0xff]  ;;  %v694_v42 = vld [vmem:[%s2115_s7 + $0xaf] sm:$0xff] }
  0xaf   : >> { %v677_v59 = vadd.f32 %v669_v44, %v659_v27  ;;  %v678_v49 = vadd.f32 %v670_v46, %v660_v17  ;;  %v679_v50 = vadd.f32 %v671_v48, %v661_v18  ;;  %v680_v60 = vadd.f32 %v672_v51, %v662_v28  ;;  %v1821_v48 = vld [vmem:[%s2459_s1 + $0x1a] ss:$0 sm:$0xff] }
  0xb0   : >> { %v681_v61 = vadd.f32 %v673_v52, %v663_v40  ;;  %v682_v0 = vadd.f32 %v674_v55, %v664_v41  ;;  %v705_v4 = vmul.f32 %v1818_v47, %v683_v56  ;;  %v706_v5 = vmul.f32 %v1818_v47, %v684_v57  ;;  %v693_v41 = vld [vmem:[%s2115_s7 + $0xa7] sm:$0xff] }
  0xb1   : >> { %v707_v6 = vmul.f32 %v1818_v47, %v685_v58  ;;  %v708_v7 = vmul.f32 %v1818_v47, %v686_v1  ;;  %v709_v11 = vmul.f32 %v1818_v47, %v687_v53  ;;  %v710_v12 = vmul.f32 %v1818_v47, %v688_v54 }
  0xb2   : >> { %v711_v13 = vmul.f32 %v1818_v47, %v689_v2  ;;  %v712_v14 = vmul.f32 %v1818_v47, %v690_v3  ;;  %v713_v15 = vadd.f32 %v705_v4, %v675_v38  ;;  %v714_v62 = vadd.f32 %v706_v5, %v676_v45  ;;  %v1822_v5 = vld [vmem:[%s2459_s1 + $0x22] ss:$0 sm:$0xff] }
  0xb3   : >> { %v715_v16 = vadd.f32 %v707_v6, %v677_v59  ;;  %v716_v63 = vadd.f32 %v708_v7, %v678_v49  ;;  %v717_v19 = vadd.f32 %v709_v11, %v679_v50  ;;  %v718_v20 = vadd.f32 %v710_v12, %v680_v60 }
  0xb4   : >> { %v719_v21 = vadd.f32 %v711_v13, %v681_v61  ;;  %v720_v9 = vadd.f32 %v712_v14, %v682_v0  ;;  %v723_v23 = vmul.f32 %v1819_v8, %v685_v58  ;;  %v724_v24 = vmul.f32 %v1819_v8, %v686_v1  ;;  %v695_v61 = vld [vmem:[%s2115_s7 + $0xc7] sm:$0xff]  ;;  %v696_v0 = vld [vmem:[%s2115_s7 + $0xcf] sm:$0xff] }
  0xb5   : >> { %v725_v25 = vmul.f32 %v1819_v8, %v687_v53  ;;  %v726_v26 = vmul.f32 %v1819_v8, %v688_v54  ;;  %v727_v30 = vmul.f32 %v1819_v8, %v689_v2  ;;  %v728_v31 = vmul.f32 %v1819_v8, %v690_v3 }
  0xb6   : >> { %v729_v32 = vmul.f32 %v1819_v8, %v691_v10  ;;  %v730_v35 = vmul.f32 %v1819_v8, %v692_v22  ;;  %v731_v36 = vadd.f32 %v723_v23, %v713_v15  ;;  %v732_v37 = vadd.f32 %v724_v24, %v714_v62  ;;  %v1823_v24 = vld [vmem:[%s2459_s1 + $0x2a] ss:$0 sm:$0xff] }
  0xb7   : >> { %v733_v39 = vadd.f32 %v725_v25, %v715_v16  ;;  %v734_v27 = vadd.f32 %v726_v26, %v716_v63  ;;  %v735_v17 = vadd.f32 %v727_v30, %v717_v19  ;;  %v736_v18 = vadd.f32 %v728_v31, %v718_v20  ;;  %v697_v63 = vld [vmem:[%s2115_s7 + $0xe7] sm:$0xff]  ;;  %v698_v19 = vld [vmem:[%s2115_s7 + $0xef] sm:$0xff] }
  0xb8   : >> { %v737_v28 = vadd.f32 %v729_v32, %v719_v21  ;;  %v738_v40 = vadd.f32 %v730_v35, %v720_v9  ;;  %v741_v43 = vmul.f32 %v1820_v29, %v687_v53  ;;  %v742_v44 = vmul.f32 %v1820_v29, %v688_v54 }
  0xb9   : >> { %v743_v46 = vmul.f32 %v1820_v29, %v689_v2  ;;  %v744_v47 = vmul.f32 %v1820_v29, %v690_v3  ;;  %v745_v51 = vmul.f32 %v1820_v29, %v691_v10  ;;  %v746_v52 = vmul.f32 %v1820_v29, %v692_v22 }
  0xba   : >> { %v747_v55 = vmul.f32 %v1820_v29, %v693_v41  ;;  %v748_v56 = vmul.f32 %v1820_v29, %v694_v42  ;;  %v749_v57 = vadd.f32 %v741_v43, %v731_v36  ;;  %v750_v58 = vadd.f32 %v742_v44, %v732_v37  ;;  %v1824_v44 = vld [vmem:[%s2459_s1 + $0x32] ss:$0 sm:$0xff] }
  0xbb   : >> { %v751_v38 = vadd.f32 %v743_v46, %v733_v39  ;;  %v752_v45 = vadd.f32 %v744_v47, %v734_v27  ;;  %v753_v59 = vadd.f32 %v745_v51, %v735_v17  ;;  %v754_v49 = vadd.f32 %v746_v52, %v736_v18  ;;  %v699_v27 = vld [vmem:[%s2115_s7 + $0x107] sm:$0xff]  ;;  %v700_v17 = vld [vmem:[%s2115_s7 + $0x10f] sm:$0xff] }
  0xbc   : >> { %v755_v50 = vadd.f32 %v747_v55, %v737_v28  ;;  %v756_v60 = vadd.f32 %v748_v56, %v738_v40  ;;  %v759_v1 = vmul.f32 %v1821_v48, %v689_v2  ;;  %v760_v53 = vmul.f32 %v1821_v48, %v690_v3  ;;  %v701_v52 = vld [vmem:[%s2115_s7 + $0x127] sm:$0xff]  ;;  %v702_v55 = vld [vmem:[%s2115_s7 + $0x12f] sm:$0xff] }
  0xbd   : >> { %v761_v54 = vmul.f32 %v1821_v48, %v691_v10  ;;  %v762_v4 = vmul.f32 %v1821_v48, %v692_v22  ;;  %v763_v6 = vmul.f32 %v1821_v48, %v693_v41  ;;  %v764_v7 = vmul.f32 %v1821_v48, %v694_v42 }
  0xbe   : >> { %v765_v8 = vmul.f32 %v1821_v48, %v695_v61  ;;  %v766_v11 = vmul.f32 %v1821_v48, %v696_v0  ;;  %v767_v12 = vadd.f32 %v759_v1, %v749_v57  ;;  %v768_v13 = vadd.f32 %v760_v53, %v750_v58  ;;  %v1825_v53 = vld [vmem:[%s2459_s1 + $0x3] ss:$0 sm:$0xff] }
  0xbf   : >> { %v769_v14 = vadd.f32 %v761_v54, %v751_v38  ;;  %v770_v15 = vadd.f32 %v762_v4, %v752_v45  ;;  %v771_v62 = vadd.f32 %v763_v6, %v753_v59  ;;  %v772_v16 = vadd.f32 %v764_v7, %v754_v49  ;;  %v829_v7 = vld [vmem:[%s2115_s7 + $0x8] sm:$0xff] }
  0xc0   : >> { %v773_v2 = vadd.f32 %v765_v8, %v755_v50  ;;  %v774_v3 = vadd.f32 %v766_v11, %v756_v60  ;;  %v777_v20 = vmul.f32 %v1822_v5, %v691_v10  ;;  %v778_v21 = vmul.f32 %v1822_v5, %v692_v22  ;;  %v830_v8 = vld [vmem:[%s2115_s7 + $0x10] sm:$0xff]  ;;  %v831_v11 = vld [vmem:[%s2115_s7 + $0x28] sm:$0xff] }
  0xc1   : >> { %v779_v9 = vmul.f32 %v1822_v5, %v693_v41  ;;  %v780_v23 = vmul.f32 %v1822_v5, %v694_v42  ;;  %v781_v25 = vmul.f32 %v1822_v5, %v695_v61  ;;  %v782_v26 = vmul.f32 %v1822_v5, %v696_v0 }
  0xc2   : >> { %v783_v29 = vmul.f32 %v1822_v5, %v697_v63  ;;  %v784_v30 = vmul.f32 %v1822_v5, %v698_v19  ;;  %v785_v31 = vadd.f32 %v777_v20, %v767_v12  ;;  %v786_v32 = vadd.f32 %v778_v21, %v768_v13  ;;  %v836_v20 = vld [vmem:[%s2115_s7 + $0x70] sm:$0xff] }
  0xc3   : >> { %v787_v35 = vadd.f32 %v779_v9, %v769_v14  ;;  %v788_v36 = vadd.f32 %v780_v23, %v770_v15  ;;  %v789_v37 = vadd.f32 %v781_v25, %v771_v62  ;;  %v790_v10 = vadd.f32 %v782_v26, %v772_v16  ;;  %v1826_v25 = vld [vmem:[%s2459_s1 + $0xb] ss:$0 sm:$0xff] }
  0xc4   : >> { %v791_v22 = vadd.f32 %v783_v29, %v773_v2  ;;  %v792_v39 = vadd.f32 %v784_v30, %v774_v3  ;;  %v795_v18 = vmul.f32 %v1823_v24, %v693_v41  ;;  %v796_v28 = vmul.f32 %v1823_v24, %v694_v42  ;;  %v832_v2 = vld [vmem:[%s2115_s7 + $0x30] sm:$0xff]  ;;  %v833_v3 = vld [vmem:[%s2115_s7 + $0x48] sm:$0xff] }
  0xc5   : >> { %v797_v40 = vmul.f32 %v1823_v24, %v695_v61  ;;  %v798_v43 = vmul.f32 %v1823_v24, %v696_v0  ;;  %v799_v46 = vmul.f32 %v1823_v24, %v697_v63  ;;  %v800_v47 = vmul.f32 %v1823_v24, %v698_v19 }
  0xc6   : >> { %v801_v48 = vmul.f32 %v1823_v24, %v699_v27  ;;  %v802_v51 = vmul.f32 %v1823_v24, %v700_v17  ;;  %v803_v56 = vadd.f32 %v795_v18, %v785_v31  ;;  %v804_v57 = vadd.f32 %v796_v28, %v786_v32  ;;  %v838_v18 = vld [vmem:[%s2115_s7 + $0x90] sm:$0xff] }
  0xc7   : >> { %v805_v58 = vadd.f32 %v797_v40, %v787_v35  ;;  %v806_v38 = vadd.f32 %v798_v43, %v788_v36  ;;  %v807_v41 = vadd.f32 %v799_v46, %v789_v37  ;;  %v808_v42 = vadd.f32 %v800_v47, %v790_v10  ;;  %v1827_v46 = vld [vmem:[%s2459_s1 + $0x13] ss:$0 sm:$0xff] }
  0xc8   : >> { %v809_v45 = vadd.f32 %v801_v48, %v791_v22  ;;  %v810_v59 = vadd.f32 %v802_v51, %v792_v39  ;;  %v813_v49 = vmul.f32 %v1824_v44, %v695_v61  ;;  %v814_v50 = vmul.f32 %v1824_v44, %v696_v0 }
  0xc9   : >> { %v815_v60 = vmul.f32 %v1824_v44, %v697_v63  ;;  %v816_v1 = vmul.f32 %v1824_v44, %v698_v19  ;;  %v817_v54 = vmul.f32 %v1824_v44, %v699_v27  ;;  %v818_v4 = vmul.f32 %v1824_v44, %v700_v17  ;;  %v834_v63 = vld [vmem:[%s2115_s7 + $0x50] sm:$0xff]  ;;  %v835_v19 = vld [vmem:[%s2115_s7 + $0x68] sm:$0xff] }
  0xca   : >> { %v819_v5 = vmul.f32 %v1824_v44, %v701_v52  ;;  %v820_v6 = vmul.f32 %v1824_v44, %v702_v55  ;;  %v821_v61 = vadd.f32 %v813_v49, %v803_v56  ;;  %v822_v0 = vadd.f32 %v814_v50, %v804_v57  ;;  %v837_v17 = vld [vmem:[%s2115_s7 + $0x88] sm:$0xff]  ;;  %v840_v49 = vld [vmem:[%s2115_s7 + $0xb0] sm:$0xff] }
  0xcb   : >> { %v823_v12 = vadd.f32 %v815_v60, %v805_v58  ;;  %v824_v13 = vadd.f32 %v816_v1, %v806_v38  ;;  %v825_v14 = vadd.f32 %v817_v54, %v807_v41  ;;  %v826_v15 = vadd.f32 %v818_v4, %v808_v42  ;;  %v1828_v54 = vld [vmem:[%s2459_s1 + $0x1b] ss:$0 sm:$0xff] }
  0xcc   : >> { %v827_v62 = vadd.f32 %v819_v5, %v809_v45  ;;  %v828_v16 = vadd.f32 %v820_v6, %v810_v59  ;;  %v851_v21 = vmul.f32 %v1825_v53, %v829_v7  ;;  %v852_v9 = vmul.f32 %v1825_v53, %v830_v8  ;;  %v839_v59 = vld [vmem:[%s2115_s7 + $0xa8] sm:$0xff] }
  0xcd   : >> { %v853_v23 = vmul.f32 %v1825_v53, %v831_v11  ;;  %v854_v24 = vmul.f32 %v1825_v53, %v832_v2  ;;  %v855_v26 = vmul.f32 %v1825_v53, %v833_v3  ;;  %v856_v29 = vmul.f32 %v1825_v53, %v834_v63 }
  0xce   : >> { %v857_v30 = vmul.f32 %v1825_v53, %v835_v19  ;;  %v858_v31 = vmul.f32 %v1825_v53, %v836_v20  ;;  %v859_v32 = vadd.f32 %v851_v21, %v821_v61  ;;  %v860_v35 = vadd.f32 %v852_v9, %v822_v0  ;;  %v1829_v9 = vld [vmem:[%s2459_s1 + $0x23] ss:$0 sm:$0xff] }
  0xcf   : >> { %v861_v36 = vadd.f32 %v853_v23, %v823_v12  ;;  %v862_v37 = vadd.f32 %v854_v24, %v824_v13  ;;  %v863_v10 = vadd.f32 %v855_v26, %v825_v14  ;;  %v864_v22 = vadd.f32 %v856_v29, %v826_v15 }
  0xd0   : >> { %v865_v39 = vadd.f32 %v857_v30, %v827_v62  ;;  %v866_v27 = vadd.f32 %v858_v31, %v828_v16  ;;  %v869_v28 = vmul.f32 %v1826_v25, %v831_v11  ;;  %v870_v40 = vmul.f32 %v1826_v25, %v832_v2  ;;  %v841_v62 = vld [vmem:[%s2115_s7 + $0xc8] sm:$0xff]  ;;  %v842_v16 = vld [vmem:[%s2115_s7 + $0xd0] sm:$0xff] }
  0xd1   : >> { %v871_v43 = vmul.f32 %v1826_v25, %v833_v3  ;;  %v872_v44 = vmul.f32 %v1826_v25, %v834_v63  ;;  %v873_v47 = vmul.f32 %v1826_v25, %v835_v19  ;;  %v874_v48 = vmul.f32 %v1826_v25, %v836_v20 }
  0xd2   : >> { %v875_v51 = vmul.f32 %v1826_v25, %v837_v17  ;;  %v876_v52 = vmul.f32 %v1826_v25, %v838_v18  ;;  %v877_v55 = vadd.f32 %v869_v28, %v859_v32  ;;  %v878_v56 = vadd.f32 %v870_v40, %v860_v35  ;;  %v1830_v40 = vld [vmem:[%s2459_s1 + $0x2b] ss:$0 sm:$0xff] }
  0xd3   : >> { %v879_v57 = vadd.f32 %v871_v43, %v861_v36  ;;  %v880_v58 = vadd.f32 %v872_v44, %v862_v37  ;;  %v881_v38 = vadd.f32 %v873_v47, %v863_v10  ;;  %v882_v41 = vadd.f32 %v874_v48, %v864_v22  ;;  %v843_v37 = vld [vmem:[%s2115_s7 + $0xe8] sm:$0xff]  ;;  %v844_v10 = vld [vmem:[%s2115_s7 + $0xf0] sm:$0xff] }
  0xd4   : >> { %v883_v42 = vadd.f32 %v875_v51, %v865_v39  ;;  %v884_v45 = vadd.f32 %v876_v52, %v866_v27  ;;  %v887_v50 = vmul.f32 %v1827_v46, %v833_v3  ;;  %v888_v60 = vmul.f32 %v1827_v46, %v834_v63 }
  0xd5   : >> { %v889_v1 = vmul.f32 %v1827_v46, %v835_v19  ;;  %v890_v53 = vmul.f32 %v1827_v46, %v836_v20  ;;  %v891_v4 = vmul.f32 %v1827_v46, %v837_v17  ;;  %v892_v5 = vmul.f32 %v1827_v46, %v838_v18 }
  0xd6   : >> { %v893_v6 = vmul.f32 %v1827_v46, %v839_v59  ;;  %v894_v7 = vmul.f32 %v1827_v46, %v840_v49  ;;  %v895_v8 = vadd.f32 %v887_v50, %v877_v55  ;;  %v896_v11 = vadd.f32 %v888_v60, %v878_v56  ;;  %v1831_v60 = vld [vmem:[%s2459_s1 + $0x33] ss:$0 sm:$0xff] }
  0xd7   : >> { %v897_v61 = vadd.f32 %v889_v1, %v879_v57  ;;  %v898_v0 = vadd.f32 %v890_v53, %v880_v58  ;;  %v899_v12 = vadd.f32 %v891_v4, %v881_v38  ;;  %v900_v13 = vadd.f32 %v892_v5, %v882_v41  ;;  %v845_v58 = vld [vmem:[%s2115_s7 + $0x108] sm:$0xff]  ;;  %v846_v38 = vld [vmem:[%s2115_s7 + $0x110] sm:$0xff] }
  0xd8   : >> { %v901_v14 = vadd.f32 %v893_v6, %v883_v42  ;;  %v902_v15 = vadd.f32 %v894_v7, %v884_v45  ;;  %v905_v2 = vmul.f32 %v1828_v54, %v835_v19  ;;  %v906_v3 = vmul.f32 %v1828_v54, %v836_v20  ;;  %v847_v5 = vld [vmem:[%s2115_s7 + $0x128] sm:$0xff]  ;;  %v848_v6 = vld [vmem:[%s2115_s7 + $0x130] sm:$0xff] }
  0xd9   : >> { %v907_v63 = vmul.f32 %v1828_v54, %v837_v17  ;;  %v908_v21 = vmul.f32 %v1828_v54, %v838_v18  ;;  %v909_v23 = vmul.f32 %v1828_v54, %v839_v59  ;;  %v910_v24 = vmul.f32 %v1828_v54, %v840_v49 }
  0xda   : >> { %v911_v25 = vmul.f32 %v1828_v54, %v841_v62  ;;  %v912_v26 = vmul.f32 %v1828_v54, %v842_v16  ;;  %v913_v29 = vadd.f32 %v905_v2, %v895_v8  ;;  %v914_v30 = vadd.f32 %v906_v3, %v896_v11  ;;  %v1832_v3 = vld [vmem:[%s2459_s1 + $0x4] ss:$0 sm:$0xff] }
  0xdb   : >> { %v915_v31 = vadd.f32 %v907_v63, %v897_v61  ;;  %v916_v32 = vadd.f32 %v908_v21, %v898_v0  ;;  %v917_v35 = vadd.f32 %v909_v23, %v899_v12  ;;  %v918_v36 = vadd.f32 %v910_v24, %v900_v13  ;;  %v975_v24 = vld [vmem:[%s2115_s7 + $0x9] sm:$0xff] }
  0xdc   : >> { %v919_v19 = vadd.f32 %v911_v25, %v901_v14  ;;  %v920_v20 = vadd.f32 %v912_v26, %v902_v15  ;;  %v923_v22 = vmul.f32 %v1829_v9, %v837_v17  ;;  %v924_v39 = vmul.f32 %v1829_v9, %v838_v18  ;;  %v976_v25 = vld [vmem:[%s2115_s7 + $0x11] sm:$0xff]  ;;  %v977_v26 = vld [vmem:[%s2115_s7 + $0x29] sm:$0xff] }
  0xdd   : >> { %v925_v27 = vmul.f32 %v1829_v9, %v839_v59  ;;  %v926_v28 = vmul.f32 %v1829_v9, %v840_v49  ;;  %v927_v43 = vmul.f32 %v1829_v9, %v841_v62  ;;  %v928_v44 = vmul.f32 %v1829_v9, %v842_v16 }
  0xde   : >> { %v929_v46 = vmul.f32 %v1829_v9, %v843_v37  ;;  %v930_v47 = vmul.f32 %v1829_v9, %v844_v10  ;;  %v931_v48 = vadd.f32 %v923_v22, %v913_v29  ;;  %v932_v51 = vadd.f32 %v924_v39, %v914_v30  ;;  %v982_v22 = vld [vmem:[%s2115_s7 + $0x71] sm:$0xff] }
  0xdf   : >> { %v933_v52 = vadd.f32 %v925_v27, %v915_v31  ;;  %v934_v55 = vadd.f32 %v926_v28, %v916_v32  ;;  %v935_v56 = vadd.f32 %v927_v43, %v917_v35  ;;  %v936_v17 = vadd.f32 %v928_v44, %v918_v36  ;;  %v1833_v43 = vld [vmem:[%s2459_s1 + $0xc] ss:$0 sm:$0xff] }
  0xe0   : >> { %v937_v18 = vadd.f32 %v929_v46, %v919_v19  ;;  %v938_v57 = vadd.f32 %v930_v47, %v920_v20  ;;  %v941_v41 = vmul.f32 %v1830_v40, %v839_v59  ;;  %v942_v42 = vmul.f32 %v1830_v40, %v840_v49  ;;  %v978_v19 = vld [vmem:[%s2115_s7 + $0x31] sm:$0xff]  ;;  %v979_v20 = vld [vmem:[%s2115_s7 + $0x49] sm:$0xff] }
  0xe1   : >> { %v943_v45 = vmul.f32 %v1830_v40, %v841_v62  ;;  %v944_v50 = vmul.f32 %v1830_v40, %v842_v16  ;;  %v945_v1 = vmul.f32 %v1830_v40, %v843_v37  ;;  %v946_v53 = vmul.f32 %v1830_v40, %v844_v10 }
  0xe2   : >> { %v947_v54 = vmul.f32 %v1830_v40, %v845_v58  ;;  %v948_v4 = vmul.f32 %v1830_v40, %v846_v38  ;;  %v949_v7 = vadd.f32 %v941_v41, %v931_v48  ;;  %v950_v8 = vadd.f32 %v942_v42, %v932_v51  ;;  %v984_v41 = vld [vmem:[%s2115_s7 + $0x91] sm:$0xff] }
  0xe3   : >> { %v951_v11 = vadd.f32 %v943_v45, %v933_v52  ;;  %v952_v61 = vadd.f32 %v944_v50, %v934_v55  ;;  %v953_v59 = vadd.f32 %v945_v1, %v935_v56  ;;  %v954_v49 = vadd.f32 %v946_v53, %v936_v17  ;;  %v1834_v1 = vld [vmem:[%s2459_s1 + $0x14] ss:$0 sm:$0xff] }
  0xe4   : >> { %v955_v0 = vadd.f32 %v947_v54, %v937_v18  ;;  %v956_v12 = vadd.f32 %v948_v4, %v938_v57  ;;  %v959_v13 = vmul.f32 %v1831_v60, %v841_v62  ;;  %v960_v14 = vmul.f32 %v1831_v60, %v842_v16 }
  0xe5   : >> { %v961_v15 = vmul.f32 %v1831_v60, %v843_v37  ;;  %v962_v2 = vmul.f32 %v1831_v60, %v844_v10  ;;  %v963_v63 = vmul.f32 %v1831_v60, %v845_v58  ;;  %v964_v21 = vmul.f32 %v1831_v60, %v846_v38  ;;  %v980_v37 = vld [vmem:[%s2115_s7 + $0x51] sm:$0xff]  ;;  %v981_v10 = vld [vmem:[%s2115_s7 + $0x69] sm:$0xff] }
  0xe6   : >> { %v965_v9 = vmul.f32 %v1831_v60, %v847_v5  ;;  %v966_v23 = vmul.f32 %v1831_v60, %v848_v6  ;;  %v967_v62 = vadd.f32 %v959_v13, %v949_v7  ;;  %v968_v16 = vadd.f32 %v960_v14, %v950_v8  ;;  %v983_v38 = vld [vmem:[%s2115_s7 + $0x89] sm:$0xff]  ;;  %v986_v13 = vld [vmem:[%s2115_s7 + $0xb1] sm:$0xff] }
  0xe7   : >> { %v969_v29 = vadd.f32 %v961_v15, %v951_v11  ;;  %v970_v30 = vadd.f32 %v962_v2, %v952_v61  ;;  %v971_v31 = vadd.f32 %v963_v63, %v953_v59  ;;  %v972_v32 = vadd.f32 %v964_v21, %v954_v49  ;;  %v1835_v63 = vld [vmem:[%s2459_s1 + $0x1c] ss:$0 sm:$0xff] }
  0xe8   : >> { %v973_v35 = vadd.f32 %v965_v9, %v955_v0  ;;  %v974_v36 = vadd.f32 %v966_v23, %v956_v12  ;;  %v997_v39 = vmul.f32 %v1832_v3, %v975_v24  ;;  %v998_v27 = vmul.f32 %v1832_v3, %v976_v25  ;;  %v985_v12 = vld [vmem:[%s2115_s7 + $0xa9] sm:$0xff] }
  0xe9   : >> { %v999_v28 = vmul.f32 %v1832_v3, %v977_v26  ;;  %v1000_v40 = vmul.f32 %v1832_v3, %v978_v19  ;;  %v1001_v44 = vmul.f32 %v1832_v3, %v979_v20  ;;  %v1002_v46 = vmul.f32 %v1832_v3, %v980_v37 }
  0xea   : >> { %v1003_v47 = vmul.f32 %v1832_v3, %v981_v10  ;;  %v1004_v48 = vmul.f32 %v1832_v3, %v982_v22  ;;  %v1005_v51 = vadd.f32 %v997_v39, %v967_v62  ;;  %v1006_v52 = vadd.f32 %v998_v27, %v968_v16  ;;  %v1836_v27 = vld [vmem:[%s2459_s1 + $0x24] ss:$0 sm:$0xff] }
  0xeb   : >> { %v1007_v55 = vadd.f32 %v999_v28, %v969_v29  ;;  %v1008_v56 = vadd.f32 %v1000_v40, %v970_v30  ;;  %v1009_v17 = vadd.f32 %v1001_v44, %v971_v31  ;;  %v1010_v18 = vadd.f32 %v1002_v46, %v972_v32 }
  0xec   : >> { %v1011_v57 = vadd.f32 %v1003_v47, %v973_v35  ;;  %v1012_v58 = vadd.f32 %v1004_v48, %v974_v36  ;;  %v1015_v42 = vmul.f32 %v1833_v43, %v977_v26  ;;  %v1016_v45 = vmul.f32 %v1833_v43, %v978_v19  ;;  %v987_v35 = vld [vmem:[%s2115_s7 + $0xc9] sm:$0xff]  ;;  %v988_v36 = vld [vmem:[%s2115_s7 + $0xd1] sm:$0xff] }
  0xed   : >> { %v1017_v50 = vmul.f32 %v1833_v43, %v979_v20  ;;  %v1018_v60 = vmul.f32 %v1833_v43, %v980_v37  ;;  %v1019_v53 = vmul.f32 %v1833_v43, %v981_v10  ;;  %v1020_v54 = vmul.f32 %v1833_v43, %v982_v22 }
  0xee   : >> { %v1021_v4 = vmul.f32 %v1833_v43, %v983_v38  ;;  %v1022_v5 = vmul.f32 %v1833_v43, %v984_v41  ;;  %v1023_v6 = vadd.f32 %v1015_v42, %v1005_v51  ;;  %v1024_v7 = vadd.f32 %v1016_v45, %v1006_v52  ;;  %v1837_v45 = vld [vmem:[%s2459_s1 + $0x2c] ss:$0 sm:$0xff] }
  0xef   : >> { %v1025_v8 = vadd.f32 %v1017_v50, %v1007_v55  ;;  %v1026_v11 = vadd.f32 %v1018_v60, %v1008_v56  ;;  %v1027_v61 = vadd.f32 %v1019_v53, %v1009_v17  ;;  %v1028_v59 = vadd.f32 %v1020_v54, %v1010_v18  ;;  %v989_v56 = vld [vmem:[%s2115_s7 + $0xe9] sm:$0xff]  ;;  %v990_v17 = vld [vmem:[%s2115_s7 + $0xf1] sm:$0xff] }
  0xf0   : >> { %v1029_v49 = vadd.f32 %v1021_v4, %v1011_v57  ;;  %v1030_v0 = vadd.f32 %v1022_v5, %v1012_v58  ;;  %v1033_v14 = vmul.f32 %v1834_v1, %v979_v20  ;;  %v1034_v15 = vmul.f32 %v1834_v1, %v980_v37 }
  0xf1   : >> { %v1035_v2 = vmul.f32 %v1834_v1, %v981_v10  ;;  %v1036_v3 = vmul.f32 %v1834_v1, %v982_v22  ;;  %v1037_v21 = vmul.f32 %v1834_v1, %v983_v38  ;;  %v1038_v9 = vmul.f32 %v1834_v1, %v984_v41 }
  0xf2   : >> { %v1039_v23 = vmul.f32 %v1834_v1, %v985_v12  ;;  %v1040_v24 = vmul.f32 %v1834_v1, %v986_v13  ;;  %v1041_v25 = vadd.f32 %v1033_v14, %v1023_v6  ;;  %v1042_v26 = vadd.f32 %v1034_v15, %v1024_v7  ;;  %v1838_v15 = vld [vmem:[%s2459_s1 + $0x34] ss:$0 sm:$0xff] }
  0xf3   : >> { %v1043_v62 = vadd.f32 %v1035_v2, %v1025_v8  ;;  %v1044_v16 = vadd.f32 %v1036_v3, %v1026_v11  ;;  %v1045_v29 = vadd.f32 %v1037_v21, %v1027_v61  ;;  %v1046_v30 = vadd.f32 %v1038_v9, %v1028_v59  ;;  %v991_v11 = vld [vmem:[%s2115_s7 + $0x109] sm:$0xff]  ;;  %v992_v61 = vld [vmem:[%s2115_s7 + $0x111] sm:$0xff] }
  0xf4   : >> { %v1047_v31 = vadd.f32 %v1039_v23, %v1029_v49  ;;  %v1048_v32 = vadd.f32 %v1040_v24, %v1030_v0  ;;  %v1051_v19 = vmul.f32 %v1835_v63, %v981_v10  ;;  %v1052_v20 = vmul.f32 %v1835_v63, %v982_v22  ;;  %v993_v9 = vld [vmem:[%s2115_s7 + $0x129] sm:$0xff]  ;;  %v994_v23 = vld [vmem:[%s2115_s7 + $0x131] sm:$0xff] }
  0xf5   : >> { %v1053_v37 = vmul.f32 %v1835_v63, %v983_v38  ;;  %v1054_v39 = vmul.f32 %v1835_v63, %v984_v41  ;;  %v1055_v28 = vmul.f32 %v1835_v63, %v985_v12  ;;  %v1056_v40 = vmul.f32 %v1835_v63, %v986_v13 }
  0xf6   : >> { %v1057_v43 = vmul.f32 %v1835_v63, %v987_v35  ;;  %v1058_v44 = vmul.f32 %v1835_v63, %v988_v36  ;;  %v1059_v46 = vadd.f32 %v1051_v19, %v1041_v25  ;;  %v1060_v47 = vadd.f32 %v1052_v20, %v1042_v26  ;;  %v1839_v20 = vld [vmem:[%s2459_s1 + $0x5] ss:$0 sm:$0xff] }
  0xf7   : >> { %v1061_v48 = vadd.f32 %v1053_v37, %v1043_v62  ;;  %v1062_v51 = vadd.f32 %v1054_v39, %v1044_v16  ;;  %v1063_v52 = vadd.f32 %v1055_v28, %v1045_v29  ;;  %v1064_v55 = vadd.f32 %v1056_v40, %v1046_v30  ;;  %v1121_v40 = vld [vmem:[%s2115_s7 + $0xa] sm:$0xff] }
  0xf8   : >> { %v1065_v10 = vadd.f32 %v1057_v43, %v1047_v31  ;;  %v1066_v22 = vadd.f32 %v1058_v44, %v1048_v32  ;;  %v1069_v18 = vmul.f32 %v1836_v27, %v983_v38  ;;  %v1070_v57 = vmul.f32 %v1836_v27, %v984_v41  ;;  %v1122_v43 = vld [vmem:[%s2115_s7 + $0x12] sm:$0xff]  ;;  %v1123_v44 = vld [vmem:[%s2115_s7 + $0x2a] sm:$0xff] }
  0xf9   : >> { %v1071_v58 = vmul.f32 %v1836_v27, %v985_v12  ;;  %v1072_v42 = vmul.f32 %v1836_v27, %v986_v13  ;;  %v1073_v50 = vmul.f32 %v1836_v27, %v987_v35  ;;  %v1074_v60 = vmul.f32 %v1836_v27, %v988_v36 }
  0xfa   : >> { %v1075_v1 = vmul.f32 %v1836_v27, %v989_v56  ;;  %v1076_v53 = vmul.f32 %v1836_v27, %v990_v17  ;;  %v1077_v54 = vadd.f32 %v1069_v18, %v1059_v46  ;;  %v1078_v4 = vadd.f32 %v1070_v57, %v1060_v47  ;;  %v1128_v18 = vld [vmem:[%s2115_s7 + $0x72] sm:$0xff] }
  0xfb   : >> { %v1079_v5 = vadd.f32 %v1071_v58, %v1061_v48  ;;  %v1080_v6 = vadd.f32 %v1072_v42, %v1062_v51  ;;  %v1081_v7 = vadd.f32 %v1073_v50, %v1063_v52  ;;  %v1082_v38 = vadd.f32 %v1074_v60, %v1064_v55  ;;  %v1840_v50 = vld [vmem:[%s2459_s1 + $0xd] ss:$0 sm:$0xff] }
  0xfc   : >> { %v1083_v41 = vadd.f32 %v1075_v1, %v1065_v10  ;;  %v1084_v8 = vadd.f32 %v1076_v53, %v1066_v22  ;;  %v1087_v59 = vmul.f32 %v1837_v45, %v985_v12  ;;  %v1088_v49 = vmul.f32 %v1837_v45, %v986_v13  ;;  %v1124_v10 = vld [vmem:[%s2115_s7 + $0x32] sm:$0xff]  ;;  %v1125_v22 = vld [vmem:[%s2115_s7 + $0x4a] sm:$0xff] }
  0xfd   : >> { %v1089_v0 = vmul.f32 %v1837_v45, %v987_v35  ;;  %v1090_v14 = vmul.f32 %v1837_v45, %v988_v36  ;;  %v1091_v2 = vmul.f32 %v1837_v45, %v989_v56  ;;  %v1092_v3 = vmul.f32 %v1837_v45, %v990_v17 }
  0xfe   : >> { %v1093_v63 = vmul.f32 %v1837_v45, %v991_v11  ;;  %v1094_v21 = vmul.f32 %v1837_v45, %v992_v61  ;;  %v1095_v24 = vadd.f32 %v1087_v59, %v1077_v54  ;;  %v1096_v25 = vadd.f32 %v1088_v49, %v1078_v4  ;;  %v1130_v59 = vld [vmem:[%s2115_s7 + $0x92] sm:$0xff] }
  0xff   : >> { %v1097_v26 = vadd.f32 %v1089_v0, %v1079_v5  ;;  %v1098_v62 = vadd.f32 %v1090_v14, %v1080_v6  ;;  %v1099_v12 = vadd.f32 %v1091_v2, %v1081_v7  ;;  %v1100_v13 = vadd.f32 %v1092_v3, %v1082_v38  ;;  %v1841_v2 = vld [vmem:[%s2459_s1 + $0x15] ss:$0 sm:$0xff] }
 0x100   : >> { %v1101_v16 = vadd.f32 %v1093_v63, %v1083_v41  ;;  %v1102_v29 = vadd.f32 %v1094_v21, %v1084_v8  ;;  %v1105_v30 = vmul.f32 %v1838_v15, %v987_v35  ;;  %v1106_v31 = vmul.f32 %v1838_v15, %v988_v36 }
 0x101   : >> { %v1107_v32 = vmul.f32 %v1838_v15, %v989_v56  ;;  %v1108_v19 = vmul.f32 %v1838_v15, %v990_v17  ;;  %v1109_v37 = vmul.f32 %v1838_v15, %v991_v11  ;;  %v1110_v39 = vmul.f32 %v1838_v15, %v992_v61  ;;  %v1126_v56 = vld [vmem:[%s2115_s7 + $0x52] sm:$0xff]  ;;  %v1127_v17 = vld [vmem:[%s2115_s7 + $0x6a] sm:$0xff] }
 0x102   : >> { %v1111_v27 = vmul.f32 %v1838_v15, %v993_v9  ;;  %v1112_v28 = vmul.f32 %v1838_v15, %v994_v23  ;;  %v1113_v35 = vadd.f32 %v1105_v30, %v1095_v24  ;;  %v1114_v36 = vadd.f32 %v1106_v31, %v1096_v25  ;;  %v1129_v61 = vld [vmem:[%s2115_s7 + $0x8a] sm:$0xff]  ;;  %v1132_v30 = vld [vmem:[%s2115_s7 + $0xb2] sm:$0xff] }
 0x103   : >> { %v1115_v46 = vadd.f32 %v1107_v32, %v1097_v26  ;;  %v1116_v47 = vadd.f32 %v1108_v19, %v1098_v62  ;;  %v1117_v48 = vadd.f32 %v1109_v37, %v1099_v12  ;;  %v1118_v51 = vadd.f32 %v1110_v39, %v1100_v13  ;;  %v1842_v37 = vld [vmem:[%s2459_s1 + $0x1d] ss:$0 sm:$0xff] }
 0x104   : >> { %v1119_v52 = vadd.f32 %v1111_v27, %v1101_v16  ;;  %v1120_v55 = vadd.f32 %v1112_v28, %v1102_v29  ;;  %v1143_v57 = vmul.f32 %v1839_v20, %v1121_v40  ;;  %v1144_v58 = vmul.f32 %v1839_v20, %v1122_v43  ;;  %v1131_v29 = vld [vmem:[%s2115_s7 + $0xaa] sm:$0xff] }
 0x105   : >> { %v1145_v42 = vmul.f32 %v1839_v20, %v1123_v44  ;;  %v1146_v45 = vmul.f32 %v1839_v20, %v1124_v10  ;;  %v1147_v60 = vmul.f32 %v1839_v20, %v1125_v22  ;;  %v1148_v1 = vmul.f32 %v1839_v20, %v1126_v56 }
 0x106   : >> { %v1149_v53 = vmul.f32 %v1839_v20, %v1127_v17  ;;  %v1150_v54 = vmul.f32 %v1839_v20, %v1128_v18  ;;  %v1151_v4 = vadd.f32 %v1143_v57, %v1113_v35  ;;  %v1152_v5 = vadd.f32 %v1144_v58, %v1114_v36  ;;  %v1843_v58 = vld [vmem:[%s2459_s1 + $0x25] ss:$0 sm:$0xff] }
 0x107   : >> { %v1153_v6 = vadd.f32 %v1145_v42, %v1115_v46  ;;  %v1154_v7 = vadd.f32 %v1146_v45, %v1116_v47  ;;  %v1155_v38 = vadd.f32 %v1147_v60, %v1117_v48  ;;  %v1156_v41 = vadd.f32 %v1148_v1, %v1118_v51 }
 0x108   : >> { %v1157_v8 = vadd.f32 %v1149_v53, %v1119_v52  ;;  %v1158_v11 = vadd.f32 %v1150_v54, %v1120_v55  ;;  %v1161_v49 = vmul.f32 %v1840_v50, %v1123_v44  ;;  %v1162_v0 = vmul.f32 %v1840_v50, %v1124_v10  ;;  %v1133_v52 = vld [vmem:[%s2115_s7 + $0xca] sm:$0xff]  ;;  %v1134_v55 = vld [vmem:[%s2115_s7 + $0xd2] sm:$0xff] }
 0x109   : >> { %v1163_v14 = vmul.f32 %v1840_v50, %v1125_v22  ;;  %v1164_v15 = vmul.f32 %v1840_v50, %v1126_v56  ;;  %v1165_v3 = vmul.f32 %v1840_v50, %v1127_v17  ;;  %v1166_v63 = vmul.f32 %v1840_v50, %v1128_v18 }
 0x10a   : >> { %v1167_v21 = vmul.f32 %v1840_v50, %v1129_v61  ;;  %v1168_v9 = vmul.f32 %v1840_v50, %v1130_v59  ;;  %v1169_v23 = vadd.f32 %v1161_v49, %v1151_v4  ;;  %v1170_v24 = vadd.f32 %v1162_v0, %v1152_v5  ;;  %v1844_v0 = vld [vmem:[%s2459_s1 + $0x2d] ss:$0 sm:$0xff] }
 0x10b   : >> { %v1171_v25 = vadd.f32 %v1163_v14, %v1153_v6  ;;  %v1172_v26 = vadd.f32 %v1164_v15, %v1154_v7  ;;  %v1173_v62 = vadd.f32 %v1165_v3, %v1155_v38  ;;  %v1174_v12 = vadd.f32 %v1166_v63, %v1156_v41  ;;  %v1135_v7 = vld [vmem:[%s2115_s7 + $0xea] sm:$0xff]  ;;  %v1136_v38 = vld [vmem:[%s2115_s7 + $0xf2] sm:$0xff] }
 0x10c   : >> { %v1175_v13 = vadd.f32 %v1167_v21, %v1157_v8  ;;  %v1176_v16 = vadd.f32 %v1168_v9, %v1158_v11  ;;  %v1179_v31 = vmul.f32 %v1841_v2, %v1125_v22  ;;  %v1180_v32 = vmul.f32 %v1841_v2, %v1126_v56 }
 0x10d   : >> { %v1181_v19 = vmul.f32 %v1841_v2, %v1127_v17  ;;  %v1182_v20 = vmul.f32 %v1841_v2, %v1128_v18  ;;  %v1183_v39 = vmul.f32 %v1841_v2, %v1129_v61  ;;  %v1184_v27 = vmul.f32 %v1841_v2, %v1130_v59 }
 0x10e   : >> { %v1185_v28 = vmul.f32 %v1841_v2, %v1131_v29  ;;  %v1186_v40 = vmul.f32 %v1841_v2, %v1132_v30  ;;  %v1187_v43 = vadd.f32 %v1179_v31, %v1169_v23  ;;  %v1188_v44 = vadd.f32 %v1180_v32, %v1170_v24  ;;  %v1845_v32 = vld [vmem:[%s2459_s1 + $0x35] ss:$0 sm:$0xff] }
 0x10f   : >> { %v1189_v35 = vadd.f32 %v1181_v19, %v1171_v25  ;;  %v1190_v36 = vadd.f32 %v1182_v20, %v1172_v26  ;;  %v1191_v46 = vadd.f32 %v1183_v39, %v1173_v62  ;;  %v1192_v47 = vadd.f32 %v1184_v27, %v1174_v12  ;;  %v1137_v26 = vld [vmem:[%s2115_s7 + $0x10a] sm:$0xff]  ;;  %v1138_v62 = vld [vmem:[%s2115_s7 + $0x112] sm:$0xff] }
 0x110   : >> { %v1193_v48 = vadd.f32 %v1185_v28, %v1175_v13  ;;  %v1194_v51 = vadd.f32 %v1186_v40, %v1176_v16  ;;  %v1197_v10 = vmul.f32 %v1842_v37, %v1127_v17  ;;  %v1198_v22 = vmul.f32 %v1842_v37, %v1128_v18  ;;  %v1139_v27 = vld [vmem:[%s2115_s7 + $0x12a] sm:$0xff]  ;;  %v1140_v28 = vld [vmem:[%s2115_s7 + $0x132] sm:$0xff] }
 0x111   : >> { %v1199_v56 = vmul.f32 %v1842_v37, %v1129_v61  ;;  %v1200_v57 = vmul.f32 %v1842_v37, %v1130_v59  ;;  %v1201_v42 = vmul.f32 %v1842_v37, %v1131_v29  ;;  %v1202_v45 = vmul.f32 %v1842_v37, %v1132_v30 }
 0x112   : >> { %v1203_v50 = vmul.f32 %v1842_v37, %v1133_v52  ;;  %v1204_v60 = vmul.f32 %v1842_v37, %v1134_v55  ;;  %v1205_v1 = vadd.f32 %v1197_v10, %v1187_v43  ;;  %v1206_v53 = vadd.f32 %v1198_v22, %v1188_v44  ;;  %v1846_v22 = vld [vmem:[%s2459_s1 + $0x6] ss:$0 sm:$0xff] }
 0x113   : >> { %v1207_v54 = vadd.f32 %v1199_v56, %v1189_v35  ;;  %v1208_v4 = vadd.f32 %v1200_v57, %v1190_v36  ;;  %v1209_v5 = vadd.f32 %v1201_v42, %v1191_v46  ;;  %v1210_v6 = vadd.f32 %v1202_v45, %v1192_v47  ;;  %v1267_v45 = vld [vmem:[%s2115_s7 + $0xb] sm:$0xff] }
 0x114   : >> { %v1211_v17 = vadd.f32 %v1203_v50, %v1193_v48  ;;  %v1212_v18 = vadd.f32 %v1204_v60, %v1194_v51  ;;  %v1215_v41 = vmul.f32 %v1843_v58, %v1129_v61  ;;  %v1216_v8 = vmul.f32 %v1843_v58, %v1130_v59  ;;  %v1268_v50 = vld [vmem:[%s2115_s7 + $0x13] sm:$0xff]  ;;  %v1269_v60 = vld [vmem:[%s2115_s7 + $0x2b] sm:$0xff] }
 0x115   : >> { %v1217_v11 = vmul.f32 %v1843_v58, %v1131_v29  ;;  %v1218_v49 = vmul.f32 %v1843_v58, %v1132_v30  ;;  %v1219_v14 = vmul.f32 %v1843_v58, %v1133_v52  ;;  %v1220_v15 = vmul.f32 %v1843_v58, %v1134_v55 }
 0x116   : >> { %v1221_v2 = vmul.f32 %v1843_v58, %v1135_v7  ;;  %v1222_v3 = vmul.f32 %v1843_v58, %v1136_v38  ;;  %v1223_v63 = vadd.f32 %v1215_v41, %v1205_v1  ;;  %v1224_v21 = vadd.f32 %v1216_v8, %v1206_v53  ;;  %v1274_v41 = vld [vmem:[%s2115_s7 + $0x73] sm:$0xff] }
 0x117   : >> { %v1225_v9 = vadd.f32 %v1217_v11, %v1207_v54  ;;  %v1226_v23 = vadd.f32 %v1218_v49, %v1208_v4  ;;  %v1227_v24 = vadd.f32 %v1219_v14, %v1209_v5  ;;  %v1228_v61 = vadd.f32 %v1220_v15, %v1210_v6  ;;  %v1847_v14 = vld [vmem:[%s2459_s1 + $0xe] ss:$0 sm:$0xff] }
 0x118   : >> { %v1229_v59 = vadd.f32 %v1221_v2, %v1211_v17  ;;  %v1230_v25 = vadd.f32 %v1222_v3, %v1212_v18  ;;  %v1233_v12 = vmul.f32 %v1844_v0, %v1131_v29  ;;  %v1234_v13 = vmul.f32 %v1844_v0, %v1132_v30  ;;  %v1270_v17 = vld [vmem:[%s2115_s7 + $0x33] sm:$0xff]  ;;  %v1271_v18 = vld [vmem:[%s2115_s7 + $0x4b] sm:$0xff] }
 0x119   : >> { %v1235_v16 = vmul.f32 %v1844_v0, %v1133_v52  ;;  %v1236_v31 = vmul.f32 %v1844_v0, %v1134_v55  ;;  %v1237_v19 = vmul.f32 %v1844_v0, %v1135_v7  ;;  %v1238_v20 = vmul.f32 %v1844_v0, %v1136_v38 }
 0x11a   : >> { %v1239_v37 = vmul.f32 %v1844_v0, %v1137_v26  ;;  %v1240_v39 = vmul.f32 %v1844_v0, %v1138_v62  ;;  %v1241_v40 = vadd.f32 %v1233_v12, %v1223_v63  ;;  %v1242_v43 = vadd.f32 %v1234_v13, %v1224_v21  ;;  %v1276_v12 = vld [vmem:[%s2115_s7 + $0x93] sm:$0xff] }
 0x11b   : >> { %v1243_v44 = vadd.f32 %v1235_v16, %v1225_v9  ;;  %v1244_v35 = vadd.f32 %v1236_v31, %v1226_v23  ;;  %v1245_v29 = vadd.f32 %v1237_v19, %v1227_v24  ;;  %v1246_v30 = vadd.f32 %v1238_v20, %v1228_v61  ;;  %v1848_v19 = vld [vmem:[%s2459_s1 + $0x16] ss:$0 sm:$0xff] }
 0x11c   : >> { %v1247_v36 = vadd.f32 %v1239_v37, %v1229_v59  ;;  %v1248_v46 = vadd.f32 %v1240_v39, %v1230_v25  ;;  %v1251_v47 = vmul.f32 %v1845_v32, %v1133_v52  ;;  %v1252_v48 = vmul.f32 %v1845_v32, %v1134_v55 }
 0x11d   : >> { %v1253_v51 = vmul.f32 %v1845_v32, %v1135_v7  ;;  %v1254_v10 = vmul.f32 %v1845_v32, %v1136_v38  ;;  %v1255_v56 = vmul.f32 %v1845_v32, %v1137_v26  ;;  %v1256_v57 = vmul.f32 %v1845_v32, %v1138_v62  ;;  %v1272_v7 = vld [vmem:[%s2115_s7 + $0x53] sm:$0xff]  ;;  %v1273_v38 = vld [vmem:[%s2115_s7 + $0x6b] sm:$0xff] }
 0x11e   : >> { %v1257_v58 = vmul.f32 %v1845_v32, %v1139_v27  ;;  %v1258_v42 = vmul.f32 %v1845_v32, %v1140_v28  ;;  %v1259_v52 = vadd.f32 %v1251_v47, %v1241_v40  ;;  %v1260_v55 = vadd.f32 %v1252_v48, %v1242_v43  ;;  %v1275_v62 = vld [vmem:[%s2115_s7 + $0x8b] sm:$0xff]  ;;  %v1278_v47 = vld [vmem:[%s2115_s7 + $0xb3] sm:$0xff] }
 0x11f   : >> { %v1261_v1 = vadd.f32 %v1253_v51, %v1243_v44  ;;  %v1262_v53 = vadd.f32 %v1254_v10, %v1244_v35  ;;  %v1263_v54 = vadd.f32 %v1255_v56, %v1245_v29  ;;  %v1264_v4 = vadd.f32 %v1256_v57, %v1246_v30  ;;  %v1849_v56 = vld [vmem:[%s2459_s1 + $0x1e] ss:$0 sm:$0xff] }
 0x120   : >> { %v1265_v5 = vadd.f32 %v1257_v58, %v1247_v36  ;;  %v1266_v6 = vadd.f32 %v1258_v42, %v1248_v46  ;;  %v1289_v8 = vmul.f32 %v1846_v22, %v1267_v45  ;;  %v1290_v11 = vmul.f32 %v1846_v22, %v1268_v50  ;;  %v1277_v46 = vld [vmem:[%s2115_s7 + $0xab] sm:$0xff] }
 0x121   : >> { %v1291_v49 = vmul.f32 %v1846_v22, %v1269_v60  ;;  %v1292_v0 = vmul.f32 %v1846_v22, %v1270_v17  ;;  %v1293_v15 = vmul.f32 %v1846_v22, %v1271_v18  ;;  %v1294_v2 = vmul.f32 %v1846_v22, %v1272_v7 }
 0x122   : >> { %v1295_v3 = vmul.f32 %v1846_v22, %v1273_v38  ;;  %v1296_v63 = vmul.f32 %v1846_v22, %v1274_v41  ;;  %v1297_v21 = vadd.f32 %v1289_v8, %v1259_v52  ;;  %v1298_v9 = vadd.f32 %v1290_v11, %v1260_v55  ;;  %v1850_v11 = vld [vmem:[%s2459_s1 + $0x26] ss:$0 sm:$0xff] }
 0x123   : >> { %v1299_v23 = vadd.f32 %v1291_v49, %v1261_v1  ;;  %v1300_v24 = vadd.f32 %v1292_v0, %v1262_v53  ;;  %v1301_v61 = vadd.f32 %v1293_v15, %v1263_v54  ;;  %v1302_v59 = vadd.f32 %v1294_v2, %v1264_v4 }
 0x124   : >> { %v1303_v25 = vadd.f32 %v1295_v3, %v1265_v5  ;;  %v1304_v26 = vadd.f32 %v1296_v63, %v1266_v6  ;;  %v1307_v13 = vmul.f32 %v1847_v14, %v1269_v60  ;;  %v1308_v16 = vmul.f32 %v1847_v14, %v1270_v17  ;;  %v1279_v5 = vld [vmem:[%s2115_s7 + $0xcb] sm:$0xff]  ;;  %v1280_v6 = vld [vmem:[%s2115_s7 + $0xd3] sm:$0xff] }
 0x125   : >> { %v1309_v31 = vmul.f32 %v1847_v14, %v1271_v18  ;;  %v1310_v32 = vmul.f32 %v1847_v14, %v1272_v7  ;;  %v1311_v20 = vmul.f32 %v1847_v14, %v1273_v38  ;;  %v1312_v37 = vmul.f32 %v1847_v14, %v1274_v41 }
 0x126   : >> { %v1313_v39 = vmul.f32 %v1847_v14, %v1275_v62  ;;  %v1314_v27 = vmul.f32 %v1847_v14, %v1276_v12  ;;  %v1315_v28 = vadd.f32 %v1307_v13, %v1297_v21  ;;  %v1316_v40 = vadd.f32 %v1308_v16, %v1298_v9  ;;  %v1851_v16 = vld [vmem:[%s2459_s1 + $0x2e] ss:$0 sm:$0xff] }
 0x127   : >> { %v1317_v43 = vadd.f32 %v1309_v31, %v1299_v23  ;;  %v1318_v44 = vadd.f32 %v1310_v32, %v1300_v24  ;;  %v1319_v35 = vadd.f32 %v1311_v20, %v1301_v61  ;;  %v1320_v29 = vadd.f32 %v1312_v37, %v1302_v59  ;;  %v1281_v24 = vld [vmem:[%s2115_s7 + $0xeb] sm:$0xff]  ;;  %v1282_v61 = vld [vmem:[%s2115_s7 + $0xf3] sm:$0xff] }
 0x128   : >> { %v1321_v30 = vadd.f32 %v1313_v39, %v1303_v25  ;;  %v1322_v36 = vadd.f32 %v1314_v27, %v1304_v26  ;;  %v1325_v48 = vmul.f32 %v1848_v19, %v1271_v18  ;;  %v1326_v51 = vmul.f32 %v1848_v19, %v1272_v7 }
 0x129   : >> { %v1327_v10 = vmul.f32 %v1848_v19, %v1273_v38  ;;  %v1328_v22 = vmul.f32 %v1848_v19, %v1274_v41  ;;  %v1329_v57 = vmul.f32 %v1848_v19, %v1275_v62  ;;  %v1330_v58 = vmul.f32 %v1848_v19, %v1276_v12 }
 0x12a   : >> { %v1331_v42 = vmul.f32 %v1848_v19, %v1277_v46  ;;  %v1332_v45 = vmul.f32 %v1848_v19, %v1278_v47  ;;  %v1333_v50 = vadd.f32 %v1325_v48, %v1315_v28  ;;  %v1334_v60 = vadd.f32 %v1326_v51, %v1316_v40  ;;  %v1852_v51 = vld [vmem:[%s2459_s1 + $0x36] ss:$0 sm:$0xff] }
 0x12b   : >> { %v1335_v52 = vadd.f32 %v1327_v10, %v1317_v43  ;;  %v1336_v55 = vadd.f32 %v1328_v22, %v1318_v44  ;;  %v1337_v1 = vadd.f32 %v1329_v57, %v1319_v35  ;;  %v1338_v53 = vadd.f32 %v1330_v58, %v1320_v29  ;;  %v1283_v44 = vld [vmem:[%s2115_s7 + $0x10b] sm:$0xff]  ;;  %v1284_v35 = vld [vmem:[%s2115_s7 + $0x113] sm:$0xff] }
 0x12c   : >> { %v1339_v54 = vadd.f32 %v1331_v42, %v1321_v30  ;;  %v1340_v4 = vadd.f32 %v1332_v45, %v1322_v36  ;;  %v1343_v17 = vmul.f32 %v1849_v56, %v1273_v38  ;;  %v1344_v18 = vmul.f32 %v1849_v56, %v1274_v41  ;;  %v1285_v58 = vld [vmem:[%s2115_s7 + $0x12b] sm:$0xff]  ;;  %v1286_v42 = vld [vmem:[%s2115_s7 + $0x133] sm:$0xff]  ;;  %s1423_s7 = scalar_lea.vmem %s2054_s26, %s1698_s25 }
 0x12d   : >> { %v1345_v7 = vmul.f32 %v1849_v56, %v1275_v62  ;;  %v1346_v8 = vmul.f32 %v1849_v56, %v1276_v12  ;;  %v1347_v49 = vmul.f32 %v1849_v56, %v1277_v46  ;;  %v1348_v0 = vmul.f32 %v1849_v56, %v1278_v47 }
 0x12e   : >> { %v1349_v14 = vmul.f32 %v1849_v56, %v1279_v5  ;;  %v1350_v15 = vmul.f32 %v1849_v56, %v1280_v6  ;;  %v1351_v2 = vadd.f32 %v1343_v17, %v1333_v50  ;;  %v1352_v3 = vadd.f32 %v1344_v18, %v1334_v60 }
 0x12f   : >> { %v1353_v63 = vadd.f32 %v1345_v7, %v1335_v52  ;;  %v1354_v21 = vadd.f32 %v1346_v8, %v1336_v55  ;;  %v1355_v9 = vadd.f32 %v1347_v49, %v1337_v1  ;;  %v1356_v23 = vadd.f32 %v1348_v0, %v1338_v53 }
 0x130   : >> { %v1357_v38 = vadd.f32 %v1349_v14, %v1339_v54  ;;  %v1358_v41 = vadd.f32 %v1350_v15, %v1340_v4  ;;  %v1361_v59 = vmul.f32 %v1850_v11, %v1275_v62  ;;  %v1362_v25 = vmul.f32 %v1850_v11, %v1276_v12 }
 0x131   : >> { %v1363_v26 = vmul.f32 %v1850_v11, %v1277_v46  ;;  %v1364_v13 = vmul.f32 %v1850_v11, %v1278_v47  ;;  %v1365_v31 = vmul.f32 %v1850_v11, %v1279_v5  ;;  %v1366_v32 = vmul.f32 %v1850_v11, %v1280_v6 }
 0x132   : >> { %v1367_v19 = vmul.f32 %v1850_v11, %v1281_v24  ;;  %v1368_v20 = vmul.f32 %v1850_v11, %v1282_v61  ;;  %v1369_v37 = vadd.f32 %v1361_v59, %v1351_v2  ;;  %v1370_v39 = vadd.f32 %v1362_v25, %v1352_v3 }
 0x133   : >> { %v1371_v27 = vadd.f32 %v1363_v26, %v1353_v63  ;;  %v1372_v28 = vadd.f32 %v1364_v13, %v1354_v21  ;;  %v1373_v40 = vadd.f32 %v1365_v31, %v1355_v9  ;;  %v1374_v62 = vadd.f32 %v1366_v32, %v1356_v23 }
 0x134   : >> { %v1375_v12 = vadd.f32 %v1367_v19, %v1357_v38  ;;  %v1376_v43 = vadd.f32 %v1368_v20, %v1358_v41  ;;  %v1379_v29 = vmul.f32 %v1851_v16, %v1277_v46  ;;  %v1380_v30 = vmul.f32 %v1851_v16, %v1278_v47 }
 0x135   : >> { %v1381_v36 = vmul.f32 %v1851_v16, %v1279_v5  ;;  %v1382_v48 = vmul.f32 %v1851_v16, %v1280_v6  ;;  %v1383_v10 = vmul.f32 %v1851_v16, %v1281_v24  ;;  %v1384_v22 = vmul.f32 %v1851_v16, %v1282_v61 }
 0x136   : >> { %v1385_v56 = vmul.f32 %v1851_v16, %v1283_v44  ;;  %v1386_v57 = vmul.f32 %v1851_v16, %v1284_v35  ;;  %v1387_v45 = vadd.f32 %v1379_v29, %v1369_v37  ;;  %v1388_v50 = vadd.f32 %v1380_v30, %v1370_v39 }
 0x137   : >> { %v1389_v60 = vadd.f32 %v1381_v36, %v1371_v27  ;;  %v1390_v52 = vadd.f32 %v1382_v48, %v1372_v28  ;;  %v1391_v55 = vadd.f32 %v1383_v10, %v1373_v40  ;;  %v1392_v46 = vadd.f32 %v1384_v22, %v1374_v62 }
 0x138   : >> { %v1393_v47 = vadd.f32 %v1385_v56, %v1375_v12  ;;  %v1394_v1 = vadd.f32 %v1386_v57, %v1376_v43  ;;  %v1397_v53 = vmul.f32 %v1852_v51, %v1279_v5  ;;  %v1398_v54 = vmul.f32 %v1852_v51, %v1280_v6 }
 0x139   : >> { %v1399_v4 = vmul.f32 %v1852_v51, %v1281_v24  ;;  %v1400_v17 = vmul.f32 %v1852_v51, %v1282_v61  ;;  %v1401_v18 = vmul.f32 %v1852_v51, %v1283_v44  ;;  %v1402_v7 = vmul.f32 %v1852_v51, %v1284_v35 }
 0x13a   : >> { %v1403_v8 = vmul.f32 %v1852_v51, %v1285_v58  ;;  %v1404_v11 = vmul.f32 %v1852_v51, %v1286_v42  ;;  %v1405_v49 = vadd.f32 %v1397_v53, %v1387_v45  ;;  %v1406_v0 = vadd.f32 %v1398_v54, %v1388_v50 }
 0x13b   : >> { %v1407_v14 = vadd.f32 %v1399_v4, %v1389_v60  ;;  %v1408_v15 = vadd.f32 %v1400_v17, %v1390_v52  ;;  %v1409_v2 = vadd.f32 %v1401_v18, %v1391_v55  ;;  %v1410_v3 = vadd.f32 %v1402_v7, %v1392_v46 }
 0x13c   : >> { %v1411_v63 = vadd.f32 %v1403_v8, %v1393_v47  ;;  %v1412_v21 = vadd.f32 %v1404_v11, %v1394_v1  ;;  %v1702_v9 = vpack.c.bf16 %v1406_v0, %v1405_v49  ;;  %v1432_v6 = vadd.f32 %v1406_v0, %v1405_v49 }
 0x13d   : >> { %v1707_v5 = vpack.c.bf16 %v1408_v15, %v1407_v14  ;;  %v1446_v23 = vmul.f32 %v1405_v49, %v1405_v49  ;;  %v1712_v38 = vpack.c.bf16 %v1410_v3, %v1409_v2  ;;  %v1447_v24 = vmul.f32 %v1406_v0, %v1406_v0 }
 0x13e   : >> { %v1717_v41 = vpack.c.bf16 %v1412_v21, %v1411_v63  ;;  %v1448_v61 = vmul.f32 %v1407_v14, %v1407_v14  ;;  %1703 = vst [vmem:[%s1423_s7] sm:$0xff] %v1702_v9   ;;  %v1433_v59 = vadd.f32 %v1432_v6, %v1407_v14  ;;  %v1449_v25 = vmul.f32 %v1408_v15, %v1408_v15 }
 0x13f   : >> { %1719 = vst [vmem:[%s1423_s7 + $0x8] sm:$0xff] %v1707_v5   ;;  %v1454_v26 = vadd.f32 %v1447_v24, %v1446_v23  ;;  %v1450_v16 = vmul.f32 %v1409_v2, %v1409_v2  ;;  %v1451_v19 = vmul.f32 %v1410_v3, %v1410_v3  ;;  %v1452_v39 = vmul.f32 %v1411_v63, %v1411_v63 }
 0x140   : >> { %1720 = vst [vmem:[%s1423_s7 + $0x10] sm:$0xff] %v1712_v38   ;;  %v1434_v13 = vadd.f32 %v1433_v59, %v1408_v15  ;;  %v1453_v40 = vmul.f32 %v1412_v21, %v1412_v21 }
 0x141   : >> { %1721 = vst [vmem:[%s1423_s7 + $0x18] sm:$0xff] %v1717_v41   ;;  %v1455_v31 = vadd.f32 %v1454_v26, %v1448_v61 }
 0x142   : >> { %v1435_v32 = vadd.f32 %v1434_v13, %v1409_v2 }
 0x143   : >> { %v1456_v20 = vadd.f32 %v1455_v31, %v1449_v25 }
 0x144   : >> { %v1436_v37 = vadd.f32 %v1435_v32, %v1410_v3 }
 0x145   : >> { %v1457_v27 = vadd.f32 %v1456_v20, %v1450_v16 }
 0x146   : >> { %v1437_v28 = vadd.f32 %v1436_v37, %v1411_v63 }
 0x147   : >> { %v1458_v62 = vadd.f32 %v1457_v27, %v1451_v19 }
 0x148   : >> { %v1438_v12 = vadd.f32 %v1437_v28, %v1412_v21 }
 0x149   : >> { %v1459_v43 = vadd.f32 %v1458_v62, %v1452_v39 }
 0x14a   : >> { %v1439_v44 = vrot.slane %v1438_v12, 4 }
 0x14b   : >> { %v1460_v35 = vadd.f32 %v1459_v43, %v1453_v40 }
 0x14c   : >> { %v1440_v29 = vadd.f32 %v1439_v44, %v1438_v12 }
 0x14d   : >> { %v1461_v30 = vrot.slane %v1460_v35, 4 }
 0x14e   : >> { %v1441_v36 = vrot.slane %v1440_v29, 2 }
 0x14f   : >> { %v1462_v48 = vadd.f32 %v1461_v30, %v1460_v35 }
 0x150   : >> { %v1442_v51 = vadd.f32 %v1441_v36, %v1440_v29 }
 0x151   : >> { %v1463_v10 = vrot.slane %v1462_v48, 2 }
 0x152   : >> { %v1443_v22 = vrot.slane %v1442_v51, 1 }
 0x153   : >> { %v1464_v56 = vadd.f32 %v1463_v10, %v1462_v48 }
 0x154   : >> { %v1444_v57 = vadd.f32 %v1443_v22, %v1442_v51 }
 0x155   : >> { %v1465_v58 = vrot.slane %v1464_v56, 1 }
 0x156   : >> { %v1445_v42 = vadd.f32 %v1953_v34, %v1444_v57  }
 0x157   : >> { %v1466_v45 = vadd.f32 %v1465_v58, %v1464_v56  ;;  %378 = sbr.rel (!%p376_p0) target bundleno = 115 (0x73), region = 100 }
 0x158   : >> { %v2465_v34 = vmov %v1445_v42 }
 0x159   : >> { %v1467_v50 = vadd.f32 %v1949_v33, %v1466_v45  }
 0x15b   : >> { %v2464_v33 = vmov %v1467_v50  ;;  %v1469_v60 = vsel (%p376_p0), %vm1468_vm0, %v1445_v42, %v1467_v50 }
 0x15c   : > { %1470 = vst [vmem:[%s2059_s23] sm:$0x3] %v1469_v60 }
 0x15d PF: > { %s17_s17 = sadd.s32 1, %s1945_s17   ;;  %s2466_s12 = smov %s1929_s13 }
 0x15e   : > { %p14_p1 = scmp.ge.s32.totalorder %s17_s17, 4   ;;  %s2467_s13 = smov %s1933_s14 }
 0x15f   : > { %s2468_s14 = smov %s2031_s24  ;;  %s2469_s15 = smov %s1941_s16 }
 0x160   : > { %s2470_s16 = smov %s2472_s19  ;;  %16 = sbr.rel (!%p14_p1) target bundleno = 4 (0x4), region = 111 }
 0x165   :  { %1518 = vsyncpa [#allocation4], 1 }
 0x166   :  { %1520 = vsyncpa [#allocation4 + $0x1], 1 }

// kernel: conv_ffn.3
= control target key start
LH: loop header
LB: loop body
LE: loop exit
PB: predicated region body
PF: predicated region fallthrough
CT: control target
= control target key end

     0   :  { %s4699_s18 = smov 0   ;;  %s4701_s19 = smov 0   ;;  %s6181_s0 = inlined_call_operand.vmem [shape: bf16[2,256,128], index: 0, kind: input, shape index: {}]   ;;  %s6182_s1 = inlined_call_operand.vmem [shape: bf16[128,512], index: 1, kind: input, shape index: {}]   ;;  %s6183_s2 = inlined_call_operand.vmem [shape: f32[1,512], index: 2, kind: input, shape index: {}]   ;;  %s6184_s3 = inlined_call_operand.vmem [shape: bf16[128,512], index: 3, kind: input, shape index: {}]   ;;  %s6185_s4 = inlined_call_operand.vmem [shape: f32[128,1], index: 4, kind: input, shape index: {}]   ;;  %s6186_s5 = inlined_call_operand.vmem [shape: f32[2,128,256], index: 5, kind: output, shape index: {}]  }
   0x1   :  { %s4703_s20 = smov 0  }
   0x2 LB: > { %s27_s21 = sadd.s32 1, %s4662_s19  ;;  %p3615_p0 = scmp.ge.s32.totalorder %s4666_s20, 1  ;;  %s4666_s20 = sphi %s4703_s20, %s15_s20   ;;  %s4662_s19 = sphi %s4701_s19, %s6188_s19   ;;  %s4658_s18 = sphi %s4699_s18, %s6187_s18  }
   0x3   : > { %p29_p1 = scmp.ge.s32.totalorder %s27_s21, 2  ;;  %p208_p2 = scmp.lt.s32.totalorder %s4666_s20, 3 }
   0x5   : > { %s6190_s21 = smov (%p29_p1, %s27_s21), 0  ;;  %p209_p3 = pnand %p3615_p0, %p208_p2 }
   0x6   : > { %p245_p4 = scmp.lt.s32.totalorder (!%p209_p3), %s4658_s18, 1 }
   0x7   : > { %212 = sbr.rel (%p209_p3) target bundleno = 945 (0x3b1), region = 40 }
   0xc   : > { %v3714_v0 = vld [vmem:[%s6182_s1 + $0xe0] sm:$0xf]  ;;  %v4223_v1 = vld [vmem:[%s6182_s1 + $0xec] sm:$0xf0]  ;;  %v3746_v2 = vld [vmem:[%s6182_s1 + $0xe4] sm:$0xf] }
   0xd   : > { %v3715_v3 = vor.u32 %v4223_v1, %v3714_v0  ;;  %v4231_v4 = vld [vmem:[%s6182_s1 + $0xf0] sm:$0xf0]  ;;  %v3778_v5 = vld [vmem:[%s6182_s1 + $0xe8] sm:$0xf]  ;;  %v4239_v6 = vld [vmem:[%s6182_s1 + $0xf4] sm:$0xf0] }
   0xe   : > { %v3747_v7 = vor.u32 %v4231_v4, %v3746_v2  ;;  %v3779_v8 = vor.u32 %v4239_v6, %v3778_v5  ;;  %v3810_v9 = vld [vmem:[%s6182_s1 + $0xec] sm:$0xf]  ;;  %v4247_v10 = vld [vmem:[%s6182_s1 + $0xf8] sm:$0xf0]  ;;  %v3710_v11 = vld [vmem:[%s6182_s1 + $0xc0] sm:$0xf] }
   0xf   : > { %460 = vmatpush.bf16.msra.mxu0 %v3715_v3  ;;  %v3811_v12 = vor.u32 %v4247_v10, %v3810_v9  ;;  %v4222_v13 = vld [vmem:[%s6182_s1 + $0xcc] sm:$0xf0]  ;;  %v3742_v14 = vld [vmem:[%s6182_s1 + $0xc4] sm:$0xf]  ;;  %v4230_v15 = vld [vmem:[%s6182_s1 + $0xd0] sm:$0xf0] }
  0x10   : > { %969 = vmatpush.bf16.msra.mxu1 %v3747_v7  ;;  %1478 = vmatpush.bf16.msra.mxu2 %v3779_v8  ;;  %v3711_v16 = vor.u32 %v4222_v13, %v3710_v11  ;;  %v3743_v17 = vor.u32 %v4230_v15, %v3742_v14  ;;  %v3774_v18 = vld [vmem:[%s6182_s1 + $0xc8] sm:$0xf]  ;;  %v4238_v19 = vld [vmem:[%s6182_s1 + $0xd4] sm:$0xf0]  ;;  %v3806_v20 = vld [vmem:[%s6182_s1 + $0xcc] sm:$0xf] }
  0x11   : > { %1987 = vmatpush.bf16.msra.mxu3 %v3811_v12  ;;  %v3775_v21 = vor.u32 %v4238_v19, %v3774_v18  ;;  %v4246_v22 = vld [vmem:[%s6182_s1 + $0xd8] sm:$0xf0]  ;;  %v3706_v23 = vld [vmem:[%s6182_s1 + $0xa0] sm:$0xf]  ;;  %v4221_v24 = vld [vmem:[%s6182_s1 + $0xac] sm:$0xf0] }
  0x12   : > { %v3807_v25 = vor.u32 %v4246_v22, %v3806_v20  ;;  %v3738_v26 = vld [vmem:[%s6182_s1 + $0xa4] sm:$0xf]  ;;  %v4229_v27 = vld [vmem:[%s6182_s1 + $0xb0] sm:$0xf0]  ;;  %v3770_v28 = vld [vmem:[%s6182_s1 + $0xa8] sm:$0xf]  ;;  %v3707_v29 = vor.u32 %v4221_v24, %v3706_v23 }
  0x13   : > { %461 = vmatpush.bf16.msra.mxu0 %v3711_v16  ;;  %v4237_v30 = vld [vmem:[%s6182_s1 + $0xb4] sm:$0xf0]  ;;  %v3802_v31 = vld [vmem:[%s6182_s1 + $0xac] sm:$0xf]  ;;  %v4245_v32 = vld [vmem:[%s6182_s1 + $0xb8] sm:$0xf0]  ;;  %v3739_v33 = vor.u32 %v4229_v27, %v3738_v26 }
  0x14   : > { %970 = vmatpush.bf16.msra.mxu1 %v3743_v17  ;;  %1479 = vmatpush.bf16.msra.mxu2 %v3775_v21  ;;  %v3771_v34 = vor.u32 %v4237_v30, %v3770_v28  ;;  %v3702_v35 = vld [vmem:[%s6182_s1 + $0x80] sm:$0xf]  ;;  %v4220_v36 = vld [vmem:[%s6182_s1 + $0x8c] sm:$0xf0]  ;;  %v3734_v37 = vld [vmem:[%s6182_s1 + $0x84] sm:$0xf]  ;;  %v3803_v38 = vor.u32 %v4245_v32, %v3802_v31 }
  0x15   : > { %1988 = vmatpush.bf16.msra.mxu3 %v3807_v25  ;;  %v4228_v39 = vld [vmem:[%s6182_s1 + $0x90] sm:$0xf0]  ;;  %v3766_v40 = vld [vmem:[%s6182_s1 + $0x88] sm:$0xf]  ;;  %v4236_v41 = vld [vmem:[%s6182_s1 + $0x94] sm:$0xf0]  ;;  %v3703_v44 = vor.u32 %v4220_v36, %v3702_v35 }
  0x16   : > { %v3798_v42 = vld [vmem:[%s6182_s1 + $0x8c] sm:$0xf]  ;;  %v4244_v43 = vld [vmem:[%s6182_s1 + $0x98] sm:$0xf0]  ;;  %v3735_v45 = vor.u32 %v4228_v39, %v3734_v37  ;;  %v3767_v46 = vor.u32 %v4236_v41, %v3766_v40  ;;  %v3698_v47 = vld [vmem:[%s6182_s1 + $0x60] sm:$0xf] }
  0x17   : > { %462 = vmatpush.bf16.msra.mxu0 %v3707_v29  ;;  %v4219_v48 = vld [vmem:[%s6182_s1 + $0x6c] sm:$0xf0]  ;;  %v3730_v49 = vld [vmem:[%s6182_s1 + $0x64] sm:$0xf]  ;;  %v3799_v50 = vor.u32 %v4244_v43, %v3798_v42  ;;  %v4227_v51 = vld [vmem:[%s6182_s1 + $0x70] sm:$0xf0] }
  0x18   : > { %971 = vmatpush.bf16.msra.mxu1 %v3739_v33  ;;  %1480 = vmatpush.bf16.msra.mxu2 %v3771_v34  ;;  %v3762_v52 = vld [vmem:[%s6182_s1 + $0x68] sm:$0xf]  ;;  %v4235_v53 = vld [vmem:[%s6182_s1 + $0x74] sm:$0xf0]  ;;  %v3794_v54 = vld [vmem:[%s6182_s1 + $0x6c] sm:$0xf]  ;;  %v3699_v56 = vor.u32 %v4219_v48, %v3698_v47  ;;  %v3731_v57 = vor.u32 %v4227_v51, %v3730_v49 }
  0x19   : > { %1989 = vmatpush.bf16.msra.mxu3 %v3803_v38  ;;  %v4243_v55 = vld [vmem:[%s6182_s1 + $0x78] sm:$0xf0]  ;;  %v3763_v58 = vor.u32 %v4235_v53, %v3762_v52  ;;  %v3694_v59 = vld [vmem:[%s6182_s1 + $0x40] sm:$0xf]  ;;  %v4218_v60 = vld [vmem:[%s6182_s1 + $0x4c] sm:$0xf0] }
  0x1a   : > { %v3726_v61 = vld [vmem:[%s6182_s1 + $0x44] sm:$0xf]  ;;  %v3795_v62 = vor.u32 %v4243_v55, %v3794_v54  ;;  %v4226_v63 = vld [vmem:[%s6182_s1 + $0x50] sm:$0xf0]  ;;  %v3758_v0 = vld [vmem:[%s6182_s1 + $0x48] sm:$0xf]  ;;  %v3695_v5 = vor.u32 %v4218_v60, %v3694_v59 }
  0x1b   : > { %463 = vmatpush.bf16.msra.mxu0 %v3703_v44  ;;  %v4234_v1 = vld [vmem:[%s6182_s1 + $0x54] sm:$0xf0]  ;;  %v3790_v2 = vld [vmem:[%s6182_s1 + $0x4c] sm:$0xf]  ;;  %v4242_v3 = vld [vmem:[%s6182_s1 + $0x58] sm:$0xf0]  ;;  %v3727_v9 = vor.u32 %v4226_v63, %v3726_v61 }
  0x1c   : > { %972 = vmatpush.bf16.msra.mxu1 %v3735_v45  ;;  %1481 = vmatpush.bf16.msra.mxu2 %v3767_v46  ;;  %v3690_v4 = vld [vmem:[%s6182_s1 + $0x20] sm:$0xf]  ;;  %v4217_v6 = vld [vmem:[%s6182_s1 + $0x2c] sm:$0xf0]  ;;  %v3722_v7 = vld [vmem:[%s6182_s1 + $0x24] sm:$0xf]  ;;  %v3759_v10 = vor.u32 %v4234_v1, %v3758_v0  ;;  %v3791_v14 = vor.u32 %v4242_v3, %v3790_v2 }
  0x1d   : > { %1990 = vmatpush.bf16.msra.mxu3 %v3799_v50  ;;  %v4225_v8 = vld [vmem:[%s6182_s1 + $0x30] sm:$0xf0]  ;;  %v3754_v11 = vld [vmem:[%s6182_s1 + $0x28] sm:$0xf]  ;;  %v4233_v12 = vld [vmem:[%s6182_s1 + $0x34] sm:$0xf0]  ;;  %v3691_v16 = vor.u32 %v4217_v6, %v3690_v4 }
  0x1e   : > { %v3786_v13 = vld [vmem:[%s6182_s1 + $0x2c] sm:$0xf]  ;;  %v4241_v15 = vld [vmem:[%s6182_s1 + $0x38] sm:$0xf0]  ;;  %v3686_v17 = vld [vmem:[%s6182_s1] sm:$0xf]  ;;  %v3723_v18 = vor.u32 %v4225_v8, %v3722_v7  ;;  %v3755_v19 = vor.u32 %v4233_v12, %v3754_v11 }
  0x1f   : > { %464 = vmatpush.bf16.msra.mxu0 %v3699_v56  ;;  %s6192_s18 = smov (!%p245_p4, %s4658_s18), 1  ;;  %v4216_v20 = vld [vmem:[%s6182_s1 + $0xc] sm:$0xf0]  ;;  %v3718_v21 = vld [vmem:[%s6182_s1 + $0x4] sm:$0xf]  ;;  %v3787_v23 = vor.u32 %v4241_v15, %v3786_v13 }
  0x20   : > { %973 = vmatpush.bf16.msra.mxu1 %v3731_v57  ;;  %1482 = vmatpush.bf16.msra.mxu2 %v3763_v58  ;;  %v4224_v22 = vld [vmem:[%s6182_s1 + $0x10] sm:$0xf0]  ;;  %v3750_v24 = vld [vmem:[%s6182_s1 + $0x8] sm:$0xf]  ;;  %v4232_v25 = vld [vmem:[%s6182_s1 + $0x14] sm:$0xf0]  ;;  %v3687_v28 = vor.u32 %v4216_v20, %v3686_v17 }
  0x21   : > { %1991 = vmatpush.bf16.msra.mxu3 %v3795_v62  ;;  %s4198_s16 = sshll.u32 %s6192_s18, 7  ;;  %v3782_v26 = vld [vmem:[%s6182_s1 + $0xc] sm:$0xf]  ;;  %v4240_v27 = vld [vmem:[%s6182_s1 + $0x18] sm:$0xf0]  ;;  %v3719_v29 = vor.u32 %v4224_v22, %v3718_v21  ;;  %v3751_v30 = vor.u32 %v4232_v25, %v3750_v24 }
  0x22   : > { %s4919_s27 = scalar_lea.vmem %s6181_s0, %s4198_s16  ;;  %v3783_v31 = vor.u32 %v4240_v27, %v3782_v26  ;;  %v4932_v40 = vld [vmem:[%s6183_s2] ss:$0 sm:$0xff]  ;;  %v4937_v41 = vld [vmem:[%s6183_s2 + $0x1] ss:$0 sm:$0xff]  ;;  %v4945_v49 = vld [vmem:[%s6183_s2 + $0x2] ss:$0 sm:$0xff] }
  0x23   : > { %465 = vmatpush.bf16.msra.mxu0 %v3695_v5  ;;  %v4200_v32 = vld [vmem:[%s4919_s27] sm:$0xff]  ;;  %v4201_v33 = vld [vmem:[%s4919_s27 + $0x8] sm:$0xff]  ;;  %v4202_v34 = vld [vmem:[%s4919_s27 + $0x10] sm:$0xff] }
  0x24   : > { %974 = vmatpush.bf16.msra.mxu1 %v3727_v9  ;;  %1483 = vmatpush.bf16.msra.mxu2 %v3759_v10  ;;  %v4203_v35 = vld [vmem:[%s4919_s27 + $0x18] sm:$0xff]  ;;  %v4204_v36 = vld [vmem:[%s4919_s27 + $0x20] sm:$0xff]  ;;  %v4205_v37 = vld [vmem:[%s4919_s27 + $0x28] sm:$0xff] }
  0x25   : > { %1992 = vmatpush.bf16.msra.mxu3 %v3791_v14  ;;  %v4206_v38 = vld [vmem:[%s4919_s27 + $0x30] sm:$0xff]  ;;  %v4207_v39 = vld [vmem:[%s4919_s27 + $0x38] sm:$0xff]  ;;  %v4208_v42 = vld [vmem:[%s4919_s27 + $0x40] sm:$0xff] }
  0x26   : > { %v4950_v51 = vld [vmem:[%s6183_s2 + $0x3] ss:$0 sm:$0xff] }
  0x27   : > { %466 = vmatpush.bf16.msra.mxu0 %v3691_v16  ;;  %v4209_v16 = vld [vmem:[%s4919_s27 + $0x48] sm:$0xff] }
  0x28   : > { %975 = vmatpush.bf16.msra.mxu1 %v3723_v18  ;;  %1484 = vmatpush.bf16.msra.mxu2 %v3755_v19 }
  0x29   : > { %1993 = vmatpush.bf16.msra.mxu3 %v3787_v23 }
  0x2b   : > { %467 = vmatpush.bf16.msra.mxu0 %v3687_v28 }
  0x2c   : > { %976 = vmatpush.bf16.msra.mxu1 %v3719_v29  ;;  %1485 = vmatpush.bf16.msra.mxu2 %v3751_v30 }
  0x2d   : > { %1994 = vmatpush.bf16.msra.mxu3 %v3783_v31 }
  0x2e   : > { %468 = vmatmul.bf16.vlgmr.msra.gmra.mxu0 %v4200_v32 }
  0x2f   : > { %977 = vmatmul.bf16.vlgmr.msra.gmra.mxu1 %v4200_v32  ;;  %1486 = vmatmul.bf16.vlgmr.msra.gmra.mxu2 %v4200_v32 }
  0x30   : > { %1995 = vmatmul.bf16.vlgmr.msra.gmra.mxu3 %v4200_v32 }
  0x3e   : > { %473 = vmatmul.bf16.gmra.mxu0 %v4201_v33 }
  0x3f   : > { %982 = vmatmul.bf16.gmra.mxu1 %v4201_v33  ;;  %1491 = vmatmul.bf16.gmra.mxu2 %v4201_v33 }
  0x40   : > { %2000 = vmatmul.bf16.gmra.mxu3 %v4201_v33 }
  0x4e   : > { %478 = vmatmul.bf16.gmra.mxu0 %v4202_v34 }
  0x4f   : > { %987 = vmatmul.bf16.gmra.mxu1 %v4202_v34  ;;  %1496 = vmatmul.bf16.gmra.mxu2 %v4202_v34 }
  0x50   : > { %2005 = vmatmul.bf16.gmra.mxu3 %v4202_v34 }
  0x5e   : > { %483 = vmatmul.bf16.gmra.mxu0 %v4203_v35 }
  0x5f   : > { %992 = vmatmul.bf16.gmra.mxu1 %v4203_v35  ;;  %1501 = vmatmul.bf16.gmra.mxu2 %v4203_v35 }
  0x60   : > { %2010 = vmatmul.bf16.gmra.mxu3 %v4203_v35 }
  0x6e   : > { %488 = vmatmul.bf16.gmra.mxu0 %v4204_v36 }
  0x6f   : > { %997 = vmatmul.bf16.gmra.mxu1 %v4204_v36  ;;  %1506 = vmatmul.bf16.gmra.mxu2 %v4204_v36 }
  0x70   : > { %2015 = vmatmul.bf16.gmra.mxu3 %v4204_v36 }
  0x7e   : > { %493 = vmatmul.bf16.gmra.mxu0 %v4205_v37 }
  0x7f   : > { %1002 = vmatmul.bf16.gmra.mxu1 %v4205_v37  ;;  %1511 = vmatmul.bf16.gmra.mxu2 %v4205_v37 }
  0x80   : > { %2020 = vmatmul.bf16.gmra.mxu3 %v4205_v37 }
  0x8e   : > { %498 = vmatmul.bf16.gmra.mxu0 %v4206_v38 }
  0x8f   : > { %1007 = vmatmul.bf16.gmra.mxu1 %v4206_v38  ;;  %1516 = vmatmul.bf16.gmra.mxu2 %v4206_v38 }
  0x90   : > { %2025 = vmatmul.bf16.gmra.mxu3 %v4206_v38 }
  0x9e   : > { %503 = vmatmul.bf16.gmra.mxu0 %v4207_v39 }
  0x9f   : > { %1012 = vmatmul.bf16.gmra.mxu1 %v4207_v39  ;;  %1521 = vmatmul.bf16.gmra.mxu2 %v4207_v39 }
  0xa0   : > { %2030 = vmatmul.bf16.gmra.mxu3 %v4207_v39 }
  0xab   : > { %v469_v43 = vpop.f32.mrf.mxu0 }
  0xac   : > { %v470_v44 = vadd.f32 %v4932_v40, %v469_v43  ;;  %v978_v45 = vpop.f32.mrf.mxu1 }
  0xad   : > { %v979_v46 = vadd.f32 %v4937_v41, %v978_v45 }
  0xae   : > { %v581_v47 = vmul.f32 %v470_v44, %v470_v44  ;;  %508 = vmatmul.bf16.gmra.mxu0 %v4208_v42  ;;  %v549_v11 = vmul.f32 0.5, %v470_v44 }
  0xaf   : > { %v1090_v48 = vmul.f32 %v979_v46, %v979_v46  ;;  %1017 = vmatmul.bf16.gmra.mxu1 %v4208_v42  ;;  %1526 = vmatmul.bf16.gmra.mxu2 %v4208_v42  ;;  %v1058_v12 = vmul.f32 0.5, %v979_v46 }
  0xb0   : > { %v613_v50 = vmul.f32 %v581_v47, %v470_v44  ;;  %2035 = vmatmul.bf16.gmra.mxu3 %v4208_v42 }
  0xb1   : > { %v1122_v52 = vmul.f32 %v1090_v48, %v979_v46 }
  0xb2   : > { %v645_v53 = vmul.f32 0.044715, %v613_v50  ;;  %v1487_v54 = vpop.f32.mrf.mxu2 }
  0xb3   : > { %v1154_v55 = vmul.f32 0.044715, %v1122_v52  ;;  %v1488_v56 = vadd.f32 %v4945_v49, %v1487_v54  ;;  %v1996_v57 = vpop.f32.mrf.mxu3  ;;  %v471_v58 = vpop.f32.mrf.mxu0 }
  0xb4   : > { %v677_v59 = vadd.f32 %v645_v53, %v470_v44  ;;  %v1997_v60 = vadd.f32 %v4950_v51, %v1996_v57  ;;  %v472_v61 = vadd.f32 %v4932_v40, %v471_v58  ;;  %v980_v62 = vpop.f32.mrf.mxu1 }
  0xb5   : > { %v1186_v63 = vadd.f32 %v1154_v55, %v979_v46  ;;  %v1599_v0 = vmul.f32 %v1488_v56, %v1488_v56  ;;  %v981_v1 = vadd.f32 %v4937_v41, %v980_v62  ;;  %v4957_v17 = vmul.f32 0.5, %v1488_v56 }
  0xb6   : > { %v709_v2 = vmul.f32 0.7978846, %v677_v59  ;;  %v2108_v3 = vmul.f32 %v1997_v60, %v1997_v60  ;;  %v582_v6 = vmul.f32 %v472_v61, %v472_v61  ;;  %v4960_v23 = vmul.f32 0.5, %v1997_v60 }
  0xb7   : > { %v1218_v4 = vmul.f32 0.7978846, %v1186_v63  ;;  %v1631_v5 = vmul.f32 %v1599_v0, %v1488_v56  ;;  %v1091_v8 = vmul.f32 %v981_v1, %v981_v1  ;;  %v4963_v28 = vmul.f32 0.5, %v472_v61 }
  0xb8   : > { %4376 = vtanh.f32 %v709_v2  ;;  %v2140_v7 = vmul.f32 %v2108_v3, %v1997_v60  ;;  %v614_v10 = vmul.f32 %v582_v6, %v472_v61  ;;  %v1059_v47 = vmul.f32 0.5, %v981_v1 }
  0xb9   : > { %4378 = vtanh.f32 %v1218_v4  ;;  %v1663_v9 = vmul.f32 0.044715, %v1631_v5  ;;  %v1123_v14 = vmul.f32 %v1091_v8, %v981_v1 }
  0xba   : > { %v2172_v13 = vmul.f32 0.044715, %v2140_v7  ;;  %v1489_v15 = vpop.f32.mrf.mxu2  ;;  %v646_v19 = vmul.f32 0.044715, %v614_v10 }
  0xbb   : > { %v1695_v18 = vadd.f32 %v1663_v9, %v1488_v56  ;;  %v1490_v20 = vadd.f32 %v4945_v49, %v1489_v15  ;;  %v1998_v21 = vpop.f32.mrf.mxu3  ;;  %v474_v22 = vpop.f32.mrf.mxu0  ;;  %v1155_v25 = vmul.f32 0.044715, %v1123_v14 }
  0xbc   : > { %v2204_v24 = vadd.f32 %v2172_v13, %v1997_v60  ;;  %v1999_v26 = vadd.f32 %v4950_v51, %v1998_v21  ;;  %v678_v29 = vadd.f32 %v646_v19, %v472_v61  ;;  %v475_v35 = vadd.f32 %v4932_v40, %v474_v22  ;;  %v983_v45 = vpop.f32.mrf.mxu1 }
  0xbd   : > { %v1727_v27 = vmul.f32 0.7978846, %v1695_v18  ;;  %v1600_v30 = vmul.f32 %v1490_v20, %v1490_v20  ;;  %v1187_v33 = vadd.f32 %v1155_v25, %v981_v1  ;;  %v984_v57 = vadd.f32 %v4937_v41, %v983_v45 }
  0xbe   : > { %v4377_v31 = vpop.eup %4376  ;;  %v2236_v32 = vmul.f32 0.7978846, %v2204_v24  ;;  %v2109_v34 = vmul.f32 %v1999_v26, %v1999_v26  ;;  %513 = vmatmul.bf16.gmra.mxu0 %v4209_v16  ;;  %v710_v38 = vmul.f32 0.7978846, %v678_v29  ;;  %v583_v53 = vmul.f32 %v475_v35, %v475_v35 }
  0xbf   : > { %v4379_v36 = vpop.eup %4378  ;;  %v773_v37 = vadd.f32 1.0, %v4377_v31  ;;  %4380 = vtanh.f32 %v1727_v27  ;;  %v1632_v39 = vmul.f32 %v1600_v30, %v1490_v20  ;;  %1022 = vmatmul.bf16.gmra.mxu1 %v4209_v16  ;;  %1531 = vmatmul.bf16.gmra.mxu2 %v4209_v16  ;;  %v1219_v43 = vmul.f32 0.7978846, %v1187_v33  ;;  %v4210_v31 = vld [vmem:[%s4919_s27 + $0x50] sm:$0xff] }
  0xc0   : > { %v1282_v42 = vadd.f32 1.0, %v4379_v36  ;;  %4382 = vtanh.f32 %v2236_v32  ;;  %v2141_v44 = vmul.f32 %v2109_v34, %v1999_v26  ;;  %2040 = vmatmul.bf16.gmra.mxu3 %v4209_v16  ;;  %v4970_v61 = vmul.f32 0.5, %v1490_v20 }
  0xc1   : > { %v805_v46 = vmul.f32 %v773_v37, %v549_v11  ;;  %4384 = vtanh.f32 %v710_v38  ;;  %v1664_v48 = vmul.f32 0.044715, %v1632_v39  ;;  %v615_v63 = vmul.f32 %v583_v53, %v475_v35 }
  0xc2   : > { %v1314_v50 = vmul.f32 %v1282_v42, %v1058_v12  ;;  %4386 = vtanh.f32 %v1219_v43  ;;  %v2173_v52 = vmul.f32 0.044715, %v2141_v44  ;;  %v1492_v54 = vpop.f32.mrf.mxu2  ;;  %v4972_v2 = vmul.f32 0.5, %v1999_v26 }
  0xc3   : > { %v837_v55 = vpack.c.bf16 %v805_v46, %v805_v46  ;;  %v1696_v56 = vadd.f32 %v1664_v48, %v1490_v20  ;;  %v4968_v58 = vadd.f32 %v4945_v49, %v1492_v54  ;;  %v2001_v59 = vpop.f32.mrf.mxu3  ;;  %v4974_v3 = vmul.f32 0.5, %v475_v35  ;;  %v476_v10 = vpop.f32.mrf.mxu0 }
  0xc4   : > { %v1346_v60 = vpack.c.bf16 %v1314_v50, %v1314_v50  ;;  %v2205_v62 = vadd.f32 %v2173_v52, %v1999_v26  ;;  %v1092_v4 = vmul.f32 %v984_v57, %v984_v57  ;;  %v4979_v9 = vadd.f32 %v4950_v51, %v2001_v59  ;;  %v985_v30 = vpop.f32.mrf.mxu1 }
  0xc5   : > { %v4381_v0 = vpop.eup %4380  ;;  %869 = vst [vmem:[#allocation2] sm:$0xf] %v837_v55  ;;  %v1728_v1 = vmul.f32 0.7978846, %v1696_v56  ;;  %v1601_v8 = vmul.f32 %v4968_v58, %v4968_v58  ;;  %v647_v13 = vmul.f32 0.044715, %v615_v63  ;;  %v477_v37 = vadd.f32 %v4932_v40, %v476_v10 }
  0xc6   : > { %v4383_v5 = vpop.eup %4382  ;;  %1378 = vst [vmem:[#allocation2 + $0x4] sm:$0xf] %v1346_v60  ;;  %v1791_v6 = vadd.f32 1.0, %v4381_v0  ;;  %v2237_v7 = vmul.f32 0.7978846, %v2205_v62  ;;  %v1124_v14 = vmul.f32 %v1092_v4, %v984_v57  ;;  %v2110_v29 = vmul.f32 %v4979_v9, %v4979_v9 }
  0xc7   : > { %v4385_v11 = vpop.eup %4384  ;;  %v2300_v12 = vadd.f32 1.0, %v4383_v5  ;;  %4388 = vtanh.f32 %v1728_v1  ;;  %v1633_v19 = vmul.f32 %v1601_v8, %v4968_v58  ;;  %v679_v22 = vadd.f32 %v647_v13, %v475_v35 }
  0xc8   : > { %v4387_v15 = vpop.eup %4386  ;;  %v1823_v16 = vmul.f32 %v1791_v6, %v4957_v17  ;;  %v774_v18 = vadd.f32 1.0, %v4385_v11  ;;  %4390 = vtanh.f32 %v2237_v7  ;;  %v1156_v24 = vmul.f32 0.044715, %v1124_v14 }
  0xc9   : > { %v2332_v20 = vmul.f32 %v2300_v12, %v4960_v23  ;;  %v1283_v21 = vadd.f32 1.0, %v4387_v15  ;;  %v1665_v27 = vmul.f32 0.044715, %v1633_v19  ;;  %v711_v33 = vmul.f32 0.7978846, %v679_v22 }
  0xca   : > { %v1855_v25 = vpack.c.bf16 %v1823_v16, %v1823_v16  ;;  %v806_v26 = vmul.f32 %v774_v18, %v4963_v28  ;;  %v1188_v34 = vadd.f32 %v1156_v24, %v984_v57  ;;  %v2142_v35 = vmul.f32 %v2110_v29, %v4979_v9  ;;  %v1494_v43 = vpop.f32.mrf.mxu2 }
  0xcb   : > { %v2364_v32 = vpack.c.bf16 %v2332_v20, %v2332_v20  ;;  %v1315_v17 = vmul.f32 %v1283_v21, %v1059_v47  ;;  %v1697_v23 = vadd.f32 %v1665_v27, %v4968_v58  ;;  %4392 = vtanh.f32 %v711_v33  ;;  %v2003_v50 = vpop.f32.mrf.mxu3  ;;  %v479_v60 = vpop.f32.mrf.mxu0 }
  0xcc   : > { %1887 = vst [vmem:[#allocation2 + $0x8] sm:$0xf] %v1855_v25  ;;  %v838_v36 = vpack.c.bf16 %v806_v26, %v806_v26  ;;  %v1220_v39 = vmul.f32 0.7978846, %v1188_v34  ;;  %v986_v42 = vadd.f32 %v4937_v41, %v985_v30  ;;  %v1060_v46 = vmul.f32 0.5, %v984_v57  ;;  %v988_v18 = vpop.f32.mrf.mxu1 }
  0xcd   : > { %v4389_v38 = vpop.eup %4388  ;;  %2396 = vst [vmem:[#allocation2 + $0xc] sm:$0xf] %v2364_v32  ;;  %v1347_v28 = vpack.c.bf16 %v1315_v17, %v1315_v17  ;;  %v1729_v47 = vmul.f32 0.7978846, %v1697_v23  ;;  %v584_v48 = vmul.f32 %v477_v37, %v477_v37  ;;  %v1569_v53 = vmul.f32 0.5, %v4968_v58 }
  0xce   : > { %v4391_v44 = vpop.eup %4390  ;;  %870 = vst [vmem:[#allocation2 + $0x10] sm:$0xf] %v838_v36  ;;  %v1792_v45 = vadd.f32 1.0, %v4389_v38  ;;  %518 = vmatmul.bf16.gmra.mxu0 %v4210_v31  ;;  %4394 = vtanh.f32 %v1220_v39  ;;  %v2174_v54 = vmul.f32 0.044715, %v2142_v35  ;;  %v1093_v59 = vmul.f32 %v986_v42, %v986_v42  ;;  %v4211_v38 = vld [vmem:[%s4919_s27 + $0x58] sm:$0xff] }
  0xcf   : > { %1379 = vst [vmem:[#allocation2 + $0x14] sm:$0xf] %v1347_v28  ;;  %v2301_v52 = vadd.f32 1.0, %v4391_v44  ;;  %1027 = vmatmul.bf16.gmra.mxu1 %v4210_v31  ;;  %1536 = vmatmul.bf16.gmra.mxu2 %v4210_v31  ;;  %4396 = vtanh.f32 %v1729_v47  ;;  %v616_v56 = vmul.f32 %v584_v48, %v477_v37  ;;  %v1495_v63 = vadd.f32 %v4945_v49, %v1494_v43 }
  0xd0   : > { %v1824_v55 = vmul.f32 %v1792_v45, %v4970_v61  ;;  %2045 = vmatmul.bf16.gmra.mxu3 %v4210_v31  ;;  %v2206_v62 = vadd.f32 %v2174_v54, %v4979_v9  ;;  %v2004_v0 = vadd.f32 %v4950_v51, %v2003_v50  ;;  %v2078_v58 = vmul.f32 0.5, %v4979_v9 }
  0xd1   : > { %v2333_v57 = vmul.f32 %v2301_v52, %v4972_v2  ;;  %v648_v4 = vmul.f32 0.044715, %v616_v56  ;;  %v1125_v5 = vmul.f32 %v1093_v59, %v986_v42  ;;  %v4393_v6 = vpop.eup %4392  ;;  %v1602_v8 = vmul.f32 %v1495_v63, %v1495_v63 }
  0xd2   : > { %v1856_v1 = vpack.c.bf16 %v1824_v55, %v1824_v55  ;;  %v2238_v7 = vmul.f32 0.7978846, %v2206_v62  ;;  %v5000_v10 = vadd.f32 %v4932_v40, %v479_v60  ;;  %v775_v2 = vadd.f32 1.0, %v4393_v6  ;;  %v1497_v30 = vpop.f32.mrf.mxu2 }
  0xd3   : > { %v2365_v61 = vpack.c.bf16 %v2333_v57, %v2333_v57  ;;  %v5002_v11 = vmul.f32 0.5, %v477_v37  ;;  %v680_v12 = vadd.f32 %v648_v4, %v477_v37  ;;  %v1157_v13 = vmul.f32 0.044715, %v1125_v5  ;;  %v2006_v45 = vpop.f32.mrf.mxu3 }
  0xd4   : > { %1888 = vst [vmem:[#allocation2 + $0x18] sm:$0xf] %v1856_v1  ;;  %v4395_v14 = vpop.eup %4394  ;;  %4398 = vtanh.f32 %v2238_v7  ;;  %v5004_v15 = vmul.f32 0.5, %v986_v42  ;;  %v1634_v9 = vmul.f32 %v1602_v8, %v1495_v63  ;;  %v2111_v16 = vmul.f32 %v2004_v0, %v2004_v0  ;;  %v990_v4 = vpop.f32.mrf.mxu1 }
  0xd5   : > { %2397 = vst [vmem:[#allocation2 + $0x1c] sm:$0xf] %v2365_v61  ;;  %v4397_v19 = vpop.eup %4396  ;;  %v807_v20 = vmul.f32 %v775_v2, %v4974_v3  ;;  %v1284_v21 = vadd.f32 1.0, %v4395_v14  ;;  %v712_v22 = vmul.f32 0.7978846, %v680_v12  ;;  %v1189_v24 = vadd.f32 %v1157_v13, %v986_v42 }
  0xd6   : > { %v1793_v25 = vadd.f32 1.0, %v4397_v19  ;;  %v1666_v26 = vmul.f32 0.044715, %v1634_v9  ;;  %v2143_v27 = vmul.f32 %v2111_v16, %v2004_v0  ;;  %v585_v29 = vmul.f32 %v5000_v10, %v5000_v10 }
  0xd7   : > { %v839_v31 = vpack.c.bf16 %v807_v20, %v807_v20  ;;  %v1316_v32 = vmul.f32 %v1284_v21, %v1060_v46  ;;  %4400 = vtanh.f32 %v712_v22  ;;  %v1221_v17 = vmul.f32 0.7978846, %v1189_v24  ;;  %v481_v46 = vpop.f32.mrf.mxu0 }
  0xd8   : > { %v1825_v33 = vmul.f32 %v1793_v25, %v1569_v53  ;;  %v1698_v34 = vadd.f32 %v1666_v26, %v1495_v63  ;;  %v2175_v36 = vmul.f32 0.044715, %v2143_v27  ;;  %v617_v3 = vmul.f32 %v585_v29, %v5000_v10 }
  0xd9   : > { %871 = vst [vmem:[#allocation2 + $0x20] sm:$0xf] %v839_v31  ;;  %v1348_v23 = vpack.c.bf16 %v1316_v32, %v1316_v32  ;;  %4402 = vtanh.f32 %v1221_v17  ;;  %v989_v35 = vadd.f32 %v4937_v41, %v988_v18  ;;  %v1498_v37 = vadd.f32 %v4945_v49, %v1497_v30 }
  0xda   : > { %v4399_v28 = vpop.eup %4398  ;;  %v1857_v39 = vpack.c.bf16 %v1825_v33, %v1825_v33  ;;  %v1730_v42 = vmul.f32 0.7978846, %v1698_v34  ;;  %v2207_v43 = vadd.f32 %v2175_v36, %v2004_v0  ;;  %v649_v44 = vmul.f32 0.044715, %v617_v3  ;;  %v1499_v22 = vpop.f32.mrf.mxu2 }
  0xdb   : > { %1380 = vst [vmem:[#allocation2 + $0x24] sm:$0xf] %v1348_v23  ;;  %v2302_v47 = vadd.f32 1.0, %v4399_v28  ;;  %v1570_v48 = vmul.f32 0.5, %v1495_v63  ;;  %v5013_v50 = vmul.f32 0.5, %v2004_v0  ;;  %v1094_v52 = vmul.f32 %v989_v35, %v989_v35 }
  0xdc   : > { %1889 = vst [vmem:[#allocation2 + $0x28] sm:$0xf] %v1857_v39  ;;  %4404 = vtanh.f32 %v1730_v42  ;;  %v2239_v53 = vmul.f32 0.7978846, %v2207_v43  ;;  %v681_v54 = vadd.f32 %v649_v44, %v5000_v10  ;;  %v1603_v55 = vmul.f32 %v1498_v37, %v1498_v37 }
  0xdd   : > { %v4401_v56 = vpop.eup %4400  ;;  %v2334_v59 = vmul.f32 %v2302_v47, %v2078_v58  ;;  %v1126_v60 = vmul.f32 %v1094_v52, %v989_v35  ;;  %v2007_v57 = vadd.f32 %v4950_v51, %v2006_v45  ;;  %v5018_v62 = vadd.f32 %v4932_v40, %v481_v46  ;;  %v993_v47 = vpop.f32.mrf.mxu1 }
  0xde   : > { %523 = vmatmul.bf16.gmra.mxu0 %v4211_v38  ;;  %v776_v1 = vadd.f32 1.0, %v4401_v56  ;;  %4406 = vtanh.f32 %v2239_v53  ;;  %v713_v63 = vmul.f32 0.7978846, %v681_v54  ;;  %v1635_v0 = vmul.f32 %v1603_v55, %v1498_v37  ;;  %v4212_v54 = vld [vmem:[%s4919_s27 + $0x60] sm:$0xff] }
  0xdf   : > { %1032 = vmatmul.bf16.gmra.mxu1 %v4211_v38  ;;  %1541 = vmatmul.bf16.gmra.mxu2 %v4211_v38  ;;  %v4403_v5 = vpop.eup %4402  ;;  %v2366_v6 = vpack.c.bf16 %v2334_v59, %v2334_v59  ;;  %v553_v61 = vmul.f32 0.5, %v5000_v10  ;;  %v1158_v7 = vmul.f32 0.044715, %v1126_v60  ;;  %v2112_v58 = vmul.f32 %v2007_v57, %v2007_v57  ;;  %v484_v42 = vpop.f32.mrf.mxu0 }
  0xe0   : > { %2050 = vmatmul.bf16.gmra.mxu3 %v4211_v38  ;;  %v808_v8 = vmul.f32 %v776_v1, %v5002_v11  ;;  %v1285_v2 = vadd.f32 1.0, %v4403_v5  ;;  %4408 = vtanh.f32 %v713_v63  ;;  %v1667_v12 = vmul.f32 0.044715, %v1635_v0 }
  0xe1   : > { %2398 = vst [vmem:[#allocation2 + $0x2c] sm:$0xf] %v2366_v6  ;;  %v5022_v13 = vmul.f32 0.5, %v989_v35  ;;  %v1190_v14 = vadd.f32 %v1158_v7, %v989_v35  ;;  %v2144_v9 = vmul.f32 %v2112_v58, %v2007_v57  ;;  %v586_v16 = vmul.f32 %v5018_v62, %v5018_v62  ;;  %v2008_v35 = vpop.f32.mrf.mxu3 }
  0xe2   : > { %v4405_v18 = vpop.eup %4404  ;;  %v840_v19 = vpack.c.bf16 %v808_v8, %v808_v8  ;;  %v1317_v10 = vmul.f32 %v1285_v2, %v5004_v15  ;;  %v1699_v20 = vadd.f32 %v1667_v12, %v1498_v37  ;;  %v991_v21 = vadd.f32 %v4937_v41, %v990_v4  ;;  %v1502_v7 = vpop.f32.mrf.mxu2 }
  0xe3   : > { %v1794_v11 = vadd.f32 1.0, %v4405_v18  ;;  %v1222_v24 = vmul.f32 0.7978846, %v1190_v14  ;;  %v2176_v25 = vmul.f32 0.044715, %v2144_v9  ;;  %v618_v26 = vmul.f32 %v586_v16, %v5018_v62 }
  0xe4   : > { %v4407_v27 = vpop.eup %4406  ;;  %872 = vst [vmem:[#allocation2 + $0x30] sm:$0xf] %v840_v19  ;;  %v1349_v29 = vpack.c.bf16 %v1317_v10, %v1317_v10  ;;  %v1571_v30 = vmul.f32 0.5, %v1498_v37  ;;  %v1731_v31 = vmul.f32 0.7978846, %v1699_v20  ;;  %v1095_v32 = vmul.f32 %v991_v21, %v991_v21 }
  0xe5   : > { %v1826_v17 = vmul.f32 %v1794_v11, %v1570_v48  ;;  %v2303_v33 = vadd.f32 1.0, %v4407_v27  ;;  %4410 = vtanh.f32 %v1222_v24  ;;  %v2208_v34 = vadd.f32 %v2176_v25, %v2007_v57 }
  0xe6   : > { %v4409_v15 = vpop.eup %4408  ;;  %1381 = vst [vmem:[#allocation2 + $0x34] sm:$0xf] %v1349_v29  ;;  %4412 = vtanh.f32 %v1731_v31  ;;  %v650_v36 = vmul.f32 0.044715, %v618_v26  ;;  %v1127_v3 = vmul.f32 %v1095_v32, %v991_v21  ;;  %v1500_v23 = vadd.f32 %v4945_v49, %v1499_v22 }
  0xe7   : > { %v1858_v38 = vpack.c.bf16 %v1826_v17, %v1826_v17  ;;  %v2335_v28 = vmul.f32 %v2303_v33, %v5013_v50  ;;  %v777_v39 = vadd.f32 1.0, %v4409_v15  ;;  %v2240_v37 = vmul.f32 0.7978846, %v2208_v34  ;;  %v486_v31 = vpop.f32.mrf.mxu0 }
  0xe8   : > { %v2080_v43 = vmul.f32 0.5, %v2007_v57  ;;  %v682_v44 = vadd.f32 %v650_v36, %v5018_v62  ;;  %v1159_v45 = vmul.f32 0.044715, %v1127_v3  ;;  %v1604_v46 = vmul.f32 %v1500_v23, %v1500_v23 }
  0xe9   : > { %1890 = vst [vmem:[#allocation2 + $0x38] sm:$0xf] %v1858_v38  ;;  %v2367_v48 = vpack.c.bf16 %v2335_v28, %v2335_v28  ;;  %v809_v52 = vmul.f32 %v777_v39, %v553_v61  ;;  %4414 = vtanh.f32 %v2240_v37  ;;  %v2009_v53 = vadd.f32 %v4950_v51, %v2008_v35 }
  0xea   : > { %v714_v55 = vmul.f32 0.7978846, %v682_v44  ;;  %v1191_v56 = vadd.f32 %v1159_v45, %v991_v21  ;;  %v1636_v59 = vmul.f32 %v1604_v46, %v1500_v23  ;;  %v485_v50 = vadd.f32 %v4932_v40, %v484_v42 }
  0xeb   : > { %v4411_v60 = vpop.eup %4410  ;;  %2399 = vst [vmem:[#allocation2 + $0x3c] sm:$0xf] %v2367_v48  ;;  %v841_v57 = vpack.c.bf16 %v809_v52, %v809_v52  ;;  %v554_v1 = vmul.f32 0.5, %v5018_v62  ;;  %v2113_v63 = vmul.f32 %v2009_v53, %v2009_v53  ;;  %v5037_v0 = vadd.f32 %v4937_v41, %v993_v47  ;;  %v1504_v52 = vpop.f32.mrf.mxu2 }
  0xec   : > { %v4413_v4 = vpop.eup %4412  ;;  %v1286_v5 = vadd.f32 1.0, %v4411_v60  ;;  %4416 = vtanh.f32 %v714_v55  ;;  %v1223_v6 = vmul.f32 0.7978846, %v1191_v56  ;;  %v1668_v61 = vmul.f32 0.044715, %v1636_v59 }
  0xed   : > { %873 = vst [vmem:[#allocation2 + $0x40] sm:$0xf] %v841_v57  ;;  %v1795_v58 = vadd.f32 1.0, %v4413_v4  ;;  %v1063_v8 = vmul.f32 0.5, %v991_v21  ;;  %v2145_v2 = vmul.f32 %v2113_v63, %v2009_v53  ;;  %v587_v12 = vmul.f32 %v485_v50, %v485_v50 }
  0xee   : > { %528 = vmatmul.bf16.gmra.mxu0 %v4212_v54  ;;  %v1318_v14 = vmul.f32 %v1286_v5, %v5022_v13  ;;  %4418 = vtanh.f32 %v1223_v6  ;;  %v5040_v62 = vmul.f32 0.5, %v1500_v23  ;;  %v1700_v9 = vadd.f32 %v1668_v61, %v1500_v23  ;;  %v2011_v13 = vpop.f32.mrf.mxu3  ;;  %v4213_v6 = vld [vmem:[%s4919_s27 + $0x68] sm:$0xff] }
  0xef   : > { %1037 = vmatmul.bf16.gmra.mxu1 %v4212_v54  ;;  %1546 = vmatmul.bf16.gmra.mxu2 %v4212_v54  ;;  %v4415_v16 = vpop.eup %4414  ;;  %v1827_v18 = vmul.f32 %v1795_v58, %v1571_v30  ;;  %v2177_v19 = vmul.f32 0.044715, %v2145_v2  ;;  %v619_v10 = vmul.f32 %v587_v12, %v485_v50  ;;  %v1096_v20 = vmul.f32 %v5037_v0, %v5037_v0 }
  0xf0   : > { %2055 = vmatmul.bf16.gmra.mxu3 %v4212_v54  ;;  %v1350_v21 = vpack.c.bf16 %v1318_v14, %v1318_v14  ;;  %v2304_v22 = vadd.f32 1.0, %v4415_v16  ;;  %v1732_v11 = vmul.f32 0.7978846, %v1700_v9  ;;  %v1503_v24 = vadd.f32 %v4945_v49, %v1502_v7 }
  0xf1   : > { %v1859_v25 = vpack.c.bf16 %v1827_v18, %v1827_v18  ;;  %v2209_v26 = vadd.f32 %v2177_v19, %v2009_v53  ;;  %v651_v27 = vmul.f32 0.044715, %v619_v10  ;;  %v1128_v29 = vmul.f32 %v1096_v20, %v5037_v0 }
  0xf2   : > { %v4417_v32 = vpop.eup %4416  ;;  %1382 = vst [vmem:[#allocation2 + $0x44] sm:$0xf] %v1350_v21  ;;  %v2336_v30 = vmul.f32 %v2304_v22, %v2080_v43  ;;  %4420 = vtanh.f32 %v1732_v11  ;;  %v2081_v17 = vmul.f32 0.5, %v2009_v53  ;;  %v1605_v33 = vmul.f32 %v1503_v24, %v1503_v24  ;;  %v995_v43 = vpop.f32.mrf.mxu1 }
  0xf3   : > { %1891 = vst [vmem:[#allocation2 + $0x48] sm:$0xf] %v1859_v25  ;;  %v778_v34 = vadd.f32 1.0, %v4417_v32  ;;  %v2241_v15 = vmul.f32 0.7978846, %v2209_v26  ;;  %v683_v36 = vadd.f32 %v651_v27, %v485_v50  ;;  %v2012_v3 = vadd.f32 %v4950_v51, %v2011_v13  ;;  %v489_v13 = vpop.f32.mrf.mxu0 }
  0xf4   : > { %v4419_v23 = vpop.eup %4418  ;;  %v2368_v35 = vpack.c.bf16 %v2336_v30, %v2336_v30  ;;  %v1160_v38 = vmul.f32 0.044715, %v1128_v29  ;;  %v1637_v28 = vmul.f32 %v1605_v33, %v1503_v24  ;;  %v487_v39 = vadd.f32 %v4932_v40, %v486_v31 }
  0xf5   : > { %v810_v37 = vmul.f32 %v778_v34, %v554_v1  ;;  %v1287_v42 = vadd.f32 1.0, %v4419_v23  ;;  %4422 = vtanh.f32 %v2241_v15  ;;  %v715_v44 = vmul.f32 0.7978846, %v683_v36 }
  0xf6   : > { %2400 = vst [vmem:[#allocation2 + $0x4c] sm:$0xf] %v2368_v35  ;;  %v555_v45 = vmul.f32 0.5, %v485_v50  ;;  %v1192_v46 = vadd.f32 %v1160_v38, %v5037_v0  ;;  %v1669_v47 = vmul.f32 0.044715, %v1637_v28  ;;  %v2114_v48 = vmul.f32 %v2012_v3, %v2012_v3 }
  0xf7   : > { %v842_v53 = vpack.c.bf16 %v810_v37, %v810_v37  ;;  %v1319_v54 = vmul.f32 %v1287_v42, %v1063_v8  ;;  %4424 = vtanh.f32 %v715_v44  ;;  %v1064_v55 = vmul.f32 0.5, %v5037_v0  ;;  %v2013_v8 = vpop.f32.mrf.mxu3 }
  0xf8   : > { %v4421_v56 = vpop.eup %4420  ;;  %v1224_v59 = vmul.f32 0.7978846, %v1192_v46  ;;  %v1701_v60 = vadd.f32 %v1669_v47, %v1503_v24  ;;  %v2146_v57 = vmul.f32 %v2114_v48, %v2012_v3  ;;  %v588_v1 = vmul.f32 %v487_v39, %v487_v39  ;;  %v1507_v47 = vpop.f32.mrf.mxu2 }
  0xf9   : > { %874 = vst [vmem:[#allocation2 + $0x50] sm:$0xf] %v842_v53  ;;  %v1351_v63 = vpack.c.bf16 %v1319_v54, %v1319_v54  ;;  %v1796_v4 = vadd.f32 1.0, %v4421_v56  ;;  %v996_v50 = vadd.f32 %v4937_v41, %v995_v43  ;;  %v1505_v5 = vadd.f32 %v4945_v49, %v1504_v52 }
  0xfa   : > { %4426 = vtanh.f32 %v1224_v59  ;;  %v1733_v61 = vmul.f32 0.7978846, %v1701_v60  ;;  %v2178_v7 = vmul.f32 0.044715, %v2146_v57  ;;  %v620_v58 = vmul.f32 %v588_v1, %v487_v39  ;;  %v998_v30 = vpop.f32.mrf.mxu1 }
  0xfb   : > { %v4423_v2 = vpop.eup %4422  ;;  %1383 = vst [vmem:[#allocation2 + $0x54] sm:$0xf] %v1351_v63  ;;  %v1828_v0 = vmul.f32 %v1796_v4, %v5040_v62  ;;  %v1573_v12 = vmul.f32 0.5, %v1503_v24  ;;  %v5054_v14 = vmul.f32 0.5, %v2012_v3  ;;  %v1097_v9 = vmul.f32 %v996_v50, %v996_v50 }
  0xfc   : > { %v2305_v16 = vadd.f32 1.0, %v4423_v2  ;;  %4428 = vtanh.f32 %v1733_v61  ;;  %v2210_v18 = vadd.f32 %v2178_v7, %v2012_v3  ;;  %v652_v19 = vmul.f32 0.044715, %v620_v58 }
  0xfd   : > { %v4425_v10 = vpop.eup %4424  ;;  %v1860_v20 = vpack.c.bf16 %v1828_v0, %v1828_v0  ;;  %v1129_v21 = vmul.f32 %v1097_v9, %v996_v50  ;;  %v1606_v22 = vmul.f32 %v1505_v5, %v1505_v5  ;;  %v2014_v11 = vadd.f32 %v4950_v51, %v2013_v8 }
  0xfe   : > { %533 = vmatmul.bf16.gmra.mxu0 %v4213_v6  ;;  %v2337_v25 = vmul.f32 %v2305_v16, %v2081_v17  ;;  %v779_v26 = vadd.f32 1.0, %v4425_v10  ;;  %v2242_v27 = vmul.f32 0.7978846, %v2210_v18  ;;  %v684_v62 = vadd.f32 %v652_v19, %v487_v39 }
  0xff   : > { %1042 = vmatmul.bf16.gmra.mxu1 %v4213_v6  ;;  %1551 = vmatmul.bf16.gmra.mxu2 %v4213_v6  ;;  %1892 = vst [vmem:[#allocation2 + $0x58] sm:$0xf] %v1860_v20  ;;  %v5057_v24 = vmul.f32 0.5, %v487_v39  ;;  %v1161_v29 = vmul.f32 0.044715, %v1129_v21  ;;  %v1638_v31 = vmul.f32 %v1606_v22, %v1505_v5  ;;  %v2115_v32 = vmul.f32 %v2014_v11, %v2014_v11  ;;  %v2016_v54 = vpop.f32.mrf.mxu3 }
 0x100   : > { %2060 = vmatmul.bf16.gmra.mxu3 %v4213_v6  ;;  %v4427_v33 = vpop.eup %4426  ;;  %v2369_v34 = vpack.c.bf16 %v2337_v25, %v2337_v25  ;;  %v811_v15 = vmul.f32 %v779_v26, %v555_v45  ;;  %4430 = vtanh.f32 %v2242_v27  ;;  %v716_v36 = vmul.f32 0.7978846, %v684_v62 }
 0x101   : > { %v1288_v3 = vadd.f32 1.0, %v4427_v33  ;;  %v1193_v17 = vadd.f32 %v1161_v29, %v996_v50  ;;  %v1670_v23 = vmul.f32 0.044715, %v1638_v31  ;;  %v2147_v35 = vmul.f32 %v2115_v32, %v2014_v11 }
 0x102   : > { %v4429_v38 = vpop.eup %4428  ;;  %2401 = vst [vmem:[#allocation2 + $0x5c] sm:$0xf] %v2369_v34  ;;  %v843_v28 = vpack.c.bf16 %v811_v15, %v811_v15  ;;  %4432 = vtanh.f32 %v716_v36  ;;  %v490_v39 = vadd.f32 %v4932_v40, %v489_v13  ;;  %v999_v37 = vadd.f32 %v4937_v41, %v998_v30  ;;  %v1509_v34 = vpop.f32.mrf.mxu2 }
 0x103   : > { %v1320_v42 = vmul.f32 %v1288_v3, %v1064_v55  ;;  %v1797_v44 = vadd.f32 1.0, %v4429_v38  ;;  %v1225_v43 = vmul.f32 0.7978846, %v1193_v17  ;;  %v1702_v46 = vadd.f32 %v1670_v23, %v1505_v5 }
 0x104   : > { %875 = vst [vmem:[#allocation2 + $0x60] sm:$0xf] %v843_v28  ;;  %v1065_v45 = vmul.f32 0.5, %v996_v50  ;;  %v1574_v48 = vmul.f32 0.5, %v1505_v5  ;;  %v2179_v52 = vmul.f32 0.044715, %v2147_v35  ;;  %v589_v53 = vmul.f32 %v490_v39, %v490_v39  ;;  %v491_v5 = vpop.f32.mrf.mxu0 }
 0x105   : > { %v1352_v56 = vpack.c.bf16 %v1320_v42, %v1320_v42  ;;  %v1829_v59 = vmul.f32 %v1797_v44, %v1573_v12  ;;  %4434 = vtanh.f32 %v1225_v43  ;;  %v1734_v60 = vmul.f32 0.7978846, %v1702_v46 }
 0x106   : > { %v4431_v57 = vpop.eup %4430  ;;  %v2211_v1 = vadd.f32 %v2179_v52, %v2014_v11  ;;  %v621_v63 = vmul.f32 %v589_v53, %v490_v39  ;;  %v1098_v4 = vmul.f32 %v999_v37, %v999_v37  ;;  %v1508_v55 = vadd.f32 %v4945_v49, %v1507_v47 }
 0x107   : > { %1384 = vst [vmem:[#allocation2 + $0x64] sm:$0xf] %v1352_v56  ;;  %v1861_v6 = vpack.c.bf16 %v1829_v59, %v1829_v59  ;;  %v2306_v61 = vadd.f32 1.0, %v4431_v57  ;;  %4436 = vtanh.f32 %v1734_v60  ;;  %v2017_v50 = vadd.f32 %v4950_v51, %v2016_v54  ;;  %v2018_v46 = vpop.f32.mrf.mxu3 }
 0x108   : > { %v4433_v7 = vpop.eup %4432  ;;  %v2083_v58 = vmul.f32 0.5, %v2014_v11  ;;  %v2243_v8 = vmul.f32 0.7978846, %v2211_v1  ;;  %v653_v2 = vmul.f32 0.044715, %v621_v63  ;;  %v1130_v0 = vmul.f32 %v1098_v4, %v999_v37 }
 0x109   : > { %1893 = vst [vmem:[#allocation2 + $0x68] sm:$0xf] %v1861_v6  ;;  %v2338_v12 = vmul.f32 %v2306_v61, %v5054_v14  ;;  %v780_v9 = vadd.f32 1.0, %v4433_v7  ;;  %v5064_v16 = vmul.f32 0.5, %v490_v39  ;;  %v1607_v18 = vmul.f32 %v1508_v55, %v1508_v55  ;;  %v1000_v14 = vpop.f32.mrf.mxu1  ;;  %v5078_v1 = vld [vmem:[%s6183_s2 + $0x3] ss:$0 sm:$0xff] }
 0x10a   : > { %4438 = vtanh.f32 %v2243_v8  ;;  %v685_v19 = vadd.f32 %v653_v2, %v490_v39  ;;  %v1162_v10 = vmul.f32 0.044715, %v1130_v0  ;;  %v2116_v20 = vmul.f32 %v2017_v50, %v2017_v50  ;;  %v5084_v4 = vld [vmem:[%s6183_s2] ss:$0 sm:$0xff] }
 0x10b   : > { %v4435_v21 = vpop.eup %4434  ;;  %v2370_v22 = vpack.c.bf16 %v2338_v12, %v2338_v12  ;;  %v812_v51 = vmul.f32 %v780_v9, %v5057_v24  ;;  %v1639_v13 = vmul.f32 %v1607_v18, %v1508_v55  ;;  %v492_v11 = vadd.f32 %v4932_v40, %v491_v5 }
 0x10c   : > { %v1289_v25 = vadd.f32 1.0, %v4435_v21  ;;  %v717_v26 = vmul.f32 0.7978846, %v685_v19  ;;  %v1194_v27 = vadd.f32 %v1162_v10, %v999_v37  ;;  %v2148_v62 = vmul.f32 %v2116_v20, %v2017_v50  ;;  %v494_v47 = vpop.f32.mrf.mxu0  ;;  %v1512_v19 = vpop.f32.mrf.mxu2 }
 0x10d   : > { %v4437_v29 = vpop.eup %4436  ;;  %2402 = vst [vmem:[#allocation2 + $0x6c] sm:$0xf] %v2370_v22  ;;  %v844_v31 = vpack.c.bf16 %v812_v51, %v812_v51  ;;  %v5068_v32 = vmul.f32 0.5, %v999_v37  ;;  %v1671_v30 = vmul.f32 0.044715, %v1639_v13  ;;  %v590_v33 = vmul.f32 %v492_v11, %v492_v11 }
 0x10e   : > { %v1321_v15 = vmul.f32 %v1289_v25, %v1065_v45  ;;  %v1798_v36 = vadd.f32 1.0, %v4437_v29  ;;  %4440 = vtanh.f32 %v717_v26  ;;  %v1226_v24 = vmul.f32 0.7978846, %v1194_v27  ;;  %v4214_v45 = vld [vmem:[%s4919_s27 + $0x70] sm:$0xff] }
 0x10f   : > { %876 = vst [vmem:[#allocation2 + $0x70] sm:$0xf] %v844_v31  ;;  %v1703_v40 = vadd.f32 %v1671_v30, %v1508_v55  ;;  %v2180_v3 = vmul.f32 0.044715, %v2148_v62  ;;  %v622_v17 = vmul.f32 %v590_v33, %v492_v11  ;;  %v1001_v23 = vadd.f32 %v4937_v41, %v1000_v14  ;;  %538 = vmatmul.bf16.gmra.mxu0 %v4214_v45 }
 0x110   : > { %v4439_v35 = vpop.eup %4438  ;;  %v1353_v38 = vpack.c.bf16 %v1321_v15, %v1321_v15  ;;  %v1830_v28 = vmul.f32 %v1798_v36, %v1574_v48  ;;  %4442 = vtanh.f32 %v1226_v24  ;;  %v1510_v39 = vadd.f32 %v4945_v49, %v1509_v34  ;;  %1047 = vmatmul.bf16.gmra.mxu1 %v4214_v45  ;;  %1556 = vmatmul.bf16.gmra.mxu2 %v4214_v45 }
 0x111   : > { %v2307_v37 = vadd.f32 1.0, %v4439_v35  ;;  %v1735_v42 = vmul.f32 0.7978846, %v1703_v40  ;;  %v2212_v44 = vadd.f32 %v2180_v3, %v2017_v50  ;;  %v654_v43 = vmul.f32 0.044715, %v622_v17  ;;  %2065 = vmatmul.bf16.gmra.mxu3 %v4214_v45  ;;  %v1003_v0 = vpop.f32.mrf.mxu1  ;;  %v2021_v3 = vpop.f32.mrf.mxu3 }
 0x112   : > { %1385 = vst [vmem:[#allocation2 + $0x74] sm:$0xf] %v1353_v38  ;;  %v1862_v52 = vpack.c.bf16 %v1830_v28, %v1830_v28  ;;  %v1575_v53 = vmul.f32 0.5, %v1508_v55  ;;  %v5073_v54 = vmul.f32 0.5, %v2017_v50  ;;  %v1099_v56 = vmul.f32 %v1001_v23, %v1001_v23 }
 0x113   : > { %v2339_v41 = vmul.f32 %v2307_v37, %v2083_v58  ;;  %4444 = vtanh.f32 %v1735_v42  ;;  %v2244_v59 = vmul.f32 0.7978846, %v2212_v44  ;;  %v686_v48 = vadd.f32 %v654_v43, %v492_v11 }
 0x114   : > { %v4441_v49 = vpop.eup %4440  ;;  %1894 = vst [vmem:[#allocation2 + $0x78] sm:$0xf] %v1862_v52  ;;  %v1131_v60 = vmul.f32 %v1099_v56, %v1001_v23  ;;  %v1608_v57 = vmul.f32 %v1510_v39, %v1510_v39  ;;  %v2019_v63 = vadd.f32 %v5078_v1, %v2018_v46  ;;  %v5087_v55 = vadd.f32 %v5084_v4, %v494_v47 }
 0x115   : > { %v2371_v6 = vpack.c.bf16 %v2339_v41, %v2339_v41  ;;  %v781_v61 = vadd.f32 1.0, %v4441_v49  ;;  %4446 = vtanh.f32 %v2244_v59  ;;  %v718_v50 = vmul.f32 0.7978846, %v686_v48 }
 0x116   : > { %v4443_v5 = vpop.eup %4442  ;;  %v558_v7 = vmul.f32 0.5, %v492_v11  ;;  %v1163_v58 = vmul.f32 0.044715, %v1131_v60  ;;  %v1640_v8 = vmul.f32 %v1608_v57, %v1510_v39  ;;  %v2117_v2 = vmul.f32 %v2019_v63, %v2019_v63 }
 0x117   : > { %2403 = vst [vmem:[#allocation2 + $0x7c] sm:$0xf] %v2371_v6  ;;  %v813_v12 = vmul.f32 %v781_v61, %v5064_v16  ;;  %v1290_v9 = vadd.f32 1.0, %v4443_v5  ;;  %4448 = vtanh.f32 %v718_v50  ;;  %v5090_v18 = vmul.f32 0.5, %v1001_v23  ;;  %v5100_v16 = vld [vmem:[%s6183_s2 + $0x1] ss:$0 sm:$0xff] }
 0x118   : > { %v1195_v10 = vadd.f32 %v1163_v58, %v1001_v23  ;;  %v1672_v20 = vmul.f32 0.044715, %v1640_v8  ;;  %v2149_v21 = vmul.f32 %v2117_v2, %v2019_v63  ;;  %v591_v22 = vmul.f32 %v5087_v55, %v5087_v55 }
 0x119   : > { %v4445_v51 = vpop.eup %4444  ;;  %v845_v13 = vpack.c.bf16 %v813_v12, %v813_v12  ;;  %v1322_v11 = vmul.f32 %v1290_v9, %v5068_v32  ;;  %v5095_v25 = vmul.f32 0.5, %v1510_v39  ;;  %v1004_v26 = vadd.f32 %v5100_v16, %v1003_v0  ;;  %v5107_v32 = vld [vmem:[%s6183_s2 + $0x2] ss:$0 sm:$0xff]  ;;  %v1005_v60 = vpop.f32.mrf.mxu1 }
 0x11a   : > { %v1799_v27 = vadd.f32 1.0, %v4445_v51  ;;  %v1227_v62 = vmul.f32 0.7978846, %v1195_v10  ;;  %v1704_v14 = vadd.f32 %v1672_v20, %v1510_v39  ;;  %v2181_v29 = vmul.f32 0.044715, %v2149_v21  ;;  %v496_v39 = vpop.f32.mrf.mxu0  ;;  %v4215_v20 = vld [vmem:[%s4919_s27 + $0x78] sm:$0xff] }
 0x11b   : > { %v4447_v31 = vpop.eup %4446  ;;  %877 = vst [vmem:[#allocation2 + $0x80] sm:$0xf] %v845_v13  ;;  %v1354_v30 = vpack.c.bf16 %v1322_v11, %v1322_v11  ;;  %v623_v33 = vmul.f32 %v591_v22, %v5087_v55  ;;  %v1100_v34 = vmul.f32 %v1004_v26, %v1004_v26  ;;  %v1513_v15 = vadd.f32 %v5107_v32, %v1512_v19  ;;  %v2023_v11 = vpop.f32.mrf.mxu3  ;;  %s4199_s27 = sshll.u32 %s6192_s18, 8 }
 0x11c   : > { %v1831_v36 = vmul.f32 %v1799_v27, %v1575_v53  ;;  %v2308_v24 = vadd.f32 1.0, %v4447_v31  ;;  %4450 = vtanh.f32 %v1227_v62  ;;  %v1736_v40 = vmul.f32 0.7978846, %v1704_v14  ;;  %s6046_s7 = scalar_lea.vmem %s6186_s5, %s4199_s27 }
 0x11d   : > { %v4449_v17 = vpop.eup %4448  ;;  %1386 = vst [vmem:[#allocation2 + $0x84] sm:$0xf] %v1354_v30  ;;  %v5110_v23 = vmul.f32 0.5, %v2019_v63  ;;  %v2213_v35 = vadd.f32 %v2181_v29, %v2019_v63  ;;  %v655_v38 = vmul.f32 0.044715, %v623_v33  ;;  %v1132_v28 = vmul.f32 %v1100_v34, %v1004_v26 }
 0x11e   : > { %v1863_v37 = vpack.c.bf16 %v1831_v36, %v1831_v36  ;;  %v2340_v42 = vmul.f32 %v2308_v24, %v5073_v54  ;;  %v782_v44 = vadd.f32 1.0, %v4449_v17  ;;  %4452 = vtanh.f32 %v1736_v40  ;;  %v1514_v54 = vpop.f32.mrf.mxu2 }
 0x11f   : > { %v2245_v43 = vmul.f32 0.7978846, %v2213_v35  ;;  %v687_v46 = vadd.f32 %v655_v38, %v5087_v55  ;;  %v1164_v47 = vmul.f32 0.044715, %v1132_v28  ;;  %v1609_v45 = vmul.f32 %v1513_v15, %v1513_v15  ;;  %543 = vmatmul.bf16.gmra.mxu0 %v4215_v20 }
 0x120   : > { %1895 = vst [vmem:[#allocation2 + $0x88] sm:$0xf] %v1863_v37  ;;  %v2372_v52 = vpack.c.bf16 %v2340_v42, %v2340_v42  ;;  %v814_v53 = vmul.f32 %v782_v44, %v558_v7  ;;  %v2022_v56 = vadd.f32 %v5078_v1, %v2021_v3  ;;  %v497_v41 = vadd.f32 %v5084_v4, %v496_v39 }
 0x121   : > { %4454 = vtanh.f32 %v2245_v43  ;;  %v719_v59 = vmul.f32 0.7978846, %v687_v46  ;;  %v1196_v48 = vadd.f32 %v1164_v47, %v1004_v26  ;;  %v1641_v49 = vmul.f32 %v1609_v45, %v1513_v15  ;;  %1052 = vmatmul.bf16.gmra.mxu1 %v4215_v20  ;;  %1561 = vmatmul.bf16.gmra.mxu2 %v4215_v20  ;;  %v1008_v44 = vpop.f32.mrf.mxu1 }
 0x122   : > { %v4451_v57 = vpop.eup %4450  ;;  %2404 = vst [vmem:[#allocation2 + $0x8c] sm:$0xf] %v2372_v52  ;;  %v846_v63 = vpack.c.bf16 %v814_v53, %v814_v53  ;;  %v559_v6 = vmul.f32 0.5, %v5087_v55  ;;  %v5117_v61 = vmul.f32 0.5, %v1004_v26  ;;  %v2118_v50 = vmul.f32 %v2022_v56, %v2022_v56  ;;  %2070 = vmatmul.bf16.gmra.mxu3 %v4215_v20  ;;  %v499_v35 = vpop.f32.mrf.mxu0 }
 0x123   : > { %v1291_v5 = vadd.f32 1.0, %v4451_v57  ;;  %4456 = vtanh.f32 %v719_v59  ;;  %v1228_v7 = vmul.f32 0.7978846, %v1196_v48  ;;  %v1673_v58 = vmul.f32 0.044715, %v1641_v49 }
 0x124   : > { %v4453_v8 = vpop.eup %4452  ;;  %878 = vst [vmem:[#allocation2 + $0x90] sm:$0xf] %v846_v63  ;;  %v2150_v2 = vmul.f32 %v2118_v50, %v2022_v56  ;;  %v592_v0 = vmul.f32 %v497_v41, %v497_v41  ;;  %v5120_v12 = vadd.f32 %v5100_v16, %v1005_v60  ;;  %v5123_v9 = vadd.f32 %v5107_v32, %v1514_v54 }
 0x125   : > { %v1323_v55 = vmul.f32 %v1291_v5, %v5090_v18  ;;  %v1800_v19 = vadd.f32 1.0, %v4453_v8  ;;  %4458 = vtanh.f32 %v1228_v7  ;;  %v1705_v10 = vadd.f32 %v1673_v58, %v1513_v15  ;;  %v2026_v58 = vpop.f32.mrf.mxu3 }
 0x126   : > { %v5127_v21 = vmul.f32 0.5, %v1513_v15  ;;  %v2182_v22 = vmul.f32 0.044715, %v2150_v2  ;;  %v624_v51 = vmul.f32 %v592_v0, %v497_v41  ;;  %v1101_v13 = vmul.f32 %v5120_v12, %v5120_v12  ;;  %v1517_v49 = vpop.f32.mrf.mxu2 }
 0x127   : > { %v4455_v26 = vpop.eup %4454  ;;  %v1355_v27 = vpack.c.bf16 %v1323_v55, %v1323_v55  ;;  %v1832_v62 = vmul.f32 %v1800_v19, %v5095_v25  ;;  %v1737_v14 = vmul.f32 0.7978846, %v1705_v10  ;;  %v5132_v29 = vmul.f32 0.5, %v2022_v56 }
 0x128   : > { %v2309_v18 = vadd.f32 1.0, %v4455_v26  ;;  %v2214_v31 = vadd.f32 %v2182_v22, %v2022_v56  ;;  %v656_v30 = vmul.f32 0.044715, %v624_v51  ;;  %v1133_v33 = vmul.f32 %v1101_v13, %v5120_v12 }
 0x129   : > { %v4457_v34 = vpop.eup %4456  ;;  %1387 = vst [vmem:[#allocation2 + $0x94] sm:$0xf] %v1355_v27  ;;  %v1864_v15 = vpack.c.bf16 %v1832_v62, %v1832_v62  ;;  %4460 = vtanh.f32 %v1737_v14  ;;  %v1610_v36 = vmul.f32 %v5123_v9, %v5123_v9  ;;  %v2024_v25 = vadd.f32 %v5078_v1, %v2023_v11 }
 0x12a   : > { %v2341_v24 = vmul.f32 %v2309_v18, %v5110_v23  ;;  %v783_v40 = vadd.f32 1.0, %v4457_v34  ;;  %v2246_v3 = vmul.f32 0.7978846, %v2214_v31  ;;  %v688_v17 = vadd.f32 %v656_v30, %v497_v41  ;;  %v501_v27 = vpop.f32.mrf.mxu0 }
 0x12b   : > { %v4459_v38 = vpop.eup %4458  ;;  %1896 = vst [vmem:[#allocation2 + $0x98] sm:$0xf] %v1864_v15  ;;  %v5139_v28 = vmul.f32 0.5, %v497_v41  ;;  %v1165_v39 = vmul.f32 0.044715, %v1133_v33  ;;  %v1642_v37 = vmul.f32 %v1610_v36, %v5123_v9  ;;  %v2119_v42 = vmul.f32 %v2024_v25, %v2024_v25  ;;  %v1010_v15 = vpop.f32.mrf.mxu1 }
 0x12c   : > { %v2373_v43 = vpack.c.bf16 %v2341_v24, %v2341_v24  ;;  %v815_v46 = vmul.f32 %v783_v40, %v559_v6  ;;  %v1292_v47 = vadd.f32 1.0, %v4459_v38  ;;  %4462 = vtanh.f32 %v2246_v3 }
 0x12d   : > { %v720_v45 = vmul.f32 0.7978846, %v688_v17  ;;  %v1197_v23 = vadd.f32 %v1165_v39, %v5120_v12  ;;  %v1674_v52 = vmul.f32 0.044715, %v1642_v37  ;;  %v2151_v53 = vmul.f32 %v2119_v42, %v2024_v25 }
 0x12e   : > { %2405 = vst [vmem:[#allocation2 + $0x9c] sm:$0xf] %v2373_v43  ;;  %v847_v56 = vpack.c.bf16 %v815_v46, %v815_v46  ;;  %v1324_v59 = vmul.f32 %v1292_v47, %v5117_v61  ;;  %v500_v41 = vadd.f32 %v5084_v4, %v499_v35  ;;  %v1009_v48 = vadd.f32 %v5100_v16, %v1008_v44  ;;  %v1519_v39 = vpop.f32.mrf.mxu2 }
 0x12f   : > { %v4461_v60 = vpop.eup %4460  ;;  %4464 = vtanh.f32 %v720_v45  ;;  %v1229_v54 = vmul.f32 0.7978846, %v1197_v23  ;;  %v1706_v57 = vadd.f32 %v1674_v52, %v5123_v9  ;;  %v2183_v63 = vmul.f32 0.044715, %v2151_v53 }
 0x130   : > { %879 = vst [vmem:[#allocation2 + $0xa0] sm:$0xf] %v847_v56  ;;  %v1356_v6 = vpack.c.bf16 %v1324_v59, %v1324_v59  ;;  %v1801_v50 = vadd.f32 1.0, %v4461_v60  ;;  %v1069_v5 = vmul.f32 0.5, %v5120_v12  ;;  %v593_v7 = vmul.f32 %v500_v41, %v500_v41 }
 0x131   : > { %4466 = vtanh.f32 %v1229_v54  ;;  %v1578_v61 = vmul.f32 0.5, %v5123_v9  ;;  %v1738_v8 = vmul.f32 0.7978846, %v1706_v57  ;;  %v2215_v2 = vadd.f32 %v2183_v63, %v2024_v25  ;;  %v2028_v54 = vpop.f32.mrf.mxu3 }
 0x132   : > { %v4463_v0 = vpop.eup %4462  ;;  %1388 = vst [vmem:[#allocation2 + $0xa4] sm:$0xf] %v1356_v6  ;;  %v1833_v55 = vmul.f32 %v1801_v50, %v5127_v21  ;;  %v625_v19 = vmul.f32 %v593_v7, %v500_v41  ;;  %v1102_v10 = vmul.f32 %v1009_v48, %v1009_v48  ;;  %v1518_v20 = vadd.f32 %v5107_v32, %v1517_v49 }
 0x133   : > { %v2310_v22 = vadd.f32 1.0, %v4463_v0  ;;  %4468 = vtanh.f32 %v1738_v8  ;;  %v2247_v51 = vmul.f32 0.7978846, %v2215_v2  ;;  %v5152_v12 = vadd.f32 %v5078_v1, %v2026_v58 }
 0x134   : > { %v1865_v13 = vpack.c.bf16 %v1833_v55, %v1833_v55  ;;  %v2087_v11 = vmul.f32 0.5, %v2024_v25  ;;  %v657_v26 = vmul.f32 0.044715, %v625_v19  ;;  %v1134_v9 = vmul.f32 %v1102_v10, %v1009_v48 }
 0x135   : > { %v4465_v62 = vpop.eup %4464  ;;  %v2342_v14 = vmul.f32 %v2310_v22, %v5132_v29  ;;  %4470 = vtanh.f32 %v2247_v51  ;;  %v5155_v21 = vmul.f32 0.5, %v500_v41  ;;  %v1611_v18 = vmul.f32 %v1518_v20, %v1518_v20  ;;  %v1013_v51 = vpop.f32.mrf.mxu1 }
 0x136   : > { %1897 = vst [vmem:[#allocation2 + $0xa8] sm:$0xf] %v1865_v13  ;;  %v784_v31 = vadd.f32 1.0, %v4465_v62  ;;  %v689_v30 = vadd.f32 %v657_v26, %v500_v41  ;;  %v1166_v33 = vmul.f32 0.044715, %v1134_v9  ;;  %v2120_v34 = vmul.f32 %v5152_v12, %v5152_v12 }
 0x137   : > { %v4467_v36 = vpop.eup %4466  ;;  %v2374_v25 = vpack.c.bf16 %v2342_v14, %v2342_v14  ;;  %v5159_v24 = vmul.f32 0.5, %v1009_v48  ;;  %v1643_v40 = vmul.f32 %v1611_v18, %v1518_v20  ;;  %v502_v3 = vadd.f32 %v5084_v4, %v501_v27  ;;  %v1522_v18 = vpop.f32.mrf.mxu2 }
 0x138   : > { %v816_v29 = vmul.f32 %v784_v31, %v5139_v28  ;;  %v1293_v17 = vadd.f32 1.0, %v4467_v36  ;;  %v721_v35 = vmul.f32 0.7978846, %v689_v30  ;;  %v1198_v38 = vadd.f32 %v1166_v33, %v1009_v48 }
 0x139   : > { %v4469_v37 = vpop.eup %4468  ;;  %2406 = vst [vmem:[#allocation2 + $0xac] sm:$0xf] %v2374_v25  ;;  %v1675_v42 = vmul.f32 0.044715, %v1643_v40  ;;  %v2152_v44 = vmul.f32 %v2120_v34, %v5152_v12  ;;  %v594_v43 = vmul.f32 %v502_v3, %v502_v3  ;;  %v1011_v46 = vadd.f32 %v5100_v16, %v1010_v15 }
 0x13a   : > { %v848_v47 = vpack.c.bf16 %v816_v29, %v816_v29  ;;  %v1325_v45 = vmul.f32 %v1293_v17, %v1069_v5  ;;  %v1802_v23 = vadd.f32 1.0, %v4469_v37  ;;  %4472 = vtanh.f32 %v721_v35 }
 0x13b   : > { %v4471_v52 = vpop.eup %4470  ;;  %v1230_v53 = vmul.f32 0.7978846, %v1198_v38  ;;  %v1707_v56 = vadd.f32 %v1675_v42, %v1518_v20  ;;  %v2184_v28 = vmul.f32 0.044715, %v2152_v44  ;;  %v626_v59 = vmul.f32 %v594_v43, %v502_v3  ;;  %v2031_v42 = vpop.f32.mrf.mxu3 }
 0x13c   : > { %880 = vst [vmem:[#allocation2 + $0xb0] sm:$0xf] %v848_v47  ;;  %v1357_v41 = vpack.c.bf16 %v1325_v45, %v1325_v45  ;;  %v1834_v48 = vmul.f32 %v1802_v23, %v1578_v61  ;;  %v2311_v49 = vadd.f32 1.0, %v4471_v52  ;;  %v1579_v60 = vmul.f32 0.5, %v1518_v20  ;;  %v504_v61 = vpop.f32.mrf.mxu0 }
 0x13d   : > { %4474 = vtanh.f32 %v1230_v53  ;;  %v1739_v57 = vmul.f32 0.7978846, %v1707_v56  ;;  %v2216_v63 = vadd.f32 %v2184_v28, %v5152_v12  ;;  %v658_v6 = vmul.f32 0.044715, %v626_v59 }
 0x13e   : > { %1389 = vst [vmem:[#allocation2 + $0xb4] sm:$0xf] %v1357_v41  ;;  %v1866_v50 = vpack.c.bf16 %v1834_v48, %v1834_v48  ;;  %v2343_v5 = vmul.f32 %v2311_v49, %v2087_v11  ;;  %v1103_v7 = vmul.f32 %v1011_v46, %v1011_v46  ;;  %v1520_v58 = vadd.f32 %v5107_v32, %v1519_v39 }
 0x13f   : > { %4476 = vtanh.f32 %v1739_v57  ;;  %v2248_v8 = vmul.f32 0.7978846, %v2216_v63  ;;  %v690_v2 = vadd.f32 %v658_v6, %v502_v3  ;;  %v2029_v0 = vadd.f32 %v5078_v1, %v2028_v54 }
 0x140   : > { %v4473_v55 = vpop.eup %4472  ;;  %1898 = vst [vmem:[#allocation2 + $0xb8] sm:$0xf] %v1866_v50  ;;  %v2375_v19 = vpack.c.bf16 %v2343_v5, %v2343_v5  ;;  %v2088_v10 = vmul.f32 0.5, %v5152_v12  ;;  %v1135_v20 = vmul.f32 %v1103_v7, %v1011_v46  ;;  %v1612_v22 = vmul.f32 %v1520_v58, %v1520_v58 }
 0x141   : > { %v785_v13 = vadd.f32 1.0, %v4473_v55  ;;  %4478 = vtanh.f32 %v2248_v8  ;;  %v562_v11 = vmul.f32 0.5, %v502_v3  ;;  %v722_v26 = vmul.f32 0.7978846, %v690_v2  ;;  %v1015_v55 = vpop.f32.mrf.mxu1 }
 0x142   : > { %2407 = vst [vmem:[#allocation2 + $0xbc] sm:$0xf] %v2375_v19  ;;  %v1167_v9 = vmul.f32 0.044715, %v1135_v20  ;;  %v1644_v27 = vmul.f32 %v1612_v22, %v1520_v58  ;;  %v2121_v62 = vmul.f32 %v2029_v0, %v2029_v0  ;;  %v505_v14 = vadd.f32 %v5084_v4, %v504_v61 }
 0x143   : > { %v4475_v31 = vpop.eup %4474  ;;  %v817_v30 = vmul.f32 %v785_v13, %v5155_v21  ;;  %4480 = vtanh.f32 %v722_v26  ;;  %v5171_v33 = vmul.f32 0.5, %v1011_v46  ;;  %v1014_v12 = vadd.f32 %v5100_v16, %v1013_v51  ;;  %v1524_v13 = vpop.f32.mrf.mxu2 }
 0x144   : > { %v1294_v34 = vadd.f32 1.0, %v4475_v31  ;;  %v1199_v15 = vadd.f32 %v1167_v9, %v1011_v46  ;;  %v1676_v36 = vmul.f32 0.044715, %v1644_v27  ;;  %v2153_v25 = vmul.f32 %v2121_v62, %v2029_v0  ;;  %v506_v63 = vpop.f32.mrf.mxu0 }
 0x145   : > { %v4477_v40 = vpop.eup %4476  ;;  %v849_v3 = vpack.c.bf16 %v817_v30, %v817_v30  ;;  %v5174_v29 = vmul.f32 0.5, %v1520_v58  ;;  %v595_v17 = vmul.f32 %v505_v14, %v505_v14  ;;  %v1523_v35 = vadd.f32 %v5107_v32, %v1522_v18  ;;  %v2033_v30 = vpop.f32.mrf.mxu3 }
 0x146   : > { %v1326_v38 = vmul.f32 %v1294_v34, %v5159_v24  ;;  %v1803_v39 = vadd.f32 1.0, %v4477_v40  ;;  %v1231_v21 = vmul.f32 0.7978846, %v1199_v15  ;;  %v1708_v37 = vadd.f32 %v1676_v36, %v1520_v58 }
 0x147   : > { %v4479_v44 = vpop.eup %4478  ;;  %881 = vst [vmem:[#allocation2 + $0xc0] sm:$0xf] %v849_v3  ;;  %v5178_v43 = vmul.f32 0.5, %v2029_v0  ;;  %v2185_v46 = vmul.f32 0.044715, %v2153_v25  ;;  %v627_v47 = vmul.f32 %v595_v17, %v505_v14  ;;  %v1104_v45 = vmul.f32 %v1014_v12, %v1014_v12 }
 0x148   : > { %v1358_v23 = vpack.c.bf16 %v1326_v38, %v1326_v38  ;;  %v1835_v52 = vmul.f32 %v1803_v39, %v1579_v60  ;;  %v2312_v53 = vadd.f32 1.0, %v4479_v44  ;;  %4482 = vtanh.f32 %v1231_v21 }
 0x149   : > { %v4481_v56 = vpop.eup %4480  ;;  %v1740_v28 = vmul.f32 0.7978846, %v1708_v37  ;;  %v2217_v59 = vadd.f32 %v2185_v46, %v2029_v0  ;;  %v659_v41 = vmul.f32 0.044715, %v627_v47  ;;  %v1136_v24 = vmul.f32 %v1104_v45, %v1014_v12 }
 0x14a   : > { %1390 = vst [vmem:[#allocation2 + $0xc4] sm:$0xf] %v1358_v23  ;;  %v1867_v48 = vpack.c.bf16 %v1835_v52, %v1835_v52  ;;  %v2344_v49 = vmul.f32 %v2312_v53, %v2088_v10  ;;  %v786_v54 = vadd.f32 1.0, %v4481_v56  ;;  %v1613_v57 = vmul.f32 %v1523_v35, %v1523_v35 }
 0x14b   : > { %4484 = vtanh.f32 %v1740_v28  ;;  %v2249_v6 = vmul.f32 0.7978846, %v2217_v59  ;;  %v691_v50 = vadd.f32 %v659_v41, %v505_v14  ;;  %v1168_v5 = vmul.f32 0.044715, %v1136_v24 }
 0x14c   : > { %1899 = vst [vmem:[#allocation2 + $0xc8] sm:$0xf] %v1867_v48  ;;  %v2376_v7 = vpack.c.bf16 %v2344_v49, %v2344_v49  ;;  %v818_v60 = vmul.f32 %v786_v54, %v562_v11  ;;  %v1645_v58 = vmul.f32 %v1613_v57, %v1523_v35  ;;  %v2032_v8 = vadd.f32 %v5078_v1, %v2031_v42  ;;  %v1018_v54 = vpop.f32.mrf.mxu1 }
 0x14d   : > { %4486 = vtanh.f32 %v2249_v6  ;;  %v723_v2 = vmul.f32 0.7978846, %v691_v50  ;;  %v1200_v0 = vadd.f32 %v1168_v5, %v1014_v12  ;;  %v507_v61 = vadd.f32 %v5084_v4, %v506_v63 }
 0x14e   : > { %v4483_v19 = vpop.eup %4482  ;;  %2408 = vst [vmem:[#allocation2 + $0xcc] sm:$0xf] %v2376_v7  ;;  %v850_v10 = vpack.c.bf16 %v818_v60, %v818_v60  ;;  %v563_v20 = vmul.f32 0.5, %v505_v14  ;;  %v1677_v22 = vmul.f32 0.044715, %v1645_v58  ;;  %v2122_v51 = vmul.f32 %v2032_v8, %v2032_v8 }
 0x14f   : > { %v1295_v26 = vadd.f32 1.0, %v4483_v19  ;;  %4488 = vtanh.f32 %v723_v2  ;;  %v1072_v9 = vmul.f32 0.5, %v1014_v12  ;;  %v1232_v11 = vmul.f32 0.7978846, %v1200_v0 }
 0x150   : > { %882 = vst [vmem:[#allocation2 + $0xd0] sm:$0xf] %v850_v10  ;;  %v1709_v27 = vadd.f32 %v1677_v22, %v1523_v35  ;;  %v2154_v62 = vmul.f32 %v2122_v51, %v2032_v8  ;;  %v596_v18 = vmul.f32 %v507_v61, %v507_v61  ;;  %v1016_v31 = vadd.f32 %v5100_v16, %v1015_v55  ;;  %v1527_v10 = vpop.f32.mrf.mxu2 }
 0x151   : > { %v4485_v34 = vpop.eup %4484  ;;  %v1327_v15 = vmul.f32 %v1295_v26, %v5171_v33  ;;  %4490 = vtanh.f32 %v1232_v11  ;;  %v1581_v36 = vmul.f32 0.5, %v1523_v35  ;;  %v1525_v14 = vadd.f32 %v5107_v32, %v1524_v13  ;;  %v509_v35 = vpop.f32.mrf.mxu0 }
 0x152   : > { %v1804_v25 = vadd.f32 1.0, %v4485_v34  ;;  %v1741_v40 = vmul.f32 0.7978846, %v1709_v27  ;;  %v2186_v3 = vmul.f32 0.044715, %v2154_v62  ;;  %v628_v17 = vmul.f32 %v596_v18, %v507_v61  ;;  %v2036_v26 = vpop.f32.mrf.mxu3 }
 0x153   : > { %v4487_v12 = vpop.eup %4486  ;;  %v1359_v38 = vpack.c.bf16 %v1327_v15, %v1327_v15  ;;  %v5185_v39 = vmul.f32 0.5, %v2032_v8  ;;  %v1105_v21 = vmul.f32 %v1016_v31, %v1016_v31  ;;  %v5188_v37 = vadd.f32 %v5078_v1, %v2033_v30 }
 0x154   : > { %v1836_v42 = vmul.f32 %v1804_v25, %v5174_v29  ;;  %v2313_v44 = vadd.f32 1.0, %v4487_v12  ;;  %4492 = vtanh.f32 %v1741_v40  ;;  %v2218_v33 = vadd.f32 %v2186_v3, %v2032_v8 }
 0x155   : > { %v4489_v46 = vpop.eup %4488  ;;  %1391 = vst [vmem:[#allocation2 + $0xd4] sm:$0xf] %v1359_v38  ;;  %v5191_v47 = vmul.f32 0.5, %v507_v61  ;;  %v660_v45 = vmul.f32 0.044715, %v628_v17  ;;  %v1137_v23 = vmul.f32 %v1105_v21, %v1016_v31  ;;  %v1614_v52 = vmul.f32 %v1525_v14, %v1525_v14 }
 0x156   : > { %v1868_v53 = vpack.c.bf16 %v1836_v42, %v1836_v42  ;;  %v2345_v56 = vmul.f32 %v2313_v44, %v5178_v43  ;;  %v787_v28 = vadd.f32 1.0, %v4489_v46  ;;  %v2250_v59 = vmul.f32 0.7978846, %v2218_v33 }
 0x157   : > { %v4491_v41 = vpop.eup %4490  ;;  %v692_v24 = vadd.f32 %v660_v45, %v507_v61  ;;  %v1169_v48 = vmul.f32 0.044715, %v1137_v23  ;;  %v1646_v29 = vmul.f32 %v1614_v52, %v1525_v14  ;;  %v2123_v49 = vmul.f32 %v5188_v37, %v5188_v37  ;;  %v1020_v23 = vpop.f32.mrf.mxu1 }
 0x158   : > { %1900 = vst [vmem:[#allocation2 + $0xd8] sm:$0xf] %v1868_v53  ;;  %v2377_v57 = vpack.c.bf16 %v2345_v56, %v2345_v56  ;;  %v819_v63 = vmul.f32 %v787_v28, %v563_v20  ;;  %v1296_v6 = vadd.f32 1.0, %v4491_v41  ;;  %4494 = vtanh.f32 %v2250_v59 }
 0x159   : > { %v724_v50 = vmul.f32 0.7978846, %v692_v24  ;;  %v1201_v5 = vadd.f32 %v1169_v48, %v1016_v31  ;;  %v1678_v7 = vmul.f32 0.044715, %v1646_v29  ;;  %v2155_v43 = vmul.f32 %v2123_v49, %v5188_v37  ;;  %v511_v25 = vpop.f32.mrf.mxu0 }
 0x15a   : > { %v4493_v60 = vpop.eup %4492  ;;  %2409 = vst [vmem:[#allocation2 + $0xdc] sm:$0xf] %v2377_v57  ;;  %v851_v58 = vpack.c.bf16 %v819_v63, %v819_v63  ;;  %v1328_v8 = vmul.f32 %v1296_v6, %v1072_v9  ;;  %v510_v2 = vadd.f32 %v5084_v4, %v509_v35  ;;  %v1019_v0 = vadd.f32 %v5100_v16, %v1018_v54 }
 0x15b   : > { %v1805_v61 = vadd.f32 1.0, %v4493_v60  ;;  %4496 = vtanh.f32 %v724_v50  ;;  %v1233_v55 = vmul.f32 0.7978846, %v1201_v5  ;;  %v1710_v19 = vadd.f32 %v1678_v7, %v1525_v14 }
 0x15c   : > { %883 = vst [vmem:[#allocation2 + $0xe0] sm:$0xf] %v851_v58  ;;  %v1360_v20 = vpack.c.bf16 %v1328_v8, %v1328_v8  ;;  %v1073_v22 = vmul.f32 0.5, %v1016_v31  ;;  %v2187_v51 = vmul.f32 0.044715, %v2155_v43  ;;  %v597_v13 = vmul.f32 %v510_v2, %v510_v2  ;;  %v1529_v58 = vpop.f32.mrf.mxu2 }
 0x15d   : > { %v1837_v11 = vmul.f32 %v1805_v61, %v1581_v36  ;;  %4498 = vtanh.f32 %v1233_v55  ;;  %v1582_v27 = vmul.f32 0.5, %v1525_v14  ;;  %v1742_v62 = vmul.f32 0.7978846, %v1710_v19  ;;  %v2038_v19 = vpop.f32.mrf.mxu3 }
 0x15e   : > { %v4495_v9 = vpop.eup %4494  ;;  %1392 = vst [vmem:[#allocation2 + $0xe4] sm:$0xf] %v1360_v20  ;;  %v2219_v18 = vadd.f32 %v2187_v51, %v5188_v37  ;;  %v629_v30 = vmul.f32 %v597_v13, %v510_v2  ;;  %v1106_v34 = vmul.f32 %v1019_v0, %v1019_v0  ;;  %v1528_v15 = vadd.f32 %v5107_v32, %v1527_v10 }
 0x15f   : > { %v1869_v40 = vpack.c.bf16 %v1837_v11, %v1837_v11  ;;  %v2314_v3 = vadd.f32 1.0, %v4495_v9  ;;  %4500 = vtanh.f32 %v1742_v62  ;;  %v2037_v31 = vadd.f32 %v5078_v1, %v2036_v26 }
 0x160   : > { %v2091_v17 = vmul.f32 0.5, %v5188_v37  ;;  %v2251_v36 = vmul.f32 0.7978846, %v2219_v18  ;;  %v661_v12 = vmul.f32 0.044715, %v629_v30  ;;  %v1138_v14 = vmul.f32 %v1106_v34, %v1019_v0 }
 0x161   : > { %v4497_v38 = vpop.eup %4496  ;;  %1901 = vst [vmem:[#allocation2 + $0xe8] sm:$0xf] %v1869_v40  ;;  %v2346_v21 = vmul.f32 %v2314_v3, %v5185_v39  ;;  %v5204_v42 = vmul.f32 0.5, %v510_v2  ;;  %v1615_v44 = vmul.f32 %v1528_v15, %v1528_v15  ;;  %v2124_v33 = vmul.f32 %v2037_v31, %v2037_v31  ;;  %v514_v10 = vpop.f32.mrf.mxu0 }
 0x162   : > { %v788_v35 = vadd.f32 1.0, %v4497_v38  ;;  %4502 = vtanh.f32 %v2251_v36  ;;  %v693_v46 = vadd.f32 %v661_v12, %v510_v2  ;;  %v1170_v45 = vmul.f32 0.044715, %v1138_v14 }
 0x163   : > { %v4499_v52 = vpop.eup %4498  ;;  %v2378_v53 = vpack.c.bf16 %v2346_v21, %v2346_v21  ;;  %v1647_v56 = vmul.f32 %v1615_v44, %v1528_v15  ;;  %v2156_v37 = vmul.f32 %v2124_v33, %v2037_v31  ;;  %v512_v28 = vadd.f32 %v5084_v4, %v511_v25  ;;  %v1023_v25 = vpop.f32.mrf.mxu1 }
 0x164   : > { %v820_v59 = vmul.f32 %v788_v35, %v5191_v47  ;;  %v1297_v41 = vadd.f32 1.0, %v4499_v52  ;;  %v725_v24 = vmul.f32 0.7978846, %v693_v46  ;;  %v1202_v39 = vadd.f32 %v1170_v45, %v1019_v0 }
 0x165   : > { %v4501_v48 = vpop.eup %4500  ;;  %2410 = vst [vmem:[#allocation2 + $0xec] sm:$0xf] %v2378_v53  ;;  %v1679_v29 = vmul.f32 0.044715, %v1647_v56  ;;  %v2188_v49 = vmul.f32 0.044715, %v2156_v37  ;;  %v598_v54 = vmul.f32 %v512_v28, %v512_v28  ;;  %v1021_v57 = vadd.f32 %v5100_v16, %v1020_v23 }
 0x166   : > { %v852_v63 = vpack.c.bf16 %v820_v59, %v820_v59  ;;  %v1329_v6 = vmul.f32 %v1297_v41, %v1073_v22  ;;  %v1806_v50 = vadd.f32 1.0, %v4501_v48  ;;  %4504 = vtanh.f32 %v725_v24 }
 0x167   : > { %v1074_v5 = vmul.f32 0.5, %v1019_v0  ;;  %v1234_v7 = vmul.f32 0.7978846, %v1202_v39  ;;  %v1711_v43 = vadd.f32 %v1679_v29, %v1528_v15  ;;  %v2220_v60 = vadd.f32 %v2188_v49, %v2037_v31 }
 0x168   : > { %v4503_v47 = vpop.eup %4502  ;;  %884 = vst [vmem:[#allocation2 + $0xf0] sm:$0xf] %v852_v63  ;;  %v1361_v8 = vpack.c.bf16 %v1329_v6, %v1329_v6  ;;  %v1838_v2 = vmul.f32 %v1806_v50, %v1582_v27  ;;  %v1583_v61 = vmul.f32 0.5, %v1528_v15  ;;  %v630_v55 = vmul.f32 %v598_v54, %v512_v28  ;;  %v2041_v63 = vpop.f32.mrf.mxu3 }
 0x169   : > { %v2315_v20 = vadd.f32 1.0, %v4503_v47  ;;  %4506 = vtanh.f32 %v1234_v7  ;;  %v1743_v51 = vmul.f32 0.7978846, %v1711_v43  ;;  %v2252_v13 = vmul.f32 0.7978846, %v2220_v60 }
 0x16a   : > { %1393 = vst [vmem:[#allocation2 + $0xf4] sm:$0xf] %v1361_v8  ;;  %v1870_v22 = vpack.c.bf16 %v1838_v2, %v1838_v2  ;;  %v662_v26 = vmul.f32 0.044715, %v630_v55  ;;  %v1107_v0 = vmul.f32 %v1021_v57, %v1021_v57  ;;  %v1530_v11 = vadd.f32 %v5107_v32, %v1529_v58 }
 0x16b   : > { %v2347_v62 = vmul.f32 %v2315_v20, %v2091_v17  ;;  %4508 = vtanh.f32 %v1743_v51  ;;  %v5211_v9 = vadd.f32 %v5078_v1, %v2038_v19  ;;  %v5214_v27 = vadd.f32 %v5084_v4, %v514_v10  ;;  %v516_v51 = vpop.f32.mrf.mxu0 }
 0x16c   : > { %v4505_v18 = vpop.eup %4504  ;;  %1902 = vst [vmem:[#allocation2 + $0xf8] sm:$0xf] %v1870_v22  ;;  %v2092_v30 = vmul.f32 0.5, %v2037_v31  ;;  %4510 = vtanh.f32 %v2252_v13  ;;  %v694_v34 = vadd.f32 %v662_v26, %v512_v28  ;;  %v1139_v15 = vmul.f32 %v1107_v0, %v1021_v57  ;;  %v1025_v13 = vpop.f32.mrf.mxu1 }
 0x16d   : > { %v2379_v40 = vpack.c.bf16 %v2347_v62, %v2347_v62  ;;  %v789_v3 = vadd.f32 1.0, %v4505_v18  ;;  %v566_v36 = vmul.f32 0.5, %v512_v28  ;;  %v1616_v12 = vmul.f32 %v1530_v11, %v1530_v11 }
 0x16e   : > { %v726_v14 = vmul.f32 0.7978846, %v694_v34  ;;  %v5216_v17 = vmul.f32 0.5, %v1021_v57  ;;  %v1171_v38 = vmul.f32 0.044715, %v1139_v15  ;;  %v2125_v21 = vmul.f32 %v5211_v9, %v5211_v9 }
 0x16f   : > { %v4507_v4 = vpop.eup %4506  ;;  %2411 = vst [vmem:[#allocation2 + $0xfc] sm:$0xf] %v2379_v40  ;;  %v821_v44 = vmul.f32 %v789_v3, %v5204_v42  ;;  %v1648_v31 = vmul.f32 %v1616_v12, %v1530_v11  ;;  %v599_v33 = vmul.f32 %v5214_v27, %v5214_v27  ;;  %v5224_v35 = vadd.f32 %v5100_v16, %v1023_v25  ;;  %v4310_v0 = vld [vmem:[#allocation2 + $0xec] sm:$0xf0]  ;;  %v5251_v34 = vld [vmem:[%s6183_s2] ss:$0 sm:$0xff] }
 0x170   : > { %v1298_v46 = vadd.f32 1.0, %v4507_v4  ;;  %4512 = vtanh.f32 %v726_v14  ;;  %v1203_v45 = vadd.f32 %v1171_v38, %v1021_v57  ;;  %v2157_v23 = vmul.f32 %v2125_v21, %v5211_v9  ;;  %v1532_v57 = vpop.f32.mrf.mxu2 }
 0x171   : > { %v4509_v52 = vpop.eup %4508  ;;  %v853_v53 = vpack.c.bf16 %v821_v44, %v821_v44  ;;  %v5227_v56 = vmul.f32 0.5, %v1530_v11  ;;  %v1680_v37 = vmul.f32 0.044715, %v1648_v31  ;;  %v631_v28 = vmul.f32 %v599_v33, %v5214_v27 }
 0x172   : > { %v4511_v42 = vpop.eup %4510  ;;  %v1330_v59 = vmul.f32 %v1298_v46, %v1074_v5  ;;  %v1807_v41 = vadd.f32 1.0, %v4509_v52  ;;  %v1235_v24 = vmul.f32 0.7978846, %v1203_v45  ;;  %v2189_v39 = vmul.f32 0.044715, %v2157_v23 }
 0x173   : > { %885 = vst [vmem:[#allocation2 + $0x100] sm:$0xf] %v853_v53  ;;  %v2316_v48 = vadd.f32 1.0, %v4511_v42  ;;  %v1712_v29 = vadd.f32 %v1680_v37, %v1530_v11  ;;  %v663_v49 = vmul.f32 0.044715, %v631_v28  ;;  %v1108_v54 = vmul.f32 %v5224_v35, %v5224_v35 }
 0x174   : > { %v1362_v6 = vpack.c.bf16 %v1330_v59, %v1330_v59  ;;  %v1839_v50 = vmul.f32 %v1807_v41, %v1583_v61  ;;  %4514 = vtanh.f32 %v1235_v24  ;;  %v2221_v7 = vadd.f32 %v2189_v39, %v5211_v9  ;;  %v4056_v53 = vld [vmem:[#allocation2 + $0xf0] sm:$0xf0]  ;;  %v4308_v59 = vld [vmem:[#allocation2 + $0xe4] sm:$0xf] }
 0x175   : > { %v2348_v43 = vmul.f32 %v2316_v48, %v2092_v30  ;;  %v1744_v60 = vmul.f32 0.7978846, %v1712_v29  ;;  %v695_v5 = vadd.f32 %v663_v49, %v5214_v27  ;;  %v1140_v58 = vmul.f32 %v1108_v54, %v5224_v35 }
 0x176   : > { %v4513_v47 = vpop.eup %4512  ;;  %1394 = vst [vmem:[#allocation2 + $0x104] sm:$0xf] %v1362_v6  ;;  %v1871_v8 = vpack.c.bf16 %v1839_v50, %v1839_v50  ;;  %v2253_v2 = vmul.f32 0.7978846, %v2221_v7  ;;  %v5236_v55 = vadd.f32 %v5107_v32, %v1532_v57  ;;  %v5239_v19 = vadd.f32 %v5078_v1, %v2041_v63  ;;  %v2043_v6 = vpop.f32.mrf.mxu3 }
 0x177   : > { %v2380_v61 = vpack.c.bf16 %v2348_v43, %v2348_v43  ;;  %v790_v10 = vadd.f32 1.0, %v4513_v47  ;;  %4516 = vtanh.f32 %v1744_v60  ;;  %v727_v20 = vmul.f32 0.7978846, %v695_v5  ;;  %v519_v50 = vpop.f32.mrf.mxu0 }
 0x178   : > { %1903 = vst [vmem:[#allocation2 + $0x108] sm:$0xf] %v1871_v8  ;;  %4518 = vtanh.f32 %v2253_v2  ;;  %v1172_v22 = vmul.f32 0.044715, %v1140_v58  ;;  %v1617_v26 = vmul.f32 %v5236_v55, %v5236_v55  ;;  %v2093_v32 = vmul.f32 0.5, %v5211_v9  ;;  %v1534_v29 = vpop.f32.mrf.mxu2 }
 0x179   : > { %2412 = vst [vmem:[#allocation2 + $0x10c] sm:$0xf] %v2380_v61  ;;  %v822_v11 = vmul.f32 %v790_v10, %v566_v36  ;;  %4520 = vtanh.f32 %v727_v20  ;;  %v2126_v1 = vmul.f32 %v5239_v19, %v5239_v19  ;;  %v5254_v15 = vadd.f32 %v5251_v34, %v516_v51  ;;  %v4054_v9 = vld [vmem:[#allocation2 + $0xe0] sm:$0xf]  ;;  %v4311_v8 = vld [vmem:[#allocation2 + $0xf4] sm:$0xf0] }
 0x17a   : > { %v4515_v62 = vpop.eup %4514  ;;  %v1204_v18 = vadd.f32 %v1172_v22, %v5224_v35  ;;  %v1649_v30 = vmul.f32 %v1617_v26, %v5236_v55  ;;  %v5257_v25 = vadd.f32 %v5100_v16, %v1025_v13  ;;  %v4055_v12 = vor.u32 %v4310_v0, %v4054_v9  ;;  %v5277_v58 = vld [vmem:[%s6183_s2 + $0x2] ss:$0 sm:$0xff]  ;;  %v5285_v20 = vld [vmem:[%s6183_s2 + $0x3] ss:$0 sm:$0xff]  ;;  %v4064_v22 = vld [vmem:[#allocation2 + $0xf8] sm:$0xf0] }
 0x17b   : > { %v854_v40 = vpack.c.bf16 %v822_v11, %v822_v11  ;;  %v1299_v3 = vadd.f32 1.0, %v4515_v62  ;;  %v2158_v36 = vmul.f32 %v2126_v1, %v5239_v19  ;;  %v567_v14 = vmul.f32 0.5, %v5214_v27  ;;  %v1028_v1 = vpop.f32.mrf.mxu1 }
 0x17c   : > { %v1236_v38 = vmul.f32 0.7978846, %v1204_v18  ;;  %v1681_v21 = vmul.f32 0.044715, %v1649_v30  ;;  %v600_v4 = vmul.f32 %v5254_v15, %v5254_v15  ;;  %v1076_v16 = vmul.f32 0.5, %v5224_v35  ;;  %3100 = vmatpush.bf16.xpose.msrb.mxu0 %v4055_v12 }
 0x17d   : > { %v4517_v44 = vpop.eup %4516  ;;  %886 = vst [vmem:[#allocation2 + $0x110] sm:$0xf] %v854_v40  ;;  %v1331_v31 = vmul.f32 %v1299_v3, %v5216_v17  ;;  %v2190_v33 = vmul.f32 0.044715, %v2158_v36  ;;  %v1109_v46 = vmul.f32 %v5257_v25, %v5257_v25  ;;  %v4059_v63 = vor.u32 %v4308_v59, %v4056_v53  ;;  %v4062_v3 = vld [vmem:[#allocation2 + $0xe8] sm:$0xf] }
 0x17e   : > { %v4519_v45 = vpop.eup %4518  ;;  %v1808_v23 = vadd.f32 1.0, %v4517_v44  ;;  %4522 = vtanh.f32 %v1236_v38  ;;  %v1713_v27 = vadd.f32 %v1681_v21, %v5236_v55  ;;  %v632_v52 = vmul.f32 %v600_v4, %v5254_v15  ;;  %v4309_v36 = vld [vmem:[#allocation2 + $0xec] sm:$0xf]  ;;  %v4306_v4 = vld [vmem:[#allocation2 + $0xcc] sm:$0xf0] }
 0x17f   : > { %v4521_v37 = vpop.eup %4520  ;;  %v1363_v28 = vpack.c.bf16 %v1331_v31, %v1331_v31  ;;  %v2317_v42 = vadd.f32 1.0, %v4519_v45  ;;  %v2222_v17 = vadd.f32 %v2190_v33, %v5239_v19  ;;  %v1141_v35 = vmul.f32 %v1109_v46, %v5257_v25  ;;  %3149 = vmatpush.bf16.xpose.msrb.mxu1 %v4059_v63  ;;  %v4040_v45 = vld [vmem:[#allocation2 + $0xd0] sm:$0xf0] }
 0x180   : > { %v1840_v41 = vmul.f32 %v1808_v23, %v5227_v56  ;;  %v791_v24 = vadd.f32 1.0, %v4521_v37  ;;  %v1745_v39 = vmul.f32 0.7978846, %v1713_v27  ;;  %v664_v48 = vmul.f32 0.044715, %v632_v52 }
 0x181   : > { %1395 = vst [vmem:[#allocation2 + $0x114] sm:$0xf] %v1363_v28  ;;  %v2349_v49 = vmul.f32 %v2317_v42, %v2093_v32  ;;  %v2254_v54 = vmul.f32 0.7978846, %v2222_v17  ;;  %v1173_v57 = vmul.f32 0.044715, %v1141_v35  ;;  %v5280_v47 = vadd.f32 %v5277_v58, %v1534_v29  ;;  %v1537_v28 = vpop.f32.mrf.mxu2 }
 0x182   : > { %v1872_v7 = vpack.c.bf16 %v1840_v41, %v1840_v41  ;;  %v823_v43 = vmul.f32 %v791_v24, %v567_v14  ;;  %4524 = vtanh.f32 %v1745_v39  ;;  %v696_v60 = vadd.f32 %v664_v48, %v5254_v15  ;;  %v4038_v37 = vld [vmem:[#allocation2 + $0xc0] sm:$0xf]  ;;  %v4304_v41 = vld [vmem:[#allocation2 + $0xc4] sm:$0xf] }
 0x183   : > { %v2381_v5 = vpack.c.bf16 %v2349_v49, %v2349_v49  ;;  %4526 = vtanh.f32 %v2254_v54  ;;  %v1205_v56 = vadd.f32 %v1173_v57, %v5257_v25  ;;  %v5288_v51 = vadd.f32 %v5285_v20, %v2043_v6 }
 0x184   : > { %v4523_v2 = vpop.eup %4522  ;;  %1904 = vst [vmem:[#allocation2 + $0x118] sm:$0xf] %v1872_v7  ;;  %v855_v61 = vpack.c.bf16 %v823_v43, %v823_v43  ;;  %v728_v10 = vmul.f32 0.7978846, %v696_v60  ;;  %v5291_v13 = vadd.f32 %v5251_v34, %v519_v50  ;;  %v1585_v0 = vmul.f32 0.5, %v5236_v55  ;;  %v2046_v50 = vpop.f32.mrf.mxu3 }
 0x185   : > { %2413 = vst [vmem:[#allocation2 + $0x11c] sm:$0xf] %v2381_v5  ;;  %v1300_v26 = vadd.f32 1.0, %v4523_v2  ;;  %v1237_v11 = vmul.f32 0.7978846, %v1205_v56  ;;  %v1618_v32 = vmul.f32 %v5280_v47, %v5280_v47  ;;  %v2094_v62 = vmul.f32 0.5, %v5239_v19 }
 0x186   : > { %887 = vst [vmem:[#allocation2 + $0x120] sm:$0xf] %v855_v61  ;;  %v568_v18 = vmul.f32 0.5, %v5254_v15  ;;  %4528 = vtanh.f32 %v728_v10  ;;  %v2127_v30 = vmul.f32 %v5288_v51, %v5288_v51  ;;  %v601_v55 = vmul.f32 %v5291_v13, %v5291_v13  ;;  %v5307_v19 = vld [vmem:[%s6183_s2 + $0x1] ss:$0 sm:$0xff] }
 0x187   : > { %v1332_v9 = vmul.f32 %v1300_v26, %v1076_v16  ;;  %4530 = vtanh.f32 %v1237_v11  ;;  %v1650_v40 = vmul.f32 %v1618_v32, %v5280_v47  ;;  %v5310_v15 = vadd.f32 %v5307_v19, %v1028_v1  ;;  %v521_v26 = vpop.f32.mrf.mxu0  ;;  %v4307_v11 = vld [vmem:[#allocation2 + $0xd4] sm:$0xf0] }
 0x188   : > { %v4525_v12 = vpop.eup %4524  ;;  %v2159_v14 = vmul.f32 %v2127_v30, %v5288_v51  ;;  %v4063_v38 = vor.u32 %v4311_v8, %v4062_v3  ;;  %v4067_v21 = vor.u32 %v4309_v36, %v4064_v22  ;;  %v633_v46 = vmul.f32 %v601_v55, %v5291_v13  ;;  %v4022_v30 = vld [vmem:[#allocation2 + $0xa0] sm:$0xf] }
 0x189   : > { %v4527_v44 = vpop.eup %4526  ;;  %v1364_v31 = vpack.c.bf16 %v1332_v9, %v1332_v9  ;;  %v1809_v16 = vadd.f32 1.0, %v4525_v12  ;;  %v1682_v33 = vmul.f32 0.044715, %v1650_v40  ;;  %v1077_v27 = vmul.f32 0.5, %v5257_v25  ;;  %v4302_v9 = vld [vmem:[#allocation2 + $0xac] sm:$0xf0] }
 0x18a   : > { %v2318_v23 = vadd.f32 1.0, %v4527_v44  ;;  %v2191_v52 = vmul.f32 0.044715, %v2159_v14  ;;  %v1110_v53 = vmul.f32 %v5310_v15, %v5310_v15  ;;  %3198 = vmatpush.bf16.xpose.msrb.mxu2 %v4063_v38  ;;  %3247 = vmatpush.bf16.xpose.msrb.mxu3 %v4067_v21  ;;  %v665_v35 = vmul.f32 0.044715, %v633_v46 }
 0x18b   : > { %1396 = vst [vmem:[#allocation2 + $0x124] sm:$0xf] %v1364_v31  ;;  %v1841_v42 = vmul.f32 %v1809_v16, %v1585_v0  ;;  %v1714_v17 = vadd.f32 %v1682_v33, %v5280_v47  ;;  %v4039_v59 = vor.u32 %v4306_v4, %v4038_v37  ;;  %v4043_v29 = vor.u32 %v4304_v41, %v4040_v45  ;;  %v1030_v0 = vpop.f32.mrf.mxu1  ;;  %v4046_v12 = vld [vmem:[#allocation2 + $0xc8] sm:$0xf]  ;;  %v4305_v4 = vld [vmem:[#allocation2 + $0xcc] sm:$0xf]  ;;  %v1539_v33 = vpop.f32.mrf.mxu2 }
 0x18c   : > { %v4529_v24 = vpop.eup %4528  ;;  %v2350_v39 = vmul.f32 %v2318_v23, %v2094_v62  ;;  %v2223_v48 = vadd.f32 %v2191_v52, %v5288_v51  ;;  %v1142_v25 = vmul.f32 %v1110_v53, %v5310_v15  ;;  %v697_v6 = vadd.f32 %v665_v35, %v5291_v13  ;;  %v4024_v44 = vld [vmem:[#allocation2 + $0xb0] sm:$0xf0]  ;;  %v4300_v53 = vld [vmem:[#allocation2 + $0xa4] sm:$0xf] }
 0x18d   : > { %v4531_v49 = vpop.eup %4530  ;;  %v1873_v54 = vpack.c.bf16 %v1841_v42, %v1841_v42  ;;  %v792_v57 = vadd.f32 1.0, %v4529_v24  ;;  %v1746_v63 = vmul.f32 0.7978846, %v1714_v17  ;;  %3101 = vmatpush.bf16.xpose.msrb.mxu0 %v4039_v59  ;;  %3150 = vmatpush.bf16.xpose.msrb.mxu1 %v4043_v29  ;;  %v1538_v2 = vadd.f32 %v5277_v58, %v1537_v28 }
 0x18e   : > { %v2382_v7 = vpack.c.bf16 %v2350_v39, %v2350_v39  ;;  %v1301_v43 = vadd.f32 1.0, %v4531_v49  ;;  %v2255_v60 = vmul.f32 0.7978846, %v2223_v48  ;;  %v1174_v5 = vmul.f32 0.044715, %v1142_v25  ;;  %v2048_v49 = vpop.f32.mrf.mxu3 }
 0x18f   : > { %1905 = vst [vmem:[#allocation2 + $0x128] sm:$0xf] %v1873_v54  ;;  %v824_v56 = vmul.f32 %v792_v57, %v568_v18  ;;  %4532 = vtanh.f32 %v1746_v63  ;;  %v729_v8 = vmul.f32 0.7978846, %v697_v6  ;;  %v5323_v22 = vadd.f32 %v5285_v20, %v2046_v50  ;;  %v4048_v18 = vld [vmem:[#allocation2 + $0xd8] sm:$0xf0] }
 0x190   : > { %2414 = vst [vmem:[#allocation2 + $0x12c] sm:$0xf] %v2382_v7  ;;  %v1333_v61 = vmul.f32 %v1301_v43, %v1077_v27  ;;  %4534 = vtanh.f32 %v2255_v60  ;;  %v1206_v10 = vadd.f32 %v1174_v5, %v5310_v15  ;;  %v1586_v1 = vmul.f32 0.5, %v5280_v47 }
 0x191   : > { %v856_v32 = vpack.c.bf16 %v824_v56, %v824_v56  ;;  %4536 = vtanh.f32 %v729_v8  ;;  %v1619_v62 = vmul.f32 %v1538_v2, %v1538_v2  ;;  %v2095_v55 = vmul.f32 0.5, %v5288_v51  ;;  %v524_v56 = vpop.f32.mrf.mxu0 }
 0x192   : > { %v1365_v40 = vpack.c.bf16 %v1333_v61, %v1333_v61  ;;  %v1238_v3 = vmul.f32 0.7978846, %v1206_v10  ;;  %v2128_v36 = vmul.f32 %v5323_v22, %v5323_v22  ;;  %v5330_v38 = vadd.f32 %v5251_v34, %v521_v26 }
 0x193   : > { %888 = vst [vmem:[#allocation2 + $0x130] sm:$0xf] %v856_v32  ;;  %v1651_v14 = vmul.f32 %v1619_v62, %v1538_v2  ;;  %v5333_v47 = vadd.f32 %v5307_v19, %v1030_v0  ;;  %v4047_v21 = vor.u32 %v4307_v11, %v4046_v12  ;;  %v4051_v31 = vor.u32 %v4305_v4, %v4048_v18  ;;  %v1033_v26 = vpop.f32.mrf.mxu1  ;;  %v4303_v0 = vld [vmem:[#allocation2 + $0xb4] sm:$0xf0]  ;;  %v4032_v12 = vld [vmem:[#allocation2 + $0xb8] sm:$0xf0] }
 0x194   : > { %1397 = vst [vmem:[#allocation2 + $0x134] sm:$0xf] %v1365_v40  ;;  %4538 = vtanh.f32 %v1238_v3  ;;  %v2160_v51 = vmul.f32 %v2128_v36, %v5323_v22  ;;  %v4023_v16 = vor.u32 %v4302_v9, %v4022_v30  ;;  %v569_v45 = vmul.f32 0.5, %v5291_v13  ;;  %v4030_v9 = vld [vmem:[#allocation2 + $0xa8] sm:$0xf] }
 0x195   : > { %v4533_v46 = vpop.eup %4532  ;;  %v1078_v23 = vmul.f32 0.5, %v5310_v15  ;;  %v1683_v27 = vmul.f32 0.044715, %v1651_v14  ;;  %v602_v52 = vmul.f32 %v5330_v38, %v5330_v38  ;;  %3199 = vmatpush.bf16.xpose.msrb.mxu2 %v4047_v21  ;;  %v1111_v17 = vmul.f32 %v5333_v47, %v5333_v47  ;;  %3248 = vmatpush.bf16.xpose.msrb.mxu3 %v4051_v31 }
 0x196   : > { %v4535_v37 = vpop.eup %4534  ;;  %v1810_v28 = vadd.f32 1.0, %v4533_v46  ;;  %v2192_v42 = vmul.f32 0.044715, %v2160_v51  ;;  %3102 = vmatpush.bf16.xpose.msrb.mxu0 %v4023_v16  ;;  %v4027_v35 = vor.u32 %v4300_v53, %v4024_v44  ;;  %v5344_v24 = vadd.f32 %v5277_v58, %v1539_v33  ;;  %v4301_v44 = vld [vmem:[#allocation2 + $0xac] sm:$0xf] }
 0x197   : > { %v4537_v59 = vpop.eup %4536  ;;  %v2319_v41 = vadd.f32 1.0, %v4535_v37  ;;  %v1715_v13 = vadd.f32 %v1683_v27, %v1538_v2  ;;  %v634_v15 = vmul.f32 %v602_v52, %v5330_v38  ;;  %v1143_v29 = vmul.f32 %v1111_v17, %v5333_v47  ;;  %v4298_v51 = vld [vmem:[#allocation2 + $0x8c] sm:$0xf0]  ;;  %v4008_v46 = vld [vmem:[#allocation2 + $0x90] sm:$0xf0]  ;;  %v1542_v37 = vpop.f32.mrf.mxu2 }
 0x198   : > { %v1842_v39 = vmul.f32 %v1810_v28, %v1586_v1  ;;  %v793_v48 = vadd.f32 1.0, %v4537_v59  ;;  %v2224_v25 = vadd.f32 %v2192_v42, %v5323_v22  ;;  %3151 = vmatpush.bf16.xpose.msrb.mxu1 %v4027_v35  ;;  %v5348_v57 = vmul.f32 0.5, %v1538_v2  ;;  %v4006_v53 = vld [vmem:[#allocation2 + $0x80] sm:$0xf]  ;;  %v4296_v59 = vld [vmem:[#allocation2 + $0x84] sm:$0xf] }
 0x199   : > { %v2351_v54 = vmul.f32 %v2319_v41, %v2095_v55  ;;  %v1747_v63 = vmul.f32 0.7978846, %v1715_v13  ;;  %v666_v6 = vmul.f32 0.044715, %v634_v15  ;;  %v1175_v5 = vmul.f32 0.044715, %v1143_v29  ;;  %v2051_v41 = vpop.f32.mrf.mxu3 }
 0x19a   : > { %v4539_v50 = vpop.eup %4538  ;;  %v1874_v7 = vpack.c.bf16 %v1842_v39, %v1842_v39  ;;  %v825_v43 = vmul.f32 %v793_v48, %v569_v45  ;;  %v2256_v60 = vmul.f32 0.7978846, %v2224_v25  ;;  %v1620_v32 = vmul.f32 %v5344_v24, %v5344_v24 }
 0x19b   : > { %v2383_v8 = vpack.c.bf16 %v2351_v54, %v2351_v54  ;;  %v1302_v61 = vadd.f32 1.0, %v4539_v50  ;;  %4540 = vtanh.f32 %v1747_v63  ;;  %v698_v10 = vadd.f32 %v666_v6, %v5330_v38 }
 0x19c   : > { %1906 = vst [vmem:[#allocation2 + $0x138] sm:$0xf] %v1874_v7  ;;  %v857_v11 = vpack.c.bf16 %v825_v43, %v825_v43  ;;  %4542 = vtanh.f32 %v2256_v60  ;;  %v1207_v2 = vadd.f32 %v1175_v5, %v5333_v47  ;;  %v5355_v18 = vadd.f32 %v5285_v20, %v2048_v49 }
 0x19d   : > { %2415 = vst [vmem:[#allocation2 + $0x13c] sm:$0xf] %v2383_v8  ;;  %v1334_v1 = vmul.f32 %v1302_v61, %v1078_v23  ;;  %v730_v62 = vmul.f32 0.7978846, %v698_v10  ;;  %v5358_v30 = vadd.f32 %v5251_v34, %v524_v56  ;;  %v1652_v55 = vmul.f32 %v1620_v32, %v5344_v24  ;;  %v526_v32 = vpop.f32.mrf.mxu0 }
 0x19e   : > { %889 = vst [vmem:[#allocation2 + $0x140] sm:$0xf] %v857_v11  ;;  %v1239_v40 = vmul.f32 0.7978846, %v1207_v2  ;;  %v5362_v3 = vadd.f32 %v5307_v19, %v1033_v26  ;;  %v4031_v36 = vor.u32 %v4303_v0, %v4030_v9  ;;  %v2096_v21 = vmul.f32 0.5, %v5323_v22 }
 0x19f   : > { %v1366_v14 = vpack.c.bf16 %v1334_v1, %v1334_v1  ;;  %4544 = vtanh.f32 %v730_v62  ;;  %v2129_v4 = vmul.f32 %v5355_v18, %v5355_v18  ;;  %v570_v31 = vmul.f32 0.5, %v5330_v38  ;;  %v4299_v26 = vld [vmem:[#allocation2 + $0x94] sm:$0xf0]  ;;  %v1035_v1 = vpop.f32.mrf.mxu1  ;;  %v4016_v62 = vld [vmem:[#allocation2 + $0x98] sm:$0xf0] }
 0x1a0   : > { %4546 = vtanh.f32 %v1239_v40  ;;  %v1684_v16 = vmul.f32 0.044715, %v1652_v55  ;;  %v603_v33 = vmul.f32 %v5358_v30, %v5358_v30  ;;  %3200 = vmatpush.bf16.xpose.msrb.mxu2 %v4031_v36  ;;  %v1079_v23 = vmul.f32 0.5, %v5333_v47 }
 0x1a1   : > { %v4541_v45 = vpop.eup %4540  ;;  %1398 = vst [vmem:[#allocation2 + $0x144] sm:$0xf] %v1366_v14  ;;  %v2161_v22 = vmul.f32 %v2129_v4, %v5355_v18  ;;  %v1112_v27 = vmul.f32 %v5362_v3, %v5362_v3  ;;  %v4035_v52 = vor.u32 %v4301_v44, %v4032_v12  ;;  %v4007_v35 = vor.u32 %v4298_v51, %v4006_v53  ;;  %v4014_v51 = vld [vmem:[#allocation2 + $0x88] sm:$0xf] }
 0x1a2   : > { %v4543_v38 = vpop.eup %4542  ;;  %v1811_v28 = vadd.f32 1.0, %v4541_v45  ;;  %v1716_v42 = vadd.f32 %v1684_v16, %v5344_v24  ;;  %v635_v17 = vmul.f32 %v603_v33, %v5358_v30  ;;  %v4011_v39 = vor.u32 %v4296_v59, %v4008_v46  ;;  %v4294_v16 = vld [vmem:[#allocation2 + $0x6c] sm:$0xf0] }
 0x1a3   : > { %v2320_v13 = vadd.f32 1.0, %v4543_v38  ;;  %v2193_v15 = vmul.f32 0.044715, %v2161_v22  ;;  %v1144_v47 = vmul.f32 %v1112_v27, %v5362_v3  ;;  %3249 = vmatpush.bf16.xpose.msrb.mxu3 %v4035_v52  ;;  %3103 = vmatpush.bf16.xpose.msrb.mxu0 %v4007_v35  ;;  %v5379_v49 = vadd.f32 %v5277_v58, %v1542_v37  ;;  %v3992_v27 = vld [vmem:[#allocation2 + $0x70] sm:$0xf0]  ;;  %v1544_v52 = vpop.f32.mrf.mxu2 }
 0x1a4   : > { %v1843_v48 = vmul.f32 %v1811_v28, %v5348_v57  ;;  %v1748_v25 = vmul.f32 0.7978846, %v1716_v42  ;;  %v667_v29 = vmul.f32 0.044715, %v635_v17  ;;  %3152 = vmatpush.bf16.xpose.msrb.mxu1 %v4011_v39  ;;  %v5383_v7 = vadd.f32 %v5285_v20, %v2051_v41  ;;  %v4292_v41 = vld [vmem:[#allocation2 + $0x64] sm:$0xf] }
 0x1a5   : > { %v4545_v54 = vpop.eup %4544  ;;  %v2352_v63 = vmul.f32 %v2320_v13, %v2096_v21  ;;  %v2225_v6 = vadd.f32 %v2193_v15, %v5355_v18  ;;  %v1176_v50 = vmul.f32 0.044715, %v1144_v47  ;;  %v1621_v2 = vmul.f32 %v5379_v49, %v5379_v49 }
 0x1a6   : > { %v4547_v43 = vpop.eup %4546  ;;  %v1875_v60 = vpack.c.bf16 %v1843_v48, %v1843_v48  ;;  %v794_v5 = vadd.f32 1.0, %v4545_v54  ;;  %4548 = vtanh.f32 %v1748_v25  ;;  %v699_v57 = vadd.f32 %v667_v29, %v5358_v30 }
 0x1a7   : > { %v2384_v56 = vpack.c.bf16 %v2352_v63, %v2352_v63  ;;  %v1303_v8 = vadd.f32 1.0, %v4547_v43  ;;  %v2257_v61 = vmul.f32 0.7978846, %v2225_v6  ;;  %v1208_v10 = vadd.f32 %v1176_v50, %v5362_v3 }
 0x1a8   : > { %1907 = vst [vmem:[#allocation2 + $0x148] sm:$0xf] %v1875_v60  ;;  %v826_v0 = vmul.f32 %v794_v5, %v570_v31  ;;  %v731_v11 = vmul.f32 0.7978846, %v699_v57  ;;  %v1588_v40 = vmul.f32 0.5, %v5344_v24  ;;  %v1653_v12 = vmul.f32 %v1621_v2, %v5379_v49  ;;  %v2053_v5 = vpop.f32.mrf.mxu3 }
 0x1a9   : > { %2416 = vst [vmem:[#allocation2 + $0x14c] sm:$0xf] %v2384_v56  ;;  %v1335_v9 = vmul.f32 %v1303_v8, %v1079_v23  ;;  %4550 = vtanh.f32 %v2257_v61  ;;  %v1240_v55 = vmul.f32 0.7978846, %v1208_v10  ;;  %v2130_v14 = vmul.f32 %v5383_v7, %v5383_v7  ;;  %v4297_v31 = vld [vmem:[#allocation2 + $0x8c] sm:$0xf] }
 0x1aa   : > { %v858_v36 = vpack.c.bf16 %v826_v0, %v826_v0  ;;  %4552 = vtanh.f32 %v731_v11  ;;  %v5394_v4 = vadd.f32 %v5251_v34, %v526_v32  ;;  %v5397_v44 = vadd.f32 %v5307_v19, %v1035_v1  ;;  %v3990_v24 = vld [vmem:[#allocation2 + $0x60] sm:$0xf]  ;;  %v529_v11 = vpop.f32.mrf.mxu0  ;;  %v1038_v1 = vpop.f32.mrf.mxu1 }
 0x1ab   : > { %v1367_v21 = vpack.c.bf16 %v1335_v9, %v1335_v9  ;;  %4554 = vtanh.f32 %v1240_v55  ;;  %v1685_v46 = vmul.f32 0.044715, %v1653_v12  ;;  %v2162_v45 = vmul.f32 %v2130_v14, %v5383_v7  ;;  %v4295_v12 = vld [vmem:[#allocation2 + $0x74] sm:$0xf0] }
 0x1ac   : > { %v4549_v33 = vpop.eup %4548  ;;  %890 = vst [vmem:[#allocation2 + $0x150] sm:$0xf] %v858_v36  ;;  %v4015_v23 = vor.u32 %v4299_v26, %v4014_v51  ;;  %v4019_v22 = vor.u32 %v4297_v31, %v4016_v62  ;;  %v2097_v37 = vmul.f32 0.5, %v5355_v18  ;;  %v571_v38 = vmul.f32 0.5, %v5358_v30  ;;  %v3998_v36 = vld [vmem:[#allocation2 + $0x68] sm:$0xf] }
 0x1ad   : > { %1399 = vst [vmem:[#allocation2 + $0x154] sm:$0xf] %v1367_v21  ;;  %v1812_v53 = vadd.f32 1.0, %v4549_v33  ;;  %v604_v28 = vmul.f32 %v5394_v4, %v5394_v4  ;;  %v1717_v42 = vadd.f32 %v1685_v46, %v5379_v49  ;;  %v2194_v17 = vmul.f32 0.044715, %v2162_v45 }
 0x1ae   : > { %v1113_v35 = vmul.f32 %v5397_v44, %v5397_v44  ;;  %3201 = vmatpush.bf16.xpose.msrb.mxu2 %v4015_v23  ;;  %3250 = vmatpush.bf16.xpose.msrb.mxu3 %v4019_v22  ;;  %v3991_v59 = vor.u32 %v4294_v16, %v3990_v24  ;;  %v3995_v18 = vor.u32 %v4292_v41, %v3992_v27  ;;  %v1080_v43 = vmul.f32 0.5, %v5362_v3  ;;  %v4000_v24 = vld [vmem:[#allocation2 + $0x78] sm:$0xf0] }
 0x1af   : > { %v4551_v13 = vpop.eup %4550  ;;  %v1844_v15 = vmul.f32 %v1812_v53, %v1588_v40  ;;  %v636_v47 = vmul.f32 %v604_v28, %v5394_v4  ;;  %v5409_v30 = vadd.f32 %v5277_v58, %v1544_v52  ;;  %v1749_v25 = vmul.f32 0.7978846, %v1717_v42  ;;  %v4290_v52 = vld [vmem:[#allocation2 + $0x4c] sm:$0xf0]  ;;  %v4293_v28 = vld [vmem:[#allocation2 + $0x6c] sm:$0xf] }
 0x1b0   : > { %v4553_v39 = vpop.eup %4552  ;;  %v2321_v48 = vadd.f32 1.0, %v4551_v13  ;;  %v2226_v29 = vadd.f32 %v2194_v17, %v5383_v7  ;;  %v1145_v54 = vmul.f32 %v1113_v35, %v5397_v44  ;;  %3104 = vmatpush.bf16.xpose.msrb.mxu0 %v3991_v59  ;;  %3153 = vmatpush.bf16.xpose.msrb.mxu1 %v3995_v18  ;;  %v5418_v3 = vadd.f32 %v5285_v20, %v2053_v5  ;;  %v3976_v42 = vld [vmem:[#allocation2 + $0x50] sm:$0xf0]  ;;  %v3974_v13 = vld [vmem:[#allocation2 + $0x40] sm:$0xf] }
 0x1b1   : > { %v4555_v63 = vpop.eup %4554  ;;  %v1876_v6 = vpack.c.bf16 %v1844_v15, %v1844_v15  ;;  %v795_v50 = vadd.f32 1.0, %v4553_v39  ;;  %v668_v60 = vmul.f32 0.044715, %v636_v47  ;;  %4556 = vtanh.f32 %v1749_v25  ;;  %v1547_v15 = vpop.f32.mrf.mxu2 }
 0x1b2   : > { %v2353_v57 = vmul.f32 %v2321_v48, %v2097_v37  ;;  %v1304_v56 = vadd.f32 1.0, %v4555_v63  ;;  %v2258_v8 = vmul.f32 0.7978846, %v2226_v29  ;;  %v1177_v26 = vmul.f32 0.044715, %v1145_v54 }
 0x1b3   : > { %1908 = vst [vmem:[#allocation2 + $0x158] sm:$0xf] %v1876_v6  ;;  %v827_v61 = vmul.f32 %v795_v50, %v571_v38  ;;  %v700_v10 = vadd.f32 %v668_v60, %v5394_v4  ;;  %v1622_v0 = vmul.f32 %v5409_v30, %v5409_v30  ;;  %v1589_v21 = vmul.f32 0.5, %v5379_v49  ;;  %v4288_v48 = vld [vmem:[#allocation2 + $0x44] sm:$0xf]  ;;  %v2056_v6 = vpop.f32.mrf.mxu3 }
 0x1b4   : > { %v2385_v2 = vpack.c.bf16 %v2353_v57, %v2353_v57  ;;  %v1336_v32 = vmul.f32 %v1304_v56, %v1080_v43  ;;  %4558 = vtanh.f32 %v2258_v8  ;;  %v1209_v40 = vadd.f32 %v1177_v26, %v5397_v44 }
 0x1b5   : > { %v859_v62 = vpack.c.bf16 %v827_v61, %v827_v61  ;;  %v732_v9 = vmul.f32 0.7978846, %v700_v10  ;;  %v1654_v55 = vmul.f32 %v1622_v0, %v5409_v30  ;;  %v2131_v51 = vmul.f32 %v5418_v3, %v5418_v3 }
 0x1b6   : > { %2417 = vst [vmem:[#allocation2 + $0x15c] sm:$0xf] %v2385_v2  ;;  %v1368_v14 = vpack.c.bf16 %v1336_v32, %v1336_v32  ;;  %v5426_v31 = vadd.f32 %v5251_v34, %v529_v11  ;;  %v1241_v16 = vmul.f32 0.7978846, %v1209_v40  ;;  %v5429_v46 = vadd.f32 %v5307_v19, %v1038_v1  ;;  %v531_v32 = vpop.f32.mrf.mxu0  ;;  %v1040_v40 = vpop.f32.mrf.mxu1 }
 0x1b7   : > { %891 = vst [vmem:[#allocation2 + $0x160] sm:$0xf] %v859_v62  ;;  %4560 = vtanh.f32 %v732_v9  ;;  %v1686_v33 = vmul.f32 0.044715, %v1654_v55  ;;  %v4557_v45 = vpop.eup %4556  ;;  %v2098_v23 = vmul.f32 0.5, %v5383_v7  ;;  %v2163_v49 = vmul.f32 %v2131_v51, %v5418_v3 }
 0x1b8   : > { %1400 = vst [vmem:[#allocation2 + $0x164] sm:$0xf] %v1368_v14  ;;  %v605_v22 = vmul.f32 %v5426_v31, %v5426_v31  ;;  %v3999_v27 = vor.u32 %v4295_v12, %v3998_v36  ;;  %v1813_v53 = vadd.f32 1.0, %v4557_v45  ;;  %v572_v37 = vmul.f32 0.5, %v5394_v4 }
 0x1b9   : > { %4562 = vtanh.f32 %v1241_v16  ;;  %v1718_v38 = vadd.f32 %v1686_v33, %v5409_v30  ;;  %v2195_v35 = vmul.f32 0.044715, %v2163_v49  ;;  %v1114_v7 = vmul.f32 %v5429_v46, %v5429_v46  ;;  %v4286_v49 = vld [vmem:[#allocation2 + $0x2c] sm:$0xf0] }
 0x1ba   : > { %v4559_v17 = vpop.eup %4558  ;;  %v637_v59 = vmul.f32 %v605_v22, %v5426_v31  ;;  %3202 = vmatpush.bf16.xpose.msrb.mxu2 %v3999_v27  ;;  %v4003_v41 = vor.u32 %v4293_v28, %v4000_v24  ;;  %v1845_v47 = vmul.f32 %v1813_v53, %v1589_v21  ;;  %v3975_v4 = vor.u32 %v4290_v52, %v3974_v13  ;;  %v4289_v13 = vld [vmem:[#allocation2 + $0x4c] sm:$0xf] }
 0x1bb   : > { %v2322_v18 = vadd.f32 1.0, %v4559_v17  ;;  %v1750_v39 = vmul.f32 0.7978846, %v1718_v38  ;;  %v2227_v25 = vadd.f32 %v2195_v35, %v5418_v3  ;;  %v1146_v54 = vmul.f32 %v1114_v7, %v5429_v46  ;;  %v3982_v17 = vld [vmem:[#allocation2 + $0x48] sm:$0xf] }
 0x1bc   : > { %v669_v29 = vmul.f32 0.044715, %v637_v59  ;;  %3251 = vmatpush.bf16.xpose.msrb.mxu3 %v4003_v41  ;;  %v3979_v63 = vor.u32 %v4288_v48, %v3976_v42  ;;  %v1877_v43 = vpack.c.bf16 %v1845_v47, %v1845_v47  ;;  %3105 = vmatpush.bf16.xpose.msrb.mxu0 %v3975_v4  ;;  %v5443_v5 = vadd.f32 %v5277_v58, %v1547_v15  ;;  %v3958_v15 = vld [vmem:[#allocation2 + $0x20] sm:$0xf]  ;;  %v3960_v4 = vld [vmem:[#allocation2 + $0x30] sm:$0xf0]  ;;  %v1549_v48 = vpop.f32.mrf.mxu2 }
 0x1bd   : > { %v4561_v50 = vpop.eup %4560  ;;  %v2354_v60 = vmul.f32 %v2322_v18, %v2098_v23  ;;  %4564 = vtanh.f32 %v1750_v39  ;;  %v2259_v56 = vmul.f32 0.7978846, %v2227_v25  ;;  %v1178_v61 = vmul.f32 0.044715, %v1146_v54  ;;  %v4291_v23 = vld [vmem:[#allocation2 + $0x54] sm:$0xf0] }
 0x1be   : > { %v796_v57 = vadd.f32 1.0, %v4561_v50  ;;  %v701_v8 = vadd.f32 %v669_v29, %v5426_v31  ;;  %3154 = vmatpush.bf16.xpose.msrb.mxu1 %v3979_v63  ;;  %1909 = vst [vmem:[#allocation2 + $0x168] sm:$0xf] %v1877_v43  ;;  %v1081_v0 = vmul.f32 0.5, %v5397_v44  ;;  %v1623_v11 = vmul.f32 %v5443_v5, %v5443_v5  ;;  %v2058_v50 = vpop.f32.mrf.mxu3 }
 0x1bf   : > { %v4563_v10 = vpop.eup %4562  ;;  %v2386_v26 = vpack.c.bf16 %v2354_v60, %v2354_v60  ;;  %v5450_v2 = vadd.f32 %v5285_v20, %v2056_v6  ;;  %4566 = vtanh.f32 %v2259_v56  ;;  %v1590_v55 = vmul.f32 0.5, %v5409_v30  ;;  %v4284_v56 = vld [vmem:[#allocation2 + $0x24] sm:$0xf] }
 0x1c0   : > { %v828_v1 = vmul.f32 %v796_v57, %v572_v37  ;;  %v1305_v62 = vadd.f32 1.0, %v4563_v10  ;;  %v733_v9 = vmul.f32 0.7978846, %v701_v8  ;;  %v1210_v36 = vadd.f32 %v1178_v61, %v5429_v46  ;;  %v3984_v37 = vld [vmem:[#allocation2 + $0x58] sm:$0xf0] }
 0x1c1   : > { %2418 = vst [vmem:[#allocation2 + $0x16c] sm:$0xf] %v2386_v26  ;;  %v1655_v12 = vmul.f32 %v1623_v11, %v5443_v5  ;;  %v2132_v44 = vmul.f32 %v5450_v2, %v5450_v2  ;;  %v5458_v51 = vadd.f32 %v5251_v34, %v531_v32  ;;  %v5462_v30 = vadd.f32 %v5307_v19, %v1040_v40 }
 0x1c2   : > { %v860_v14 = vpack.c.bf16 %v828_v1, %v828_v1  ;;  %v1337_v21 = vmul.f32 %v1305_v62, %v1081_v0  ;;  %4568 = vtanh.f32 %v733_v9  ;;  %v1242_v16 = vmul.f32 0.7978846, %v1210_v36  ;;  %v534_v62 = vpop.f32.mrf.mxu0 }
 0x1c3   : > { %v4565_v24 = vpop.eup %4564  ;;  %v1687_v33 = vmul.f32 0.044715, %v1655_v12  ;;  %v2164_v45 = vmul.f32 %v2132_v44, %v5450_v2  ;;  %v2099_v52 = vmul.f32 0.5, %v5418_v3  ;;  %v606_v53 = vmul.f32 %v5458_v51, %v5458_v51  ;;  %v1043_v12 = vpop.f32.mrf.mxu1  ;;  %v4287_v44 = vld [vmem:[#allocation2 + $0x34] sm:$0xf0] }
 0x1c4   : > { %892 = vst [vmem:[#allocation2 + $0x170] sm:$0xf] %v860_v14  ;;  %v1369_v22 = vpack.c.bf16 %v1337_v21, %v1337_v21  ;;  %v1814_v27 = vadd.f32 1.0, %v4565_v24  ;;  %v573_v38 = vmul.f32 0.5, %v5426_v31  ;;  %4570 = vtanh.f32 %v1242_v16 }
 0x1c5   : > { %v1719_v28 = vadd.f32 %v1687_v33, %v5443_v5  ;;  %v2196_v42 = vmul.f32 0.044715, %v2164_v45  ;;  %v4567_v35 = vpop.eup %4566  ;;  %v638_v7 = vmul.f32 %v606_v53, %v5458_v51  ;;  %v1115_v41 = vmul.f32 %v5462_v30, %v5462_v30  ;;  %v3968_v53 = vld [vmem:[#allocation2 + $0x38] sm:$0xf0] }
 0x1c6   : > { %1401 = vst [vmem:[#allocation2 + $0x174] sm:$0xf] %v1369_v22  ;;  %v1846_v59 = vmul.f32 %v1814_v27, %v1590_v55  ;;  %v3983_v3 = vor.u32 %v4291_v23, %v3982_v17  ;;  %v2323_v47 = vadd.f32 1.0, %v4567_v35  ;;  %v3987_v39 = vor.u32 %v4289_v13, %v3984_v37  ;;  %v3966_v23 = vld [vmem:[#allocation2 + $0x28] sm:$0xf] }
 0x1c7   : > { %v1751_v18 = vmul.f32 0.7978846, %v1719_v28  ;;  %v2228_v31 = vadd.f32 %v2196_v42, %v5450_v2  ;;  %v670_v54 = vmul.f32 0.044715, %v638_v7  ;;  %v1147_v63 = vmul.f32 %v1115_v41, %v5462_v30  ;;  %v4282_v37 = vld [vmem:[#allocation2 + $0xc] sm:$0xf0] }
 0x1c8   : > { %v4569_v25 = vpop.eup %4568  ;;  %v1878_v29 = vpack.c.bf16 %v1846_v59, %v1846_v59  ;;  %3203 = vmatpush.bf16.xpose.msrb.mxu2 %v3983_v3  ;;  %v3959_v6 = vor.u32 %v4286_v49, %v3958_v15  ;;  %v2355_v43 = vmul.f32 %v2323_v47, %v2099_v52  ;;  %3252 = vmatpush.bf16.xpose.msrb.mxu3 %v3987_v39  ;;  %v1082_v9 = vmul.f32 0.5, %v5429_v46  ;;  %v3944_v17 = vld [vmem:[#allocation2 + $0x10] sm:$0xf0] }
 0x1c9   : > { %v797_v60 = vadd.f32 1.0, %v4569_v25  ;;  %4572 = vtanh.f32 %v1751_v18  ;;  %v2260_v57 = vmul.f32 0.7978846, %v2228_v31  ;;  %v702_v8 = vadd.f32 %v670_v54, %v5458_v51  ;;  %v1552_v31 = vpop.f32.mrf.mxu2  ;;  %v4280_v25 = vld [vmem:[#allocation2 + $0x4] sm:$0xf] }
 0x1ca   : > { %1910 = vst [vmem:[#allocation2 + $0x178] sm:$0xf] %v1878_v29  ;;  %v1179_v61 = vmul.f32 0.044715, %v1147_v63  ;;  %3106 = vmatpush.bf16.xpose.msrb.mxu0 %v3959_v6  ;;  %v3963_v10 = vor.u32 %v4284_v56, %v3960_v4  ;;  %v5476_v26 = vadd.f32 %v5277_v58, %v1549_v48  ;;  %v4571_v0 = vpop.eup %4570  ;;  %v2387_v11 = vpack.c.bf16 %v2355_v43, %v2355_v43  ;;  %v2061_v29 = vpop.f32.mrf.mxu3 }
 0x1cb   : > { %v829_v32 = vmul.f32 %v797_v60, %v573_v38  ;;  %4574 = vtanh.f32 %v2260_v57  ;;  %v5479_v1 = vadd.f32 %v5285_v20, %v2058_v50  ;;  %v1306_v40 = vadd.f32 1.0, %v4571_v0 }
 0x1cc   : > { %v734_v55 = vmul.f32 0.7978846, %v702_v8  ;;  %v1211_v36 = vadd.f32 %v1179_v61, %v5462_v30  ;;  %3155 = vmatpush.bf16.xpose.msrb.mxu1 %v3963_v10  ;;  %2419 = vst [vmem:[#allocation2 + $0x17c] sm:$0xf] %v2387_v11  ;;  %v1591_v21 = vmul.f32 0.5, %v5443_v5  ;;  %v1624_v24 = vmul.f32 %v5476_v26, %v5476_v26 }
 0x1cd   : > { %v861_v14 = vpack.c.bf16 %v829_v32, %v829_v32  ;;  %v2133_v16 = vmul.f32 %v5479_v1, %v5479_v1  ;;  %v1338_v33 = vmul.f32 %v1306_v40, %v1082_v9  ;;  %v5489_v45 = vadd.f32 %v5251_v34, %v534_v62  ;;  %v4285_v34 = vld [vmem:[#allocation2 + $0x2c] sm:$0xf] }
 0x1ce   : > { %4576 = vtanh.f32 %v734_v55  ;;  %v1243_v46 = vmul.f32 0.7978846, %v1211_v36  ;;  %v1656_v22 = vmul.f32 %v1624_v24, %v5476_v26  ;;  %v5494_v5 = vadd.f32 %v5307_v19, %v1043_v12  ;;  %v536_v55 = vpop.f32.mrf.mxu0 }
 0x1cf   : > { %v4573_v49 = vpop.eup %4572  ;;  %893 = vst [vmem:[#allocation2 + $0x180] sm:$0xf] %v861_v14  ;;  %v2165_v27 = vmul.f32 %v2133_v16, %v5479_v1  ;;  %v3967_v52 = vor.u32 %v4287_v44, %v3966_v23  ;;  %v1370_v38 = vpack.c.bf16 %v1338_v33, %v1338_v33  ;;  %v2100_v42 = vmul.f32 0.5, %v5450_v2  ;;  %v3942_v2 = vld [vmem:[#allocation2] sm:$0xf]  ;;  %v1045_v44 = vpop.f32.mrf.mxu1 }
 0x1d0   : > { %v1815_v28 = vadd.f32 1.0, %v4573_v49  ;;  %4578 = vtanh.f32 %v1243_v46  ;;  %v574_v59 = vmul.f32 0.5, %v5458_v51  ;;  %v1688_v7 = vmul.f32 0.044715, %v1656_v22  ;;  %v4283_v14 = vld [vmem:[#allocation2 + $0x14] sm:$0xf0] }
 0x1d1   : > { %v4575_v35 = vpop.eup %4574  ;;  %v2197_v41 = vmul.f32 0.044715, %v2165_v27  ;;  %v607_v3 = vmul.f32 %v5489_v45, %v5489_v45  ;;  %3204 = vmatpush.bf16.xpose.msrb.mxu2 %v3967_v52  ;;  %1402 = vst [vmem:[#allocation2 + $0x184] sm:$0xf] %v1370_v38  ;;  %v1116_v47 = vmul.f32 %v5494_v5, %v5494_v5  ;;  %v3971_v18 = vor.u32 %v4285_v34, %v3968_v53  ;;  %v5524_v23 = vld [vmem:[%s6183_s2] ss:$0 sm:$0xff] }
 0x1d2   : > { %v1847_v13 = vmul.f32 %v1815_v28, %v1591_v21  ;;  %v2324_v15 = vadd.f32 1.0, %v4575_v35  ;;  %v1720_v39 = vadd.f32 %v1688_v7, %v5476_v26  ;;  %v3943_v48 = vor.u32 %v4282_v37, %v3942_v2  ;;  %v3950_v22 = vld [vmem:[#allocation2 + $0x8] sm:$0xf]  ;;  %v3952_v37 = vld [vmem:[#allocation2 + $0x18] sm:$0xf0] }
 0x1d3   : > { %v2229_v4 = vadd.f32 %v2197_v41, %v5479_v1  ;;  %v639_v51 = vmul.f32 %v607_v3, %v5489_v45  ;;  %v1148_v50 = vmul.f32 %v1116_v47, %v5494_v5  ;;  %3253 = vmatpush.bf16.xpose.msrb.mxu3 %v3971_v18  ;;  %v3947_v43 = vor.u32 %v4280_v25, %v3944_v17  ;;  %v4281_v34 = vld [vmem:[#allocation2 + $0xc] sm:$0xf]  ;;  %v1554_v17 = vpop.f32.mrf.mxu2  ;;  %v2063_v47 = vpop.f32.mrf.mxu3 }
 0x1d4   : > { %v4577_v54 = vpop.eup %4576  ;;  %v1879_v63 = vpack.c.bf16 %v1847_v13, %v1847_v13  ;;  %v2356_v6 = vmul.f32 %v2324_v15, %v2100_v42  ;;  %v1752_v57 = vmul.f32 0.7978846, %v1720_v39  ;;  %3107 = vmatpush.bf16.xpose.msrb.mxu0 %v3943_v48  ;;  %v5507_v8 = vadd.f32 %v5277_v58, %v1552_v31 }
 0x1d5   : > { %v798_v60 = vadd.f32 1.0, %v4577_v54  ;;  %v2261_v56 = vmul.f32 0.7978846, %v2229_v4  ;;  %v671_v0 = vmul.f32 0.044715, %v639_v51  ;;  %3156 = vmatpush.bf16.xpose.msrb.mxu1 %v3947_v43  ;;  %v5510_v32 = vadd.f32 %v5285_v20, %v2061_v29 }
 0x1d6   : > { %v4579_v61 = vpop.eup %4578  ;;  %1911 = vst [vmem:[#allocation2 + $0x188] sm:$0xf] %v1879_v63  ;;  %v2388_v10 = vpack.c.bf16 %v2356_v6, %v2356_v6  ;;  %v1180_v11 = vmul.f32 0.044715, %v1148_v50  ;;  %v1083_v9 = vmul.f32 0.5, %v5462_v30  ;;  %4580 = vtanh.f32 %v1752_v57 }
 0x1d7   : > { %v830_v62 = vmul.f32 %v798_v60, %v574_v59  ;;  %v1307_v40 = vadd.f32 1.0, %v4579_v61  ;;  %4582 = vtanh.f32 %v2261_v56  ;;  %v703_v58 = vadd.f32 %v671_v0, %v5489_v45  ;;  %v5555_v6 = vld [vmem:[%s6183_s2 + $0x3] ss:$0 sm:$0xff]  ;;  %v539_v56 = vpop.f32.mrf.mxu0 }
 0x1d8   : > { %2420 = vst [vmem:[#allocation2 + $0x18c] sm:$0xf] %v2388_v10  ;;  %v1212_v36 = vadd.f32 %v1180_v11, %v5494_v5  ;;  %v1625_v12 = vmul.f32 %v5507_v8, %v5507_v8  ;;  %v1592_v24 = vmul.f32 0.5, %v5476_v26  ;;  %v2134_v30 = vmul.f32 %v5510_v32, %v5510_v32 }
 0x1d9   : > { %v862_v21 = vpack.c.bf16 %v830_v62, %v830_v62  ;;  %v1339_v20 = vmul.f32 %v1307_v40, %v1083_v9  ;;  %v735_v16 = vmul.f32 0.7978846, %v703_v58  ;;  %v5527_v49 = vadd.f32 %v5524_v23, %v536_v55  ;;  %v1048_v62 = vpop.f32.mrf.mxu1 }
 0x1da   : > { %v1244_v33 = vmul.f32 0.7978846, %v1212_v36  ;;  %v1657_v46 = vmul.f32 %v1625_v12, %v5507_v8  ;;  %v2166_v26 = vmul.f32 %v2134_v30, %v5510_v32  ;;  %v5531_v52 = vadd.f32 %v5307_v19, %v1045_v44 }
 0x1db   : > { %894 = vst [vmem:[#allocation2 + $0x190] sm:$0xf] %v862_v21  ;;  %v1371_v27 = vpack.c.bf16 %v1339_v20, %v1339_v20  ;;  %v3951_v53 = vor.u32 %v4283_v14, %v3950_v22  ;;  %v2101_v38 = vmul.f32 0.5, %v5479_v1  ;;  %4584 = vtanh.f32 %v735_v16  ;;  %v1557_v30 = vpop.f32.mrf.mxu2 }
 0x1dc   : > { %v1689_v28 = vmul.f32 0.044715, %v1657_v46  ;;  %v608_v42 = vmul.f32 %v5527_v49, %v5527_v49  ;;  %v4581_v35 = vpop.eup %4580  ;;  %v575_v59 = vmul.f32 0.5, %v5489_v45  ;;  %4586 = vtanh.f32 %v1244_v33  ;;  %v5546_v45 = vld [vmem:[%s6183_s2 + $0x2] ss:$0 sm:$0xff] }
 0x1dd   : > { %1403 = vst [vmem:[#allocation2 + $0x194] sm:$0xf] %v1371_v27  ;;  %v2198_v7 = vmul.f32 0.044715, %v2166_v26  ;;  %v1117_v19 = vmul.f32 %v5531_v52, %v5531_v52  ;;  %3205 = vmatpush.bf16.xpose.msrb.mxu2 %v3951_v53  ;;  %v4583_v41 = vpop.eup %4582  ;;  %v1816_v3 = vadd.f32 1.0, %v4581_v35  ;;  %v3955_v15 = vor.u32 %v4281_v34, %v3952_v37 }
 0x1de   : > { %v1721_v1 = vadd.f32 %v1689_v28, %v5507_v8  ;;  %v640_v13 = vmul.f32 %v608_v42, %v5527_v49  ;;  %v2325_v18 = vadd.f32 1.0, %v4583_v41  ;;  %v5549_v39 = vadd.f32 %v5546_v45, %v1554_v17 }
 0x1df   : > { %v2230_v2 = vadd.f32 %v2198_v7, %v5510_v32  ;;  %v1149_v31 = vmul.f32 %v1117_v19, %v5531_v52  ;;  %v1848_v4 = vmul.f32 %v1816_v3, %v1592_v24  ;;  %v1084_v51 = vmul.f32 0.5, %v5494_v5  ;;  %3254 = vmatpush.bf16.xpose.msrb.mxu3 %v3955_v15  ;;  %v5574_v24 = vld [vmem:[%s6183_s2 + $0x1] ss:$0 sm:$0xff] }
 0x1e0   : > { %v1753_v48 = vmul.f32 0.7978846, %v1721_v1  ;;  %v672_v25 = vmul.f32 0.044715, %v640_v13  ;;  %v2357_v29 = vmul.f32 %v2325_v18, %v2101_v38  ;;  %v5558_v50 = vadd.f32 %v5555_v6, %v2063_v47  ;;  %v2066_v38 = vpop.f32.mrf.mxu3 }
 0x1e1   : > { %v2262_v54 = vmul.f32 0.7978846, %v2230_v2  ;;  %v1181_v63 = vmul.f32 0.044715, %v1149_v31  ;;  %v4585_v43 = vpop.eup %4584  ;;  %v1880_v60 = vpack.c.bf16 %v1848_v4, %v1848_v4  ;;  %v1626_v5 = vmul.f32 %v5549_v39, %v5549_v39 }
 0x1e2   : > { %4588 = vtanh.f32 %v1753_v48  ;;  %v704_v57 = vadd.f32 %v672_v25, %v5527_v49  ;;  %v4587_v61 = vpop.eup %4586  ;;  %v2389_v10 = vpack.c.bf16 %v2357_v29, %v2357_v29  ;;  %v799_v0 = vadd.f32 1.0, %v4585_v43  ;;  %v1050_v43 = vpop.f32.mrf.mxu1 }
 0x1e3   : > { %4590 = vtanh.f32 %v2262_v54  ;;  %v1213_v11 = vadd.f32 %v1181_v63, %v5531_v52  ;;  %1912 = vst [vmem:[#allocation2 + $0x198] sm:$0xf] %v1880_v60  ;;  %v1308_v9 = vadd.f32 1.0, %v4587_v61  ;;  %v1593_v40 = vmul.f32 0.5, %v5507_v8  ;;  %v541_v63 = vpop.f32.mrf.mxu0 }
 0x1e4   : > { %v736_v55 = vmul.f32 0.7978846, %v704_v57  ;;  %v1658_v58 = vmul.f32 %v1626_v5, %v5549_v39  ;;  %2421 = vst [vmem:[#allocation2 + $0x19c] sm:$0xf] %v2389_v10  ;;  %v831_v36 = vmul.f32 %v799_v0, %v575_v59  ;;  %v2135_v44 = vmul.f32 %v5558_v50, %v5558_v50 }
 0x1e5   : > { %v1245_v12 = vmul.f32 0.7978846, %v1213_v11  ;;  %v5569_v14 = vadd.f32 %v5524_v23, %v539_v56  ;;  %v1340_v21 = vmul.f32 %v1308_v9, %v1084_v51  ;;  %v5577_v8 = vadd.f32 %v5574_v24, %v1048_v62 }
 0x1e6   : > { %4592 = vtanh.f32 %v736_v55  ;;  %v1690_v20 = vmul.f32 0.044715, %v1658_v58  ;;  %v863_v16 = vpack.c.bf16 %v831_v36, %v831_v36  ;;  %v2102_v33 = vmul.f32 0.5, %v5510_v32  ;;  %v1559_v55 = vpop.f32.mrf.mxu2 }
 0x1e7   : > { %4594 = vtanh.f32 %v1245_v12  ;;  %v2167_v46 = vmul.f32 %v2135_v44, %v5558_v50  ;;  %v1372_v27 = vpack.c.bf16 %v1340_v21, %v1340_v21  ;;  %v576_v26 = vmul.f32 0.5, %v5527_v49 }
 0x1e8   : > { %v4589_v22 = vpop.eup %4588  ;;  %v1722_v53 = vadd.f32 %v1690_v20, %v5549_v39  ;;  %v609_v37 = vmul.f32 %v5569_v14, %v5569_v14  ;;  %895 = vst [vmem:[#allocation2 + $0x1a0] sm:$0xf] %v863_v16  ;;  %v1118_v32 = vmul.f32 %v5577_v8, %v5577_v8  ;;  %v5588_v17 = vadd.f32 %v5546_v45, %v1557_v30  ;;  %v2068_v44 = vpop.f32.mrf.mxu3 }
 0x1e9   : > { %v4591_v28 = vpop.eup %4590  ;;  %v1817_v42 = vadd.f32 1.0, %v4589_v22  ;;  %v2199_v34 = vmul.f32 0.044715, %v2167_v46  ;;  %1404 = vst [vmem:[#allocation2 + $0x1a4] sm:$0xf] %v1372_v27  ;;  %v1085_v49 = vmul.f32 0.5, %v5531_v52  ;;  %v5595_v1 = vadd.f32 %v5555_v6, %v2066_v38 }
 0x1ea   : > { %v2326_v35 = vadd.f32 1.0, %v4591_v28  ;;  %v1754_v59 = vmul.f32 0.7978846, %v1722_v53  ;;  %v641_v7 = vmul.f32 %v609_v37, %v5569_v14  ;;  %v1150_v3 = vmul.f32 %v1118_v32, %v5577_v8 }
 0x1eb   : > { %v1849_v19 = vmul.f32 %v1817_v42, %v1593_v40  ;;  %v2231_v41 = vadd.f32 %v2199_v34, %v5558_v50  ;;  %v1627_v18 = vmul.f32 %v5588_v17, %v5588_v17  ;;  %v1594_v57 = vmul.f32 0.5, %v5549_v39 }
 0x1ec   : > { %v4593_v13 = vpop.eup %4592  ;;  %v2358_v15 = vmul.f32 %v2326_v35, %v2102_v33  ;;  %4596 = vtanh.f32 %v1754_v59  ;;  %v673_v47 = vmul.f32 0.044715, %v641_v7  ;;  %v1182_v51 = vmul.f32 0.044715, %v1150_v3 }
 0x1ed   : > { %v4595_v2 = vpop.eup %4594  ;;  %v1881_v52 = vpack.c.bf16 %v1849_v19, %v1849_v19  ;;  %v800_v31 = vadd.f32 1.0, %v4593_v13  ;;  %v2263_v4 = vmul.f32 0.7978846, %v2231_v41  ;;  %v1659_v54 = vmul.f32 %v1627_v18, %v5588_v17  ;;  %v544_v18 = vpop.f32.mrf.mxu0 }
 0x1ee   : > { %v2390_v48 = vpack.c.bf16 %v2358_v15, %v2358_v15  ;;  %v1309_v25 = vadd.f32 1.0, %v4595_v2  ;;  %v705_v29 = vadd.f32 %v673_v47, %v5569_v14  ;;  %v1214_v5 = vadd.f32 %v1182_v51, %v5577_v8  ;;  %v1053_v2 = vpop.f32.mrf.mxu1 }
 0x1ef   : > { %1913 = vst [vmem:[#allocation2 + $0x1a8] sm:$0xf] %v1881_v52  ;;  %v832_v60 = vmul.f32 %v800_v31, %v576_v26  ;;  %4598 = vtanh.f32 %v2263_v4  ;;  %v1691_v10 = vmul.f32 0.044715, %v1659_v54  ;;  %v2136_v0 = vmul.f32 %v5595_v1, %v5595_v1 }
 0x1f0   : > { %2422 = vst [vmem:[#allocation2 + $0x1ac] sm:$0xf] %v2390_v48  ;;  %v1341_v56 = vmul.f32 %v1309_v25, %v1085_v49  ;;  %v737_v61 = vmul.f32 0.7978846, %v705_v29  ;;  %v1246_v62 = vmul.f32 0.7978846, %v1214_v5  ;;  %v5606_v9 = vadd.f32 %v5524_v23, %v541_v63 }
 0x1f1   : > { %v864_v11 = vpack.c.bf16 %v832_v60, %v832_v60  ;;  %v5609_v40 = vadd.f32 %v5574_v24, %v1050_v43  ;;  %v1723_v36 = vadd.f32 %v1691_v10, %v5588_v17  ;;  %v2168_v12 = vmul.f32 %v2136_v0, %v5595_v1  ;;  %v2071_v10 = vpop.f32.mrf.mxu3 }
 0x1f2   : > { %v4597_v39 = vpop.eup %4596  ;;  %v1373_v58 = vpack.c.bf16 %v1341_v56, %v1341_v56  ;;  %4600 = vtanh.f32 %v737_v61  ;;  %v2103_v20 = vmul.f32 0.5, %v5558_v50  ;;  %v610_v30 = vmul.f32 %v5606_v9, %v5606_v9  ;;  %v1562_v61 = vpop.f32.mrf.mxu2 }
 0x1f3   : > { %896 = vst [vmem:[#allocation2 + $0x1b0] sm:$0xf] %v864_v11  ;;  %v1818_v21 = vadd.f32 1.0, %v4597_v39  ;;  %4602 = vtanh.f32 %v1246_v62  ;;  %v1755_v16 = vmul.f32 0.7978846, %v1723_v36  ;;  %v1119_v46 = vmul.f32 %v5609_v40, %v5609_v40 }
 0x1f4   : > { %1405 = vst [vmem:[#allocation2 + $0x1b4] sm:$0xf] %v1373_v58  ;;  %v2200_v33 = vmul.f32 0.044715, %v2168_v12  ;;  %v5619_v22 = vadd.f32 %v5546_v45, %v1559_v55  ;;  %v577_v53 = vmul.f32 0.5, %v5569_v14  ;;  %v642_v37 = vmul.f32 %v610_v30, %v5606_v9 }
 0x1f5   : > { %v4599_v27 = vpop.eup %4598  ;;  %v1850_v26 = vmul.f32 %v1818_v21, %v1594_v57  ;;  %v5624_v50 = vadd.f32 %v5555_v6, %v2068_v44  ;;  %4604 = vtanh.f32 %v1755_v16  ;;  %v1151_v42 = vmul.f32 %v1119_v46, %v5609_v40 }
 0x1f6   : > { %v2327_v38 = vadd.f32 1.0, %v4599_v27  ;;  %v2232_v28 = vadd.f32 %v2200_v33, %v5595_v1  ;;  %v1086_v32 = vmul.f32 0.5, %v5577_v8  ;;  %v674_v35 = vmul.f32 0.044715, %v642_v37 }
 0x1f7   : > { %v1882_v34 = vpack.c.bf16 %v1850_v26, %v1850_v26  ;;  %v1628_v49 = vmul.f32 %v5619_v22, %v5619_v22  ;;  %v1595_v7 = vmul.f32 0.5, %v5588_v17  ;;  %v1183_v41 = vmul.f32 0.044715, %v1151_v42 }
 0x1f8   : > { %v4601_v59 = vpop.eup %4600  ;;  %v2359_v14 = vmul.f32 %v2327_v38, %v2103_v20  ;;  %v2264_v19 = vmul.f32 0.7978846, %v2232_v28  ;;  %v706_v15 = vadd.f32 %v674_v35, %v5606_v9  ;;  %v2137_v8 = vmul.f32 %v5624_v50, %v5624_v50 }
 0x1f9   : > { %v4603_v3 = vpop.eup %4602  ;;  %1914 = vst [vmem:[#allocation2 + $0x1b8] sm:$0xf] %v1882_v34  ;;  %v801_v13 = vadd.f32 1.0, %v4601_v59  ;;  %v1660_v47 = vmul.f32 %v1628_v49, %v5619_v22  ;;  %v1215_v4 = vadd.f32 %v1183_v41, %v5609_v40  ;;  %v5639_v43 = vadd.f32 %v5524_v23, %v544_v18  ;;  %v546_v34 = vpop.f32.mrf.mxu0 }
 0x1fa   : > { %v2391_v52 = vpack.c.bf16 %v2359_v14, %v2359_v14  ;;  %v1310_v31 = vadd.f32 1.0, %v4603_v3  ;;  %4606 = vtanh.f32 %v2264_v19  ;;  %v738_v51 = vmul.f32 0.7978846, %v706_v15  ;;  %v1055_v59 = vpop.f32.mrf.mxu1 }
 0x1fb   : > { %v833_v17 = vmul.f32 %v801_v13, %v577_v53  ;;  %v1692_v48 = vmul.f32 0.044715, %v1660_v47  ;;  %v2169_v25 = vmul.f32 %v2137_v8, %v5624_v50  ;;  %v4605_v29 = vpop.eup %4604  ;;  %v1247_v63 = vmul.f32 0.7978846, %v1215_v4 }
 0x1fc   : > { %2423 = vst [vmem:[#allocation2 + $0x1bc] sm:$0xf] %v2391_v52  ;;  %v1342_v54 = vmul.f32 %v1310_v31, %v1086_v32  ;;  %v5642_v60 = vadd.f32 %v5574_v24, %v1053_v2  ;;  %v1819_v5 = vadd.f32 1.0, %v4605_v29  ;;  %4608 = vtanh.f32 %v738_v51  ;;  %v1564_v29 = vpop.f32.mrf.mxu2 }
 0x1fd   : > { %v865_v57 = vpack.c.bf16 %v833_v17, %v833_v17  ;;  %v1724_v56 = vadd.f32 %v1692_v48, %v5619_v22  ;;  %v2104_v11 = vmul.f32 0.5, %v5595_v1  ;;  %4610 = vtanh.f32 %v1247_v63 }
 0x1fe   : > { %v1374_v0 = vpack.c.bf16 %v1342_v54, %v1342_v54  ;;  %v2201_v62 = vmul.f32 0.044715, %v2169_v25  ;;  %v1851_v55 = vmul.f32 %v1819_v5, %v1595_v7  ;;  %v578_v39 = vmul.f32 0.5, %v5606_v9 }
 0x1ff   : > { %897 = vst [vmem:[#allocation2 + $0x1c0] sm:$0xf] %v865_v57  ;;  %v1756_v58 = vmul.f32 0.7978846, %v1724_v56  ;;  %v611_v36 = vmul.f32 %v5639_v43, %v5639_v43  ;;  %v1120_v21 = vmul.f32 %v5642_v60, %v5642_v60  ;;  %v5653_v20 = vadd.f32 %v5546_v45, %v1562_v61 }
 0x200   : > { %v4607_v12 = vpop.eup %4606  ;;  %1406 = vst [vmem:[#allocation2 + $0x1c4] sm:$0xf] %v1374_v0  ;;  %v2233_v44 = vadd.f32 %v2201_v62, %v5624_v50  ;;  %v5656_v1 = vadd.f32 %v5555_v6, %v2071_v10  ;;  %v1883_v30 = vpack.c.bf16 %v1851_v55, %v1851_v55  ;;  %v1087_v33 = vmul.f32 0.5, %v5609_v40 }
 0x201   : > { %v2328_v16 = vadd.f32 1.0, %v4607_v12  ;;  %4612 = vtanh.f32 %v1756_v58  ;;  %v643_v9 = vmul.f32 %v611_v36, %v5639_v43  ;;  %v1152_v27 = vmul.f32 %v1120_v21, %v5642_v60 }
 0x202   : > { %v2265_v46 = vmul.f32 0.7978846, %v2233_v44  ;;  %v1629_v26 = vmul.f32 %v5653_v20, %v5653_v20  ;;  %v4609_v53 = vpop.eup %4608  ;;  %1915 = vst [vmem:[#allocation2 + $0x1c8] sm:$0xf] %v1883_v30  ;;  %v1596_v38 = vmul.f32 0.5, %v5619_v22  ;;  %v2138_v42 = vmul.f32 %v5656_v1, %v5656_v1 }
 0x203   : > { %v2360_v37 = vmul.f32 %v2328_v16, %v2104_v11  ;;  %v675_v28 = vmul.f32 0.044715, %v643_v9  ;;  %v4611_v32 = vpop.eup %4610  ;;  %v802_v35 = vadd.f32 1.0, %v4609_v53  ;;  %v1184_v40 = vmul.f32 0.044715, %v1152_v27 }
 0x204   : > { %4614 = vtanh.f32 %v2265_v46  ;;  %v1661_v49 = vmul.f32 %v1629_v26, %v5653_v20  ;;  %v1311_v7 = vadd.f32 1.0, %v4611_v32  ;;  %v2170_v41 = vmul.f32 %v2138_v42, %v5656_v1 }
 0x205   : > { %v2392_v14 = vpack.c.bf16 %v2360_v37, %v2360_v37  ;;  %v707_v19 = vadd.f32 %v675_v28, %v5639_v43  ;;  %v834_v3 = vmul.f32 %v802_v35, %v578_v39  ;;  %v1216_v22 = vadd.f32 %v1184_v40, %v5642_v60 }
 0x206   : > { %v1693_v13 = vmul.f32 0.044715, %v1661_v49  ;;  %v5671_v15 = vadd.f32 %v5524_v23, %v546_v34  ;;  %v1343_v8 = vmul.f32 %v1311_v7, %v1087_v33  ;;  %v2202_v2 = vmul.f32 0.044715, %v2170_v41 }
 0x207   : > { %v4613_v47 = vpop.eup %4612  ;;  %2424 = vst [vmem:[#allocation2 + $0x1cc] sm:$0xf] %v2392_v14  ;;  %v739_v18 = vmul.f32 0.7978846, %v707_v19  ;;  %v5674_v52 = vadd.f32 %v5574_v24, %v1055_v59  ;;  %v866_v31 = vpack.c.bf16 %v834_v3, %v834_v3  ;;  %v1248_v17 = vmul.f32 0.7978846, %v1216_v22  ;;  %v2073_v24 = vpop.f32.mrf.mxu3 }
 0x208   : > { %v1820_v4 = vadd.f32 1.0, %v4613_v47  ;;  %v1725_v51 = vadd.f32 %v1693_v13, %v5653_v20  ;;  %v1375_v48 = vpack.c.bf16 %v1343_v8, %v1343_v8  ;;  %v2234_v25 = vadd.f32 %v2202_v2, %v5656_v1 }
 0x209   : > { %4616 = vtanh.f32 %v739_v18  ;;  %898 = vst [vmem:[#allocation2 + $0x1d0] sm:$0xf] %v866_v31  ;;  %v612_v57 = vmul.f32 %v5671_v15, %v5671_v15  ;;  %v2105_v5 = vmul.f32 0.5, %v5624_v50  ;;  %v1121_v10 = vmul.f32 %v5674_v52, %v5674_v52 }
 0x20a   : > { %v4615_v23 = vpop.eup %4614  ;;  %v1852_v54 = vmul.f32 %v1820_v4, %v1596_v38  ;;  %4618 = vtanh.f32 %v1248_v17  ;;  %v1757_v63 = vmul.f32 0.7978846, %v1725_v51  ;;  %1407 = vst [vmem:[#allocation2 + $0x1d4] sm:$0xf] %v1375_v48  ;;  %v2266_v61 = vmul.f32 0.7978846, %v2234_v25 }
 0x20b   : > { %v2329_v56 = vadd.f32 1.0, %v4615_v23  ;;  %v644_v11 = vmul.f32 %v612_v57, %v5671_v15  ;;  %v5685_v62 = vadd.f32 %v5546_v45, %v1564_v29  ;;  %v1153_v39 = vmul.f32 %v1121_v10, %v5674_v52 }
 0x20c   : > { %v1884_v0 = vpack.c.bf16 %v1852_v54, %v1852_v54  ;;  %4620 = vtanh.f32 %v1757_v63  ;;  %v2074_v58 = vadd.f32 %v5555_v6, %v2073_v24  ;;  %v579_v21 = vmul.f32 0.5, %v5639_v43 }
 0x20d   : > { %v2361_v55 = vmul.f32 %v2329_v56, %v2105_v5  ;;  %4622 = vtanh.f32 %v2266_v61  ;;  %v676_v50 = vmul.f32 0.044715, %v644_v11  ;;  %v1630_v36 = vmul.f32 %v5685_v62, %v5685_v62 }
 0x20e   : > { %1916 = vst [vmem:[#allocation2 + $0x1d8] sm:$0xf] %v1884_v0  ;;  %v1185_v30 = vmul.f32 0.044715, %v1153_v39  ;;  %v2139_v16 = vmul.f32 %v2074_v58, %v2074_v58  ;;  %v1088_v33 = vmul.f32 0.5, %v5642_v60  ;;  %v1597_v26 = vmul.f32 0.5, %v5653_v20 }
 0x20f   : > { %v4617_v12 = vpop.eup %4616  ;;  %v2393_v44 = vpack.c.bf16 %v2361_v55, %v2361_v55  ;;  %v708_v46 = vadd.f32 %v676_v50, %v5671_v15  ;;  %v1662_v27 = vmul.f32 %v1630_v36, %v5685_v62  ;;  %v2106_v43 = vmul.f32 0.5, %v5656_v1 }
 0x210   : > { %v4619_v9 = vpop.eup %4618  ;;  %v803_v45 = vadd.f32 1.0, %v4617_v12  ;;  %v1217_v53 = vadd.f32 %v1185_v30, %v5674_v52  ;;  %v2171_v37 = vmul.f32 %v2139_v16, %v2074_v58  ;;  %v580_v2 = vmul.f32 0.5, %v5671_v15  ;;  %v4338_v30 = vld [vmem:[#allocation2 + $0x1cc] sm:$0xf0] }
 0x211   : > { %2425 = vst [vmem:[#allocation2 + $0x1dc] sm:$0xf] %v2393_v44  ;;  %v1312_v6 = vadd.f32 1.0, %v4619_v9  ;;  %v740_v42 = vmul.f32 0.7978846, %v708_v46  ;;  %v1089_v4 = vmul.f32 0.5, %v5674_v52 }
 0x212   : > { %v4621_v38 = vpop.eup %4620  ;;  %v835_v28 = vmul.f32 %v803_v45, %v579_v21  ;;  %v1694_v34 = vmul.f32 0.044715, %v1662_v27  ;;  %v1249_v40 = vmul.f32 0.7978846, %v1217_v53  ;;  %v2203_v49 = vmul.f32 0.044715, %v2171_v37 }
 0x213   : > { %v4623_v32 = vpop.eup %4622  ;;  %v1344_v35 = vmul.f32 %v1312_v6, %v1088_v33  ;;  %v1821_v60 = vadd.f32 1.0, %v4621_v38  ;;  %4624 = vtanh.f32 %v740_v42  ;;  %v1598_v54 = vmul.f32 0.5, %v5685_v62  ;;  %v4168_v16 = vld [vmem:[#allocation2 + $0x1d0] sm:$0xf0]  ;;  %v4166_v9 = vld [vmem:[#allocation2 + $0x1c0] sm:$0xf] }
 0x214   : > { %v867_v59 = vpack.c.bf16 %v835_v28, %v835_v28  ;;  %v2330_v14 = vadd.f32 1.0, %v4623_v32  ;;  %v1726_v7 = vadd.f32 %v1694_v34, %v5685_v62  ;;  %4626 = vtanh.f32 %v1249_v40  ;;  %v4336_v33 = vld [vmem:[#allocation2 + $0x1c4] sm:$0xf]  ;;  %v4337_v37 = vld [vmem:[#allocation2 + $0x1cc] sm:$0xf] }
 0x215   : > { %v1376_v20 = vpack.c.bf16 %v1344_v35, %v1344_v35  ;;  %v1853_v19 = vmul.f32 %v1821_v60, %v1597_v26  ;;  %v2235_v41 = vadd.f32 %v2203_v49, %v2074_v58  ;;  %v2107_v24 = vmul.f32 0.5, %v2074_v58  ;;  %v4339_v27 = vld [vmem:[#allocation2 + $0x1d4] sm:$0xf0]  ;;  %v4174_v26 = vld [vmem:[#allocation2 + $0x1c8] sm:$0xf] }
 0x216   : > { %899 = vst [vmem:[#allocation2 + $0x1e0] sm:$0xf] %v867_v59  ;;  %v2362_v3 = vmul.f32 %v2330_v14, %v2106_v43  ;;  %v1758_v22 = vmul.f32 0.7978846, %v1726_v7  ;;  %v4167_v45 = vor.u32 %v4338_v30, %v4166_v9  ;;  %v4171_v46 = vor.u32 %v4336_v33, %v4168_v16  ;;  %v4334_v28 = vld [vmem:[#allocation2 + $0x1ac] sm:$0xf0] }
 0x217   : > { %1408 = vst [vmem:[#allocation2 + $0x1e4] sm:$0xf] %v1376_v20  ;;  %v1885_v1 = vpack.c.bf16 %v1853_v19, %v1853_v19  ;;  %v2267_v13 = vmul.f32 0.7978846, %v2235_v41  ;;  %v4175_v53 = vor.u32 %v4339_v27, %v4174_v26  ;;  %v4152_v43 = vld [vmem:[#allocation2 + $0x1b0] sm:$0xf0] }
 0x218   : > { %v2394_v47 = vpack.c.bf16 %v2362_v3, %v2362_v3  ;;  %4628 = vtanh.f32 %v1758_v22  ;;  %v4176_v6 = vld [vmem:[#allocation2 + $0x1d8] sm:$0xf0]  ;;  %v4150_v42 = vld [vmem:[#allocation2 + $0x1a0] sm:$0xf]  ;;  %v4332_v32 = vld [vmem:[#allocation2 + $0x1a4] sm:$0xf] }
 0x219   : > { %1917 = vst [vmem:[#allocation2 + $0x1e8] sm:$0xf] %v1885_v1  ;;  %4630 = vtanh.f32 %v2267_v13  ;;  %v4625_v8 = vpop.eup %4624  ;;  %v4179_v38 = vor.u32 %v4337_v37, %v4176_v6  ;;  %v4151_v34 = vor.u32 %v4334_v28, %v4150_v42  ;;  %v4155_v35 = vor.u32 %v4332_v32, %v4152_v43  ;;  %v4335_v60 = vld [vmem:[#allocation2 + $0x1b4] sm:$0xf0]  ;;  %v4160_v40 = vld [vmem:[#allocation2 + $0x1b8] sm:$0xf0] }
 0x21a   : > { %2426 = vst [vmem:[#allocation2 + $0x1ec] sm:$0xf] %v2394_v47  ;;  %v4627_v18 = vpop.eup %4626  ;;  %v804_v31 = vadd.f32 1.0, %v4625_v8  ;;  %v4158_v49 = vld [vmem:[#allocation2 + $0x1a8] sm:$0xf]  ;;  %v4668_v9 = vmov 0  }
 0x21b   : > { %v1313_v17 = vadd.f32 1.0, %v4627_v18  ;;  %v4159_v59 = vor.u32 %v4335_v60, %v4158_v49  ;;  %v4333_v14 = vld [vmem:[#allocation2 + $0x1ac] sm:$0xf]  ;;  %v4330_v20 = vld [vmem:[#allocation2 + $0x18c] sm:$0xf0]  ;;  %4369 = vset.pattern.permute.xlu0 %v4668_v9  ;;  %4370 = vset.pattern.permute.xlu1 %v4668_v9 }
 0x21c   : > { %v836_v51 = vmul.f32 %v804_v31, %v580_v2  ;;  %v4163_v7 = vor.u32 %v4333_v14, %v4160_v40  ;;  %v4136_v19 = vld [vmem:[#allocation2 + $0x190] sm:$0xf0]  ;;  %v4134_v41 = vld [vmem:[#allocation2 + $0x180] sm:$0xf]  ;;  %v4328_v22 = vld [vmem:[#allocation2 + $0x184] sm:$0xf]  ;;  %4371 = vset.pattern.permute.xlu2 %v4668_v9 }
 0x21d   : > { %v1345_v25 = vmul.f32 %v1313_v17, %v1089_v4  ;;  %v4182_v52 = vld [vmem:[#allocation2 + $0x1e0] sm:$0xf]  ;;  %v4135_v3 = vor.u32 %v4330_v20, %v4134_v41  ;;  %v4139_v1 = vor.u32 %v4328_v22, %v4136_v19  ;;  %v4331_v13 = vld [vmem:[#allocation2 + $0x194] sm:$0xf0]  ;;  %v4144_v47 = vld [vmem:[#allocation2 + $0x198] sm:$0xf0] }
 0x21e   : > { %v4629_v48 = vpop.eup %4628  ;;  %v868_v23 = vpack.c.bf16 %v836_v51, %v836_v51  ;;  %v4340_v55 = vld [vmem:[#allocation2 + $0x1e4] sm:$0xf]  ;;  %v4142_v8 = vld [vmem:[#allocation2 + $0x188] sm:$0xf]  ;;  %v4329_v2 = vld [vmem:[#allocation2 + $0x18c] sm:$0xf] }
 0x21f   : > { %v4631_v29 = vpop.eup %4630  ;;  %v1822_v63 = vadd.f32 1.0, %v4629_v48  ;;  %v1377_v57 = vpack.c.bf16 %v1345_v25, %v1345_v25  ;;  %v4143_v18 = vor.u32 %v4331_v13, %v4142_v8  ;;  %v4147_v31 = vor.u32 %v4329_v2, %v4144_v47  ;;  %v4326_v4 = vld [vmem:[#allocation2 + $0x16c] sm:$0xf0]  ;;  %v4118_v17 = vld [vmem:[#allocation2 + $0x160] sm:$0xf] }
 0x220   : > { %v2331_v5 = vadd.f32 1.0, %v4631_v29  ;;  %900 = vst [vmem:[#allocation2 + $0x1f0] sm:$0xf] %v868_v23  ;;  %v4190_v62 = vld [vmem:[#allocation2 + $0x1e8] sm:$0xf] }
 0x221   : > { %v1854_v56 = vmul.f32 %v1822_v63, %v1598_v54  ;;  %1409 = vst [vmem:[#allocation2 + $0x1f4] sm:$0xf] %v1377_v57  ;;  %v4341_v12 = vld [vmem:[#allocation2 + $0x1ec] sm:$0xf]  ;;  %v4324_v51 = vld [vmem:[#allocation2 + $0x164] sm:$0xf]  ;;  %v4119_v54 = vor.u32 %v4326_v4, %v4118_v17 }
 0x222   : > { %v2363_v61 = vmul.f32 %v2331_v5, %v2107_v24  ;;  %v4120_v48 = vld [vmem:[#allocation2 + $0x170] sm:$0xf0]  ;;  %v3822_v25 = vld [vmem:[%s6184_s3 + $0x8] sm:$0xf]  ;;  %v4251_v29 = vld [vmem:[%s6184_s3 + $0x14] sm:$0xf0] }
 0x223   : > { %v1886_v15 = vpack.c.bf16 %v1854_v56, %v1854_v56  ;;  %v3814_v23 = vld [vmem:[%s6184_s3] sm:$0xf]  ;;  %v5711_v63 = vor.u32 %v4251_v29, %v3822_v25  ;;  %v4250_v57 = vld [vmem:[%s6184_s3 + $0xc] sm:$0xf0]  ;;  %v4249_v24 = vld [vmem:[%s6184_s3 + $0xc] sm:$0xf]  ;;  %v4123_v56 = vor.u32 %v4324_v51, %v4120_v48 }
 0x224   : > { %v2395_v10 = vpack.c.bf16 %v2363_v61, %v2363_v61  ;;  %v3824_v5 = vld [vmem:[%s6184_s3 + $0x18] sm:$0xf0]  ;;  %v4327_v61 = vld [vmem:[#allocation2 + $0x174] sm:$0xf0]  ;;  %v4320_v16 = vld [vmem:[#allocation2 + $0x144] sm:$0xf] }
 0x225   : > { %1918 = vst [vmem:[#allocation2 + $0x1f8] sm:$0xf] %v1886_v15  ;;  %v5722_v15 = vor.u32 %v4250_v57, %v3814_v23  ;;  %3206 = vmatmul.bf16.vlgmr.msrb.gmra.mxu2 %v5711_v63  ;;  %v4323_v33 = vld [vmem:[#allocation2 + $0x154] sm:$0xf0]  ;;  %v4321_v27 = vld [vmem:[#allocation2 + $0x14c] sm:$0xf] }
 0x226   : > { %2427 = vst [vmem:[#allocation2 + $0x1fc] sm:$0xf] %v2395_v10  ;;  %v5724_v10 = vor.u32 %v4249_v24, %v3824_v5  ;;  %v4112_v6 = vld [vmem:[#allocation2 + $0x158] sm:$0xf0]  ;;  %v4318_v26 = vld [vmem:[#allocation2 + $0x12c] sm:$0xf0] }
 0x227   : > { %v4342_v0 = vld [vmem:[#allocation2 + $0x1ec] sm:$0xf0]  ;;  %3108 = vmatmul.bf16.vlgmr.msrb.gmra.mxu0 %v5722_v15  ;;  %v4255_v37 = vld [vmem:[%s6184_s3 + $0x34] sm:$0xf0]  ;;  %v3830_v28 = vld [vmem:[%s6184_s3 + $0x20] sm:$0xf] }
 0x228   : > { %v4183_v11 = vor.u32 %v4342_v0, %v4182_v52  ;;  %v4184_v39 = vld [vmem:[#allocation2 + $0x1f0] sm:$0xf0]  ;;  %v4248_v52 = vld [vmem:[%s6184_s3 + $0x4] sm:$0xf]  ;;  %3255 = vmatmul.bf16.vlgmr.msrb.gmra.mxu3 %v5724_v10  ;;  %v4254_v43 = vld [vmem:[%s6184_s3 + $0x2c] sm:$0xf0] }
 0x229   : > { %v4187_v50 = vor.u32 %v4340_v55, %v4184_v39  ;;  %v3816_v0 = vld [vmem:[%s6184_s3 + $0x10] sm:$0xf0]  ;;  %v4126_v39 = vld [vmem:[#allocation2 + $0x168] sm:$0xf]  ;;  %v4253_v42 = vld [vmem:[%s6184_s3 + $0x2c] sm:$0xf]  ;;  %v5767_v14 = vor.u32 %v4254_v43, %v3830_v28 }
 0x22a   : > { %3296 = vmatpush.bf16.xpose.msra.mxu0 %v4183_v11  ;;  %v4128_v11 = vld [vmem:[#allocation2 + $0x178] sm:$0xf0]  ;;  %v5733_v55 = vor.u32 %v4248_v52, %v3816_v0  ;;  %v3832_v60 = vld [vmem:[%s6184_s3 + $0x30] sm:$0xf0]  ;;  %v4316_v20 = vld [vmem:[#allocation2 + $0x124] sm:$0xf] }
 0x22b   : > { %3345 = vmatpush.bf16.xpose.msra.mxu1 %v4187_v50  ;;  %v4127_v50 = vor.u32 %v4327_v61, %v4126_v39  ;;  %v3840_v32 = vld [vmem:[%s6184_s3 + $0x38] sm:$0xf0]  ;;  %v4088_v40 = vld [vmem:[#allocation2 + $0x130] sm:$0xf0]  ;;  %v4319_v22 = vld [vmem:[#allocation2 + $0x134] sm:$0xf0] }
 0x22c   : > { %v4343_v36 = vld [vmem:[#allocation2 + $0x1f4] sm:$0xf0]  ;;  %3157 = vmatmul.bf16.vlgmr.msrb.gmra.mxu1 %v5733_v55  ;;  %v5769_v19 = vor.u32 %v4253_v42, %v3840_v32  ;;  %v4094_v13 = vld [vmem:[#allocation2 + $0x128] sm:$0xf]  ;;  %v4317_v8 = vld [vmem:[#allocation2 + $0x12c] sm:$0xf] }
 0x22d   : > { %v4191_v58 = vor.u32 %v4343_v36, %v4190_v62  ;;  %v4192_v44 = vld [vmem:[#allocation2 + $0x1f8] sm:$0xf0]  ;;  %v4325_v62 = vld [vmem:[#allocation2 + $0x16c] sm:$0xf]  ;;  %v4095_v47 = vor.u32 %v4319_v22, %v4094_v13  ;;  %v2526_v4 = vld [vmem:[%s6185_s4 + $0x10] sm:$0xff] }
 0x22e   : > { %v4195_v21 = vor.u32 %v4341_v12, %v4192_v44  ;;  %v4131_v36 = vor.u32 %v4325_v62, %v4128_v11  ;;  %v4104_v12 = vld [vmem:[#allocation2 + $0x150] sm:$0xf0]  ;;  %v4102_v44 = vld [vmem:[#allocation2 + $0x140] sm:$0xf]  ;;  %2552 = vperm.xlu1 %4370, %v2526_v4   ;;  %v4312_v25 = vld [vmem:[#allocation2 + $0x104] sm:$0xf] }
 0x22f   : > { %3394 = vmatpush.bf16.xpose.msra.mxu2 %v4191_v58  ;;  %v4322_v58 = vld [vmem:[#allocation2 + $0x14c] sm:$0xf0]  ;;  %v4072_v17 = vld [vmem:[#allocation2 + $0x110] sm:$0xf0]  ;;  %v4070_v51 = vld [vmem:[#allocation2 + $0x100] sm:$0xf] }
 0x230   : > { %3443 = vmatpush.bf16.xpose.msra.mxu3 %v4195_v21  ;;  %v2524_v21 = vld [vmem:[%s6185_s4] sm:$0xff]  ;;  %v4103_v30 = vor.u32 %v4322_v58, %v4102_v44  ;;  %v4075_v29 = vor.u32 %v4312_v25, %v4072_v17  ;;  %v4315_v23 = vld [vmem:[#allocation2 + $0x114] sm:$0xf0]  ;;  %v4080_v57 = vld [vmem:[#allocation2 + $0x118] sm:$0xf0] }
 0x231   : > { %2542 = vperm.xlu0 %4369, %v2524_v21   ;;  %v4313_v24 = vld [vmem:[#allocation2 + $0x10c] sm:$0xf]  ;;  %v3854_v5 = vld [vmem:[%s6184_s3 + $0x48] sm:$0xf]  ;;  %v3846_v52 = vld [vmem:[%s6184_s3 + $0x40] sm:$0xf] }
 0x232   : > { %3297 = vmatpush.bf16.xpose.msra.mxu0 %v4167_v45  ;;  %v4107_v45 = vor.u32 %v4320_v16, %v4104_v12  ;;  %v4258_v0 = vld [vmem:[%s6184_s3 + $0x4c] sm:$0xf0]  ;;  %v4257_v11 = vld [vmem:[%s6184_s3 + $0x4c] sm:$0xf]  ;;  %v4083_v39 = vor.u32 %v4313_v24, %v4080_v57  ;;  %v4256_v62 = vld [vmem:[%s6184_s3 + $0x44] sm:$0xf] }
 0x233   : > { %3346 = vmatpush.bf16.xpose.msra.mxu1 %v4171_v46  ;;  %v4110_v46 = vld [vmem:[#allocation2 + $0x148] sm:$0xf]  ;;  %v5809_v12 = vor.u32 %v4258_v0, %v3846_v52  ;;  %v4263_v9 = vld [vmem:[%s6184_s3 + $0x74] sm:$0xf0]  ;;  %v4266_v32 = vld [vmem:[%s6184_s3 + $0x8c] sm:$0xf0] }
 0x234   : > { %v3870_v16 = vld [vmem:[%s6184_s3 + $0x68] sm:$0xf]  ;;  %v4267_v42 = vld [vmem:[%s6184_s3 + $0x94] sm:$0xf0]  ;;  %v4270_v4 = vld [vmem:[%s6184_s3 + $0xac] sm:$0xf0] }
 0x235   : > { %v3886_v43 = vld [vmem:[%s6184_s3 + $0x88] sm:$0xf]  ;;  %v2531_v13 = vld [vmem:[%s6185_s4 + $0x38] sm:$0xff]  ;;  %v4269_v17 = vld [vmem:[%s6184_s3 + $0xac] sm:$0xf] }
 0x236   : > { %v3896_v25 = vld [vmem:[%s6184_s3 + $0xb0] sm:$0xf0]  ;;  %v2533_v24 = vld [vmem:[%s6185_s4 + $0x48] sm:$0xff]  ;;  %v4274_v52 = vld [vmem:[%s6184_s3 + $0xcc] sm:$0xf0] }
 0x237   : > { %3395 = vmatpush.bf16.xpose.msra.mxu2 %v4175_v53  ;;  %v3838_v53 = vld [vmem:[%s6184_s3 + $0x28] sm:$0xf]  ;;  %3113 = vmatmul.bf16.gmra.mxu0 %v5767_v14  ;;  %v4273_v0 = vld [vmem:[%s6184_s3 + $0xcc] sm:$0xf] }
 0x238   : > { %3444 = vmatpush.bf16.xpose.msra.mxu3 %v4179_v38  ;;  %v4111_v38 = vor.u32 %v4323_v33, %v4110_v46  ;;  %v5765_v49 = vor.u32 %v4255_v37, %v3838_v53  ;;  %v4262_v33 = vld [vmem:[%s6184_s3 + $0x6c] sm:$0xf0]  ;;  %v4261_v46 = vld [vmem:[%s6184_s3 + $0x6c] sm:$0xf]  ;;  %v5846_v53 = vor.u32 %v4263_v9, %v3870_v16 }
 0x239   : > { %3260 = vmatmul.bf16.gmra.mxu3 %v5769_v19  ;;  %v2534_v9 = vld [vmem:[%s6185_s4 + $0x50] sm:$0xff] }
 0x23a   : > { %3298 = vmatpush.bf16.xpose.msra.mxu0 %v4151_v34  ;;  %v4115_v34 = vor.u32 %v4321_v27, %v4112_v6  ;;  %3211 = vmatmul.bf16.gmra.mxu2 %v5765_v49  ;;  %v3872_v27 = vld [vmem:[%s6184_s3 + $0x78] sm:$0xf0]  ;;  %v4260_v6 = vld [vmem:[%s6184_s3 + $0x64] sm:$0xf] }
 0x23b   : > { %3347 = vmatpush.bf16.xpose.msra.mxu1 %v4155_v35  ;;  %v4252_v35 = vld [vmem:[%s6184_s3 + $0x24] sm:$0xf] }
 0x23c   : > { %v5771_v41 = vor.u32 %v4252_v35, %v3832_v60  ;;  %v4265_v35 = vld [vmem:[%s6184_s3 + $0x8c] sm:$0xf]  ;;  %v3888_v60 = vld [vmem:[%s6184_s3 + $0x98] sm:$0xf0] }
 0x23e   : > { %3162 = vmatmul.bf16.gmra.mxu1 %v5771_v41 }
 0x23f   : > { %3396 = vmatpush.bf16.xpose.msra.mxu2 %v4159_v59  ;;  %v4086_v59 = vld [vmem:[#allocation2 + $0x120] sm:$0xf] }
 0x240   : > { %3445 = vmatpush.bf16.xpose.msra.mxu3 %v4163_v7  ;;  %v4087_v7 = vor.u32 %v4318_v26, %v4086_v59  ;;  %v3864_v26 = vld [vmem:[%s6184_s3 + $0x70] sm:$0xf0] }
 0x241   : > { %v5852_v28 = vor.u32 %v4260_v6, %v3864_v26  ;;  %v3880_v59 = vld [vmem:[%s6184_s3 + $0x90] sm:$0xf0]  ;;  %v4277_v6 = vld [vmem:[%s6184_s3 + $0xec] sm:$0xf]  ;;  %v3936_v26 = vld [vmem:[%s6184_s3 + $0xf8] sm:$0xf0] }
 0x242   : > { %3299 = vmatpush.bf16.xpose.msra.mxu0 %v4135_v3  ;;  %v4091_v3 = vor.u32 %v4316_v20, %v4088_v40  ;;  %v4264_v40 = vld [vmem:[%s6184_s3 + $0x84] sm:$0xf] }
 0x243   : > { %3348 = vmatpush.bf16.xpose.msra.mxu1 %v4139_v1  ;;  %v4096_v1 = vld [vmem:[#allocation2 + $0x138] sm:$0xf0]  ;;  %v5888_v22 = vor.u32 %v4264_v40, %v3880_v59  ;;  %v2537_v59 = vld [vmem:[%s6185_s4 + $0x68] sm:$0xff] }
 0x244   : > { %v4099_v2 = vor.u32 %v4317_v8, %v4096_v1  ;;  %v2528_v1 = vld [vmem:[%s6185_s4 + $0x20] sm:$0xff]  ;;  %v2529_v8 = vld [vmem:[%s6185_s4 + $0x28] sm:$0xff] }
 0x245   : > { %2562 = vperm.xlu2 %4371, %v2528_v1   ;;  %v2536_v1 = vld [vmem:[%s6185_s4 + $0x60] sm:$0xff] }
 0x247   : > { %3397 = vmatpush.bf16.xpose.msra.mxu2 %v4143_v18  ;;  %v2525_v18 = vld [vmem:[%s6185_s4 + $0x8] sm:$0xff]  ;;  %3118 = vmatmul.bf16.gmra.mxu0 %v5809_v12 }
 0x248   : > { %3446 = vmatpush.bf16.xpose.msra.mxu3 %v4147_v31  ;;  %v4314_v31 = vld [vmem:[#allocation2 + $0x10c] sm:$0xf0]  ;;  %2547 = vperm.xlu0 %4369, %v2525_v18   ;;  %v3902_v18 = vld [vmem:[%s6184_s3 + $0xa8] sm:$0xf] }
 0x249   : > { %v4071_v48 = vor.u32 %v4314_v31, %v4070_v51  ;;  %v3894_v31 = vld [vmem:[%s6184_s3 + $0xa0] sm:$0xf]  ;;  %v3904_v51 = vld [vmem:[%s6184_s3 + $0xb8] sm:$0xf0] }
 0x24a   : > { %3300 = vmatpush.bf16.xpose.msra.mxu0 %v4119_v54  ;;  %v4078_v54 = vld [vmem:[#allocation2 + $0x108] sm:$0xf] }
 0x24b   : > { %3349 = vmatpush.bf16.xpose.msra.mxu1 %v4123_v56  ;;  %v4259_v56 = vld [vmem:[%s6184_s3 + $0x54] sm:$0xf0]  ;;  %v4079_v61 = vor.u32 %v4315_v23, %v4078_v54  ;;  %v5932_v23 = vor.u32 %v4270_v4, %v3894_v31  ;;  %v5934_v54 = vor.u32 %v4269_v17, %v3904_v51 }
 0x24c   : > { %v5807_v58 = vor.u32 %v4259_v56, %v3854_v5  ;;  %v3918_v5 = vld [vmem:[%s6184_s3 + $0xc8] sm:$0xf]  ;;  %v4275_v56 = vld [vmem:[%s6184_s3 + $0xd4] sm:$0xf0] }
 0x24d   : > { %2567 = vperm.xlu2 %4371, %v2529_v8   ;;  %v2539_v17 = vld [vmem:[%s6185_s4 + $0x78] sm:$0xff] }
 0x24e   : > { %3216 = vmatmul.bf16.gmra.mxu2 %v5807_v58 }
 0x24f   : > { %3398 = vmatpush.bf16.xpose.msra.mxu2 %v4127_v50  ;;  %v3856_v50 = vld [vmem:[%s6184_s3 + $0x58] sm:$0xf0] }
 0x250   : > { %3447 = vmatpush.bf16.xpose.msra.mxu3 %v4131_v36  ;;  %v3848_v36 = vld [vmem:[%s6184_s3 + $0x50] sm:$0xf0]  ;;  %v5811_v44 = vor.u32 %v4257_v11, %v3856_v50  ;;  %v3920_v11 = vld [vmem:[%s6184_s3 + $0xd8] sm:$0xf0] }
 0x251   : > { %v5813_v21 = vor.u32 %v4256_v62, %v3848_v36  ;;  %v3912_v50 = vld [vmem:[%s6184_s3 + $0xd0] sm:$0xf0]  ;;  %v5969_v62 = vor.u32 %v4275_v56, %v3918_v5 }
 0x252   : > { %3301 = vmatpush.bf16.xpose.msra.mxu0 %v4103_v30  ;;  %3265 = vmatmul.bf16.gmra.mxu3 %v5811_v44  ;;  %v2527_v30 = vld [vmem:[%s6185_s4 + $0x18] sm:$0xff] }
 0x253   : > { %3350 = vmatpush.bf16.xpose.msra.mxu1 %v4107_v45  ;;  %2557 = vperm.xlu1 %4370, %v2527_v30   ;;  %v3862_v45 = vld [vmem:[%s6184_s3 + $0x60] sm:$0xf]  ;;  %v5973_v30 = vor.u32 %v4273_v0, %v3920_v11 }
 0x254   : > { %3167 = vmatmul.bf16.gmra.mxu1 %v5813_v21  ;;  %v5848_v37 = vor.u32 %v4262_v33, %v3862_v45  ;;  %v3934_v45 = vld [vmem:[%s6184_s3 + $0xe8] sm:$0xf]  ;;  %v4279_v33 = vld [vmem:[%s6184_s3 + $0xf4] sm:$0xf0] }
 0x257   : > { %3399 = vmatpush.bf16.xpose.msra.mxu2 %v4111_v38  ;;  %v5850_v38 = vor.u32 %v4261_v46, %v3872_v27  ;;  %3123 = vmatmul.bf16.gmra.mxu0 %v5848_v37  ;;  %v3926_v46 = vld [vmem:[%s6184_s3 + $0xe0] sm:$0xf]  ;;  %v4278_v27 = vld [vmem:[%s6184_s3 + $0xec] sm:$0xf0] }
 0x258   : > { %3448 = vmatpush.bf16.xpose.msra.mxu3 %v4115_v34  ;;  %v3878_v34 = vld [vmem:[%s6184_s3 + $0x80] sm:$0xf] }
 0x259   : > { %v5884_v20 = vor.u32 %v4266_v32, %v3878_v34  ;;  %v2532_v34 = vld [vmem:[%s6185_s4 + $0x40] sm:$0xff]  ;;  %v6011_v32 = vor.u32 %v4279_v33, %v3934_v45 }
 0x25a   : > { %3302 = vmatpush.bf16.xpose.msra.mxu0 %v4087_v7  ;;  %v5882_v7 = vor.u32 %v4267_v42, %v3886_v43  ;;  %v4276_v43 = vld [vmem:[%s6184_s3 + $0xe4] sm:$0xf]  ;;  %v3928_v42 = vld [vmem:[%s6184_s3 + $0xf0] sm:$0xf0]  ;;  %2582 = vperm.xlu2 %4371, %v2532_v34  }
 0x25b   : > { %3351 = vmatpush.bf16.xpose.msra.mxu1 %v4091_v3  ;;  %v5886_v3 = vor.u32 %v4265_v35, %v3888_v60  ;;  %2577 = vperm.xlu1 %4370, %v2531_v13   ;;  %v6013_v35 = vor.u32 %v4278_v27, %v3926_v46  ;;  %v6015_v60 = vor.u32 %v4277_v6, %v3936_v26  ;;  %v2535_v13 = vld [vmem:[%s6185_s4 + $0x58] sm:$0xff] }
 0x25c   : > { %v6017_v40 = vor.u32 %v4276_v43, %v3928_v42 }
 0x25e   : > { %3221 = vmatmul.bf16.gmra.mxu2 %v5846_v53 }
 0x25f   : > { %3400 = vmatpush.bf16.xpose.msra.mxu2 %v4095_v47  ;;  %v2530_v47 = vld [vmem:[%s6185_s4 + $0x30] sm:$0xff] }
 0x260   : > { %3449 = vmatpush.bf16.xpose.msra.mxu3 %v4099_v2  ;;  %2572 = vperm.xlu0 %4369, %v2530_v47   ;;  %v4271_v2 = vld [vmem:[%s6184_s3 + $0xb4] sm:$0xf0] }
 0x262   : > { %3303 = vmatpush.bf16.xpose.msra.mxu0 %v4071_v48  ;;  %3270 = vmatmul.bf16.gmra.mxu3 %v5850_v38  ;;  %v4268_v48 = vld [vmem:[%s6184_s3 + $0xa4] sm:$0xf] }
 0x263   : > { %3352 = vmatpush.bf16.xpose.msra.mxu1 %v4075_v29  ;;  %v5930_v29 = vor.u32 %v4271_v2, %v3902_v18  ;;  %v5936_v57 = vor.u32 %v4268_v48, %v3896_v25  ;;  %2592 = vperm.xlu1 %4370, %v2534_v9  }
 0x264   : > { %3172 = vmatmul.bf16.gmra.mxu1 %v5852_v28  ;;  %2597 = vperm.xlu2 %4371, %v2535_v13  }
 0x267   : > { %3401 = vmatpush.bf16.xpose.msra.mxu2 %v4079_v61  ;;  %3128 = vmatmul.bf16.gmra.mxu0 %v5884_v20  ;;  %v3910_v61 = vld [vmem:[%s6184_s3 + $0xc0] sm:$0xf] }
 0x268   : > { %3450 = vmatpush.bf16.xpose.msra.mxu3 %v4083_v39  ;;  %2587 = vperm.xlu0 %4369, %v2533_v24   ;;  %v4272_v39 = vld [vmem:[%s6184_s3 + $0xc4] sm:$0xf]  ;;  %v5971_v36 = vor.u32 %v4274_v52, %v3910_v61 }
 0x269   : > { %v5975_v16 = vor.u32 %v4272_v39, %v3912_v50 }
 0x26b   : > { %2607 = vperm.xlu1 %4370, %v2537_v59  }
 0x26e   : > { %3226 = vmatmul.bf16.gmra.mxu2 %v5882_v7 }
 0x270   : > { %2602 = vperm.xlu0 %4369, %v2536_v1  }
 0x272   : > { %3275 = vmatmul.bf16.gmra.mxu3 %v5886_v3 }
 0x274   : > { %3177 = vmatmul.bf16.gmra.mxu1 %v5888_v22 }
 0x277   : > { %3133 = vmatmul.bf16.gmra.mxu0 %v5932_v23 }
 0x278   : > { %2617 = vperm.xlu0 %4369, %v2539_v17  }
 0x27e   : > { %3231 = vmatmul.bf16.gmra.mxu2 %v5930_v29 }
 0x282   : > { %3280 = vmatmul.bf16.gmra.mxu3 %v5934_v54 }
 0x284   : > { %3182 = vmatmul.bf16.gmra.mxu1 %v5936_v57 }
 0x287   : > { %3138 = vmatmul.bf16.gmra.mxu0 %v5971_v36 }
 0x28e   : > { %3236 = vmatmul.bf16.gmra.mxu2 %v5969_v62 }
 0x292   : > { %3285 = vmatmul.bf16.gmra.mxu3 %v5973_v30 }
 0x294   : > { %3187 = vmatmul.bf16.gmra.mxu1 %v5975_v16 }
 0x297   : > { %3143 = vmatmul.bf16.gmra.mxu0 %v6013_v35 }
 0x29e   : > { %3241 = vmatmul.bf16.gmra.mxu2 %v6011_v32 }
 0x29f   : > { %v6067_v59 = vpop.permute.xlu2 %2562 }
 0x2a0   : > { %v6052_v52 = vpop.permute.xlu1 %2552 }
 0x2a2   : > { %3290 = vmatmul.bf16.gmra.mxu3 %v6015_v60 }
 0x2a3   : > { %v6032_v47 = vpop.permute.xlu0 %2542 }
 0x2a4   : > { %3192 = vmatmul.bf16.gmra.mxu1 %v6017_v40  ;;  %v3109_v8 = vpop.f32.mrf.mxu0 }
 0x2a5   : > { %v3110_v2 = vadd.f32 %v3109_v8, %v6032_v47 }
 0x2a7   : > { %3304 = vmatmul.bf16.vlgmr.msra.gmra.mxu0 %v5722_v15 }
 0x2a8   : > { %v3207_v4 = vpop.f32.mrf.mxu2 }
 0x2a9   : > { %v3158_v18 = vpop.f32.mrf.mxu1 }
 0x2aa   : > { %v3159_v31 = vadd.f32 %v3158_v18, %v3110_v2 }
 0x2ab   : > { %v3256_v48 = vpop.f32.mrf.mxu3 }
 0x2ac   : > { %v3208_v51 = vadd.f32 %v3207_v4, %v3159_v31  ;;  %v3111_v15 = vpop.f32.mrf.mxu0 }
 0x2ae   : > { %3402 = vmatmul.bf16.vlgmr.msra.gmra.mxu2 %v5711_v63 }
 0x2b0   : > { %v3209_v5 = vpop.f32.mrf.mxu2 }
 0x2b2   : > { %3451 = vmatmul.bf16.vlgmr.msra.gmra.mxu3 %v5724_v10  ;;  %v3257_v10 = vadd.f32 %v3256_v48, %v3208_v51  ;;  %v6075_v51 = vpop.permute.xlu2 %2567 }
 0x2b3   : > { %v3258_v61 = vpop.f32.mrf.mxu3 }
 0x2b4   : > { %3353 = vmatmul.bf16.vlgmr.msra.gmra.mxu1 %v5733_v55  ;;  %v3160_v55 = vpop.f32.mrf.mxu1  ;;  %3492 = vst [vmem:[%s6046_s7] sm:$0xff] %v3257_v10  ;;  %v3114_v0 = vpop.f32.mrf.mxu0 }
 0x2b5   : > { %v3115_v50 = vadd.f32 %v3114_v0, %v6052_v52 }
 0x2b7   : > { %3309 = vmatmul.bf16.gmra.mxu0 %v5767_v14  ;;  %v2538_v14 = vld [vmem:[%s6185_s4 + $0x70] sm:$0xff] }
 0x2b8   : > { %2612 = vperm.xlu2 %4371, %v2538_v14  }
 0x2ba   : > { %v6048_v63 = vpop.permute.xlu0 %2547 }
 0x2bb   : > { %v3112_v25 = vadd.f32 %v3111_v15, %v6048_v63 }
 0x2bc   : > { %v3163_v39 = vpop.f32.mrf.mxu1  ;;  %v3261_v46 = vpop.f32.mrf.mxu3 }
 0x2bd   : > { %v3161_v24 = vadd.f32 %v3160_v55, %v3112_v25  ;;  %v3164_v9 = vadd.f32 %v3163_v39, %v3115_v50  ;;  %v3212_v45 = vpop.f32.mrf.mxu2  ;;  %v3116_v6 = vpop.f32.mrf.mxu0 }
 0x2be   : > { %3407 = vmatmul.bf16.gmra.mxu2 %v5765_v49 }
 0x2bf   : > { %v3210_v56 = vadd.f32 %v3209_v5, %v3161_v24  ;;  %v3213_v33 = vadd.f32 %v3212_v45, %v3164_v9 }
 0x2c1   : > { %v3259_v11 = vadd.f32 %v3258_v61, %v3210_v56  ;;  %v3262_v26 = vadd.f32 %v3261_v46, %v3213_v33 }
 0x2c2   : > { %3456 = vmatmul.bf16.gmra.mxu3 %v5769_v19 }
 0x2c3   : > { %3494 = vst [vmem:[%s6046_s7 + $0x10] sm:$0xff] %v3259_v11 }
 0x2c4   : > { %3358 = vmatmul.bf16.gmra.mxu1 %v5771_v41  ;;  %v3165_v43 = vpop.f32.mrf.mxu1  ;;  %3496 = vst [vmem:[%s6046_s7 + $0x20] sm:$0xff] %v3262_v26  ;;  %v3263_v41 = vpop.f32.mrf.mxu3 }
 0x2c5   : > { %v6060_v27 = vpop.permute.xlu1 %2557  ;;  %v3214_v34 = vpop.f32.mrf.mxu2 }
 0x2c6   : > { %v3117_v42 = vadd.f32 %v3116_v6, %v6060_v27  ;;  %v3119_v1 = vpop.f32.mrf.mxu0 }
 0x2c7   : > { %v3120_v18 = vadd.f32 %v3119_v1, %v6067_v59  ;;  %3314 = vmatmul.bf16.gmra.mxu0 %v5809_v12 }
 0x2c8   : > { %v3166_v49 = vadd.f32 %v3165_v43, %v3117_v42 }
 0x2ca   : > { %v3215_v19 = vadd.f32 %v3214_v34, %v3166_v49 }
 0x2cc   : > { %v3264_v13 = vadd.f32 %v3263_v41, %v3215_v19  ;;  %v6098_v41 = vpop.permute.xlu2 %2582 }
 0x2cd   : > { %v6084_v11 = vpop.permute.xlu1 %2577 }
 0x2ce   : > { %3412 = vmatmul.bf16.gmra.mxu2 %v5807_v58  ;;  %3498 = vst [vmem:[%s6046_s7 + $0x30] sm:$0xff] %v3264_v13  ;;  %v3121_v48 = vpop.f32.mrf.mxu0 }
 0x2cf   : > { %v3122_v55 = vadd.f32 %v3121_v48, %v6075_v51 }
 0x2d1   : > { %v3168_v8 = vpop.f32.mrf.mxu1  ;;  %v3217_v31 = vpop.f32.mrf.mxu2 }
 0x2d2   : > { %v3169_v2 = vadd.f32 %v3168_v8, %v3120_v18  ;;  %3461 = vmatmul.bf16.gmra.mxu3 %v5811_v44  ;;  %v6087_v9 = vpop.permute.xlu0 %2572 }
 0x2d4   : > { %3363 = vmatmul.bf16.gmra.mxu1 %v5813_v21  ;;  %v3218_v4 = vadd.f32 %v3217_v31, %v3169_v2 }
 0x2d5   : > { %v3266_v17 = vpop.f32.mrf.mxu3 }
 0x2d6   : > { %v3267_v15 = vadd.f32 %v3266_v17, %v3218_v4  ;;  %v3124_v5 = vpop.f32.mrf.mxu0 }
 0x2d7   : > { %3319 = vmatmul.bf16.gmra.mxu0 %v5848_v37 }
 0x2d8   : > { %3500 = vst [vmem:[%s6046_s7 + $0x40] sm:$0xff] %v3267_v15 }
 0x2d9   : > { %v3170_v10 = vpop.f32.mrf.mxu1  ;;  %v3219_v25 = vpop.f32.mrf.mxu2 }
 0x2da   : > { %v3171_v58 = vadd.f32 %v3170_v10, %v3122_v55  ;;  %v6096_v14 = vpop.permute.xlu0 %2587 }
 0x2dc   : > { %v3220_v12 = vadd.f32 %v3219_v25, %v3171_v58  ;;  %v6108_v58 = vpop.permute.xlu2 %2597 }
 0x2dd   : > { %v3268_v24 = vpop.f32.mrf.mxu3 }
 0x2de   : > { %v3269_v44 = vadd.f32 %v3268_v24, %v3220_v12  ;;  %3417 = vmatmul.bf16.gmra.mxu2 %v5846_v53  ;;  %v3126_v0 = vpop.f32.mrf.mxu0  ;;  %v3125_v53 = vadd.f32 %v3124_v5, %v6087_v9  ;;  %v6111_v24 = vpop.permute.xlu1 %2592 }
 0x2df   : > { %v3127_v50 = vadd.f32 %v3126_v0, %v6084_v11 }
 0x2e0   : > { %3502 = vst [vmem:[%s6046_s7 + $0x50] sm:$0xff] %v3269_v44 }
 0x2e1   : > { %v3173_v56 = vpop.f32.mrf.mxu1  ;;  %v3222_v21 = vpop.f32.mrf.mxu2 }
 0x2e2   : > { %3466 = vmatmul.bf16.gmra.mxu3 %v5850_v38  ;;  %v3174_v37 = vadd.f32 %v3173_v56, %v3125_v53 }
 0x2e4   : > { %3368 = vmatmul.bf16.gmra.mxu1 %v5852_v28  ;;  %v3223_v46 = vadd.f32 %v3222_v21, %v3174_v37 }
 0x2e5   : > { %v3271_v61 = vpop.f32.mrf.mxu3 }
 0x2e6   : > { %v3129_v6 = vpop.f32.mrf.mxu0  ;;  %v3272_v43 = vadd.f32 %v3271_v61, %v3223_v46 }
 0x2e7   : > { %3324 = vmatmul.bf16.gmra.mxu0 %v5884_v20 }
 0x2e8   : > { %3504 = vst [vmem:[%s6046_s7 + $0x60] sm:$0xff] %v3272_v43 }
 0x2e9   : > { %v3175_v39 = vpop.f32.mrf.mxu1  ;;  %v3224_v33 = vpop.f32.mrf.mxu2 }
 0x2ea   : > { %v3176_v45 = vadd.f32 %v3175_v39, %v3127_v50 }
 0x2ec   : > { %v3225_v38 = vadd.f32 %v3224_v33, %v3176_v45  ;;  %v6120_v33 = vpop.permute.xlu1 %2607 }
 0x2ed   : > { %v3273_v28 = vpop.f32.mrf.mxu3 }
 0x2ee   : > { %v3274_v26 = vadd.f32 %v3273_v28, %v3225_v38  ;;  %3422 = vmatmul.bf16.gmra.mxu2 %v5882_v7  ;;  %v3131_v19 = vpop.f32.mrf.mxu0  ;;  %v3130_v7 = vadd.f32 %v3129_v6, %v6098_v41  ;;  %v6122_v38 = vpop.permute.xlu0 %2602 }
 0x2ef   : > { %v3132_v13 = vadd.f32 %v3131_v19, %v6096_v14 }
 0x2f0   : > { %3506 = vst [vmem:[%s6046_s7 + $0x70] sm:$0xff] %v3274_v26 }
 0x2f1   : > { %v3178_v42 = vpop.f32.mrf.mxu1  ;;  %v3227_v49 = vpop.f32.mrf.mxu2 }
 0x2f2   : > { %3471 = vmatmul.bf16.gmra.mxu3 %v5886_v3  ;;  %v3179_v20 = vadd.f32 %v3178_v42, %v3130_v7 }
 0x2f4   : > { %3373 = vmatmul.bf16.gmra.mxu1 %v5888_v22  ;;  %v3228_v3 = vadd.f32 %v3227_v49, %v3179_v20 }
 0x2f5   : > { %v3276_v34 = vpop.f32.mrf.mxu3 }
 0x2f6   : > { %v3277_v31 = vadd.f32 %v3276_v34, %v3228_v3  ;;  %v3134_v4 = vpop.f32.mrf.mxu0 }
 0x2f7   : > { %3329 = vmatmul.bf16.gmra.mxu0 %v5932_v23 }
 0x2f8   : > { %3508 = vst [vmem:[%s6046_s7 + $0x80] sm:$0xff] %v3277_v31 }
 0x2f9   : > { %v3180_v1 = vpop.f32.mrf.mxu1  ;;  %v3229_v18 = vpop.f32.mrf.mxu2 }
 0x2fa   : > { %v3181_v8 = vadd.f32 %v3180_v1, %v3132_v13 }
 0x2fc   : > { %v3230_v2 = vadd.f32 %v3229_v18, %v3181_v8  ;;  %v6134_v8 = vpop.permute.xlu0 %2617 }
 0x2fd   : > { %v3278_v22 = vpop.f32.mrf.mxu3 }
 0x2fe   : > { %v3279_v17 = vadd.f32 %v3278_v22, %v3230_v2  ;;  %3427 = vmatmul.bf16.gmra.mxu2 %v5930_v29  ;;  %v3136_v55 = vpop.f32.mrf.mxu0  ;;  %v3135_v29 = vadd.f32 %v3134_v4, %v6111_v24 }
 0x2ff   : > { %v3137_v12 = vadd.f32 %v3136_v55, %v6108_v58 }
 0x300   : > { %3510 = vst [vmem:[%s6046_s7 + $0x90] sm:$0xff] %v3279_v17 }
 0x301   : > { %v3183_v48 = vpop.f32.mrf.mxu1  ;;  %v3232_v15 = vpop.f32.mrf.mxu2 }
 0x302   : > { %3476 = vmatmul.bf16.gmra.mxu3 %v5934_v54  ;;  %v3184_v23 = vadd.f32 %v3183_v48, %v3135_v29 }
 0x304   : > { %3378 = vmatmul.bf16.gmra.mxu1 %v5936_v57  ;;  %v3233_v56 = vadd.f32 %v3232_v15, %v3184_v23 }
 0x305   : > { %v3281_v10 = vpop.f32.mrf.mxu3 }
 0x306   : > { %v3139_v21 = vpop.f32.mrf.mxu0  ;;  %v3282_v0 = vadd.f32 %v3281_v10, %v3233_v56 }
 0x307   : > { %3334 = vmatmul.bf16.gmra.mxu0 %v5971_v36 }
 0x308   : > { %3512 = vst [vmem:[%s6046_s7 + $0xa0] sm:$0xff] %v3282_v0 }
 0x309   : > { %v3185_v25 = vpop.f32.mrf.mxu1  ;;  %v3234_v44 = vpop.f32.mrf.mxu2 }
 0x30a   : > { %v3186_v5 = vadd.f32 %v3185_v25, %v3137_v12 }
 0x30c   : > { %v3235_v54 = vadd.f32 %v3234_v44, %v3186_v5 }
 0x30d   : > { %v3283_v57 = vpop.f32.mrf.mxu3 }
 0x30e   : > { %v3284_v61 = vadd.f32 %v3283_v57, %v3235_v54  ;;  %3432 = vmatmul.bf16.gmra.mxu2 %v5969_v62  ;;  %v3141_v45 = vpop.f32.mrf.mxu0  ;;  %v3140_v62 = vadd.f32 %v3139_v21, %v6122_v38 }
 0x30f   : > { %v3142_v46 = vadd.f32 %v3141_v45, %v6120_v33 }
 0x310   : > { %3514 = vst [vmem:[%s6046_s7 + $0xb0] sm:$0xff] %v3284_v61 }
 0x311   : > { %v3188_v39 = vpop.f32.mrf.mxu1  ;;  %v3237_v50 = vpop.f32.mrf.mxu2 }
 0x312   : > { %3481 = vmatmul.bf16.gmra.mxu3 %v5973_v30  ;;  %v3189_v6 = vadd.f32 %v3188_v39, %v3140_v62  ;;  %v6132_v20 = vpop.permute.xlu2 %2612 }
 0x314   : > { %3383 = vmatmul.bf16.gmra.mxu1 %v5975_v16  ;;  %v3238_v16 = vadd.f32 %v3237_v50, %v3189_v6 }
 0x315   : > { %v3286_v53 = vpop.f32.mrf.mxu3 }
 0x316   : > { %v3144_v43 = vpop.f32.mrf.mxu0  ;;  %v3287_v34 = vadd.f32 %v3286_v53, %v3238_v16 }
 0x317   : > { %3339 = vmatmul.bf16.gmra.mxu0 %v6013_v35 }
 0x318   : > { %3516 = vst [vmem:[%s6046_s7 + $0xc0] sm:$0xff] %v3287_v34 }
 0x319   : > { %v3190_v37 = vpop.f32.mrf.mxu1  ;;  %v3239_v36 = vpop.f32.mrf.mxu2 }
 0x31a   : > { %v3191_v28 = vadd.f32 %v3190_v37, %v3142_v46 }
 0x31c   : > { %v3240_v26 = vadd.f32 %v3239_v36, %v3191_v28 }
 0x31d   : > { %v3288_v30 = vpop.f32.mrf.mxu3 }
 0x31e   : > { %v3289_v49 = vadd.f32 %v3288_v30, %v3240_v26  ;;  %3437 = vmatmul.bf16.gmra.mxu2 %v6011_v32  ;;  %v3146_v7 = vpop.f32.mrf.mxu0  ;;  %v3145_v32 = vadd.f32 %v3144_v43, %v6132_v20 }
 0x31f   : > { %v3147_v35 = vadd.f32 %v3146_v7, %v6134_v8 }
 0x320   : > { %3518 = vst [vmem:[%s6046_s7 + $0xd0] sm:$0xff] %v3289_v49 }
 0x321   : > { %v3193_v42 = vpop.f32.mrf.mxu1  ;;  %v3242_v19 = vpop.f32.mrf.mxu2 }
 0x322   : > { %3486 = vmatmul.bf16.gmra.mxu3 %v6015_v60  ;;  %v3194_v3 = vadd.f32 %v3193_v42, %v3145_v32 }
 0x324   : > { %3388 = vmatmul.bf16.gmra.mxu1 %v6017_v40  ;;  %v3243_v40 = vadd.f32 %v3242_v19, %v3194_v3 }
 0x325   : > { %v3291_v1 = vpop.f32.mrf.mxu3 }
 0x326   : > { %v3305_v31 = vpop.f32.mrf.mxu0  ;;  %v3292_v48 = vadd.f32 %v3291_v1, %v3243_v40 }
 0x327   : > { %v3306_v4 = vadd.f32 %v3305_v31, %v6032_v47 }
 0x328   : > { %3520 = vst [vmem:[%s6046_s7 + $0xe0] sm:$0xff] %v3292_v48 }
 0x329   : > { %v3195_v13 = vpop.f32.mrf.mxu1  ;;  %v3244_v18 = vpop.f32.mrf.mxu2 }
 0x32a   : > { %v3196_v60 = vadd.f32 %v3195_v13, %v3147_v35 }
 0x32c   : > { %v3245_v22 = vadd.f32 %v3244_v18, %v3196_v60 }
 0x32d   : > { %v3293_v2 = vpop.f32.mrf.mxu3 }
 0x32e   : > { %v3294_v15 = vadd.f32 %v3293_v2, %v3245_v22  ;;  %v3307_v5 = vpop.f32.mrf.mxu0 }
 0x32f   : > { %v3308_v23 = vadd.f32 %v3307_v5, %v6048_v63 }
 0x330   : > { %3522 = vst [vmem:[%s6046_s7 + $0xf0] sm:$0xff] %v3294_v15 }
 0x331   : > { %v3354_v17 = vpop.f32.mrf.mxu1  ;;  %v3403_v55 = vpop.f32.mrf.mxu2 }
 0x332   : > { %v3355_v10 = vadd.f32 %v3354_v17, %v3306_v4 }
 0x334   : > { %v3404_v25 = vadd.f32 %v3403_v55, %v3355_v10 }
 0x335   : > { %v3452_v12 = vpop.f32.mrf.mxu3 }
 0x336   : > { %v3453_v29 = vadd.f32 %v3452_v12, %v3404_v25  ;;  %v3310_v61 = vpop.f32.mrf.mxu0 }
 0x337   : > { %v3311_v0 = vadd.f32 %v3310_v61, %v6052_v52 }
 0x338   : > { %3493 = vst [vmem:[%s6046_s7 + $0x8] sm:$0xff] %v3453_v29 }
 0x339   : > { %v3356_v44 = vpop.f32.mrf.mxu1  ;;  %v3405_v56 = vpop.f32.mrf.mxu2 }
 0x33a   : > { %v3357_v54 = vadd.f32 %v3356_v44, %v3308_v23 }
 0x33c   : > { %v3406_v47 = vadd.f32 %v3405_v56, %v3357_v54 }
 0x33d   : > { %v3454_v57 = vpop.f32.mrf.mxu3 }
 0x33e   : > { %v3455_v21 = vadd.f32 %v3454_v57, %v3406_v47  ;;  %v3312_v63 = vpop.f32.mrf.mxu0 }
 0x33f   : > { %v3313_v62 = vadd.f32 %v3312_v63, %v6060_v27 }
 0x340   : > { %3495 = vst [vmem:[%s6046_s7 + $0x18] sm:$0xff] %v3455_v21 }
 0x341   : > { %v3359_v39 = vpop.f32.mrf.mxu1  ;;  %v3408_v53 = vpop.f32.mrf.mxu2 }
 0x342   : > { %v3360_v50 = vadd.f32 %v3359_v39, %v3311_v0 }
 0x344   : > { %v3409_v45 = vadd.f32 %v3408_v53, %v3360_v50 }
 0x345   : > { %v3457_v37 = vpop.f32.mrf.mxu3 }
 0x346   : > { %v3458_v46 = vadd.f32 %v3457_v37, %v3409_v45  ;;  %v3315_v52 = vpop.f32.mrf.mxu0 }
 0x347   : > { %v3316_v43 = vadd.f32 %v3315_v52, %v6067_v59 }
 0x348   : > { %3497 = vst [vmem:[%s6046_s7 + $0x28] sm:$0xff] %v3458_v46 }
 0x349   : > { %v3361_v36 = vpop.f32.mrf.mxu1  ;;  %v3410_v6 = vpop.f32.mrf.mxu2 }
 0x34a   : > { %v3362_v28 = vadd.f32 %v3361_v36, %v3313_v62 }
 0x34c   : > { %v3411_v30 = vadd.f32 %v3410_v6, %v3362_v28 }
 0x34d   : > { %v3459_v26 = vpop.f32.mrf.mxu3 }
 0x34e   : > { %v3460_v16 = vadd.f32 %v3459_v26, %v3411_v30  ;;  %v3317_v27 = vpop.f32.mrf.mxu0 }
 0x34f   : > { %v3318_v13 = vadd.f32 %v3317_v27, %v6075_v51 }
 0x350   : > { %3499 = vst [vmem:[%s6046_s7 + $0x38] sm:$0xff] %v3460_v16 }
 0x351   : > { %v3364_v42 = vpop.f32.mrf.mxu1  ;;  %v3413_v34 = vpop.f32.mrf.mxu2 }
 0x352   : > { %v3365_v49 = vadd.f32 %v3364_v42, %v3316_v43 }
 0x354   : > { %v3414_v19 = vadd.f32 %v3413_v34, %v3365_v49 }
 0x355   : > { %v3462_v1 = vpop.f32.mrf.mxu3 }
 0x356   : > { %v3463_v7 = vadd.f32 %v3462_v1, %v3414_v19  ;;  %v3320_v59 = vpop.f32.mrf.mxu0 }
 0x357   : > { %v3321_v40 = vadd.f32 %v3320_v59, %v6087_v9 }
 0x358   : > { %3501 = vst [vmem:[%s6046_s7 + $0x48] sm:$0xff] %v3463_v7 }
 0x359   : > { %v3366_v32 = vpop.f32.mrf.mxu1  ;;  %v3415_v18 = vpop.f32.mrf.mxu2 }
 0x35a   : > { %v3367_v35 = vadd.f32 %v3366_v32, %v3318_v13 }
 0x35c   : > { %v3416_v3 = vadd.f32 %v3415_v18, %v3367_v35 }
 0x35d   : > { %v3464_v60 = vpop.f32.mrf.mxu3 }
 0x35e   : > { %v3465_v2 = vadd.f32 %v3464_v60, %v3416_v3  ;;  %v3322_v51 = vpop.f32.mrf.mxu0 }
 0x35f   : > { %v3323_v10 = vadd.f32 %v3322_v51, %v6084_v11 }
 0x360   : > { %3503 = vst [vmem:[%s6046_s7 + $0x58] sm:$0xff] %v3465_v2 }
 0x361   : > { %v3369_v22 = vpop.f32.mrf.mxu1  ;;  %v3418_v4 = vpop.f32.mrf.mxu2 }
 0x362   : > { %v3370_v31 = vadd.f32 %v3369_v22, %v3321_v40 }
 0x364   : > { %v3419_v17 = vadd.f32 %v3418_v4, %v3370_v31 }
 0x365   : > { %v3467_v48 = vpop.f32.mrf.mxu3 }
 0x366   : > { %v3468_v15 = vadd.f32 %v3467_v48, %v3419_v17  ;;  %v3325_v9 = vpop.f32.mrf.mxu0 }
 0x367   : > { %v3326_v44 = vadd.f32 %v3325_v9, %v6098_v41 }
 0x368   : > { %3505 = vst [vmem:[%s6046_s7 + $0x68] sm:$0xff] %v3468_v15 }
 0x369   : > { %v3371_v55 = vpop.f32.mrf.mxu1  ;;  %v3420_v12 = vpop.f32.mrf.mxu2 }
 0x36a   : > { %v3372_v25 = vadd.f32 %v3371_v55, %v3323_v10 }
 0x36c   : > { %v3421_v29 = vadd.f32 %v3420_v12, %v3372_v25 }
 0x36d   : > { %v3469_v5 = vpop.f32.mrf.mxu3 }
 0x36e   : > { %v3470_v23 = vadd.f32 %v3469_v5, %v3421_v29  ;;  %v3327_v11 = vpop.f32.mrf.mxu0 }
 0x36f   : > { %v3328_v0 = vadd.f32 %v3327_v11, %v6096_v14 }
 0x370   : > { %3507 = vst [vmem:[%s6046_s7 + $0x78] sm:$0xff] %v3470_v23 }
 0x371   : > { %v3374_v54 = vpop.f32.mrf.mxu1  ;;  %v3423_v47 = vpop.f32.mrf.mxu2 }
 0x372   : > { %v3375_v56 = vadd.f32 %v3374_v54, %v3326_v44 }
 0x374   : > { %v3424_v57 = vadd.f32 %v3423_v47, %v3375_v56 }
 0x375   : > { %v3472_v21 = vpop.f32.mrf.mxu3 }
 0x376   : > { %v3473_v61 = vadd.f32 %v3472_v21, %v3424_v57  ;;  %v3330_v41 = vpop.f32.mrf.mxu0 }
 0x377   : > { %v3331_v63 = vadd.f32 %v3330_v41, %v6111_v24 }
 0x378   : > { %3509 = vst [vmem:[%s6046_s7 + $0x88] sm:$0xff] %v3473_v61 }
 0x379   : > { %v3376_v39 = vpop.f32.mrf.mxu1  ;;  %v3425_v53 = vpop.f32.mrf.mxu2 }
 0x37a   : > { %v3377_v50 = vadd.f32 %v3376_v39, %v3328_v0 }
 0x37c   : > { %v3426_v45 = vadd.f32 %v3425_v53, %v3377_v50 }
 0x37d   : > { %v3474_v37 = vpop.f32.mrf.mxu3 }
 0x37e   : > { %v3475_v46 = vadd.f32 %v3474_v37, %v3426_v45  ;;  %v3332_v14 = vpop.f32.mrf.mxu0 }
 0x37f   : > { %v3333_v16 = vadd.f32 %v3332_v14, %v6108_v58 }
 0x380   : > { %3511 = vst [vmem:[%s6046_s7 + $0x98] sm:$0xff] %v3475_v46 }
 0x381   : > { %v3379_v62 = vpop.f32.mrf.mxu1  ;;  %v3428_v28 = vpop.f32.mrf.mxu2 }
 0x382   : > { %v3380_v36 = vadd.f32 %v3379_v62, %v3331_v63 }
 0x384   : > { %v3429_v6 = vadd.f32 %v3428_v28, %v3380_v36 }
 0x385   : > { %v3477_v30 = vpop.f32.mrf.mxu3 }
 0x386   : > { %v3478_v26 = vadd.f32 %v3477_v30, %v3429_v6  ;;  %v3335_v24 = vpop.f32.mrf.mxu0 }
 0x387   : > { %v3336_v1 = vadd.f32 %v3335_v24, %v6122_v38 }
 0x388   : > { %3513 = vst [vmem:[%s6046_s7 + $0xa8] sm:$0xff] %v3478_v26 }
 0x389   : > { %v3381_v52 = vpop.f32.mrf.mxu1  ;;  %v3430_v42 = vpop.f32.mrf.mxu2 }
 0x38a   : > { %v3382_v43 = vadd.f32 %v3381_v52, %v3333_v16 }
 0x38c   : > { %v3431_v49 = vadd.f32 %v3430_v42, %v3382_v43 }
 0x38d   : > { %v3479_v34 = vpop.f32.mrf.mxu3 }
 0x38e   : > { %v3480_v19 = vadd.f32 %v3479_v34, %v3431_v49  ;;  %v3337_v58 = vpop.f32.mrf.mxu0 }
 0x38f   : > { %v3338_v3 = vadd.f32 %v3337_v58, %v6120_v33 }
 0x390   : > { %3515 = vst [vmem:[%s6046_s7 + $0xb8] sm:$0xff] %v3480_v19 }
 0x391   : > { %v3384_v7 = vpop.f32.mrf.mxu1  ;;  %v3433_v13 = vpop.f32.mrf.mxu2 }
 0x392   : > { %v3385_v27 = vadd.f32 %v3384_v7, %v3336_v1 }
 0x394   : > { %v3434_v32 = vadd.f32 %v3433_v13, %v3385_v27 }
 0x395   : > { %v3482_v35 = vpop.f32.mrf.mxu3 }
 0x396   : > { %v3483_v18 = vadd.f32 %v3482_v35, %v3434_v32  ;;  %v3340_v38 = vpop.f32.mrf.mxu0 }
 0x397   : > { %v3341_v4 = vadd.f32 %v3340_v38, %v6132_v20 }
 0x398   : > { %3517 = vst [vmem:[%s6046_s7 + $0xc8] sm:$0xff] %v3483_v18 }
 0x399   : > { %v3386_v60 = vpop.f32.mrf.mxu1  ;;  %v3435_v59 = vpop.f32.mrf.mxu2 }
 0x39a   : > { %v3387_v2 = vadd.f32 %v3386_v60, %v3338_v3 }
 0x39c   : > { %v3436_v40 = vadd.f32 %v3435_v59, %v3387_v2 }
 0x39d   : > { %v3484_v22 = vpop.f32.mrf.mxu3 }
 0x39e   : > { %v3485_v31 = vadd.f32 %v3484_v22, %v3436_v40  ;;  %v3342_v33 = vpop.f32.mrf.mxu0 }
 0x39f   : > { %v3343_v25 = vadd.f32 %v3342_v33, %v6134_v8 }
 0x3a0   : > { %3519 = vst [vmem:[%s6046_s7 + $0xd8] sm:$0xff] %v3485_v31 }
 0x3a1   : > { %v3389_v17 = vpop.f32.mrf.mxu1  ;;  %v3438_v15 = vpop.f32.mrf.mxu2 }
 0x3a2   : > { %v3390_v48 = vadd.f32 %v3389_v17, %v3341_v4 }
 0x3a4   : > { %v3439_v51 = vadd.f32 %v3438_v15, %v3390_v48 }
 0x3a5   : > { %v3487_v10 = vpop.f32.mrf.mxu3 }
 0x3a6   : > { %v3488_v55 = vadd.f32 %v3487_v10, %v3439_v51 }
 0x3a8   : > { %3521 = vst [vmem:[%s6046_s7 + $0xe8] sm:$0xff] %v3488_v55 }
 0x3a9   : > { %v3391_v12 = vpop.f32.mrf.mxu1  ;;  %v3440_v5 = vpop.f32.mrf.mxu2 }
 0x3aa   : > { %v3392_v29 = vadd.f32 %v3391_v12, %v3343_v25 }
 0x3ac   : > { %v3441_v23 = vadd.f32 %v3440_v5, %v3392_v29 }
 0x3ad   : > { %v3489_v9 = vpop.f32.mrf.mxu3 }
 0x3ae   : > { %v3490_v44 = vadd.f32 %v3489_v9, %v3441_v23 }
 0x3b0   : > { %3523 = vst [vmem:[%s6046_s7 + $0xf8] sm:$0xff] %v3490_v44 }
 0x3b1 PF: > { %s15_s20 = sadd.s32 1, %s4666_s20   ;;  %s6187_s18 = smov %s4662_s19 }
 0x3b2   : > { %p12_p5 = scmp.ge.s32.totalorder %s15_s20, 4   ;;  %s6188_s19 = smov %s6190_s21 }
 0x3b4   :  { %14 = sbr.rel (!%p12_p5) target bundleno = 2 (0x2), region = 70 }

</bundles_post_ra>
